<compile_context>
chip_gen: v6e
topology: v6e:2x2x1
jax: 0.10.0
libtpu: 0.0.40
codegen_flags: <defaults>
</compile_context>

<pallas_src>
import functools

import jax
import jax.numpy as jnp
from jax.experimental import pallas as pl
from jax.experimental.pallas import tpu as pltpu


def _conv_block_kernel(*refs, Qp, margin, chans, slope):
    """Fused ConvBlock forward for one grid step (NB images).

    refs layout (positional, as passed by pallas_call):
      x    : (1, cin0, L)      f32  -- halo / lane padding already zero
      mask : (1, L)            f32  -- 1.0 on interior pixels, else 0.0
      w_l  : (9*cout_l, cin_l) bf16 -- row t*cout+co = W[dy, dx, :, co], t=3*dy+dx
      b_l  : (cout_l, 1)       f32
      out  : (1, cout_last, L) f32  -- lane-dense store (halo lanes = garbage)
    """
    n_layers = len(chans) - 1
    x_ref, mask_ref = refs[0], refs[1]
    wb = refs[2:2 + 2 * n_layers]
    o_ref = refs[2 + 2 * n_layers]

    L = x_ref.shape[-1]                                   # NB * SPAD lanes
    mask = mask_ref[...]                                  # (1, L)

    a = x_ref[0].astype(jnp.bfloat16)                     # (cin0, L)
    for l in range(n_layers):
        w_ref, b_ref = wb[2 * l], wb[2 * l + 1]
        cout = chans[l + 1]
        last = (l == n_layers - 1)

        # Zero margins make every tap shift an in-bounds static lane slice.
        zpad = jnp.zeros((a.shape[0], margin), a.dtype)
        aw = jnp.concatenate([zpad, a, zpad], axis=1)     # (cin, L + 2*margin)

        acc = None
        for dy in range(3):
            for dx in range(3):
                t = 3 * dy + dx
                d = (dy - 1) * Qp + (dx - 1)              # tap source offset
                a_sh = aw[:, margin + d: margin + d + L]  # a_sh[:, s] = a[:, s+d]
                w_t = w_ref[t * cout:(t + 1) * cout, :]   # (cout, cin) bf16
                p = jnp.dot(w_t, a_sh, preferred_element_type=jnp.float32)
                acc = p if acc is None else acc + p       # f32 accumulation
        acc = acc + b_ref[...]                            # (cout, 1) lane bcast

        if not last:
            acc = jnp.maximum(acc, slope * acc)           # LeakyReLU(0.01)
            a = (acc * mask).astype(jnp.bfloat16)         # re-zero halo => pad=1
        else:
            o_ref[0] = acc.astype(o_ref.dtype)            # (cout, L) lane-dense


def _num_grid_steps(n_batch):
    """v7x has two TensorCores -> 2 'parallel' grid steps; v5e/v6e are
    single-TC, so fold the whole batch into one step (per perf review)."""
    kind = ""
    try:
        kind = jax.devices()[0].device_kind.lower()
    except Exception:
        pass
    if "v7" in kind and n_batch >= 2 and n_batch % 2 == 0:
        return 2
    return 1


def conv_block_pallas(x_nchw, params, *, slope=0.01):
    """Fused ConvBlock forward. Input/output NCHW to match PyTorch."""
    N, Cin, H, W = x_nchw.shape
    couts = [w.shape[-1] for (w, _) in params]
    cout_last = couts[-1]

    P, Qp = H + 2, W + 2                    # zero-padded spatial grid
    S = P * Qp
    spad = pl.cdiv(S, 128) * 128            # lane-tile aligned slot per image
    cin0 = max(Cin, 8)                      # pad input channels (sublane dim)
    margin = pl.cdiv(Qp + 1, 128) * 128     # covers the max |tap shift|

    G = _num_grid_steps(N)
    NB = N // G
    L = NB * spad
    # TODO(synk): for large H*W or large per-step batch, row-tile the image
    # (1-row halo) so the (C, L) activations stay within VMEM (64 MiB on v7x).

    # Input: NCHW -> zero-padded, flattened, channel-major (G, cin0, NB*spad).
    xp = jnp.pad(x_nchw.astype(jnp.float32),
                 ((0, 0), (0, cin0 - Cin), (1, 1), (1, 1)))      # (N,cin0,P,Qp)
    xf = jnp.pad(xp.reshape(N, cin0, S), ((0, 0), (0, 0), (0, spad - S)))
    xf = xf.reshape(G, NB, cin0, spad).transpose(0, 2, 1, 3).reshape(G, cin0, L)

    # Interior mask: 1.0 on valid output pixels, 0.0 on halo / lane padding.
    s = jnp.arange(L, dtype=jnp.int32) % spad
    r, c = s // Qp, s % Qp
    mask = (((r >= 1) & (r <= H) & (c >= 1) & (c <= W))
            .astype(jnp.float32))[None, :]                        # (1, L)

    flat_inputs = [xf, mask]
    in_specs = [pl.BlockSpec((1, cin0, L), lambda g: (g, 0, 0)),
                pl.BlockSpec((1, L), lambda g: (0, 0))]
    chans = [cin0]
    for li, (w, b) in enumerate(params):
        cin, cout = w.shape[2], w.shape[3]
        cin_p = cin0 if li == 0 else cin
        # HWIO (3,3,cin,cout) -> (9*cout, cin_p); row t*cout+co = W[dy,dx,:,co].
        wt = jnp.transpose(w, (0, 1, 3, 2)).reshape(9 * cout, cin)
        wt = jnp.pad(wt, ((0, 0), (0, cin_p - cin))).astype(jnp.bfloat16)
        flat_inputs += [wt, b.reshape(cout, 1).astype(jnp.float32)]
        # Constant block indices -> weights/biases loaded once per grid run.
        in_specs += [pl.BlockSpec((9 * cout, cin_p), lambda g: (0, 0)),
                     pl.BlockSpec((cout, 1), lambda g: (0, 0))]
        chans.append(cout)

    kernel = functools.partial(_conv_block_kernel, Qp=Qp, margin=margin,
                               chans=tuple(chans), slope=slope)

    out = pl.pallas_call(
        kernel,
        out_shape=jax.ShapeDtypeStruct((G, cout_last, L), jnp.float32),
        grid_spec=pltpu.PrefetchScalarGridSpec(
            num_scalar_prefetch=0,
            grid=(G,),
            in_specs=in_specs,
            out_specs=pl.BlockSpec((1, cout_last, L), lambda g: (g, 0, 0)),
        ),
        compiler_params=pltpu.CompilerParams(
            dimension_semantics=("parallel",)),
    )(*flat_inputs)

    # (G, cout, NB*spad) -> NCHW: tiny reshapes + interior slice only.
    out = (out.reshape(G, cout_last, NB, spad).transpose(0, 2, 1, 3)
              .reshape(N, cout_last, spad)[:, :, :S]
              .reshape(N, cout_last, P, Qp)[:, :, 1:H + 1, 1:W + 1])
    return out


def init_conv_block_params(key, n_convs=5, n_filters=48, in_chans=2, out_chans=2):
    """Deterministic synthetic parameters matching nn.Conv2d shapes (HWIO)."""
    chans = [in_chans] + [n_filters] * (n_convs - 1) + [out_chans]
    params = []
    for i in range(n_convs):
        cin, cout = chans[i], chans[i + 1]
        key, kw, kb = jax.random.split(key, 3)
        std = (2.0 / (cin * 9)) ** 0.5
        w = jax.random.normal(kw, (3, 3, cin, cout), jnp.float32) * std
        b = jax.random.normal(kb, (cout,), jnp.float32) * 0.01
        params.append((w, b))
    return params


def _reference_forward(x_nchw, params):
    """Plain-JAX reference (lax conv, f32-accurate) for correctness check."""
    x = jnp.transpose(x_nchw, (0, 2, 3, 1))
    n = len(params)
    for i, (w, b) in enumerate(params):
        y = jax.lax.conv_general_dilated(
            x, w, window_strides=(1, 1), padding="SAME",
            dimension_numbers=("NHWC", "HWIO", "NHWC"),
            precision=jax.lax.Precision.HIGHEST)
        y = y + b[None, None, None, :]
        if i < n - 1:
            y = jnp.where(y > 0, y, 0.01 * y)
        x = y
    return jnp.transpose(x, (0, 3, 1, 2))


if __name__ == "__main__":
    key = jax.random.PRNGKey(0)
    k_x, k_p = jax.random.split(key)

    # Small shapes consistent with the module: batch=2, in_chans=2, spatial=16.
    x = jax.random.normal(k_x, (2, 2, 16, 16), jnp.float32)
    params = init_conv_block_params(k_p, n_convs=5, n_filters=48,
                                    in_chans=2, out_chans=2)

    out = jax.block_until_ready(conv_block_pallas(x, params))
    ref = jax.block_until_ready(_reference_forward(x, params))

    assert out.shape == (2, 2, 16, 16), out.shape
    # bf16 MXU operands (per perf review) -> relaxed tolerance vs the f32 ref;
    # observed error is typically ~1e-2 across the 5-layer chain.
    max_err = float(jnp.max(jnp.abs(out - ref)))
    assert jnp.allclose(out, ref, atol=1e-1, rtol=1e-1), max_err

    print("KERNEL_OK")
</pallas_src>

<mosaic_0001>
module attributes {stable_mosaic.version = 11 : i64} {
  func.func @_conv_block_kernel(%arg0: i32, %arg1: memref<1x8x768xf32, #tpu.memory_space<vmem>>, %arg2: memref<1x768xf32, #tpu.memory_space<vmem>>, %arg3: memref<432x8xbf16, #tpu.memory_space<vmem>>, %arg4: memref<48x1xf32, #tpu.memory_space<vmem>>, %arg5: memref<432x48xbf16, #tpu.memory_space<vmem>>, %arg6: memref<48x1xf32, #tpu.memory_space<vmem>>, %arg7: memref<432x48xbf16, #tpu.memory_space<vmem>>, %arg8: memref<48x1xf32, #tpu.memory_space<vmem>>, %arg9: memref<432x48xbf16, #tpu.memory_space<vmem>>, %arg10: memref<48x1xf32, #tpu.memory_space<vmem>>, %arg11: memref<18x48xbf16, #tpu.memory_space<vmem>>, %arg12: memref<2x1xf32, #tpu.memory_space<vmem>>, %arg13: memref<1x2x768xf32, #tpu.memory_space<vmem>>) attributes {dimension_semantics = [#tpu.dimension_semantics<parallel>], iteration_bounds = array<i64: 1>, scalar_prefetch = 0 : i64, scratch_operands = 0 : i64, tpu.core_type = #tpu.core_type<tc>, window_params = [{transform_indices = @transform_0, window_bounds = array<i64: 1, 8, 768>}, {pipeline_mode = #tpu.pipeline_mode<synchronous>, transform_indices = @transform_1, window_bounds = array<i64: 1, 768>}, {pipeline_mode = #tpu.pipeline_mode<synchronous>, transform_indices = @transform_2, window_bounds = array<i64: 432, 8>}, {pipeline_mode = #tpu.pipeline_mode<synchronous>, transform_indices = @transform_3, window_bounds = array<i64: 48, 1>}, {pipeline_mode = #tpu.pipeline_mode<synchronous>, transform_indices = @transform_4, window_bounds = array<i64: 432, 48>}, {pipeline_mode = #tpu.pipeline_mode<synchronous>, transform_indices = @transform_5, window_bounds = array<i64: 48, 1>}, {pipeline_mode = #tpu.pipeline_mode<synchronous>, transform_indices = @transform_6, window_bounds = array<i64: 432, 48>}, {pipeline_mode = #tpu.pipeline_mode<synchronous>, transform_indices = @transform_7, window_bounds = array<i64: 48, 1>}, {pipeline_mode = #tpu.pipeline_mode<synchronous>, transform_indices = @transform_8, window_bounds = array<i64: 432, 48>}, {pipeline_mode = #tpu.pipeline_mode<synchronous>, transform_indices = @transform_9, window_bounds = array<i64: 48, 1>}, {pipeline_mode = #tpu.pipeline_mode<synchronous>, transform_indices = @transform_10, window_bounds = array<i64: 18, 48>}, {pipeline_mode = #tpu.pipeline_mode<synchronous>, transform_indices = @transform_11, window_bounds = array<i64: 2, 1>}, {transform_indices = @transform_12, window_bounds = array<i64: 1, 2, 768>}]} {
    %c0 = arith.constant 0 : index
    %c0_0 = arith.constant 0 : index
    %0 = vector.load %arg2[%c0, %c0_0] : memref<1x768xf32, #tpu.memory_space<vmem>>, vector<1x768xf32>
    %c0_1 = arith.constant 0 : index
    %c0_2 = arith.constant 0 : index
    %c0_3 = arith.constant 0 : index
    %1 = vector.load %arg1[%c0_1, %c0_2, %c0_3] : memref<1x8x768xf32, #tpu.memory_space<vmem>>, vector<1x8x768xf32>
    %2 = vector.shape_cast %1 : vector<1x8x768xf32> to vector<8x768xf32>
    %3 = arith.truncf %2 : vector<8x768xf32> to vector<8x768xbf16>
    %cst = arith.constant 0.000000e+00 : bf16
    %4 = vector.broadcast %cst : bf16 to vector<8x128xbf16>
    %5 = tpu.concatenate %4, %3, %4 in 1 : vector<8x128xbf16>, vector<8x768xbf16>, vector<8x128xbf16> -> vector<8x1024xbf16>
    %6 = vector.extract_strided_slice %5 {offsets = [0, 109], sizes = [8, 768], strides = [1, 1]} : vector<8x1024xbf16> to vector<8x768xbf16>
    %c0_4 = arith.constant 0 : index
    %c0_5 = arith.constant 0 : index
    %7 = vector.load %arg3[%c0_4, %c0_5] : memref<432x8xbf16, #tpu.memory_space<vmem>>, vector<48x8xbf16>
    %cst_6 = arith.constant dense<0.000000e+00> : vector<48x768xf32>
    %8 = tpu.matmul %7, %6, %cst_6 {dimension_numbers = #tpu.dot_dimension_numbers<[1], [0], [0], [1], [0, 0, 1, 1], [], []>} : vector<48x8xbf16>, vector<8x768xbf16>, vector<48x768xf32> -> vector<48x768xf32>
    %9 = vector.extract_strided_slice %5 {offsets = [0, 110], sizes = [8, 768], strides = [1, 1]} : vector<8x1024xbf16> to vector<8x768xbf16>
    %c48 = arith.constant 48 : index
    %c0_7 = arith.constant 0 : index
    %10 = vector.load %arg3[%c48, %c0_7] : memref<432x8xbf16, #tpu.memory_space<vmem>>, vector<48x8xbf16>
    %cst_8 = arith.constant dense<0.000000e+00> : vector<48x768xf32>
    %11 = tpu.matmul %10, %9, %cst_8 {dimension_numbers = #tpu.dot_dimension_numbers<[1], [0], [0], [1], [0, 0, 1, 1], [], []>} : vector<48x8xbf16>, vector<8x768xbf16>, vector<48x768xf32> -> vector<48x768xf32>
    %12 = arith.addf %8, %11 : vector<48x768xf32>
    %13 = vector.extract_strided_slice %5 {offsets = [0, 111], sizes = [8, 768], strides = [1, 1]} : vector<8x1024xbf16> to vector<8x768xbf16>
    %c96 = arith.constant 96 : index
    %c0_9 = arith.constant 0 : index
    %14 = vector.load %arg3[%c96, %c0_9] : memref<432x8xbf16, #tpu.memory_space<vmem>>, vector<48x8xbf16>
    %cst_10 = arith.constant dense<0.000000e+00> : vector<48x768xf32>
    %15 = tpu.matmul %14, %13, %cst_10 {dimension_numbers = #tpu.dot_dimension_numbers<[1], [0], [0], [1], [0, 0, 1, 1], [], []>} : vector<48x8xbf16>, vector<8x768xbf16>, vector<48x768xf32> -> vector<48x768xf32>
    %16 = arith.addf %12, %15 : vector<48x768xf32>
    %17 = vector.extract_strided_slice %5 {offsets = [0, 127], sizes = [8, 768], strides = [1, 1]} : vector<8x1024xbf16> to vector<8x768xbf16>
    %c144 = arith.constant 144 : index
    %c0_11 = arith.constant 0 : index
    %18 = vector.load %arg3[%c144, %c0_11] : memref<432x8xbf16, #tpu.memory_space<vmem>>, vector<48x8xbf16>
    %cst_12 = arith.constant dense<0.000000e+00> : vector<48x768xf32>
    %19 = tpu.matmul %18, %17, %cst_12 {dimension_numbers = #tpu.dot_dimension_numbers<[1], [0], [0], [1], [0, 0, 1, 1], [], []>} : vector<48x8xbf16>, vector<8x768xbf16>, vector<48x768xf32> -> vector<48x768xf32>
    %20 = arith.addf %16, %19 : vector<48x768xf32>
    %21 = vector.extract_strided_slice %5 {offsets = [0, 128], sizes = [8, 768], strides = [1, 1]} : vector<8x1024xbf16> to vector<8x768xbf16>
    %c192 = arith.constant 192 : index
    %c0_13 = arith.constant 0 : index
    %22 = vector.load %arg3[%c192, %c0_13] : memref<432x8xbf16, #tpu.memory_space<vmem>>, vector<48x8xbf16>
    %cst_14 = arith.constant dense<0.000000e+00> : vector<48x768xf32>
    %23 = tpu.matmul %22, %21, %cst_14 {dimension_numbers = #tpu.dot_dimension_numbers<[1], [0], [0], [1], [0, 0, 1, 1], [], []>} : vector<48x8xbf16>, vector<8x768xbf16>, vector<48x768xf32> -> vector<48x768xf32>
    %24 = arith.addf %20, %23 : vector<48x768xf32>
    %25 = vector.extract_strided_slice %5 {offsets = [0, 129], sizes = [8, 768], strides = [1, 1]} : vector<8x1024xbf16> to vector<8x768xbf16>
    %c240 = arith.constant 240 : index
    %c0_15 = arith.constant 0 : index
    %26 = vector.load %arg3[%c240, %c0_15] : memref<432x8xbf16, #tpu.memory_space<vmem>>, vector<48x8xbf16>
    %cst_16 = arith.constant dense<0.000000e+00> : vector<48x768xf32>
    %27 = tpu.matmul %26, %25, %cst_16 {dimension_numbers = #tpu.dot_dimension_numbers<[1], [0], [0], [1], [0, 0, 1, 1], [], []>} : vector<48x8xbf16>, vector<8x768xbf16>, vector<48x768xf32> -> vector<48x768xf32>
    %28 = arith.addf %24, %27 : vector<48x768xf32>
    %29 = vector.extract_strided_slice %5 {offsets = [0, 145], sizes = [8, 768], strides = [1, 1]} : vector<8x1024xbf16> to vector<8x768xbf16>
    %c288 = arith.constant 288 : index
    %c0_17 = arith.constant 0 : index
    %30 = vector.load %arg3[%c288, %c0_17] : memref<432x8xbf16, #tpu.memory_space<vmem>>, vector<48x8xbf16>
    %cst_18 = arith.constant dense<0.000000e+00> : vector<48x768xf32>
    %31 = tpu.matmul %30, %29, %cst_18 {dimension_numbers = #tpu.dot_dimension_numbers<[1], [0], [0], [1], [0, 0, 1, 1], [], []>} : vector<48x8xbf16>, vector<8x768xbf16>, vector<48x768xf32> -> vector<48x768xf32>
    %32 = arith.addf %28, %31 : vector<48x768xf32>
    %33 = vector.extract_strided_slice %5 {offsets = [0, 146], sizes = [8, 768], strides = [1, 1]} : vector<8x1024xbf16> to vector<8x768xbf16>
    %c336 = arith.constant 336 : index
    %c0_19 = arith.constant 0 : index
    %34 = vector.load %arg3[%c336, %c0_19] : memref<432x8xbf16, #tpu.memory_space<vmem>>, vector<48x8xbf16>
    %cst_20 = arith.constant dense<0.000000e+00> : vector<48x768xf32>
    %35 = tpu.matmul %34, %33, %cst_20 {dimension_numbers = #tpu.dot_dimension_numbers<[1], [0], [0], [1], [0, 0, 1, 1], [], []>} : vector<48x8xbf16>, vector<8x768xbf16>, vector<48x768xf32> -> vector<48x768xf32>
    %36 = arith.addf %32, %35 : vector<48x768xf32>
    %37 = vector.extract_strided_slice %5 {offsets = [0, 147], sizes = [8, 768], strides = [1, 1]} : vector<8x1024xbf16> to vector<8x768xbf16>
    %c384 = arith.constant 384 : index
    %c0_21 = arith.constant 0 : index
    %38 = vector.load %arg3[%c384, %c0_21] : memref<432x8xbf16, #tpu.memory_space<vmem>>, vector<48x8xbf16>
    %cst_22 = arith.constant dense<0.000000e+00> : vector<48x768xf32>
    %39 = tpu.matmul %38, %37, %cst_22 {dimension_numbers = #tpu.dot_dimension_numbers<[1], [0], [0], [1], [0, 0, 1, 1], [], []>} : vector<48x8xbf16>, vector<8x768xbf16>, vector<48x768xf32> -> vector<48x768xf32>
    %40 = arith.addf %36, %39 : vector<48x768xf32>
    %c0_23 = arith.constant 0 : index
    %c0_24 = arith.constant 0 : index
    %41 = vector.load %arg4[%c0_23, %c0_24] : memref<48x1xf32, #tpu.memory_space<vmem>>, vector<48x1xf32>
    %42 = vector.broadcast %41 : vector<48x1xf32> to vector<48x768xf32>
    %43 = arith.addf %40, %42 : vector<48x768xf32>
    %cst_25 = arith.constant 0.00999999977 : f32
    %44 = vector.broadcast %cst_25 : f32 to vector<48x768xf32>
    %45 = arith.mulf %44, %43 : vector<48x768xf32>
    %46 = arith.maximumf %43, %45 : vector<48x768xf32>
    %47 = vector.broadcast %0 : vector<1x768xf32> to vector<48x768xf32>
    %48 = arith.mulf %46, %47 : vector<48x768xf32>
    %49 = arith.truncf %48 : vector<48x768xf32> to vector<48x768xbf16>
    %cst_26 = arith.constant 0.000000e+00 : bf16
    %50 = vector.broadcast %cst_26 : bf16 to vector<48x128xbf16>
    %51 = tpu.concatenate %50, %49, %50 in 1 : vector<48x128xbf16>, vector<48x768xbf16>, vector<48x128xbf16> -> vector<48x1024xbf16>
    %52 = vector.extract_strided_slice %51 {offsets = [0, 109], sizes = [48, 768], strides = [1, 1]} : vector<48x1024xbf16> to vector<48x768xbf16>
    %c0_27 = arith.constant 0 : index
    %c0_28 = arith.constant 0 : index
    %53 = vector.load %arg5[%c0_27, %c0_28] : memref<432x48xbf16, #tpu.memory_space<vmem>>, vector<48x48xbf16>
    %cst_29 = arith.constant dense<0.000000e+00> : vector<48x768xf32>
    %54 = tpu.matmul %53, %52, %cst_29 {dimension_numbers = #tpu.dot_dimension_numbers<[1], [0], [0], [1], [0, 0, 1, 1], [], []>} : vector<48x48xbf16>, vector<48x768xbf16>, vector<48x768xf32> -> vector<48x768xf32>
    %55 = vector.extract_strided_slice %51 {offsets = [0, 110], sizes = [48, 768], strides = [1, 1]} : vector<48x1024xbf16> to vector<48x768xbf16>
    %c48_30 = arith.constant 48 : index
    %c0_31 = arith.constant 0 : index
    %56 = vector.load %arg5[%c48_30, %c0_31] : memref<432x48xbf16, #tpu.memory_space<vmem>>, vector<48x48xbf16>
    %cst_32 = arith.constant dense<0.000000e+00> : vector<48x768xf32>
    %57 = tpu.matmul %56, %55, %cst_32 {dimension_numbers = #tpu.dot_dimension_numbers<[1], [0], [0], [1], [0, 0, 1, 1], [], []>} : vector<48x48xbf16>, vector<48x768xbf16>, vector<48x768xf32> -> vector<48x768xf32>
    %58 = arith.addf %54, %57 : vector<48x768xf32>
    %59 = vector.extract_strided_slice %51 {offsets = [0, 111], sizes = [48, 768], strides = [1, 1]} : vector<48x1024xbf16> to vector<48x768xbf16>
    %c96_33 = arith.constant 96 : index
    %c0_34 = arith.constant 0 : index
    %60 = vector.load %arg5[%c96_33, %c0_34] : memref<432x48xbf16, #tpu.memory_space<vmem>>, vector<48x48xbf16>
    %cst_35 = arith.constant dense<0.000000e+00> : vector<48x768xf32>
    %61 = tpu.matmul %60, %59, %cst_35 {dimension_numbers = #tpu.dot_dimension_numbers<[1], [0], [0], [1], [0, 0, 1, 1], [], []>} : vector<48x48xbf16>, vector<48x768xbf16>, vector<48x768xf32> -> vector<48x768xf32>
    %62 = arith.addf %58, %61 : vector<48x768xf32>
    %63 = vector.extract_strided_slice %51 {offsets = [0, 127], sizes = [48, 768], strides = [1, 1]} : vector<48x1024xbf16> to vector<48x768xbf16>
    %c144_36 = arith.constant 144 : index
    %c0_37 = arith.constant 0 : index
    %64 = vector.load %arg5[%c144_36, %c0_37] : memref<432x48xbf16, #tpu.memory_space<vmem>>, vector<48x48xbf16>
    %cst_38 = arith.constant dense<0.000000e+00> : vector<48x768xf32>
    %65 = tpu.matmul %64, %63, %cst_38 {dimension_numbers = #tpu.dot_dimension_numbers<[1], [0], [0], [1], [0, 0, 1, 1], [], []>} : vector<48x48xbf16>, vector<48x768xbf16>, vector<48x768xf32> -> vector<48x768xf32>
    %66 = arith.addf %62, %65 : vector<48x768xf32>
    %67 = vector.extract_strided_slice %51 {offsets = [0, 128], sizes = [48, 768], strides = [1, 1]} : vector<48x1024xbf16> to vector<48x768xbf16>
    %c192_39 = arith.constant 192 : index
    %c0_40 = arith.constant 0 : index
    %68 = vector.load %arg5[%c192_39, %c0_40] : memref<432x48xbf16, #tpu.memory_space<vmem>>, vector<48x48xbf16>
    %cst_41 = arith.constant dense<0.000000e+00> : vector<48x768xf32>
    %69 = tpu.matmul %68, %67, %cst_41 {dimension_numbers = #tpu.dot_dimension_numbers<[1], [0], [0], [1], [0, 0, 1, 1], [], []>} : vector<48x48xbf16>, vector<48x768xbf16>, vector<48x768xf32> -> vector<48x768xf32>
    %70 = arith.addf %66, %69 : vector<48x768xf32>
    %71 = vector.extract_strided_slice %51 {offsets = [0, 129], sizes = [48, 768], strides = [1, 1]} : vector<48x1024xbf16> to vector<48x768xbf16>
    %c240_42 = arith.constant 240 : index
    %c0_43 = arith.constant 0 : index
    %72 = vector.load %arg5[%c240_42, %c0_43] : memref<432x48xbf16, #tpu.memory_space<vmem>>, vector<48x48xbf16>
    %cst_44 = arith.constant dense<0.000000e+00> : vector<48x768xf32>
    %73 = tpu.matmul %72, %71, %cst_44 {dimension_numbers = #tpu.dot_dimension_numbers<[1], [0], [0], [1], [0, 0, 1, 1], [], []>} : vector<48x48xbf16>, vector<48x768xbf16>, vector<48x768xf32> -> vector<48x768xf32>
    %74 = arith.addf %70, %73 : vector<48x768xf32>
    %75 = vector.extract_strided_slice %51 {offsets = [0, 145], sizes = [48, 768], strides = [1, 1]} : vector<48x1024xbf16> to vector<48x768xbf16>
    %c288_45 = arith.constant 288 : index
    %c0_46 = arith.constant 0 : index
    %76 = vector.load %arg5[%c288_45, %c0_46] : memref<432x48xbf16, #tpu.memory_space<vmem>>, vector<48x48xbf16>
    %cst_47 = arith.constant dense<0.000000e+00> : vector<48x768xf32>
    %77 = tpu.matmul %76, %75, %cst_47 {dimension_numbers = #tpu.dot_dimension_numbers<[1], [0], [0], [1], [0, 0, 1, 1], [], []>} : vector<48x48xbf16>, vector<48x768xbf16>, vector<48x768xf32> -> vector<48x768xf32>
    %78 = arith.addf %74, %77 : vector<48x768xf32>
    %79 = vector.extract_strided_slice %51 {offsets = [0, 146], sizes = [48, 768], strides = [1, 1]} : vector<48x1024xbf16> to vector<48x768xbf16>
    %c336_48 = arith.constant 336 : index
    %c0_49 = arith.constant 0 : index
    %80 = vector.load %arg5[%c336_48, %c0_49] : memref<432x48xbf16, #tpu.memory_space<vmem>>, vector<48x48xbf16>
    %cst_50 = arith.constant dense<0.000000e+00> : vector<48x768xf32>
    %81 = tpu.matmul %80, %79, %cst_50 {dimension_numbers = #tpu.dot_dimension_numbers<[1], [0], [0], [1], [0, 0, 1, 1], [], []>} : vector<48x48xbf16>, vector<48x768xbf16>, vector<48x768xf32> -> vector<48x768xf32>
    %82 = arith.addf %78, %81 : vector<48x768xf32>
    %83 = vector.extract_strided_slice %51 {offsets = [0, 147], sizes = [48, 768], strides = [1, 1]} : vector<48x1024xbf16> to vector<48x768xbf16>
    %c384_51 = arith.constant 384 : index
    %c0_52 = arith.constant 0 : index
    %84 = vector.load %arg5[%c384_51, %c0_52] : memref<432x48xbf16, #tpu.memory_space<vmem>>, vector<48x48xbf16>
    %cst_53 = arith.constant dense<0.000000e+00> : vector<48x768xf32>
    %85 = tpu.matmul %84, %83, %cst_53 {dimension_numbers = #tpu.dot_dimension_numbers<[1], [0], [0], [1], [0, 0, 1, 1], [], []>} : vector<48x48xbf16>, vector<48x768xbf16>, vector<48x768xf32> -> vector<48x768xf32>
    %86 = arith.addf %82, %85 : vector<48x768xf32>
    %c0_54 = arith.constant 0 : index
    %c0_55 = arith.constant 0 : index
    %87 = vector.load %arg6[%c0_54, %c0_55] : memref<48x1xf32, #tpu.memory_space<vmem>>, vector<48x1xf32>
    %88 = vector.broadcast %87 : vector<48x1xf32> to vector<48x768xf32>
    %89 = arith.addf %86, %88 : vector<48x768xf32>
    %cst_56 = arith.constant 0.00999999977 : f32
    %90 = vector.broadcast %cst_56 : f32 to vector<48x768xf32>
    %91 = arith.mulf %90, %89 : vector<48x768xf32>
    %92 = arith.maximumf %89, %91 : vector<48x768xf32>
    %93 = vector.broadcast %0 : vector<1x768xf32> to vector<48x768xf32>
    %94 = arith.mulf %92, %93 : vector<48x768xf32>
    %95 = arith.truncf %94 : vector<48x768xf32> to vector<48x768xbf16>
    %cst_57 = arith.constant 0.000000e+00 : bf16
    %96 = vector.broadcast %cst_57 : bf16 to vector<48x128xbf16>
    %97 = tpu.concatenate %96, %95, %96 in 1 : vector<48x128xbf16>, vector<48x768xbf16>, vector<48x128xbf16> -> vector<48x1024xbf16>
    %98 = vector.extract_strided_slice %97 {offsets = [0, 109], sizes = [48, 768], strides = [1, 1]} : vector<48x1024xbf16> to vector<48x768xbf16>
    %c0_58 = arith.constant 0 : index
    %c0_59 = arith.constant 0 : index
    %99 = vector.load %arg7[%c0_58, %c0_59] : memref<432x48xbf16, #tpu.memory_space<vmem>>, vector<48x48xbf16>
    %cst_60 = arith.constant dense<0.000000e+00> : vector<48x768xf32>
    %100 = tpu.matmul %99, %98, %cst_60 {dimension_numbers = #tpu.dot_dimension_numbers<[1], [0], [0], [1], [0, 0, 1, 1], [], []>} : vector<48x48xbf16>, vector<48x768xbf16>, vector<48x768xf32> -> vector<48x768xf32>
    %101 = vector.extract_strided_slice %97 {offsets = [0, 110], sizes = [48, 768], strides = [1, 1]} : vector<48x1024xbf16> to vector<48x768xbf16>
    %c48_61 = arith.constant 48 : index
    %c0_62 = arith.constant 0 : index
    %102 = vector.load %arg7[%c48_61, %c0_62] : memref<432x48xbf16, #tpu.memory_space<vmem>>, vector<48x48xbf16>
    %cst_63 = arith.constant dense<0.000000e+00> : vector<48x768xf32>
    %103 = tpu.matmul %102, %101, %cst_63 {dimension_numbers = #tpu.dot_dimension_numbers<[1], [0], [0], [1], [0, 0, 1, 1], [], []>} : vector<48x48xbf16>, vector<48x768xbf16>, vector<48x768xf32> -> vector<48x768xf32>
    %104 = arith.addf %100, %103 : vector<48x768xf32>
    %105 = vector.extract_strided_slice %97 {offsets = [0, 111], sizes = [48, 768], strides = [1, 1]} : vector<48x1024xbf16> to vector<48x768xbf16>
    %c96_64 = arith.constant 96 : index
    %c0_65 = arith.constant 0 : index
    %106 = vector.load %arg7[%c96_64, %c0_65] : memref<432x48xbf16, #tpu.memory_space<vmem>>, vector<48x48xbf16>
    %cst_66 = arith.constant dense<0.000000e+00> : vector<48x768xf32>
    %107 = tpu.matmul %106, %105, %cst_66 {dimension_numbers = #tpu.dot_dimension_numbers<[1], [0], [0], [1], [0, 0, 1, 1], [], []>} : vector<48x48xbf16>, vector<48x768xbf16>, vector<48x768xf32> -> vector<48x768xf32>
    %108 = arith.addf %104, %107 : vector<48x768xf32>
    %109 = vector.extract_strided_slice %97 {offsets = [0, 127], sizes = [48, 768], strides = [1, 1]} : vector<48x1024xbf16> to vector<48x768xbf16>
    %c144_67 = arith.constant 144 : index
    %c0_68 = arith.constant 0 : index
    %110 = vector.load %arg7[%c144_67, %c0_68] : memref<432x48xbf16, #tpu.memory_space<vmem>>, vector<48x48xbf16>
    %cst_69 = arith.constant dense<0.000000e+00> : vector<48x768xf32>
    %111 = tpu.matmul %110, %109, %cst_69 {dimension_numbers = #tpu.dot_dimension_numbers<[1], [0], [0], [1], [0, 0, 1, 1], [], []>} : vector<48x48xbf16>, vector<48x768xbf16>, vector<48x768xf32> -> vector<48x768xf32>
    %112 = arith.addf %108, %111 : vector<48x768xf32>
    %113 = vector.extract_strided_slice %97 {offsets = [0, 128], sizes = [48, 768], strides = [1, 1]} : vector<48x1024xbf16> to vector<48x768xbf16>
    %c192_70 = arith.constant 192 : index
    %c0_71 = arith.constant 0 : index
    %114 = vector.load %arg7[%c192_70, %c0_71] : memref<432x48xbf16, #tpu.memory_space<vmem>>, vector<48x48xbf16>
    %cst_72 = arith.constant dense<0.000000e+00> : vector<48x768xf32>
    %115 = tpu.matmul %114, %113, %cst_72 {dimension_numbers = #tpu.dot_dimension_numbers<[1], [0], [0], [1], [0, 0, 1, 1], [], []>} : vector<48x48xbf16>, vector<48x768xbf16>, vector<48x768xf32> -> vector<48x768xf32>
    %116 = arith.addf %112, %115 : vector<48x768xf32>
    %117 = vector.extract_strided_slice %97 {offsets = [0, 129], sizes = [48, 768], strides = [1, 1]} : vector<48x1024xbf16> to vector<48x768xbf16>
    %c240_73 = arith.constant 240 : index
    %c0_74 = arith.constant 0 : index
    %118 = vector.load %arg7[%c240_73, %c0_74] : memref<432x48xbf16, #tpu.memory_space<vmem>>, vector<48x48xbf16>
    %cst_75 = arith.constant dense<0.000000e+00> : vector<48x768xf32>
    %119 = tpu.matmul %118, %117, %cst_75 {dimension_numbers = #tpu.dot_dimension_numbers<[1], [0], [0], [1], [0, 0, 1, 1], [], []>} : vector<48x48xbf16>, vector<48x768xbf16>, vector<48x768xf32> -> vector<48x768xf32>
    %120 = arith.addf %116, %119 : vector<48x768xf32>
    %121 = vector.extract_strided_slice %97 {offsets = [0, 145], sizes = [48, 768], strides = [1, 1]} : vector<48x1024xbf16> to vector<48x768xbf16>
    %c288_76 = arith.constant 288 : index
    %c0_77 = arith.constant 0 : index
    %122 = vector.load %arg7[%c288_76, %c0_77] : memref<432x48xbf16, #tpu.memory_space<vmem>>, vector<48x48xbf16>
    %cst_78 = arith.constant dense<0.000000e+00> : vector<48x768xf32>
    %123 = tpu.matmul %122, %121, %cst_78 {dimension_numbers = #tpu.dot_dimension_numbers<[1], [0], [0], [1], [0, 0, 1, 1], [], []>} : vector<48x48xbf16>, vector<48x768xbf16>, vector<48x768xf32> -> vector<48x768xf32>
    %124 = arith.addf %120, %123 : vector<48x768xf32>
    %125 = vector.extract_strided_slice %97 {offsets = [0, 146], sizes = [48, 768], strides = [1, 1]} : vector<48x1024xbf16> to vector<48x768xbf16>
    %c336_79 = arith.constant 336 : index
    %c0_80 = arith.constant 0 : index
    %126 = vector.load %arg7[%c336_79, %c0_80] : memref<432x48xbf16, #tpu.memory_space<vmem>>, vector<48x48xbf16>
    %cst_81 = arith.constant dense<0.000000e+00> : vector<48x768xf32>
    %127 = tpu.matmul %126, %125, %cst_81 {dimension_numbers = #tpu.dot_dimension_numbers<[1], [0], [0], [1], [0, 0, 1, 1], [], []>} : vector<48x48xbf16>, vector<48x768xbf16>, vector<48x768xf32> -> vector<48x768xf32>
    %128 = arith.addf %124, %127 : vector<48x768xf32>
    %129 = vector.extract_strided_slice %97 {offsets = [0, 147], sizes = [48, 768], strides = [1, 1]} : vector<48x1024xbf16> to vector<48x768xbf16>
    %c384_82 = arith.constant 384 : index
    %c0_83 = arith.constant 0 : index
    %130 = vector.load %arg7[%c384_82, %c0_83] : memref<432x48xbf16, #tpu.memory_space<vmem>>, vector<48x48xbf16>
    %cst_84 = arith.constant dense<0.000000e+00> : vector<48x768xf32>
    %131 = tpu.matmul %130, %129, %cst_84 {dimension_numbers = #tpu.dot_dimension_numbers<[1], [0], [0], [1], [0, 0, 1, 1], [], []>} : vector<48x48xbf16>, vector<48x768xbf16>, vector<48x768xf32> -> vector<48x768xf32>
    %132 = arith.addf %128, %131 : vector<48x768xf32>
    %c0_85 = arith.constant 0 : index
    %c0_86 = arith.constant 0 : index
    %133 = vector.load %arg8[%c0_85, %c0_86] : memref<48x1xf32, #tpu.memory_space<vmem>>, vector<48x1xf32>
    %134 = vector.broadcast %133 : vector<48x1xf32> to vector<48x768xf32>
    %135 = arith.addf %132, %134 : vector<48x768xf32>
    %cst_87 = arith.constant 0.00999999977 : f32
    %136 = vector.broadcast %cst_87 : f32 to vector<48x768xf32>
    %137 = arith.mulf %136, %135 : vector<48x768xf32>
    %138 = arith.maximumf %135, %137 : vector<48x768xf32>
    %139 = vector.broadcast %0 : vector<1x768xf32> to vector<48x768xf32>
    %140 = arith.mulf %138, %139 : vector<48x768xf32>
    %141 = arith.truncf %140 : vector<48x768xf32> to vector<48x768xbf16>
    %cst_88 = arith.constant 0.000000e+00 : bf16
    %142 = vector.broadcast %cst_88 : bf16 to vector<48x128xbf16>
    %143 = tpu.concatenate %142, %141, %142 in 1 : vector<48x128xbf16>, vector<48x768xbf16>, vector<48x128xbf16> -> vector<48x1024xbf16>
    %144 = vector.extract_strided_slice %143 {offsets = [0, 109], sizes = [48, 768], strides = [1, 1]} : vector<48x1024xbf16> to vector<48x768xbf16>
    %c0_89 = arith.constant 0 : index
    %c0_90 = arith.constant 0 : index
    %145 = vector.load %arg9[%c0_89, %c0_90] : memref<432x48xbf16, #tpu.memory_space<vmem>>, vector<48x48xbf16>
    %cst_91 = arith.constant dense<0.000000e+00> : vector<48x768xf32>
    %146 = tpu.matmul %145, %144, %cst_91 {dimension_numbers = #tpu.dot_dimension_numbers<[1], [0], [0], [1], [0, 0, 1, 1], [], []>} : vector<48x48xbf16>, vector<48x768xbf16>, vector<48x768xf32> -> vector<48x768xf32>
    %147 = vector.extract_strided_slice %143 {offsets = [0, 110], sizes = [48, 768], strides = [1, 1]} : vector<48x1024xbf16> to vector<48x768xbf16>
    %c48_92 = arith.constant 48 : index
    %c0_93 = arith.constant 0 : index
    %148 = vector.load %arg9[%c48_92, %c0_93] : memref<432x48xbf16, #tpu.memory_space<vmem>>, vector<48x48xbf16>
    %cst_94 = arith.constant dense<0.000000e+00> : vector<48x768xf32>
    %149 = tpu.matmul %148, %147, %cst_94 {dimension_numbers = #tpu.dot_dimension_numbers<[1], [0], [0], [1], [0, 0, 1, 1], [], []>} : vector<48x48xbf16>, vector<48x768xbf16>, vector<48x768xf32> -> vector<48x768xf32>
    %150 = arith.addf %146, %149 : vector<48x768xf32>
    %151 = vector.extract_strided_slice %143 {offsets = [0, 111], sizes = [48, 768], strides = [1, 1]} : vector<48x1024xbf16> to vector<48x768xbf16>
    %c96_95 = arith.constant 96 : index
    %c0_96 = arith.constant 0 : index
    %152 = vector.load %arg9[%c96_95, %c0_96] : memref<432x48xbf16, #tpu.memory_space<vmem>>, vector<48x48xbf16>
    %cst_97 = arith.constant dense<0.000000e+00> : vector<48x768xf32>
    %153 = tpu.matmul %152, %151, %cst_97 {dimension_numbers = #tpu.dot_dimension_numbers<[1], [0], [0], [1], [0, 0, 1, 1], [], []>} : vector<48x48xbf16>, vector<48x768xbf16>, vector<48x768xf32> -> vector<48x768xf32>
    %154 = arith.addf %150, %153 : vector<48x768xf32>
    %155 = vector.extract_strided_slice %143 {offsets = [0, 127], sizes = [48, 768], strides = [1, 1]} : vector<48x1024xbf16> to vector<48x768xbf16>
    %c144_98 = arith.constant 144 : index
    %c0_99 = arith.constant 0 : index
    %156 = vector.load %arg9[%c144_98, %c0_99] : memref<432x48xbf16, #tpu.memory_space<vmem>>, vector<48x48xbf16>
    %cst_100 = arith.constant dense<0.000000e+00> : vector<48x768xf32>
    %157 = tpu.matmul %156, %155, %cst_100 {dimension_numbers = #tpu.dot_dimension_numbers<[1], [0], [0], [1], [0, 0, 1, 1], [], []>} : vector<48x48xbf16>, vector<48x768xbf16>, vector<48x768xf32> -> vector<48x768xf32>
    %158 = arith.addf %154, %157 : vector<48x768xf32>
    %159 = vector.extract_strided_slice %143 {offsets = [0, 128], sizes = [48, 768], strides = [1, 1]} : vector<48x1024xbf16> to vector<48x768xbf16>
    %c192_101 = arith.constant 192 : index
    %c0_102 = arith.constant 0 : index
    %160 = vector.load %arg9[%c192_101, %c0_102] : memref<432x48xbf16, #tpu.memory_space<vmem>>, vector<48x48xbf16>
    %cst_103 = arith.constant dense<0.000000e+00> : vector<48x768xf32>
    %161 = tpu.matmul %160, %159, %cst_103 {dimension_numbers = #tpu.dot_dimension_numbers<[1], [0], [0], [1], [0, 0, 1, 1], [], []>} : vector<48x48xbf16>, vector<48x768xbf16>, vector<48x768xf32> -> vector<48x768xf32>
    %162 = arith.addf %158, %161 : vector<48x768xf32>
    %163 = vector.extract_strided_slice %143 {offsets = [0, 129], sizes = [48, 768], strides = [1, 1]} : vector<48x1024xbf16> to vector<48x768xbf16>
    %c240_104 = arith.constant 240 : index
    %c0_105 = arith.constant 0 : index
    %164 = vector.load %arg9[%c240_104, %c0_105] : memref<432x48xbf16, #tpu.memory_space<vmem>>, vector<48x48xbf16>
    %cst_106 = arith.constant dense<0.000000e+00> : vector<48x768xf32>
    %165 = tpu.matmul %164, %163, %cst_106 {dimension_numbers = #tpu.dot_dimension_numbers<[1], [0], [0], [1], [0, 0, 1, 1], [], []>} : vector<48x48xbf16>, vector<48x768xbf16>, vector<48x768xf32> -> vector<48x768xf32>
    %166 = arith.addf %162, %165 : vector<48x768xf32>
    %167 = vector.extract_strided_slice %143 {offsets = [0, 145], sizes = [48, 768], strides = [1, 1]} : vector<48x1024xbf16> to vector<48x768xbf16>
    %c288_107 = arith.constant 288 : index
    %c0_108 = arith.constant 0 : index
    %168 = vector.load %arg9[%c288_107, %c0_108] : memref<432x48xbf16, #tpu.memory_space<vmem>>, vector<48x48xbf16>
    %cst_109 = arith.constant dense<0.000000e+00> : vector<48x768xf32>
    %169 = tpu.matmul %168, %167, %cst_109 {dimension_numbers = #tpu.dot_dimension_numbers<[1], [0], [0], [1], [0, 0, 1, 1], [], []>} : vector<48x48xbf16>, vector<48x768xbf16>, vector<48x768xf32> -> vector<48x768xf32>
    %170 = arith.addf %166, %169 : vector<48x768xf32>
    %171 = vector.extract_strided_slice %143 {offsets = [0, 146], sizes = [48, 768], strides = [1, 1]} : vector<48x1024xbf16> to vector<48x768xbf16>
    %c336_110 = arith.constant 336 : index
    %c0_111 = arith.constant 0 : index
    %172 = vector.load %arg9[%c336_110, %c0_111] : memref<432x48xbf16, #tpu.memory_space<vmem>>, vector<48x48xbf16>
    %cst_112 = arith.constant dense<0.000000e+00> : vector<48x768xf32>
    %173 = tpu.matmul %172, %171, %cst_112 {dimension_numbers = #tpu.dot_dimension_numbers<[1], [0], [0], [1], [0, 0, 1, 1], [], []>} : vector<48x48xbf16>, vector<48x768xbf16>, vector<48x768xf32> -> vector<48x768xf32>
    %174 = arith.addf %170, %173 : vector<48x768xf32>
    %175 = vector.extract_strided_slice %143 {offsets = [0, 147], sizes = [48, 768], strides = [1, 1]} : vector<48x1024xbf16> to vector<48x768xbf16>
    %c384_113 = arith.constant 384 : index
    %c0_114 = arith.constant 0 : index
    %176 = vector.load %arg9[%c384_113, %c0_114] : memref<432x48xbf16, #tpu.memory_space<vmem>>, vector<48x48xbf16>
    %cst_115 = arith.constant dense<0.000000e+00> : vector<48x768xf32>
    %177 = tpu.matmul %176, %175, %cst_115 {dimension_numbers = #tpu.dot_dimension_numbers<[1], [0], [0], [1], [0, 0, 1, 1], [], []>} : vector<48x48xbf16>, vector<48x768xbf16>, vector<48x768xf32> -> vector<48x768xf32>
    %178 = arith.addf %174, %177 : vector<48x768xf32>
    %c0_116 = arith.constant 0 : index
    %c0_117 = arith.constant 0 : index
    %179 = vector.load %arg10[%c0_116, %c0_117] : memref<48x1xf32, #tpu.memory_space<vmem>>, vector<48x1xf32>
    %180 = vector.broadcast %179 : vector<48x1xf32> to vector<48x768xf32>
    %181 = arith.addf %178, %180 : vector<48x768xf32>
    %cst_118 = arith.constant 0.00999999977 : f32
    %182 = vector.broadcast %cst_118 : f32 to vector<48x768xf32>
    %183 = arith.mulf %182, %181 : vector<48x768xf32>
    %184 = arith.maximumf %181, %183 : vector<48x768xf32>
    %185 = vector.broadcast %0 : vector<1x768xf32> to vector<48x768xf32>
    %186 = arith.mulf %184, %185 : vector<48x768xf32>
    %187 = arith.truncf %186 : vector<48x768xf32> to vector<48x768xbf16>
    %cst_119 = arith.constant 0.000000e+00 : bf16
    %188 = vector.broadcast %cst_119 : bf16 to vector<48x128xbf16>
    %189 = tpu.concatenate %188, %187, %188 in 1 : vector<48x128xbf16>, vector<48x768xbf16>, vector<48x128xbf16> -> vector<48x1024xbf16>
    %190 = vector.extract_strided_slice %189 {offsets = [0, 109], sizes = [48, 768], strides = [1, 1]} : vector<48x1024xbf16> to vector<48x768xbf16>
    %c0_120 = arith.constant 0 : index
    %c0_121 = arith.constant 0 : index
    %191 = vector.load %arg11[%c0_120, %c0_121] : memref<18x48xbf16, #tpu.memory_space<vmem>>, vector<2x48xbf16>
    %cst_122 = arith.constant dense<0.000000e+00> : vector<2x768xf32>
    %192 = tpu.matmul %191, %190, %cst_122 {dimension_numbers = #tpu.dot_dimension_numbers<[1], [0], [0], [1], [0, 0, 1, 1], [], []>} : vector<2x48xbf16>, vector<48x768xbf16>, vector<2x768xf32> -> vector<2x768xf32>
    %193 = vector.extract_strided_slice %189 {offsets = [0, 110], sizes = [48, 768], strides = [1, 1]} : vector<48x1024xbf16> to vector<48x768xbf16>
    %c2 = arith.constant 2 : index
    %c0_123 = arith.constant 0 : index
    %194 = vector.load %arg11[%c2, %c0_123] : memref<18x48xbf16, #tpu.memory_space<vmem>>, vector<2x48xbf16>
    %cst_124 = arith.constant dense<0.000000e+00> : vector<2x768xf32>
    %195 = tpu.matmul %194, %193, %cst_124 {dimension_numbers = #tpu.dot_dimension_numbers<[1], [0], [0], [1], [0, 0, 1, 1], [], []>} : vector<2x48xbf16>, vector<48x768xbf16>, vector<2x768xf32> -> vector<2x768xf32>
    %196 = arith.addf %192, %195 : vector<2x768xf32>
    %197 = vector.extract_strided_slice %189 {offsets = [0, 111], sizes = [48, 768], strides = [1, 1]} : vector<48x1024xbf16> to vector<48x768xbf16>
    %c4 = arith.constant 4 : index
    %c0_125 = arith.constant 0 : index
    %198 = vector.load %arg11[%c4, %c0_125] : memref<18x48xbf16, #tpu.memory_space<vmem>>, vector<2x48xbf16>
    %cst_126 = arith.constant dense<0.000000e+00> : vector<2x768xf32>
    %199 = tpu.matmul %198, %197, %cst_126 {dimension_numbers = #tpu.dot_dimension_numbers<[1], [0], [0], [1], [0, 0, 1, 1], [], []>} : vector<2x48xbf16>, vector<48x768xbf16>, vector<2x768xf32> -> vector<2x768xf32>
    %200 = arith.addf %196, %199 : vector<2x768xf32>
    %201 = vector.extract_strided_slice %189 {offsets = [0, 127], sizes = [48, 768], strides = [1, 1]} : vector<48x1024xbf16> to vector<48x768xbf16>
    %c6 = arith.constant 6 : index
    %c0_127 = arith.constant 0 : index
    %202 = vector.load %arg11[%c6, %c0_127] : memref<18x48xbf16, #tpu.memory_space<vmem>>, vector<2x48xbf16>
    %cst_128 = arith.constant dense<0.000000e+00> : vector<2x768xf32>
    %203 = tpu.matmul %202, %201, %cst_128 {dimension_numbers = #tpu.dot_dimension_numbers<[1], [0], [0], [1], [0, 0, 1, 1], [], []>} : vector<2x48xbf16>, vector<48x768xbf16>, vector<2x768xf32> -> vector<2x768xf32>
    %204 = arith.addf %200, %203 : vector<2x768xf32>
    %205 = vector.extract_strided_slice %189 {offsets = [0, 128], sizes = [48, 768], strides = [1, 1]} : vector<48x1024xbf16> to vector<48x768xbf16>
    %c8 = arith.constant 8 : index
    %c0_129 = arith.constant 0 : index
    %206 = vector.load %arg11[%c8, %c0_129] : memref<18x48xbf16, #tpu.memory_space<vmem>>, vector<2x48xbf16>
    %cst_130 = arith.constant dense<0.000000e+00> : vector<2x768xf32>
    %207 = tpu.matmul %206, %205, %cst_130 {dimension_numbers = #tpu.dot_dimension_numbers<[1], [0], [0], [1], [0, 0, 1, 1], [], []>} : vector<2x48xbf16>, vector<48x768xbf16>, vector<2x768xf32> -> vector<2x768xf32>
    %208 = arith.addf %204, %207 : vector<2x768xf32>
    %209 = vector.extract_strided_slice %189 {offsets = [0, 129], sizes = [48, 768], strides = [1, 1]} : vector<48x1024xbf16> to vector<48x768xbf16>
    %c10 = arith.constant 10 : index
    %c0_131 = arith.constant 0 : index
    %210 = vector.load %arg11[%c10, %c0_131] : memref<18x48xbf16, #tpu.memory_space<vmem>>, vector<2x48xbf16>
    %cst_132 = arith.constant dense<0.000000e+00> : vector<2x768xf32>
    %211 = tpu.matmul %210, %209, %cst_132 {dimension_numbers = #tpu.dot_dimension_numbers<[1], [0], [0], [1], [0, 0, 1, 1], [], []>} : vector<2x48xbf16>, vector<48x768xbf16>, vector<2x768xf32> -> vector<2x768xf32>
    %212 = arith.addf %208, %211 : vector<2x768xf32>
    %213 = vector.extract_strided_slice %189 {offsets = [0, 145], sizes = [48, 768], strides = [1, 1]} : vector<48x1024xbf16> to vector<48x768xbf16>
    %c12 = arith.constant 12 : index
    %c0_133 = arith.constant 0 : index
    %214 = vector.load %arg11[%c12, %c0_133] : memref<18x48xbf16, #tpu.memory_space<vmem>>, vector<2x48xbf16>
    %cst_134 = arith.constant dense<0.000000e+00> : vector<2x768xf32>
    %215 = tpu.matmul %214, %213, %cst_134 {dimension_numbers = #tpu.dot_dimension_numbers<[1], [0], [0], [1], [0, 0, 1, 1], [], []>} : vector<2x48xbf16>, vector<48x768xbf16>, vector<2x768xf32> -> vector<2x768xf32>
    %216 = arith.addf %212, %215 : vector<2x768xf32>
    %217 = vector.extract_strided_slice %189 {offsets = [0, 146], sizes = [48, 768], strides = [1, 1]} : vector<48x1024xbf16> to vector<48x768xbf16>
    %c14 = arith.constant 14 : index
    %c0_135 = arith.constant 0 : index
    %218 = vector.load %arg11[%c14, %c0_135] : memref<18x48xbf16, #tpu.memory_space<vmem>>, vector<2x48xbf16>
    %cst_136 = arith.constant dense<0.000000e+00> : vector<2x768xf32>
    %219 = tpu.matmul %218, %217, %cst_136 {dimension_numbers = #tpu.dot_dimension_numbers<[1], [0], [0], [1], [0, 0, 1, 1], [], []>} : vector<2x48xbf16>, vector<48x768xbf16>, vector<2x768xf32> -> vector<2x768xf32>
    %220 = arith.addf %216, %219 : vector<2x768xf32>
    %221 = vector.extract_strided_slice %189 {offsets = [0, 147], sizes = [48, 768], strides = [1, 1]} : vector<48x1024xbf16> to vector<48x768xbf16>
    %c16 = arith.constant 16 : index
    %c0_137 = arith.constant 0 : index
    %222 = vector.load %arg11[%c16, %c0_137] : memref<18x48xbf16, #tpu.memory_space<vmem>>, vector<2x48xbf16>
    %cst_138 = arith.constant dense<0.000000e+00> : vector<2x768xf32>
    %223 = tpu.matmul %222, %221, %cst_138 {dimension_numbers = #tpu.dot_dimension_numbers<[1], [0], [0], [1], [0, 0, 1, 1], [], []>} : vector<2x48xbf16>, vector<48x768xbf16>, vector<2x768xf32> -> vector<2x768xf32>
    %224 = arith.addf %220, %223 : vector<2x768xf32>
    %c0_139 = arith.constant 0 : index
    %c0_140 = arith.constant 0 : index
    %225 = vector.load %arg12[%c0_139, %c0_140] : memref<2x1xf32, #tpu.memory_space<vmem>>, vector<2x1xf32>
    %226 = vector.broadcast %225 : vector<2x1xf32> to vector<2x768xf32>
    %227 = arith.addf %224, %226 : vector<2x768xf32>
    %c0_141 = arith.constant 0 : index
    %c0_142 = arith.constant 0 : index
    %c0_143 = arith.constant 0 : index
    %228 = vector.load %arg13[%c0_141, %c0_142, %c0_143] : memref<1x2x768xf32, #tpu.memory_space<vmem>>, vector<1x2x768xf32>
    %229 = vector.shape_cast %228 : vector<1x2x768xf32> to vector<2x768xf32>
    %230 = vector.shape_cast %227 : vector<2x768xf32> to vector<1x2x768xf32>
    tpu.vector_store %arg13[%c0_141, %c0_142, %c0_143], %230 {strides = array<i32>} : memref<1x2x768xf32, #tpu.memory_space<vmem>>, vector<1x2x768xf32>,
    return
  }
  func.func @transform_0(%arg0: i32) -> (i32, i32, i32) {
    %c0_i32 = arith.constant 0 : i32
    %c0_i32_0 = arith.constant 0 : i32
    %c0_i32_1 = arith.constant 0 : i32
    return %arg0, %c0_i32, %c0_i32_0 : i32, i32, i32
  }
  func.func @transform_1(%arg0: i32) -> (i32, i32) {
    %c0_i32 = arith.constant 0 : i32
    %c0_i32_0 = arith.constant 0 : i32
    %c0_i32_1 = arith.constant 0 : i32
    return %c0_i32, %c0_i32_0 : i32, i32
  }
  func.func @transform_2(%arg0: i32) -> (i32, i32) {
    %c0_i32 = arith.constant 0 : i32
    %c0_i32_0 = arith.constant 0 : i32
    %c0_i32_1 = arith.constant 0 : i32
    return %c0_i32, %c0_i32_0 : i32, i32
  }
  func.func @transform_3(%arg0: i32) -> (i32, i32) {
    %c0_i32 = arith.constant 0 : i32
    %c0_i32_0 = arith.constant 0 : i32
    %c0_i32_1 = arith.constant 0 : i32
    return %c0_i32, %c0_i32_0 : i32, i32
  }
  func.func @transform_4(%arg0: i32) -> (i32, i32) {
    %c0_i32 = arith.constant 0 : i32
    %c0_i32_0 = arith.constant 0 : i32
    %c0_i32_1 = arith.constant 0 : i32
    return %c0_i32, %c0_i32_0 : i32, i32
  }
  func.func @transform_5(%arg0: i32) -> (i32, i32) {
    %c0_i32 = arith.constant 0 : i32
    %c0_i32_0 = arith.constant 0 : i32
    %c0_i32_1 = arith.constant 0 : i32
    return %c0_i32, %c0_i32_0 : i32, i32
  }
  func.func @transform_6(%arg0: i32) -> (i32, i32) {
    %c0_i32 = arith.constant 0 : i32
    %c0_i32_0 = arith.constant 0 : i32
    %c0_i32_1 = arith.constant 0 : i32
    return %c0_i32, %c0_i32_0 : i32, i32
  }
  func.func @transform_7(%arg0: i32) -> (i32, i32) {
    %c0_i32 = arith.constant 0 : i32
    %c0_i32_0 = arith.constant 0 : i32
    %c0_i32_1 = arith.constant 0 : i32
    return %c0_i32, %c0_i32_0 : i32, i32
  }
  func.func @transform_8(%arg0: i32) -> (i32, i32) {
    %c0_i32 = arith.constant 0 : i32
    %c0_i32_0 = arith.constant 0 : i32
    %c0_i32_1 = arith.constant 0 : i32
    return %c0_i32, %c0_i32_0 : i32, i32
  }
  func.func @transform_9(%arg0: i32) -> (i32, i32) {
    %c0_i32 = arith.constant 0 : i32
    %c0_i32_0 = arith.constant 0 : i32
    %c0_i32_1 = arith.constant 0 : i32
    return %c0_i32, %c0_i32_0 : i32, i32
  }
  func.func @transform_10(%arg0: i32) -> (i32, i32) {
    %c0_i32 = arith.constant 0 : i32
    %c0_i32_0 = arith.constant 0 : i32
    %c0_i32_1 = arith.constant 0 : i32
    return %c0_i32, %c0_i32_0 : i32, i32
  }
  func.func @transform_11(%arg0: i32) -> (i32, i32) {
    %c0_i32 = arith.constant 0 : i32
    %c0_i32_0 = arith.constant 0 : i32
    %c0_i32_1 = arith.constant 0 : i32
    return %c0_i32, %c0_i32_0 : i32, i32
  }
  func.func @transform_12(%arg0: i32) -> (i32, i32, i32) {
    %c0_i32 = arith.constant 0 : i32
    %c0_i32_0 = arith.constant 0 : i32
    %c0_i32_1 = arith.constant 0 : i32
    return %arg0, %c0_i32, %c0_i32_0 : i32, i32, i32
  }
}

</mosaic_0001>

<bundles_post_ra>
// kernel: tpu_custom_call.1
= control target key start
LH: loop header
LB: loop body
LE: loop exit
PB: predicated region body
PF: predicated region fallthrough
CT: control target
= control target key end

     0   :  { %v23016_v3 = vmov 0   ;;  %s14400_s27 = smov 18   ;;  %s14402_s16 = smov 17   ;;  %s23003_s0 = inlined_call_operand.vmem [shape: f32[1,8,768], index: 0, kind: input, shape index: {}]   ;;  %s23004_s1 = inlined_call_operand.vmem [shape: f32[1,768], index: 1, kind: input, shape index: {}]   ;;  %s23005_s2 = inlined_call_operand.vmem [shape: bf16[432,8], index: 2, kind: input, shape index: {}]   ;;  %s23006_s3 = inlined_call_operand.vmem [shape: f32[48,1], index: 3, kind: input, shape index: {}]   ;;  %s23007_s4 = inlined_call_operand.vmem [shape: bf16[432,48], index: 4, kind: input, shape index: {}]   ;;  %s23008_s5 = inlined_call_operand.vmem [shape: f32[48,1], index: 5, kind: input, shape index: {}]   ;;  %s23009_s6 = inlined_call_operand.vmem [shape: bf16[432,48], index: 6, kind: input, shape index: {}]   ;;  %s23010_s7 = inlined_call_operand.vmem [shape: f32[48,1], index: 7, kind: input, shape index: {}]   ;;  %s23011_s8 = inlined_call_operand.vmem [shape: bf16[432,48], index: 8, kind: input, shape index: {}]   ;;  %s23012_s9 = inlined_call_operand.vmem [shape: f32[48,1], index: 9, kind: input, shape index: {}]   ;;  %s23013_s10 = inlined_call_operand.vmem [shape: bf16[18,48], index: 10, kind: input, shape index: {}]   ;;  %s23014_s11 = inlined_call_operand.vmem [shape: f32[2,1], index: 11, kind: input, shape index: {}]   ;;  %s23015_s12 = inlined_call_operand.hbm [shape: f32[1,2,768], index: 12, kind: output, shape index: {}]  }
   0x1   :  { %v45_v0 = vld [vmem:[%s23003_s0 + $0x8] sm:$0xff]  ;;  %v44_v1 = vld [vmem:[%s23003_s0] sm:$0xff]  ;;  %v46_v2 = vld [vmem:[%s23003_s0 + $0x10] sm:$0xff]  ;;  %90 = vrot.lane.b32.xlu0 %v23016_v3, %s14400_s27  ;;  %172 = vmatprep.mubr.bf16.mxu0 %v23016_v3  ;;  %s14403_s17 = smov 1   ;;  %s14404_s18 = smov 127  }
   0x2   :  { %v14486_v4 = vpack.c.bf16 %v45_v0, %v45_v0  ;;  %v14488_v5 = vpack.c.bf16 %v44_v1, %v44_v1  ;;  %v47_v6 = vld [vmem:[%s23003_s0 + $0x18] sm:$0xff]  ;;  %235 = vmatprep.mubr.bf16.mxu1 %v23016_v3  ;;  %14262 = vset.pattern.permute.xlu1 %v23016_v3  ;;  %v14498_v7 = vpack.c.bf16 %v46_v2, %v46_v2  ;;  %v48_v8 = vld [vmem:[%s23003_s0 + $0x20] sm:$0xff]  ;;  %v49_v9 = vld [vmem:[%s23003_s0 + $0x28] sm:$0xff]  ;;  %s14401_s0 = smov 19   ;;  %s14405_s19 = smov 111  }
   0x3   :  { %14261 = vset.pattern.permute.xlu0 %v23016_v3  ;;  %v14509_v10 = vpack.c.bf16 %v47_v6, %v47_v6  ;;  %v14513_v11 = vpack.c.bf16 %v48_v8, %v48_v8  ;;  %v14517_v12 = vpack.c.bf16 %v49_v9, %v49_v9 }
   0x4   :  { %94 = vrot.lane.b32.xlu1 %v14486_v4, %s14400_s27 }
   0x5   :  { %92 = vrot.lane.b32.xlu0 %v14488_v5, %s14400_s27 }
   0x8   :  { %96 = vrot.lane.b32.xlu1 %v14498_v7, %s14400_s27 }
   0x9   :  { %98 = vrot.lane.b32.xlu0 %v14509_v10, %s14400_s27 }
   0xc   :  { %100 = vrot.lane.b32.xlu1 %v14513_v11, %s14400_s27 }
   0xd   :  { %102 = vrot.lane.b32.xlu0 %v14517_v12, %s14400_s27 }
  0x10   :  { %344 = vrot.lane.b32.xlu1 %v23016_v3, %s14401_s0 }
  0x11   :  { %346 = vrot.lane.b32.xlu0 %v14488_v5, %s14401_s0 }
  0x14   :  { %348 = vrot.lane.b32.xlu1 %v14486_v4, %s14401_s0 }
  0x15   :  { %350 = vrot.lane.b32.xlu0 %v14498_v7, %s14401_s0 }
  0x18   :  { %352 = vrot.lane.b32.xlu1 %v14509_v10, %s14401_s0 }
  0x19   :  { %354 = vrot.lane.b32.xlu0 %v14513_v11, %s14401_s0 }
  0x1c   :  { %356 = vrot.lane.b32.xlu1 %v14517_v12, %s14401_s0 }
  0x1d   :  { %602 = vrot.lane.b32.xlu0 %v23016_v3, %s14402_s16 }
  0x20   :  { %604 = vrot.lane.b32.xlu1 %v14488_v5, %s14402_s16 }
  0x21   :  { %606 = vrot.lane.b32.xlu0 %v14486_v4, %s14402_s16 }
  0x24   :  { %608 = vrot.lane.b32.xlu1 %v14498_v7, %s14402_s16 }
  0x25   :  { %610 = vrot.lane.b32.xlu0 %v14509_v10, %s14402_s16 }
  0x28   :  { %612 = vrot.lane.b32.xlu1 %v14513_v11, %s14402_s16 }
  0x29   :  { %614 = vrot.lane.b32.xlu0 %v14517_v12, %s14402_s16 }
  0x2c   :  { %896 = vrot.lane.b32.xlu1 %v23016_v3, %s14403_s17 }
  0x2d   :  { %898 = vrot.lane.b32.xlu0 %v14488_v5, %s14403_s17 }
  0x30   :  { %900 = vrot.lane.b32.xlu1 %v14486_v4, %s14403_s17 }
  0x31   :  { %902 = vrot.lane.b32.xlu0 %v14498_v7, %s14403_s17 }
  0x34   :  { %904 = vrot.lane.b32.xlu1 %v14509_v10, %s14403_s17 }
  0x35   :  { %906 = vrot.lane.b32.xlu0 %v14513_v11, %s14403_s17 }
  0x38   :  { %908 = vrot.lane.b32.xlu1 %v14517_v12, %s14403_s17 }
  0x39   :  { %1463 = vrot.lane.b32.xlu0 %v14488_v5, %s14404_s18 }
  0x3c   :  { %1465 = vrot.lane.b32.xlu1 %v14486_v4, %s14404_s18 }
  0x3d   :  { %1467 = vrot.lane.b32.xlu0 %v14498_v7, %s14404_s18 }
  0x40   :  { %1469 = vrot.lane.b32.xlu1 %v14509_v10, %s14404_s18 }
  0x41   :  { %1471 = vrot.lane.b32.xlu0 %v14513_v11, %s14404_s18 }
  0x44   :  { %1473 = vrot.lane.b32.xlu1 %v14517_v12, %s14404_s18 }
  0x45   :  { %1475 = vrot.lane.b32.xlu0 %v23016_v3, %s14404_s18 }
  0x48   :  { %1757 = vrot.lane.b32.xlu1 %v14488_v5, %s14405_s19 }
  0x49   :  { %1759 = vrot.lane.b32.xlu0 %v14486_v4, %s14405_s19 }
  0x4c   :  { %1761 = vrot.lane.b32.xlu1 %v14498_v7, %s14405_s19 }
  0x4d   :  { %1763 = vrot.lane.b32.xlu0 %v14509_v10, %s14405_s19 }
  0x4e   :  { %17 = vsyncpa [#allocation3], 0  ;;  %s14406_s20 = smov 110   ;;  %vm104_vm0 = vcmask 146432   ;;  %vm121_vm1 = vcmask 1043456   ;;  %v14263_v20 = vld [vmem:[%s23005_s2 + $0x18] sm:$0xff]  }
  0x4f   :  { %vm111_vm2 = vcmask 64512   ;;  %v14264_v30 = vld [vmem:[%s23005_s2 + $0x20] sm:$0xff]   ;;  %vm358_vm3 = vcmask 154624   ;;  %v14265_v38 = vld [vmem:[%s23005_s2 + $0x28] sm:$0xff]   ;;  %vm616_vm4 = vcmask 138240   ;;  %s14407_s28 = smov 109  }
  0x50   :  { %1765 = vrot.lane.b32.xlu1 %v14513_v11, %s14405_s19  ;;  %v14266_v51 = vld [vmem:[%s23005_s2] sm:$0xff]   ;;  %v14267_v56 = vld [vmem:[%s23005_s2 + $0x8] sm:$0xff]   ;;  %v14268_v58 = vld [vmem:[%s23005_s2 + $0x10] sm:$0xff]   ;;  %vm910_vm5 = vcmask 7168   ;;  %vm1477_vm6 = vcmask 1039360   ;;  %vm1771_vm7 = vcmask 908288  }
  0x51   :  { %1767 = vrot.lane.b32.xlu0 %v14517_v12, %s14405_s19  ;;  %vm2065_vm8 = vcmask 900096   ;;  %vm2359_vm9 = vcmask 891904   ;;  %vm2964_vm10 = vcmask 392192  }
  0x54   :  { %1769 = vrot.lane.b32.xlu1 %v23016_v3, %s14405_s19 }
  0x55   :  { %2051 = vrot.lane.b32.xlu0 %v14488_v5, %s14406_s20 }
  0x58   :  { %2053 = vrot.lane.b32.xlu1 %v14486_v4, %s14406_s20 }
  0x59   :  { %2055 = vrot.lane.b32.xlu0 %v14498_v7, %s14406_s20 }
  0x5c   :  { %2057 = vrot.lane.b32.xlu1 %v14509_v10, %s14406_s20 }
  0x5d   :  { %2059 = vrot.lane.b32.xlu0 %v14513_v11, %s14406_s20 }
  0x60   :  { %2061 = vrot.lane.b32.xlu1 %v14517_v12, %s14406_s20 }
  0x61   :  { %2063 = vrot.lane.b32.xlu0 %v23016_v3, %s14406_s20 }
  0x64   :  { %2345 = vrot.lane.b32.xlu1 %v14488_v5, %s14407_s28 }
  0x65   :  { %2347 = vrot.lane.b32.xlu0 %v14486_v4, %s14407_s28 }
  0x68   :  { %2349 = vrot.lane.b32.xlu1 %v14498_v7, %s14407_s28 }
  0x69   :  { %2351 = vrot.lane.b32.xlu0 %v14509_v10, %s14407_s28 }
  0x6c   :  { %2353 = vrot.lane.b32.xlu1 %v14513_v11, %s14407_s28 }
  0x6d   :  { %2355 = vrot.lane.b32.xlu0 %v14517_v12, %s14407_s28 }
  0x70   :  { %2357 = vrot.lane.b32.xlu1 %v23016_v3, %s14407_s28 }
  0x73   :  { %v14597_v13 = vpop.permute.xlu0 %90 }
  0x74   :  { %23110 = vst [vmem:[#allocation5_spill] sm:$0xff] %v14597_v13 }
  0x76   :  { %v95_v14 = vpop.permute.xlu1 %94 }
  0x77   :  { %v93_v15 = vpop.permute.xlu0 %92 }
  0x78   :  { %v106_v16 = vsel %vm104_vm0, %v93_v15, %v95_v14  ;;  %v105_v17 = vsel %vm104_vm0, %v14597_v13, %v93_v15 }
  0x79   :  { %13760 = vmatprep.subr.msk.bf16.mxu0 %vm121_vm1, %v106_v16  ;;  %v123_v19 = vsel %vm121_vm1, %v105_v17, 0 }
  0x7a   :  { %v97_v18 = vpop.permute.xlu1 %96  ;;  %155 = vmatpush1.bf16.msra.mxu0 %v123_v19 }
  0x7b   :  { %v107_v21 = vsel %vm104_vm0, %v95_v14, %v97_v18  ;;  %v99_v22 = vpop.permute.xlu0 %98  ;;  %v14269_v14 = vld [vmem:[%s23005_s2 + $0x30] sm:$0xff]  }
  0x7c   :  { %v108_v23 = vsel %vm104_vm0, %v97_v18, %v99_v22  ;;  %v129_v24 = vsel %vm121_vm1, %v107_v21, 0 }
  0x7d   :  { %13761 = vmatmul.mubr.msk.bf16.vlgmr.msra.gmra.mxu0 %vm111_vm2, %v14263_v20  ;;  %13764 = vmatprep.subr.msk.bf16.mxu1 %vm121_vm1, %v108_v23 }
  0x7e   :  { %v101_v25 = vpop.permute.xlu1 %100  ;;  %218 = vmatpush1.bf16.msra.mxu1 %v129_v24  ;;  %182 = vmatprep.mubr.bf16.mxu0 %v23016_v3  ;;  %v14270_v24 = vld [vmem:[%s23005_s2 + $0x38] sm:$0xff]  }
  0x7f   :  { %v109_v26 = vsel %vm104_vm0, %v99_v22, %v101_v25  ;;  %v103_v27 = vpop.permute.xlu0 %102 }
  0x80   :  { %v135_v28 = vsel %vm121_vm1, %v109_v26, 0  ;;  %v110_v29 = vsel %vm104_vm0, %v101_v25, %v103_v27  ;;  %v14271_v25 = vld [vmem:[%s23005_s2 + $0x40] sm:$0xff]  }
  0x81   :  { %13765 = vmatmul.mubr.msk.bf16.vlgmr.msra.gmra.mxu1 %vm111_vm2, %v14263_v20  ;;  %13768 = vmatprep.subr.msk.bf16.mxu0 %vm121_vm1, %v110_v29  ;;  %v14272_v29 = vld [vmem:[%s23005_s2 + $0x48] sm:$0xff]  }
  0x82   :  { %v14631_v31 = vpop.permute.xlu1 %344  ;;  %281 = vmatpush1.bf16.msra.mxu0 %v135_v28  ;;  %245 = vmatprep.mubr.bf16.mxu1 %v23016_v3 }
  0x83   :  { %23111 = vst [vmem:[#allocation6_spill] sm:$0xff] %v14631_v31  ;;  %v347_v32 = vpop.permute.xlu0 %346 }
  0x84   :  { %v359_v33 = vsel %vm358_vm3, %v14631_v31, %v347_v32 }
  0x85   :  { %13762 = vmatmul.mubr.msk.bf16.gmra.mxu0 %vm111_vm2, %v14264_v30  ;;  %v375_v35 = vsel %vm121_vm1, %v359_v33, 0  ;;  %v1200_v33 = vsel %vm121_vm1, %v14488_v5, 0  ;;  %v14275_v5 = vld [vmem:[%s23005_s2 + $0x60] sm:$0xff]  }
  0x86   :  { %v349_v34 = vpop.permute.xlu1 %348  ;;  %192 = vmatprep.mubr.bf16.mxu0 %v23016_v3 }
  0x87   :  { %v360_v36 = vsel %vm358_vm3, %v347_v32, %v349_v34  ;;  %v351_v37 = vpop.permute.xlu0 %350  ;;  %v14273_v32 = vld [vmem:[%s23005_s2 + $0x50] sm:$0xff]  }
  0x88   :  { %13775 = vmatprep.subr.msk.bf16.mxu1 %vm121_vm1, %v360_v36  ;;  %v361_v45 = vsel %vm358_vm3, %v349_v34, %v351_v37  ;;  %v1206_v36 = vsel %vm121_vm1, %v14498_v7, 0 }
  0x89   :  { %407 = vmatpush1.bf16.msra.mxu1 %v375_v35  ;;  %v381_v47 = vsel %vm121_vm1, %v361_v45, 0 }
  0x8a   :  { %13766 = vmatmul.mubr.msk.bf16.gmra.mxu1 %vm111_vm2, %v14264_v30  ;;  %v353_v39 = vpop.permute.xlu1 %352 }
  0x8b   :  { %255 = vmatprep.mubr.bf16.mxu1 %v23016_v3  ;;  %v362_v40 = vsel %vm358_vm3, %v351_v37, %v353_v39  ;;  %v355_v41 = vpop.permute.xlu0 %354 }
  0x8c   :  { %13779 = vmatprep.subr.msk.bf16.mxu0 %vm121_vm1, %v362_v40  ;;  %v363_v49 = vsel %vm358_vm3, %v353_v39, %v355_v41 }
  0x8d   :  { %13763 = vmatmul.mubr.msk.bf16.gmra.mxu0 %vm111_vm2, %v14265_v38  ;;  %v387_v53 = vsel %vm121_vm1, %v363_v49, 0 }
  0x8e   :  { %v357_v42 = vpop.permute.xlu1 %356  ;;  %298 = vmatprep.mubr.bf16.mxu0 %v23016_v3 }
  0x8f   :  { %v364_v43 = vsel %vm358_vm3, %v355_v41, %v357_v42  ;;  %v14652_v44 = vpop.permute.xlu0 %602 }
  0x90   :  { %13783 = vmatprep.subr.msk.bf16.mxu1 %vm121_vm1, %v364_v43  ;;  %23112 = vst [vmem:[#allocation7_spill] sm:$0xff] %v14652_v44 }
  0x92   :  { %13767 = vmatmul.mubr.msk.bf16.gmra.mxu1 %vm111_vm2, %v14265_v38  ;;  %v605_v46 = vpop.permute.xlu1 %604 }
  0x93   :  { %424 = vmatprep.mubr.bf16.mxu1 %v23016_v3  ;;  %v607_v48 = vpop.permute.xlu0 %606  ;;  %v617_v60 = vsel %vm616_vm4, %v14652_v44, %v605_v46 }
  0x94   :  { %v618_v50 = vsel %vm616_vm4, %v605_v46, %v607_v48  ;;  %v633_v62 = vsel %vm121_vm1, %v617_v60, 0  ;;  %v14277_v46 = vld [vmem:[%s23005_s2 + $0x70] sm:$0xff]   ;;  %v14279_v60 = vld [vmem:[%s23005_s2 + $0x80] sm:$0xff]  }
  0x95   :  { %13769 = vmatmul.mubr.msk.bf16.vlgmr.msra.gmra.mxu0 %vm111_vm2, %v14263_v20 }
  0x96   :  { %v609_v52 = vpop.permute.xlu1 %608  ;;  %308 = vmatprep.mubr.bf16.mxu0 %v23016_v3  ;;  %470 = vmatpush1.bf16.msra.mxu0 %v381_v47 }
  0x97   :  { %13790 = vmatprep.subr.msk.bf16.mxu0 %vm121_vm1, %v618_v50  ;;  %v611_v54 = vpop.permute.xlu0 %610  ;;  %v619_v63 = vsel %vm616_vm4, %v607_v48, %v609_v52 }
  0x98   :  { %v620_v55 = vsel %vm616_vm4, %v609_v52, %v611_v54  ;;  %v639_v6 = vsel %vm121_vm1, %v619_v63, 0 }
  0x9a   :  { %13776 = vmatmul.mubr.msk.bf16.vlgmr.msra.gmra.mxu1 %vm111_vm2, %v14266_v51  ;;  %v613_v57 = vpop.permute.xlu1 %612 }
  0x9b   :  { %434 = vmatprep.mubr.bf16.mxu1 %v23016_v3  ;;  %533 = vmatpush1.bf16.msra.mxu1 %v387_v53  ;;  %v615_v61 = vpop.permute.xlu0 %614  ;;  %v621_v9 = vsel %vm616_vm4, %v611_v54, %v613_v57  ;;  %v14278_v54 = vld [vmem:[%s23005_s2 + $0x78] sm:$0xff]  }
  0x9c   :  { %13794 = vmatprep.subr.msk.bf16.mxu1 %vm121_vm1, %v620_v55  ;;  %v622_v0 = vsel %vm616_vm4, %v613_v57, %v615_v61  ;;  %v645_v17 = vsel %vm121_vm1, %v621_v9, 0 }
  0x9d   :  { %13770 = vmatmul.mubr.msk.bf16.gmra.mxu0 %vm111_vm2, %v14264_v30 }
  0x9e   :  { %318 = vmatprep.mubr.bf16.mxu0 %v23016_v3  ;;  %v14697_v59 = vpop.permute.xlu1 %896 }
  0x9f   :  { %23113 = vst [vmem:[#allocation8_spill] sm:$0xff] %v14697_v59  ;;  %v899_v2 = vpop.permute.xlu0 %898 }
  0xa0   :  { %v911_v18 = vsel %vm910_vm5, %v14697_v59, %v899_v2 }
  0xa1   :  { %v927_v22 = vsel %vm121_vm1, %v911_v18, 0 }
  0xa2   :  { %13777 = vmatmul.mubr.msk.bf16.gmra.mxu1 %vm111_vm2, %v14267_v56  ;;  %v901_v1 = vpop.permute.xlu1 %900 }
  0xa3   :  { %444 = vmatprep.mubr.bf16.mxu1 %v23016_v3  ;;  %v912_v8 = vsel %vm910_vm5, %v899_v2, %v901_v1  ;;  %v903_v16 = vpop.permute.xlu0 %902 }
  0xa4   :  { %v913_v26 = vsel %vm910_vm5, %v901_v1, %v903_v16 }
  0xa5   :  { %13771 = vmatmul.mubr.msk.bf16.gmra.mxu0 %vm111_vm2, %v14265_v38  ;;  %v933_v27 = vsel %vm121_vm1, %v913_v26, 0  ;;  %v1212_v38 = vsel %vm121_vm1, %v14513_v11, 0  ;;  %v14276_v11 = vld [vmem:[%s23005_s2 + $0x68] sm:$0xff]  }
  0xa6   :  { %487 = vmatprep.mubr.bf16.mxu0 %v23016_v3  ;;  %v905_v15 = vpop.permute.xlu1 %904 }
  0xa7   :  { %v914_v19 = vsel %vm910_vm5, %v903_v16, %v905_v15  ;;  %v907_v21 = vpop.permute.xlu0 %906 }
  0xa8   :  { %v915_v28 = vsel %vm910_vm5, %v905_v15, %v907_v21 }
  0xa9   :  { %v939_v30 = vsel %vm121_vm1, %v915_v28, 0 }
  0xaa   :  { %13778 = vmatmul.mubr.msk.bf16.gmra.mxu1 %vm111_vm2, %v14268_v58  ;;  %v909_v20 = vpop.permute.xlu1 %908 }
  0xab   :  { %550 = vmatprep.mubr.bf16.mxu1 %v23016_v3  ;;  %v916_v23 = vsel %vm910_vm5, %v907_v21, %v909_v20 }
  0xad   :  { %13780 = vmatmul.mubr.msk.bf16.vlgmr.msra.gmra.mxu0 %vm111_vm2, %v14266_v51 }
  0xae   :  { %497 = vmatprep.mubr.bf16.mxu0 %v23016_v3  ;;  %665 = vmatpush1.bf16.msra.mxu0 %v633_v62  ;;  %v1466_v34 = vpop.permute.xlu1 %1465  ;;  %v14280_v62 = vld [vmem:[%s23005_s2 + $0x88] sm:$0xff]  }
  0xaf   :  { %13798 = vmatprep.subr.msk.bf16.mxu0 %vm121_vm1, %v622_v0 }
  0xb2   :  { %13784 = vmatmul.mubr.msk.bf16.vlgmr.msra.gmra.mxu1 %vm111_vm2, %v14266_v51  ;;  %v1470_v7 = vpop.permute.xlu1 %1469 }
  0xb3   :  { %560 = vmatprep.mubr.bf16.mxu1 %v23016_v3  ;;  %728 = vmatpush1.bf16.msra.mxu1 %v639_v6 }
  0xb4   :  { %13805 = vmatprep.subr.msk.bf16.mxu1 %vm121_vm1, %v912_v8 }
  0xb5   :  { %13781 = vmatmul.mubr.msk.bf16.gmra.mxu0 %vm111_vm2, %v14267_v56 }
  0xb6   :  { %507 = vmatprep.mubr.bf16.mxu0 %v23016_v3  ;;  %v1474_v41 = vpop.permute.xlu1 %1473 }
  0xba   :  { %13785 = vmatmul.mubr.msk.bf16.gmra.mxu1 %vm111_vm2, %v14267_v56  ;;  %v1758_v47 = vpop.permute.xlu1 %1757 }
  0xbb   :  { %570 = vmatprep.mubr.bf16.mxu1 %v23016_v3 }
  0xbd   :  { %13782 = vmatmul.mubr.msk.bf16.gmra.mxu0 %vm111_vm2, %v14268_v58 }
  0xbe   :  { %682 = vmatprep.mubr.bf16.mxu0 %v23016_v3  ;;  %v1762_v48 = vpop.permute.xlu1 %1761 }
  0xc2   :  { %13786 = vmatmul.mubr.msk.bf16.gmra.mxu1 %vm111_vm2, %v14268_v58  ;;  %v14841_v55 = vpop.permute.xlu1 %1765 }
  0xc3   :  { %745 = vmatprep.mubr.bf16.mxu1 %v23016_v3 }
  0xc5   :  { %13791 = vmatmul.mubr.msk.bf16.vlgmr.msra.gmra.mxu0 %vm111_vm2, %v14269_v14 }
  0xc6   :  { %692 = vmatprep.mubr.bf16.mxu0 %v23016_v3  ;;  %791 = vmatpush1.bf16.msra.mxu0 %v645_v17  ;;  %v14864_v1 = vpop.permute.xlu1 %1769 }
  0xc7   :  { %13809 = vmatprep.subr.msk.bf16.mxu0 %vm121_vm1, %v914_v19  ;;  %23115 = vst [vmem:[#allocation10_spill] sm:$0xff] %v14864_v1 }
  0xca   :  { %13795 = vmatmul.mubr.msk.bf16.vlgmr.msra.gmra.mxu1 %vm111_vm2, %v14269_v14  ;;  %v2054_v9 = vpop.permute.xlu1 %2053 }
  0xcb   :  { %755 = vmatprep.mubr.bf16.mxu1 %v23016_v3  ;;  %959 = vmatpush1.bf16.msra.mxu1 %v927_v22 }
  0xcc   :  { %13813 = vmatprep.subr.msk.bf16.mxu1 %vm121_vm1, %v916_v23 }
  0xcd   :  { %13792 = vmatmul.mubr.msk.bf16.gmra.mxu0 %vm111_vm2, %v14270_v24 }
  0xce   :  { %702 = vmatprep.mubr.bf16.mxu0 %v23016_v3 }
  0xd2   :  { %13796 = vmatmul.mubr.msk.bf16.gmra.mxu1 %vm111_vm2, %v14270_v24 }
  0xd3   :  { %765 = vmatprep.mubr.bf16.mxu1 %v23016_v3 }
  0xd5   :  { %13793 = vmatmul.mubr.msk.bf16.gmra.mxu0 %vm111_vm2, %v14271_v25 }
  0xd6   :  { %808 = vmatprep.mubr.bf16.mxu0 %v23016_v3 }
  0xda   :  { %13797 = vmatmul.mubr.msk.bf16.gmra.mxu1 %vm111_vm2, %v14271_v25 }
  0xdb   :  { %976 = vmatprep.mubr.bf16.mxu1 %v23016_v3 }
  0xdd   :  { %13799 = vmatmul.mubr.msk.bf16.vlgmr.msra.gmra.mxu0 %vm111_vm2, %v14269_v14 }
  0xde   :  { %818 = vmatprep.mubr.bf16.mxu0 %v23016_v3  ;;  %1022 = vmatpush1.bf16.msra.mxu0 %v933_v27 }
  0xdf   :  { %13820 = vmatprep.subr.msk.bf16.mxu0 %vm121_vm1, %v14486_v4  ;;  %v14274_v4 = vld [vmem:[%s23005_s2 + $0x58] sm:$0xff]  }
  0xe2   :  { %13806 = vmatmul.mubr.msk.bf16.vlgmr.msra.gmra.mxu1 %vm111_vm2, %v14272_v29 }
  0xe3   :  { %986 = vmatprep.mubr.bf16.mxu1 %v23016_v3  ;;  %1085 = vmatpush1.bf16.msra.mxu1 %v939_v30 }
  0xe4   :  { %13824 = vmatprep.subr.msk.bf16.mxu1 %vm121_vm1, %v14509_v10  ;;  %v1464_v10 = vpop.permute.xlu0 %1463 }
  0xe5   :  { %13800 = vmatmul.mubr.msk.bf16.gmra.mxu0 %vm111_vm2, %v14270_v24  ;;  %v1478_v39 = vsel %vm1477_vm6, %v1464_v10, %v1466_v34 }
  0xe6   :  { %828 = vmatprep.mubr.bf16.mxu0 %v23016_v3  ;;  %v1494_v43 = vsel %vm121_vm1, %v1478_v39, 0 }
  0xe8   :  { %v1468_v35 = vpop.permute.xlu0 %1467 }
  0xe9   :  { %v1479_v37 = vsel %vm1477_vm6, %v1466_v34, %v1468_v35  ;;  %v1480_v50 = vsel %vm1477_vm6, %v1468_v35, %v1470_v7  ;;  %v14927_v35 = vpop.permute.xlu1 %2057 }
  0xea   :  { %13807 = vmatmul.mubr.msk.bf16.gmra.mxu1 %vm111_vm2, %v14273_v32  ;;  %v1500_v51 = vsel %vm121_vm1, %v1480_v50, 0 }
  0xeb   :  { %996 = vmatprep.mubr.bf16.mxu1 %v23016_v3 }
  0xed   :  { %13801 = vmatmul.mubr.msk.bf16.gmra.mxu0 %vm111_vm2, %v14271_v25 }
  0xee   :  { %1039 = vmatprep.mubr.bf16.mxu0 %v23016_v3 }
  0xf2   :  { %13808 = vmatmul.mubr.msk.bf16.gmra.mxu1 %vm111_vm2, %v14274_v4 }
  0xf3   :  { %1102 = vmatprep.mubr.bf16.mxu1 %v23016_v3 }
  0xf5   :  { %13810 = vmatmul.mubr.msk.bf16.vlgmr.msra.gmra.mxu0 %vm111_vm2, %v14272_v29 }
  0xf6   :  { %1049 = vmatprep.mubr.bf16.mxu0 %v23016_v3  ;;  %1232 = vmatpush1.bf16.msra.mxu0 %v1200_v33 }
  0xf7   :  { %13828 = vmatprep.subr.msk.bf16.mxu0 %vm121_vm1, %v14517_v12  ;;  %v1472_v12 = vpop.permute.xlu0 %1471 }
  0xf8   :  { %v1481_v40 = vsel %vm1477_vm6, %v1470_v7, %v1472_v12  ;;  %v1482_v52 = vsel %vm1477_vm6, %v1472_v12, %v1474_v41  ;;  %v14939_v7 = vld [vmem:[%s23005_s2 + $0x90] sm:$0xff]  }
  0xf9   :  { %v1506_v57 = vsel %vm121_vm1, %v1482_v52, 0 }
  0xfa   :  { %13814 = vmatmul.mubr.msk.bf16.vlgmr.msra.gmra.mxu1 %vm111_vm2, %v14272_v29 }
  0xfb   :  { %1112 = vmatprep.mubr.bf16.mxu1 %v23016_v3  ;;  %1295 = vmatpush1.bf16.msra.mxu1 %v1206_v36  ;;  %v14809_v42 = vpop.permute.xlu0 %1475 }
  0xfc   :  { %13835 = vmatprep.subr.msk.bf16.mxu1 %vm121_vm1, %v1479_v37  ;;  %23114 = vst [vmem:[#allocation9_spill] sm:$0xff] %v14809_v42  ;;  %v1483_v45 = vsel %vm1477_vm6, %v1474_v41, %v14809_v42 }
  0xfd   :  { %13811 = vmatmul.mubr.msk.bf16.gmra.mxu0 %vm111_vm2, %v14273_v32 }
  0xfe   :  { %1059 = vmatprep.mubr.bf16.mxu0 %v23016_v3 }
  0xff   :  { %v1760_v49 = vpop.permute.xlu0 %1759 }
 0x100   :  { %v1773_v53 = vsel %vm1771_vm7, %v1760_v49, %v1762_v48  ;;  %v1772_v0 = vsel %vm1771_vm7, %v1758_v47, %v1760_v49 }
 0x101   :  { %v1788_v2 = vsel %vm121_vm1, %v1772_v0, 0 }
 0x102   :  { %13815 = vmatmul.mubr.msk.bf16.gmra.mxu1 %vm111_vm2, %v14273_v32 }
 0x103   :  { %1122 = vmatprep.mubr.bf16.mxu1 %v23016_v3  ;;  %v1764_v56 = vpop.permute.xlu0 %1763 }
 0x104   :  { %v1775_v58 = vsel %vm1771_vm7, %v1764_v56, %v14841_v55  ;;  %v1774_v6 = vsel %vm1771_vm7, %v1762_v48, %v1764_v56 }
 0x105   :  { %13812 = vmatmul.mubr.msk.bf16.gmra.mxu0 %vm111_vm2, %v14274_v4  ;;  %v1794_v17 = vsel %vm121_vm1, %v1774_v6, 0  ;;  %v2622_v6 = vld [vmem:[%s23006_s3 + $0x20] sm:$0xff] }
 0x106   :  { %1249 = vmatprep.mubr.bf16.mxu0 %v23016_v3  ;;  %2646 = vperm.xlu0 %14261, %v2622_v6  }
 0x107   :  { %v1768_v61 = vpop.permute.xlu0 %1767 }
 0x108   :  { %v1777_v8 = vsel %vm1771_vm7, %v1768_v61, %v14864_v1  ;;  %v1776_v34 = vsel %vm1771_vm7, %v14841_v55, %v1768_v61 }
 0x109   :  { %v1800_v39 = vsel %vm121_vm1, %v1776_v34, 0  ;;  %v2618_v34 = vld [vmem:[%s23006_s3] sm:$0xff] }
 0x10a   :  { %13816 = vmatmul.mubr.msk.bf16.gmra.mxu1 %vm111_vm2, %v14274_v4 }
 0x10b   :  { %1312 = vmatprep.mubr.bf16.mxu1 %v23016_v3  ;;  %v2052_v63 = vpop.permute.xlu0 %2051 }
 0x10d   :  { %13821 = vmatmul.mubr.msk.bf16.vlgmr.msra.gmra.mxu0 %vm111_vm2, %v14275_v5 }
 0x10e   :  { %1259 = vmatprep.mubr.bf16.mxu0 %v23016_v3  ;;  %1358 = vmatpush1.bf16.msra.mxu0 %v1212_v38 }
 0x10f   :  { %13839 = vmatprep.subr.msk.bf16.mxu0 %vm121_vm1, %v1481_v40  ;;  %v14875_v15 = vpop.permute.xlu0 %2055  ;;  %v2066_v40 = vsel %vm2065_vm8, %v2052_v63, %v2054_v9 }
 0x110   :  { %v2067_v18 = vsel %vm2065_vm8, %v2054_v9, %v14875_v15  ;;  %v2082_v49 = vsel %vm121_vm1, %v2066_v40, 0 }
 0x112   :  { %13825 = vmatmul.mubr.msk.bf16.vlgmr.msra.gmra.mxu1 %vm111_vm2, %v14275_v5 }
 0x113   :  { %1322 = vmatprep.mubr.bf16.mxu1 %v23016_v3  ;;  %1526 = vmatpush1.bf16.msra.mxu1 %v1494_v43  ;;  %v14929_v36 = vpop.permute.xlu0 %2059  ;;  %v14951_v43 = vpop.permute.xlu1 %2061 }
 0x114   :  { %13843 = vmatprep.subr.msk.bf16.mxu1 %vm121_vm1, %v1483_v45  ;;  %v2069_v41 = vsel %vm2065_vm8, %v14927_v35, %v14929_v36 }
 0x115   :  { %13822 = vmatmul.mubr.msk.bf16.gmra.mxu0 %vm111_vm2, %v14276_v11 }
 0x116   :  { %1269 = vmatprep.mubr.bf16.mxu0 %v23016_v3 }
 0x117   :  { %v14953_v45 = vpop.permute.xlu0 %2063  ;;  %v15012_v9 = vpop.permute.xlu1 %2345 }
 0x118   :  { %23116 = vst [vmem:[#allocation11_spill] sm:$0xff] %v14953_v45  ;;  %v2071_v50 = vsel %vm2065_vm8, %v14951_v43, %v14953_v45 }
 0x11a   :  { %13826 = vmatmul.mubr.msk.bf16.gmra.mxu1 %vm111_vm2, %v14276_v11 }
 0x11b   :  { %1332 = vmatprep.mubr.bf16.mxu1 %v23016_v3 }
 0x11d   :  { %13823 = vmatmul.mubr.msk.bf16.gmra.mxu0 %vm111_vm2, %v14277_v46 }
 0x11e   :  { %1375 = vmatprep.mubr.bf16.mxu0 %v23016_v3 }
 0x122   :  { %13827 = vmatmul.mubr.msk.bf16.gmra.mxu1 %vm111_vm2, %v14277_v46 }
 0x123   :  { %1543 = vmatprep.mubr.bf16.mxu1 %v23016_v3 }
 0x125   :  { %13829 = vmatmul.mubr.msk.bf16.vlgmr.msra.gmra.mxu0 %vm111_vm2, %v14275_v5 }
 0x126   :  { %1385 = vmatprep.mubr.bf16.mxu0 %v23016_v3  ;;  %1589 = vmatpush1.bf16.msra.mxu0 %v1500_v51 }
 0x127   :  { %13850 = vmatprep.subr.msk.bf16.mxu0 %vm121_vm1, %v1773_v53  ;;  %v14978_v53 = vld [vmem:[%s23005_s2 + $0x98] sm:$0xff]  }
 0x12a   :  { %13836 = vmatmul.mubr.msk.bf16.vlgmr.msra.gmra.mxu1 %vm111_vm2, %v14278_v54 }
 0x12b   :  { %1553 = vmatprep.mubr.bf16.mxu1 %v23016_v3  ;;  %1652 = vmatpush1.bf16.msra.mxu1 %v1506_v57  ;;  %v2623_v57 = vld [vmem:[%s23006_s3 + $0x28] sm:$0xff] }
 0x12c   :  { %13854 = vmatprep.subr.msk.bf16.mxu1 %vm121_vm1, %v1775_v58  ;;  %2651 = vperm.xlu1 %14262, %v2623_v57   ;;  %v2619_v57 = vld [vmem:[%s23006_s3 + $0x8] sm:$0xff] }
 0x12d   :  { %13830 = vmatmul.mubr.msk.bf16.gmra.mxu0 %vm111_vm2, %v14276_v11 }
 0x12e   :  { %1395 = vmatprep.mubr.bf16.mxu0 %v23016_v3 }
 0x132   :  { %13837 = vmatmul.mubr.msk.bf16.gmra.mxu1 %vm111_vm2, %v14279_v60 }
 0x133   :  { %1563 = vmatprep.mubr.bf16.mxu1 %v23016_v3 }
 0x135   :  { %13831 = vmatmul.mubr.msk.bf16.gmra.mxu0 %vm111_vm2, %v14277_v46 }
 0x136   :  { %1606 = vmatprep.mubr.bf16.mxu0 %v23016_v3 }
 0x13a   :  { %13838 = vmatmul.mubr.msk.bf16.gmra.mxu1 %vm111_vm2, %v14280_v62 }
 0x13b   :  { %1669 = vmatprep.mubr.bf16.mxu1 %v23016_v3 }
 0x13d   :  { %v14872_v14 = vpop.f32.mrf.mxu0  ;;  %13840 = vmatmul.mubr.msk.bf16.vlgmr.msra.gmra.mxu0 %vm111_vm2, %v14278_v54 }
 0x13e   :  { %1616 = vmatprep.mubr.bf16.mxu0 %v23016_v3  ;;  %1820 = vmatpush1.bf16.msra.mxu0 %v1788_v2  ;;  %v2620_v2 = vld [vmem:[%s23006_s3 + $0x10] sm:$0xff] }
 0x13f   :  { %v14878_v16 = vpop.f32.mrf.mxu0  ;;  %13858 = vmatprep.subr.msk.bf16.mxu0 %vm121_vm1, %v1777_v8  ;;  %2636 = vperm.xlu1 %14262, %v2620_v2  }
 0x141   :  { %v14884_v19 = vpop.f32.mrf.mxu0  ;;  %v14886_v20 = vpop.f32.mrf.mxu1 }
 0x142   :  { %13844 = vmatmul.mubr.msk.bf16.vlgmr.msra.gmra.mxu1 %vm111_vm2, %v14278_v54 }
 0x143   :  { %1679 = vmatprep.mubr.bf16.mxu1 %v23016_v3  ;;  %1883 = vmatpush1.bf16.msra.mxu1 %v1794_v17  ;;  %v14890_v21 = vpop.f32.mrf.mxu0  ;;  %v14892_v22 = vpop.f32.mrf.mxu1  ;;  %v15021_v17 = vld [vmem:[%s23005_s2 + $0xa0] sm:$0xff]  }
 0x144   :  { %13865 = vmatprep.subr.msk.bf16.mxu1 %vm121_vm1, %v2067_v18  ;;  %2626 = vperm.xlu1 %14262, %v2618_v34  }
 0x145   :  { %v14895_v23 = vpop.f32.mrf.mxu0  ;;  %v14897_v24 = vpop.f32.mrf.mxu1  ;;  %13841 = vmatmul.mubr.msk.bf16.gmra.mxu0 %vm111_vm2, %v14279_v60 }
 0x146   :  { %1626 = vmatprep.mubr.bf16.mxu0 %v23016_v3 }
 0x147   :  { %v14901_v25 = vpop.f32.mrf.mxu0  ;;  %v14903_v26 = vpop.f32.mrf.mxu1 }
 0x149   :  { %v14905_v27 = vpop.f32.mrf.mxu0 }
 0x14a   :  { %v14907_v28 = vpop.f32.mrf.mxu1  ;;  %13845 = vmatmul.mubr.msk.bf16.gmra.mxu1 %vm111_vm2, %v14279_v60 }
 0x14b   :  { %1689 = vmatprep.mubr.bf16.mxu1 %v23016_v3  ;;  %v14911_v29 = vpop.f32.mrf.mxu0 }
 0x14c   :  { %v14913_v30 = vpop.f32.mrf.mxu1 }
 0x14d   :  { %v14915_v32 = vpop.f32.mrf.mxu0  ;;  %13842 = vmatmul.mubr.msk.bf16.gmra.mxu0 %vm111_vm2, %v14280_v62 }
 0x14e   :  { %v14917_v4 = vpop.f32.mrf.mxu1  ;;  %1837 = vmatprep.mubr.bf16.mxu0 %v23016_v3 }
 0x14f   :  { %v14921_v10 = vpop.f32.mrf.mxu0 }
 0x150   :  { %v14923_v33 = vpop.f32.mrf.mxu1 }
 0x151   :  { %v14931_v37 = vpop.f32.mrf.mxu0 }
 0x152   :  { %v14933_v5 = vpop.f32.mrf.mxu1  ;;  %13846 = vmatmul.mubr.msk.bf16.gmra.mxu1 %vm111_vm2, %v14280_v62 }
 0x153   :  { %1900 = vmatprep.mubr.bf16.mxu1 %v23016_v3  ;;  %v14942_v12 = vpop.f32.mrf.mxu0 }
 0x154   :  { %v14944_v38 = vpop.f32.mrf.mxu1 }
 0x155   :  { %v14957_v46 = vpop.f32.mrf.mxu0  ;;  %13851 = vmatmul.mubr.msk.bf16.vlgmr.msra.gmra.mxu0 %vm111_vm2, %v14939_v7 }
 0x156   :  { %v14955_v11 = vpop.f32.mrf.mxu1  ;;  %1847 = vmatprep.mubr.bf16.mxu0 %v23016_v3  ;;  %1946 = vmatpush1.bf16.msra.mxu0 %v1800_v39  ;;  %v2621_v39 = vld [vmem:[%s23006_s3 + $0x18] sm:$0xff] }
 0x157   :  { %v14964_v48 = vpop.f32.mrf.mxu0  ;;  %13869 = vmatprep.subr.msk.bf16.mxu0 %vm121_vm1, %v2069_v41  ;;  %2641 = vperm.xlu0 %14261, %v2621_v39  }
 0x158   :  { %v14962_v47 = vpop.f32.mrf.mxu1 }
 0x159   :  { %v14971_v51 = vpop.f32.mrf.mxu0 }
 0x15a   :  { %v426_v52 = vpop.f32.mrf.mxu1  ;;  %13855 = vmatmul.mubr.msk.bf16.vlgmr.msra.gmra.mxu1 %vm111_vm2, %v14939_v7 }
 0x15b   :  { %v14981_v54 = vadd.f32 %v426_v52, %v14872_v14  ;;  %1910 = vmatprep.mubr.bf16.mxu1 %v23016_v3  ;;  %2114 = vmatpush1.bf16.msra.mxu1 %v2082_v49  ;;  %v14984_v55 = vpop.f32.mrf.mxu0  ;;  %v15048_v52 = vpop.permute.xlu0 %2347 }
 0x15c   :  { %v428_v56 = vpop.f32.mrf.mxu1  ;;  %13873 = vmatprep.subr.msk.bf16.mxu1 %vm121_vm1, %v2071_v50  ;;  %v15046_v50 = vpop.permute.xlu1 %2349  ;;  %2631 = vperm.xlu0 %14261, %v2619_v57  }
 0x15d   :  { %v14991_v58 = vadd.f32 %v428_v56, %v14878_v16  ;;  %v14993_v60 = vpop.f32.mrf.mxu0  ;;  %13852 = vmatmul.mubr.msk.bf16.gmra.mxu0 %vm111_vm2, %v14978_v53  ;;  %v2361_v34 = vsel %vm2359_vm9, %v15048_v52, %v15046_v50 }
 0x15e   :  { %v430_v61 = vpop.f32.mrf.mxu1  ;;  %1857 = vmatprep.mubr.bf16.mxu0 %v23016_v3 }
 0x15f   :  { %v14998_v62 = vadd.f32 %v430_v61, %v14884_v19  ;;  %v15001_v63 = vpop.f32.mrf.mxu0  ;;  %v15083_v39 = vpop.permute.xlu0 %2351 }
 0x160   :  { %v432_v0 = vpop.f32.mrf.mxu1 }
 0x161   :  { %v15010_v8 = vadd.f32 %v432_v0, %v14890_v21  ;;  %v15014_v14 = vpop.f32.mrf.mxu0 }
 0x162   :  { %v436_v16 = vpop.f32.mrf.mxu1  ;;  %13856 = vmatmul.mubr.msk.bf16.gmra.mxu1 %vm111_vm2, %v14978_v53 }
 0x163   :  { %v15024_v18 = vadd.f32 %v436_v16, %v14895_v23  ;;  %1920 = vmatprep.mubr.bf16.mxu1 %v23016_v3  ;;  %v15027_v19 = vpop.f32.mrf.mxu0 }
 0x164   :  { %v438_v21 = vpop.f32.mrf.mxu1 }
 0x165   :  { %v15036_v40 = vadd.f32 %v438_v21, %v14901_v25  ;;  %v15038_v23 = vpop.f32.mrf.mxu0  ;;  %13853 = vmatmul.mubr.msk.bf16.gmra.mxu0 %vm111_vm2, %v15021_v17 }
 0x166   :  { %v440_v41 = vpop.f32.mrf.mxu1  ;;  %1963 = vmatprep.mubr.bf16.mxu0 %v23016_v3 }
 0x167   :  { %v15043_v49 = vadd.f32 %v440_v41, %v14905_v27  ;;  %v15050_v56 = vpop.f32.mrf.mxu0  ;;  %v2068_v27 = vsel %vm2065_vm8, %v14875_v15, %v14927_v35  ;;  %v2070_v35 = vsel %vm2065_vm8, %v14929_v36, %v14951_v43 }
 0x168   :  { %v442_v25 = vpop.f32.mrf.mxu1  ;;  %v2088_v21 = vsel %vm121_vm1, %v2068_v27, 0 }
 0x169   :  { %v15056_v61 = vadd.f32 %v442_v25, %v14911_v29  ;;  %v15061_v0 = vpop.f32.mrf.mxu0 }
 0x16a   :  { %v446_v2 = vpop.f32.mrf.mxu1  ;;  %13857 = vmatmul.mubr.msk.bf16.gmra.mxu1 %vm111_vm2, %v15021_v17 }
 0x16b   :  { %v15066_v6 = vadd.f32 %v446_v2, %v14915_v32  ;;  %2131 = vmatprep.mubr.bf16.mxu1 %v23016_v3  ;;  %v15069_v16 = vpop.f32.mrf.mxu0  ;;  %v15081_v32 = vpop.permute.xlu1 %2353  ;;  %v2094_v2 = vsel %vm121_vm1, %v2070_v35, 0 }
 0x16c   :  { %v448_v29 = vpop.f32.mrf.mxu1 }
 0x16d   :  { %v15073_v15 = vadd.f32 %v448_v29, %v14921_v10  ;;  %v489_v25 = vpop.f32.mrf.mxu0  ;;  %13859 = vmatmul.mubr.msk.bf16.vlgmr.msra.gmra.mxu0 %vm111_vm2, %v14939_v7  ;;  %v15090_v10 = vld [vmem:[%s23005_s2 + $0xa8] sm:$0xff]  }
 0x16e   :  { %v450_v41 = vpop.f32.mrf.mxu1  ;;  %v15096_v43 = vadd.f32 %v489_v25, %v14886_v20  ;;  %1973 = vmatprep.mubr.bf16.mxu0 %v23016_v3  ;;  %2177 = vmatpush1.bf16.msra.mxu0 %v2088_v21  ;;  %v2363_v20 = vsel %vm2359_vm9, %v15083_v39, %v15081_v32 }
 0x16f   :  { %v15093_v36 = vadd.f32 %v450_v41, %v14931_v37  ;;  %v491_v27 = vpop.f32.mrf.mxu0  ;;  %13880 = vmatprep.subr.msk.bf16.mxu0 %vm121_vm1, %v2361_v34 }
 0x170   :  { %v452_v57 = vpop.f32.mrf.mxu1  ;;  %v15105_v29 = vadd.f32 %v491_v27, %v14892_v22 }
 0x171   :  { %v15102_v7 = vadd.f32 %v452_v57, %v14942_v12  ;;  %v493_v37 = vpop.f32.mrf.mxu0 }
 0x172   :  { %v552_v41 = vpop.f32.mrf.mxu1  ;;  %13866 = vmatmul.mubr.msk.bf16.vlgmr.msra.gmra.mxu1 %vm111_vm2, %v15090_v10  ;;  %v15113_v21 = vadd.f32 %v493_v37, %v14897_v24  ;;  %v15131_v24 = vld [vmem:[%s23005_s2 + $0xb0] sm:$0xff]  }
 0x173   :  { %v15116_v35 = vadd.f32 %v552_v41, %v14957_v46  ;;  %2141 = vmatprep.mubr.bf16.mxu1 %v23016_v3  ;;  %2240 = vmatpush1.bf16.msra.mxu1 %v2094_v2  ;;  %v495_v22 = vpop.f32.mrf.mxu0 }
 0x174   :  { %v554_v12 = vpop.f32.mrf.mxu1  ;;  %13884 = vmatprep.subr.msk.bf16.mxu1 %vm121_vm1, %v2363_v20  ;;  %v15121_v34 = vadd.f32 %v495_v22, %v14903_v26 }
 0x175   :  { %v15124_v25 = vadd.f32 %v554_v12, %v14964_v48  ;;  %v499_v57 = vpop.f32.mrf.mxu0  ;;  %13860 = vmatmul.mubr.msk.bf16.gmra.mxu0 %vm111_vm2, %v14978_v53 }
 0x176   :  { %v556_v27 = vpop.f32.mrf.mxu1  ;;  %v15134_v46 = vadd.f32 %v499_v57, %v14907_v28  ;;  %1983 = vmatprep.mubr.bf16.mxu0 %v23016_v3 }
 0x177   :  { %v15137_v2 = vadd.f32 %v556_v27, %v14971_v51  ;;  %v501_v26 = vpop.f32.mrf.mxu0 }
 0x178   :  { %v558_v48 = vpop.f32.mrf.mxu1  ;;  %v15141_v20 = vadd.f32 %v501_v26, %v14913_v30 }
 0x179   :  { %v15144_v53 = vadd.f32 %v558_v48, %v14984_v55  ;;  %v503_v37 = vpop.f32.mrf.mxu0 }
 0x17a   :  { %v562_v41 = vpop.f32.mrf.mxu1  ;;  %13867 = vmatmul.mubr.msk.bf16.gmra.mxu1 %vm111_vm2, %v15131_v24  ;;  %v15149_v28 = vadd.f32 %v503_v37, %v14917_v4  ;;  %v15166_v4 = vld [vmem:[%s23005_s2 + $0xb8] sm:$0xff]   ;;  %v2360_v37 = vsel %vm2359_vm9, %v15012_v9, %v15048_v52 }
 0x17b   :  { %v15152_v51 = vadd.f32 %v562_v41, %v14993_v60  ;;  %2151 = vmatprep.mubr.bf16.mxu1 %v23016_v3  ;;  %v505_v22 = vpop.f32.mrf.mxu0  ;;  %v15184_v41 = vpop.permute.xlu1 %2357  ;;  %v2376_v9 = vsel %vm121_vm1, %v2360_v37, 0 }
 0x17c   :  { %v564_v12 = vpop.f32.mrf.mxu1  ;;  %v15156_v30 = vadd.f32 %v505_v22, %v14923_v33  ;;  %23117 = vst [vmem:[#allocation12_spill] sm:$0xff] %v15184_v41 }
 0x17d   :  { %v15159_v55 = vadd.f32 %v564_v12, %v15001_v63  ;;  %v509_v57 = vpop.f32.mrf.mxu0  ;;  %13861 = vmatmul.mubr.msk.bf16.gmra.mxu0 %vm111_vm2, %v15021_v17 }
 0x17e   :  { %v566_v27 = vpop.f32.mrf.mxu1  ;;  %v15169_v60 = vadd.f32 %v509_v57, %v14933_v5  ;;  %2194 = vmatprep.mubr.bf16.mxu0 %v23016_v3  ;;  %v15186_v5 = vpop.permute.xlu0 %2355 }
 0x17f   :  { %v15172_v26 = vadd.f32 %v566_v27, %v15014_v14  ;;  %v511_v33 = vpop.f32.mrf.mxu0 }
 0x180   :  { %v568_v63 = vpop.f32.mrf.mxu1  ;;  %v15176_v48 = vadd.f32 %v511_v33, %v14944_v38 }
 0x181   :  { %v15179_v17 = vadd.f32 %v568_v63, %v15027_v19  ;;  %v513_v14 = vpop.f32.mrf.mxu0 }
 0x182   :  { %v572_v22 = vpop.f32.mrf.mxu1  ;;  %13868 = vmatmul.mubr.msk.bf16.gmra.mxu1 %vm111_vm2, %v15166_v4  ;;  %v15191_v12 = vadd.f32 %v513_v14, %v14955_v11  ;;  %v2362_v11 = vsel %vm2359_vm9, %v15046_v50, %v15083_v39 }
 0x183   :  { %v15194_v38 = vadd.f32 %v572_v22, %v15038_v23  ;;  %2257 = vmatprep.mubr.bf16.mxu1 %v23016_v3  ;;  %v515_v19 = vpop.f32.mrf.mxu0  ;;  %v2365_v23 = vsel %vm2359_vm9, %v15186_v5, %v15184_v41  ;;  %v2382_v39 = vsel %vm121_vm1, %v2362_v11, 0 }
 0x184   :  { %v574_v57 = vpop.f32.mrf.mxu1  ;;  %v15199_v52 = vadd.f32 %v515_v19, %v14962_v47 }
 0x185   :  { %v15202_v27 = vadd.f32 %v574_v57, %v15050_v56  ;;  %v684_v63 = vpop.f32.mrf.mxu0  ;;  %13870 = vmatmul.mubr.msk.bf16.vlgmr.msra.gmra.mxu0 %vm111_vm2, %v15090_v10 }
 0x186   :  { %v576_v33 = vpop.f32.mrf.mxu1  ;;  %v15216_v47 = vadd.f32 %v684_v63, %v14981_v54  ;;  %2204 = vmatprep.mubr.bf16.mxu0 %v23016_v3  ;;  %2408 = vmatpush1.bf16.msra.mxu0 %v2376_v9 }
 0x187   :  { %v15213_v37 = vadd.f32 %v576_v33, %v15061_v0  ;;  %v686_v50 = vpop.f32.mrf.mxu0  ;;  %13888 = vmatprep.subr.msk.bf16.mxu0 %vm121_vm1, %v2365_v23 }
 0x188   :  { %v578_v56 = vpop.f32.mrf.mxu1  ;;  %v15225_v22 = vadd.f32 %v686_v50, %v14991_v58 }
 0x189   :  { %v15222_v14 = vadd.f32 %v578_v56, %v15069_v16  ;;  %v688_v0 = vpop.f32.mrf.mxu0 }
 0x18a   :  { %v747_v19 = vpop.f32.mrf.mxu1  ;;  %13874 = vmatmul.mubr.msk.bf16.vlgmr.msra.gmra.mxu1 %vm111_vm2, %v15090_v10  ;;  %v15230_v54 = vadd.f32 %v688_v0, %v14998_v62 }
 0x18b   :  { %v15233_v57 = vadd.f32 %v747_v19, %v15096_v43  ;;  %2267 = vmatprep.mubr.bf16.mxu1 %v23016_v3  ;;  %2471 = vmatpush1.bf16.msra.mxu1 %v2382_v39  ;;  %v690_v9 = vpop.f32.mrf.mxu0 }
 0x18c   :  { %v749_v16 = vpop.f32.mrf.mxu1  ;;  %v15237_v11 = vadd.f32 %v690_v9, %v15010_v8 }
 0x18d   :  { %v15240_v58 = vadd.f32 %v749_v16, %v15105_v29  ;;  %v694_v23 = vpop.f32.mrf.mxu0  ;;  %13871 = vmatmul.mubr.msk.bf16.gmra.mxu0 %vm111_vm2, %v15131_v24 }
 0x18e   :  { %v751_v33 = vpop.f32.mrf.mxu1  ;;  %v15245_v62 = vadd.f32 %v694_v23, %v15024_v18  ;;  %2214 = vmatprep.mubr.bf16.mxu0 %v23016_v3  ;;  %v2364_v23 = vsel %vm2359_vm9, %v15081_v32, %v15186_v5 }
 0x18f   :  { %v15248_v10 = vadd.f32 %v751_v33, %v15113_v21  ;;  %v696_v43 = vpop.f32.mrf.mxu0  ;;  %v2388_v5 = vsel %vm121_vm1, %v2364_v23, 0 }
 0x190   :  { %v753_v63 = vpop.f32.mrf.mxu1  ;;  %v15252_v8 = vadd.f32 %v696_v43, %v15036_v40 }
 0x191   :  { %v15255_v29 = vadd.f32 %v753_v63, %v15121_v34  ;;  %v698_v56 = vpop.f32.mrf.mxu0 }
 0x192   :  { %v757_v50 = vpop.f32.mrf.mxu1  ;;  %13875 = vmatmul.mubr.msk.bf16.gmra.mxu1 %vm111_vm2, %v15131_v24  ;;  %v15260_v18 = vadd.f32 %v698_v56, %v15043_v49 }
 0x193   :  { %v15263_v21 = vadd.f32 %v757_v50, %v15134_v46  ;;  %2277 = vmatprep.mubr.bf16.mxu1 %v23016_v3  ;;  %v700_v39 = vpop.f32.mrf.mxu0 }
 0x194   :  { %v759_v0 = vpop.f32.mrf.mxu1  ;;  %v15267_v40 = vadd.f32 %v700_v39, %v15056_v61 }
 0x195   :  { %v15270_v34 = vadd.f32 %v759_v0, %v15141_v20  ;;  %v704_v19 = vpop.f32.mrf.mxu0  ;;  %13872 = vmatmul.mubr.msk.bf16.gmra.mxu0 %vm111_vm2, %v15166_v4 }
 0x196   :  { %v761_v9 = vpop.f32.mrf.mxu1  ;;  %v15275_v49 = vadd.f32 %v704_v19, %v15066_v6  ;;  %2425 = vmatprep.mubr.bf16.mxu0 %v23016_v3 }
 0x197   :  { %v15278_v24 = vadd.f32 %v761_v9, %v15149_v28  ;;  %v706_v46 = vpop.f32.mrf.mxu0  ;;  %v15295_v28 = vld [vmem:[%s23005_s2 + $0xc0] sm:$0xff]  }
 0x198   :  { %v763_v16 = vpop.f32.mrf.mxu1  ;;  %v15282_v61 = vadd.f32 %v706_v46, %v15073_v15 }
 0x199   :  { %v15285_v20 = vadd.f32 %v763_v16, %v15156_v30  ;;  %v708_v33 = vpop.f32.mrf.mxu0 }
 0x19a   :  { %v767_v6 = vpop.f32.mrf.mxu1  ;;  %13876 = vmatmul.mubr.msk.bf16.gmra.mxu1 %vm111_vm2, %v15166_v4  ;;  %v15298_v15 = vadd.f32 %v708_v33, %v15093_v36 }
 0x19b   :  { %v15301_v30 = vadd.f32 %v767_v6, %v15169_v60  ;;  %2488 = vmatprep.mubr.bf16.mxu1 %v23016_v3  ;;  %v710_v43 = vpop.f32.mrf.mxu0 }
 0x19c   :  { %v769_v32 = vpop.f32.mrf.mxu1  ;;  %v15306_v63 = vadd.f32 %v710_v43, %v15102_v7 }
 0x19d   :  { %v15309_v4 = vadd.f32 %v769_v32, %v15176_v48  ;;  %v810_v50 = vpop.f32.mrf.mxu0  ;;  %13881 = vmatmul.mubr.msk.bf16.vlgmr.msra.gmra.mxu0 %vm111_vm2, %v15295_v28 }
 0x19e   :  { %v771_v56 = vpop.f32.mrf.mxu1  ;;  %v15317_v60 = vadd.f32 %v810_v50, %v15116_v35  ;;  %2435 = vmatprep.mubr.bf16.mxu0 %v23016_v3  ;;  %2534 = vmatpush1.bf16.msra.mxu0 %v2388_v5 }
 0x19f   :  { %v15314_v36 = vadd.f32 %v771_v56, %v15191_v12  ;;  %v812_v7 = vpop.f32.mrf.mxu0  ;;  %v15330_v12 = vld [vmem:[%s23005_s2 + $0xc8] sm:$0xff]  }
 0x1a0   :  { %v15320_v39 = vpop.f32.mrf.mxu1  ;;  %v15323_v48 = vadd.f32 %v812_v7, %v15124_v25 }
 0x1a1   :  { %v814_v0 = vpop.f32.mrf.mxu0 }
 0x1a2   :  { %v978_v19 = vpop.f32.mrf.mxu1  ;;  %13885 = vmatmul.mubr.msk.bf16.vlgmr.msra.gmra.mxu1 %vm111_vm2, %v15295_v28  ;;  %v15333_v35 = vadd.f32 %v814_v0, %v15137_v2 }
 0x1a3   :  { %v15336_v9 = vadd.f32 %v978_v19, %v15216_v47  ;;  %2498 = vmatprep.mubr.bf16.mxu1 %v23016_v3  ;;  %v816_v25 = vpop.f32.mrf.mxu0 }
 0x1a4   :  { %v980_v46 = vpop.f32.mrf.mxu1  ;;  %v15340_v16 = vadd.f32 %v816_v25, %v15144_v53 }
 0x1a5   :  { %v15343_v23 = vadd.f32 %v980_v46, %v15225_v22  ;;  %v820_v33 = vpop.f32.mrf.mxu0  ;;  %13882 = vmatmul.mubr.msk.bf16.gmra.mxu0 %vm111_vm2, %v15330_v12 }
 0x1a6   :  { %v982_v6 = vpop.f32.mrf.mxu1  ;;  %v15348_v2 = vadd.f32 %v820_v33, %v15152_v51  ;;  %2445 = vmatprep.mubr.bf16.mxu0 %v23016_v3  ;;  %v14289_v51 = vld [vmem:[%s23005_s2 + $0xd0] sm:$0xff]  }
 0x1a7   :  { %v15351_v47 = vadd.f32 %v982_v6, %v15230_v54  ;;  %v822_v43 = vpop.f32.mrf.mxu0 }
 0x1a8   :  { %v15354_v32 = vpop.f32.mrf.mxu1  ;;  %v856_v53 = vadd.f32 %v822_v43, %v15159_v55 }
 0x1a9   :  { %v824_v22 = vpop.f32.mrf.mxu0 }
 0x1aa   :  { %v988_v5 = vpop.f32.mrf.mxu1  ;;  %13886 = vmatmul.mubr.msk.bf16.gmra.mxu1 %vm111_vm2, %v15330_v12  ;;  %v861_v56 = vadd.f32 %v824_v22, %v15172_v26 }
 0x1ab   :  { %v15364_v54 = vadd.f32 %v988_v5, %v15245_v62  ;;  %2508 = vmatprep.mubr.bf16.mxu1 %v23016_v3  ;;  %v826_v50 = vpop.f32.mrf.mxu0 }
 0x1ac   :  { %v990_v7 = vpop.f32.mrf.mxu1  ;;  %v15368_v55 = vadd.f32 %v826_v50, %v15179_v17 }
 0x1ad   :  { %v15371_v0 = vadd.f32 %v990_v7, %v15252_v8  ;;  %v830_v19 = vpop.f32.mrf.mxu0  ;;  %13883 = vmatmul.mubr.msk.bf16.gmra.mxu0 %vm111_vm2, %v14289_v51 }
 0x1ae   :  { %v992_v25 = vpop.f32.mrf.mxu1  ;;  %v867_v46 = vadd.f32 %v830_v19, %v15194_v38  ;;  %2551 = vmatprep.mubr.bf16.mxu0 %v23016_v3 }
 0x1af   :  { %v15376_v26 = vadd.f32 %v992_v25, %v15260_v18  ;;  %v832_v62 = vpop.f32.mrf.mxu0 }
 0x1b0   :  { %v15379_v33 = vpop.f32.mrf.mxu1  ;;  %v868_v17 = vadd.f32 %v832_v62, %v15202_v27 }
 0x1b1   :  { %v834_v6 = vpop.f32.mrf.mxu0 }
 0x1b2   :  { %v998_v43 = vpop.f32.mrf.mxu1  ;;  %13887 = vmatmul.mubr.msk.bf16.gmra.mxu1 %vm111_vm2, %v14289_v51  ;;  %v873_v8 = vadd.f32 %v834_v6, %v15213_v37 }
 0x1b3   :  { %v15385_v22 = vadd.f32 %v998_v43, %v15275_v49  ;;  %3006 = vmatprep.mubr.bf16.mxu1 %v23016_v3  ;;  %v15388_v38 = vpop.f32.mrf.mxu0 }
 0x1b4   :  { %v1000_v18 = vpop.f32.mrf.mxu1 }
 0x1b5   :  { %v15391_v5 = vadd.f32 %v1000_v18, %v15282_v61  ;;  %v1041_v7 = vpop.f32.mrf.mxu0  ;;  %13889 = vmatmul.mubr.msk.bf16.vlgmr.msra.gmra.mxu0 %vm111_vm2, %v15295_v28 }
 0x1b6   :  { %v1002_v50 = vpop.f32.mrf.mxu1  ;;  %v1135_v37 = vadd.f32 %v1041_v7, %v15233_v57  ;;  %2561 = vmatprep.mubr.bf16.mxu0 %v23016_v3 }
 0x1b7   :  { %v15396_v27 = vadd.f32 %v1002_v50, %v15298_v15  ;;  %v1043_v19 = vpop.f32.mrf.mxu0 }
 0x1b8   :  { %v15400_v49 = vpop.f32.mrf.mxu1  ;;  %v1136_v25 = vadd.f32 %v1043_v19, %v15240_v58 }
 0x1b9   :  { %v1045_v62 = vpop.f32.mrf.mxu0 }
 0x1ba   :  { %v1104_v61 = vpop.f32.mrf.mxu1  ;;  %v1141_v6 = vadd.f32 %v1045_v62, %v15248_v10 }
 0x1bb   :  { %v15405_v43 = vadd.f32 %v1104_v61, %v15317_v60  ;;  %v15407_v28 = vpop.f32.mrf.mxu0 }
 0x1bc   :  { %v1106_v15 = vpop.f32.mrf.mxu1 }
 0x1bd   :  { %v15410_v18 = vadd.f32 %v1106_v15, %v15323_v48  ;;  %v1051_v57 = vpop.f32.mrf.mxu0  ;;  %13890 = vmatmul.mubr.msk.bf16.gmra.mxu0 %vm111_vm2, %v15330_v12 }
 0x1be   :  { %v1108_v50 = vpop.f32.mrf.mxu1  ;;  %v1147_v58 = vadd.f32 %v1051_v57, %v15263_v21  ;;  %2571 = vmatprep.mubr.bf16.mxu0 %v23016_v3 }
 0x1bf   :  { %v15416_v7 = vadd.f32 %v1108_v50, %v15333_v35  ;;  %v1053_v10 = vpop.f32.mrf.mxu0 }
 0x1c0   :  { %v15419_v60 = vpop.f32.mrf.mxu1  ;;  %v1148_v19 = vadd.f32 %v1053_v10, %v15270_v34  ;;  %v23118_v34 = vmov 0  }
 0x1c1   :  { %v1055_v62 = vpop.f32.mrf.mxu0 }
 0x1c2   :  { %v1114_v48 = vpop.f32.mrf.mxu1  ;;  %v1153_v61 = vadd.f32 %v1055_v62, %v15278_v24 }
 0x1c3   :  { %v15424_v15 = vadd.f32 %v1114_v48, %v15348_v2  ;;  %v15426_v12 = vpop.f32.mrf.mxu0 }
 0x1c4   :  { %v1116_v21 = vpop.f32.mrf.mxu1 }
 0x1c5   :  { %v15428_v57 = vadd.f32 %v1116_v21, %v856_v53  ;;  %v1061_v35 = vpop.f32.mrf.mxu0  ;;  %13891 = vmatmul.mubr.msk.bf16.gmra.mxu0 %vm111_vm2, %v14289_v51 }
 0x1c6   :  { %v1118_v50 = vpop.f32.mrf.mxu1  ;;  %v1159_v3 = vadd.f32 %v1061_v35, %v15301_v30  ;;  %3069 = vmatprep.mubr.bf16.mxu0 %v23118_v34 }
 0x1c7   :  { %v15432_v41 = vadd.f32 %v1118_v50, %v861_v56  ;;  %v1063_v10 = vpop.f32.mrf.mxu0 }
 0x1c8   :  { %v15435_v24 = vpop.f32.mrf.mxu1  ;;  %v1160_v2 = vadd.f32 %v1063_v10, %v15309_v4 }
 0x1c9   :  { %v1065_v62 = vpop.f32.mrf.mxu0 }
 0x1ca   :  { %v1124_v48 = vpop.f32.mrf.mxu1  ;;  %v1165_v53 = vadd.f32 %v1065_v62, %v15314_v36 }
 0x1cb   :  { %v15439_v21 = vadd.f32 %v1124_v48, %v867_v46  ;;  %v15441_v45 = vpop.f32.mrf.mxu0 }
 0x1cc   :  { %v1126_v51 = vpop.f32.mrf.mxu1 }
 0x1cd   :  { %v15443_v1 = vadd.f32 %v1126_v51, %v868_v17  ;;  %v1251_v56 = vpop.f32.mrf.mxu0 }
 0x1ce   :  { %v1128_v30 = vpop.f32.mrf.mxu1  ;;  %v1406_v50 = vadd.f32 %v1251_v56, %v15336_v9 }
 0x1cf   :  { %v15445_v35 = vadd.f32 %v1128_v30, %v873_v8  ;;  %v1253_v4 = vpop.f32.mrf.mxu0 }
 0x1d0   :  { %v15448_v42 = vpop.f32.mrf.mxu1  ;;  %v1407_v10 = vadd.f32 %v1253_v4, %v15343_v23 }
 0x1d1   :  { %v1255_v59 = vpop.f32.mrf.mxu0 }
 0x1d2   :  { %v1314_v36 = vpop.f32.mrf.mxu1  ;;  %v1412_v46 = vadd.f32 %v1255_v59, %v15351_v47 }
 0x1d3   :  { %v15452_v62 = vadd.f32 %v1314_v36, %v1135_v37  ;;  %v15454_v48 = vpop.f32.mrf.mxu0 }
 0x1d4   :  { %v1316_v17 = vpop.f32.mrf.mxu1 }
 0x1d5   :  { %v15456_v51 = vadd.f32 %v1316_v17, %v1136_v25  ;;  %v1261_v8 = vpop.f32.mrf.mxu0 }
 0x1d6   :  { %v1318_v30 = vpop.f32.mrf.mxu1  ;;  %v1418_v9 = vadd.f32 %v1261_v8, %v15364_v54 }
 0x1d7   :  { %v15459_v56 = vadd.f32 %v1318_v30, %v1141_v6  ;;  %v1263_v44 = vpop.f32.mrf.mxu0 }
 0x1d8   :  { %v15461_v31 = vpop.f32.mrf.mxu1  ;;  %v1419_v23 = vadd.f32 %v1263_v44, %v15371_v0 }
 0x1d9   :  { %v1265_v4 = vpop.f32.mrf.mxu0 }
 0x1da   :  { %v1324_v59 = vpop.f32.mrf.mxu1  ;;  %v1424_v47 = vadd.f32 %v1265_v4, %v15376_v26 }
 0x1db   :  { %v15465_v37 = vadd.f32 %v1324_v59, %v1147_v58  ;;  %v15467_v36 = vpop.f32.mrf.mxu0 }
 0x1dc   :  { %23119 = vst [vmem:[#allocation13_spill] sm:$0xff] %v15467_v36  ;;  %v1326_v25 = vpop.f32.mrf.mxu1 }
 0x1dd   :  { %v15469_v17 = vadd.f32 %v1326_v25, %v1148_v19  ;;  %v1271_v34 = vpop.f32.mrf.mxu0 }
 0x1de   :  { %v1328_v54 = vpop.f32.mrf.mxu1  ;;  %v1430_v6 = vadd.f32 %v1271_v34, %v15385_v22 }
 0x1df   :  { %v15472_v8 = vadd.f32 %v1328_v54, %v1153_v61  ;;  %v1273_v30 = vpop.f32.mrf.mxu0 }
 0x1e0   :  { %v15474_v13 = vpop.f32.mrf.mxu1  ;;  %v1431_v44 = vadd.f32 %v1273_v30, %v15391_v5 }
 0x1e1   :  { %23120 = vst [vmem:[#allocation14_spill] sm:$0xff] %v15474_v13  ;;  %v1275_v0 = vpop.f32.mrf.mxu0 }
 0x1e2   :  { %v1334_v26 = vpop.f32.mrf.mxu1  ;;  %v1436_v58 = vadd.f32 %v1275_v0, %v15396_v27 }
 0x1e3   :  { %v15478_v4 = vadd.f32 %v1334_v26, %v1159_v3  ;;  %v15480_v59 = vpop.f32.mrf.mxu0 }
 0x1e4   :  { %23121 = vst [vmem:[#allocation15_spill] sm:$0xff] %v15480_v59  ;;  %v1336_v19 = vpop.f32.mrf.mxu1 }
 0x1e5   :  { %v15482_v25 = vadd.f32 %v1336_v19, %v1160_v2  ;;  %v1377_v22 = vpop.f32.mrf.mxu0 }
 0x1e6   :  { %v1338_v36 = vpop.f32.mrf.mxu1  ;;  %v1410_v34 = vadd.f32 %v1377_v22, %v15405_v43 }
 0x1e7   :  { %v15484_v61 = vadd.f32 %v1338_v36, %v1165_v53  ;;  %v1379_v5 = vpop.f32.mrf.mxu0 }
 0x1e8   :  { %v15487_v54 = vpop.f32.mrf.mxu1  ;;  %v1411_v30 = vadd.f32 %v1379_v5, %v15410_v18 }
 0x1e9   :  { %23122 = vst [vmem:[#allocation16_spill] sm:$0xff] %v15487_v54  ;;  %v1381_v13 = vpop.f32.mrf.mxu0 }
 0x1ea   :  { %v1545_v27 = vpop.f32.mrf.mxu1  ;;  %v1416_v3 = vadd.f32 %v1381_v13, %v15416_v7 }
 0x1eb   :  { %v15491_v0 = vadd.f32 %v1545_v27, %v1406_v50  ;;  %v15493_v26 = vpop.f32.mrf.mxu0 }
 0x1ec   :  { %23123 = vst [vmem:[#allocation17_spill] sm:$0xff] %v15493_v26  ;;  %v1547_v2 = vpop.f32.mrf.mxu1 }
 0x1ed   :  { %v15495_v19 = vadd.f32 %v1547_v2, %v1407_v10  ;;  %v1387_v53 = vpop.f32.mrf.mxu0 }
 0x1ee   :  { %v1549_v36 = vpop.f32.mrf.mxu1  ;;  %v1422_v43 = vadd.f32 %v1387_v53, %v15424_v15 }
 0x1ef   :  { %v15498_v22 = vadd.f32 %v1549_v36, %v1412_v46  ;;  %v1389_v54 = vpop.f32.mrf.mxu0 }
 0x1f0   :  { %v15500_v59 = vpop.f32.mrf.mxu1  ;;  %v1423_v18 = vadd.f32 %v1389_v54, %v15428_v57 }
 0x1f1   :  { %23124 = vst [vmem:[#allocation18_spill] sm:$0xff] %v15500_v59  ;;  %v1391_v5 = vpop.f32.mrf.mxu0 }
 0x1f2   :  { %v1555_v13 = vpop.f32.mrf.mxu1  ;;  %v1428_v7 = vadd.f32 %v1391_v5, %v15432_v41 }
 0x1f3   :  { %v15504_v50 = vadd.f32 %v1555_v13, %v1418_v9  ;;  %v15506_v27 = vpop.f32.mrf.mxu0 }
 0x1f4   :  { %23125 = vst [vmem:[#allocation19_spill] sm:$0xff] %v15506_v27  ;;  %v1557_v10 = vpop.f32.mrf.mxu1 }
 0x1f5   :  { %v15508_v2 = vadd.f32 %v1557_v10, %v1419_v23  ;;  %v1397_v26 = vpop.f32.mrf.mxu0 }
 0x1f6   :  { %v1559_v15 = vpop.f32.mrf.mxu1  ;;  %v1434_v46 = vadd.f32 %v1397_v26, %v15439_v21 }
 0x1f7   :  { %v15511_v53 = vadd.f32 %v1559_v15, %v1424_v47  ;;  %v1399_v36 = vpop.f32.mrf.mxu0 }
 0x1f8   :  { %v15513_v59 = vpop.f32.mrf.mxu1  ;;  %v1435_v57 = vadd.f32 %v1399_v36, %v15443_v1 }
 0x1f9   :  { %23126 = vst [vmem:[#allocation20_spill] sm:$0xff] %v15513_v59  ;;  %v1401_v54 = vpop.f32.mrf.mxu0 }
 0x1fa   :  { %v1565_v41 = vpop.f32.mrf.mxu1  ;;  %v1440_v9 = vadd.f32 %v1401_v54, %v15445_v35 }
 0x1fb   :  { %v15517_v5 = vadd.f32 %v1565_v41, %v1430_v6  ;;  %v15519_v13 = vpop.f32.mrf.mxu0 }
 0x1fc   :  { %23127 = vst [vmem:[#allocation21_spill] sm:$0xff] %v15519_v13  ;;  %v1567_v23 = vpop.f32.mrf.mxu1 }
 0x1fd   :  { %v15521_v10 = vadd.f32 %v1567_v23, %v1431_v44  ;;  %v1608_v21 = vpop.f32.mrf.mxu0 }
 0x1fe   :  { %v1569_v27 = vpop.f32.mrf.mxu1  ;;  %v1702_v26 = vadd.f32 %v1608_v21, %v15452_v62 }
 0x1ff   :  { %v15523_v47 = vadd.f32 %v1569_v27, %v1436_v58  ;;  %v1610_v1 = vpop.f32.mrf.mxu0 }
 0x200   :  { %v15526_v15 = vpop.f32.mrf.mxu1  ;;  %v1703_v36 = vadd.f32 %v1610_v1, %v15456_v51 }
 0x201   :  { %23128 = vst [vmem:[#allocation22_spill] sm:$0xff] %v15526_v15  ;;  %v1612_v59 = vpop.f32.mrf.mxu0 }
 0x202   :  { %v1671_v35 = vpop.f32.mrf.mxu1  ;;  %v1708_v6 = vadd.f32 %v1612_v59, %v15459_v56 }
 0x203   :  { %v15530_v54 = vadd.f32 %v1671_v35, %v1410_v34  ;;  %v15532_v41 = vpop.f32.mrf.mxu0 }
 0x204   :  { %23129 = vst [vmem:[#allocation23_spill] sm:$0xff] %v15532_v41  ;;  %v1673_v44 = vpop.f32.mrf.mxu1 }
 0x205   :  { %v15534_v23 = vadd.f32 %v1673_v44, %v1411_v30  ;;  %v1618_v58 = vpop.f32.mrf.mxu0 }
 0x206   :  { %v1675_v27 = vpop.f32.mrf.mxu1  ;;  %v1714_v62 = vadd.f32 %v1618_v58, %v15465_v37 }
 0x207   :  { %v15537_v21 = vadd.f32 %v1675_v27, %v1416_v3  ;;  %v1620_v15 = vpop.f32.mrf.mxu0 }
 0x208   :  { %v15539_v13 = vpop.f32.mrf.mxu1  ;;  %v1715_v51 = vadd.f32 %v1620_v15, %v15469_v17 }
 0x209   :  { %23130 = vst [vmem:[#allocation24_spill] sm:$0xff] %v15539_v13  ;;  %v1622_v1 = vpop.f32.mrf.mxu0 }
 0x20a   :  { %v1681_v56 = vpop.f32.mrf.mxu1  ;;  %v1720_v59 = vadd.f32 %v1622_v1, %v15472_v8 }
 0x20b   :  { %v15543_v34 = vadd.f32 %v1681_v56, %v1422_v43  ;;  %v15545_v35 = vpop.f32.mrf.mxu0 }
 0x20c   :  { %23131 = vst [vmem:[#allocation25_spill] sm:$0xff] %v15545_v35  ;;  %v1683_v30 = vpop.f32.mrf.mxu1 }
 0x20d   :  { %v15547_v44 = vadd.f32 %v1683_v30, %v1423_v18  ;;  %v1628_v41 = vpop.f32.mrf.mxu0 }
 0x20e   :  { %v1685_v37 = vpop.f32.mrf.mxu1  ;;  %v1726_v3 = vadd.f32 %v1628_v41, %v15478_v4 }
 0x20f   :  { %v15550_v58 = vadd.f32 %v1685_v37, %v1428_v7  ;;  %v1630_v27 = vpop.f32.mrf.mxu0 }
 0x210   :  { %v15552_v13 = vpop.f32.mrf.mxu1  ;;  %v1727_v17 = vadd.f32 %v1630_v27, %v15482_v25 }
 0x211   :  { %v1632_v15 = vpop.f32.mrf.mxu0 }
 0x212   :  { %v1691_v8 = vpop.f32.mrf.mxu1  ;;  %v1732_v43 = vadd.f32 %v1632_v15, %v15484_v61 }
 0x213   :  { %v15556_v1 = vadd.f32 %v1691_v8, %v1434_v46  ;;  %v15558_v56 = vpop.f32.mrf.mxu0 }
 0x214   :  { %v1693_v18 = vpop.f32.mrf.mxu1 }
 0x215   :  { %v15560_v30 = vadd.f32 %v1693_v18, %v1435_v57  ;;  %v1839_v4 = vpop.f32.mrf.mxu0 }
 0x216   :  { %v1695_v35 = vpop.f32.mrf.mxu1  ;;  %v15565_v41 = vadd.f32 %v1839_v4, %v15491_v0 }
 0x217   :  { %v15562_v7 = vadd.f32 %v1695_v35, %v1440_v9  ;;  %v1841_v25 = vpop.f32.mrf.mxu0 }
 0x218   :  { %23132 = vst [vmem:[#allocation26_spill] sm:$0xff] %v15565_v41  ;;  %v15567_v37 = vpop.f32.mrf.mxu1  ;;  %v15570_v27 = vadd.f32 %v1841_v25, %v15495_v19 }
 0x219   :  { %v1843_v61 = vpop.f32.mrf.mxu0 }
 0x21a   :  { %v1902_v46 = vpop.f32.mrf.mxu1  ;;  %v15573_v15 = vadd.f32 %v1843_v61, %v15498_v22 }
 0x21b   :  { %v15575_v57 = vadd.f32 %v1902_v46, %v1702_v26  ;;  %v15577_v8 = vpop.f32.mrf.mxu0 }
 0x21c   :  { %v1904_v9 = vpop.f32.mrf.mxu1 }
 0x21d   :  { %v15579_v35 = vadd.f32 %v1904_v9, %v1703_v36  ;;  %v1849_v0 = vpop.f32.mrf.mxu0 }
 0x21e   :  { %v1906_v18 = vpop.f32.mrf.mxu1  ;;  %v15582_v4 = vadd.f32 %v1849_v0, %v15504_v50 }
 0x21f   :  { %23133 = vst [vmem:[#allocation27_spill] sm:$0xff] %v15579_v35  ;;  %v15584_v41 = vadd.f32 %v1906_v18, %v1708_v6  ;;  %v1851_v19 = vpop.f32.mrf.mxu0 }
 0x220   :  { %v15586_v25 = vpop.f32.mrf.mxu1  ;;  %v15589_v22 = vadd.f32 %v1851_v19, %v15508_v2 }
 0x221   :  { %23134 = vst [vmem:[#allocation28_spill] sm:$0xff] %v15584_v41  ;;  %v1853_v26 = vpop.f32.mrf.mxu0 }
 0x222   :  { %v1912_v61 = vpop.f32.mrf.mxu1  ;;  %v15592_v46 = vadd.f32 %v1853_v26, %v15511_v53 }
 0x223   :  { %v15594_v36 = vadd.f32 %v1912_v61, %v1714_v62  ;;  %v15596_v9 = vpop.f32.mrf.mxu0 }
 0x224   :  { %v1914_v35 = vpop.f32.mrf.mxu1 }
 0x225   :  { %23135 = vst [vmem:[#allocation29_spill] sm:$0xff] %v15594_v36  ;;  %v15598_v50 = vadd.f32 %v1914_v35, %v1715_v51  ;;  %v1859_v6 = vpop.f32.mrf.mxu0 }
 0x226   :  { %v1916_v0 = vpop.f32.mrf.mxu1  ;;  %v15601_v18 = vadd.f32 %v1859_v6, %v15517_v5 }
 0x227   :  { %23136 = vst [vmem:[#allocation30_spill] sm:$0xff] %v15598_v50  ;;  %v15603_v41 = vadd.f32 %v1916_v0, %v1720_v59  ;;  %v1861_v2 = vpop.f32.mrf.mxu0 }
 0x228   :  { %v15605_v19 = vpop.f32.mrf.mxu1  ;;  %v15608_v53 = vadd.f32 %v1861_v2, %v15521_v10 }
 0x229   :  { %23137 = vst [vmem:[#allocation31_spill] sm:$0xff] %v15603_v41  ;;  %v1863_v62 = vpop.f32.mrf.mxu0 }
 0x22a   :  { %v1922_v26 = vpop.f32.mrf.mxu1  ;;  %v15611_v61 = vadd.f32 %v1863_v62, %v15523_v47 }
 0x22b   :  { %v15613_v51 = vadd.f32 %v1922_v26, %v1726_v3  ;;  %v15615_v35 = vpop.f32.mrf.mxu0 }
 0x22c   :  { %v1924_v50 = vpop.f32.mrf.mxu1 }
 0x22d   :  { %23138 = vst [vmem:[#allocation32_spill] sm:$0xff] %v15613_v51  ;;  %v15617_v5 = vadd.f32 %v1924_v50, %v1727_v17  ;;  %v1965_v6 = vpop.f32.mrf.mxu0 }
 0x22e   :  { %v1926_v59 = vpop.f32.mrf.mxu1  ;;  %v15622_v41 = vadd.f32 %v1965_v6, %v15530_v54 }
 0x22f   :  { %23139 = vst [vmem:[#allocation33_spill] sm:$0xff] %v15617_v5  ;;  %v15619_v0 = vadd.f32 %v1926_v59, %v1732_v43  ;;  %v1967_v2 = vpop.f32.mrf.mxu0 }
 0x230   :  { %23141 = vst [vmem:[#allocation35_spill] sm:$0xff] %v15622_v41  ;;  %v15624_v10 = vpop.f32.mrf.mxu1  ;;  %v15627_v47 = vadd.f32 %v1967_v2, %v15534_v23 }
 0x231   :  { %23140 = vst [vmem:[#allocation34_spill] sm:$0xff] %v15619_v0  ;;  %v1969_v3 = vpop.f32.mrf.mxu0 }
 0x232   :  { %23142 = vst [vmem:[#allocation36_spill] sm:$0xff] %v15627_v47  ;;  %v15629_v62 = vpop.f32.mrf.mxu1  ;;  %v15632_v26 = vadd.f32 %v1969_v3, %v15537_v21 }
 0x233   :  { %v15634_v17 = vpop.f32.mrf.mxu0 }
 0x234   :  { %23143 = vst [vmem:[#allocation37_spill] sm:$0xff] %v15632_v26  ;;  %v15636_v50 = vpop.f32.mrf.mxu1 }
 0x235   :  { %v1975_v43 = vpop.f32.mrf.mxu0 }
 0x236   :  { %v15638_v59 = vpop.f32.mrf.mxu1  ;;  %v15641_v54 = vadd.f32 %v1975_v43, %v15543_v34 }
 0x237   :  { %v1977_v6 = vpop.f32.mrf.mxu0 }
 0x238   :  { %23144 = vst [vmem:[#allocation38_spill] sm:$0xff] %v15641_v54  ;;  %v15643_v0 = vpop.f32.mrf.mxu1  ;;  %v15646_v23 = vadd.f32 %v1977_v6, %v15547_v44 }
 0x239   :  { %v1979_v2 = vpop.f32.mrf.mxu0 }
 0x23a   :  { %23145 = vst [vmem:[#allocation39_spill] sm:$0xff] %v15646_v23  ;;  %v15648_v5 = vpop.f32.mrf.mxu1  ;;  %v15651_v21 = vadd.f32 %v1979_v2, %v15550_v58 }
 0x23b   :  { %v15653_v3 = vpop.f32.mrf.mxu0 }
 0x23c   :  { %23146 = vst [vmem:[#allocation40_spill] sm:$0xff] %v15651_v21  ;;  %v15655_v51 = vpop.f32.mrf.mxu1 }
 0x23d   :  { %v1985_v26 = vpop.f32.mrf.mxu0 }
 0x23e   :  { %v15657_v36 = vpop.f32.mrf.mxu1  ;;  %v15660_v34 = vadd.f32 %v1985_v26, %v15556_v1  ;;  %v2763_v26 = vlaneseq }
 0x23f   :  { %v1987_v43 = vpop.f32.mrf.mxu0 }
 0x240   :  { %23147 = vst [vmem:[#allocation41_spill] sm:$0xff] %v15660_v34  ;;  %v15662_v54 = vpop.f32.mrf.mxu1  ;;  %v15665_v44 = vadd.f32 %v1987_v43, %v15560_v30 }
 0x241   :  { %v1989_v6 = vpop.f32.mrf.mxu0 }
 0x242   :  { %23148 = vst [vmem:[#allocation42_spill] sm:$0xff] %v15665_v44  ;;  %v15667_v23 = vpop.f32.mrf.mxu1  ;;  %v15670_v58 = vadd.f32 %v1989_v6, %v15562_v7  ;;  %v15688_v44 = vshrl.u32 %v2763_v26, 7  ;;  %v874_v26 = vadd.f32 %v15388_v38, %v15222_v14 }
 0x243   :  { %v15672_v2 = vpop.f32.mrf.mxu0 }
 0x244   :  { %23149 = vst [vmem:[#allocation43_spill] sm:$0xff] %v15670_v58  ;;  %v15674_v21 = vpop.f32.mrf.mxu1  ;;  %23155 = vst [vmem:[#allocation49_spill] sm:$0xff] %v15688_v44  ;;  %v872_v58 = vadd.f32 %v15320_v39, %v15199_v52  ;;  %v2765_v52 = vsub.s32 0, %v15688_v44  ;;  %v2769_v14 = vsub.s32 1, %v15688_v44 }
 0x245   :  { %v15678_v1 = vpop.f32.mrf.mxu0 }
 0x246   :  { %v15676_v47 = vpop.f32.mrf.mxu1  ;;  %23150 = vst [vmem:[#allocation44_spill] sm:$0xff] %v15678_v1  ;;  %v1140_v1 = vadd.f32 %v15354_v32, %v15237_v11  ;;  %v1144_v11 = vadd.f32 %v15419_v60, %v15340_v16  ;;  %v43_v32 = vld [vmem:[%s23004_s1] sm:$0x3f]  ;;  %v1156_v16 = vadd.f32 %v15435_v24, %v15368_v55  ;;  %v1166_v38 = vadd.f32 %v15441_v45, %v872_v58 }
 0x247   :  { %v15682_v41 = vpop.f32.mrf.mxu0  ;;  %v23167_v24 = vld [vmem:[#allocation15_spill] sm:$0xff]  ;;  %v15741_v58 = vrot.slane %v43_v32, %v2765_v52 }
 0x248   :  { %v15680_v34 = vpop.f32.mrf.mxu1  ;;  %23152 = vst [vmem:[#allocation46_spill] sm:$0xff] %v15682_v41  ;;  %v1413_v60 = vadd.f32 %v15454_v48, %v1140_v1  ;;  %v23177_v52 = vld [vmem:[#allocation19_spill] sm:$0xff] }
 0x249   :  { %23151 = vst [vmem:[#allocation45_spill] sm:$0xff] %v15680_v34  ;;  %v15684_v30 = vpop.f32.mrf.mxu0  ;;  %v1152_v34 = vadd.f32 %v15379_v33, %v15267_v40  ;;  %v2777_v33 = vsub.s32 3, %v15688_v44 }
 0x24a   :  { %23153 = vst [vmem:[#allocation47_spill] sm:$0xff] %v15684_v30  ;;  %v15686_v43 = vpop.f32.mrf.mxu1 }
 0x24b   :  { %23154 = vst [vmem:[#allocation48_spill] sm:$0xff] %v15686_v43  ;;  %v15690_v7 = vpop.f32.mrf.mxu0 }
 0x24c   :  { %23156 = vst [vmem:[#allocation50_spill] sm:$0xff] %v15690_v7  ;;  %v15692_v6 = vpop.f32.mrf.mxu1  ;;  %v1164_v7 = vadd.f32 %v15400_v49, %v15306_v63  ;;  %v2773_v63 = vsub.s32 2, %v15688_v44  ;;  %v1168_v49 = vadd.f32 %v15448_v42, %v874_v26  ;;  %v2785_v42 = vsub.s32 5, %v15688_v44  ;;  %v23169_v26 = vld [vmem:[#allocation16_spill] sm:$0xff] }
 0x24d   :  { %23157 = vst [vmem:[#allocation51_spill] sm:$0xff] %v15692_v6  ;;  %v15700_v41 = vpop.f32.mrf.mxu0  ;;  %v1142_v6 = vadd.f32 %v15407_v28, %v15255_v29  ;;  %v1154_v29 = vadd.f32 %v15426_v12, %v15285_v20  ;;  %v15729_v28 = vpop.permute.xlu1 %2651  ;;  %v2781_v20 = vsub.s32 4, %v15688_v44  ;;  %v23166_v12 = vld [vmem:[#allocation14_spill] sm:$0xff]  ;;  %v1439_v48 = vadd.f32 %v23169_v26, %v1166_v38 }
 0x24e   :  { %23158 = vst [vmem:[#allocation52_spill] sm:$0xff] %v15700_v41  ;;  %v15702_v30 = vpop.f32.mrf.mxu1  ;;  %23162 = vst [vmem:[#allocation56_spill] sm:$0xff] %v15729_v28  ;;  %v1437_v45 = vadd.f32 %v23167_v24, %v1164_v7  ;;  %v23175_v28 = vld [vmem:[#allocation17_spill] sm:$0xff]  ;;  %v1429_v24 = vadd.f32 %v23177_v52, %v1156_v16  ;;  %v23180_v26 = vld [vmem:[#allocation22_spill] sm:$0xff]  ;;  %v15769_v16 = vpop.permute.xlu0 %2646 }
 0x24f   :  { %23159 = vst [vmem:[#allocation53_spill] sm:$0xff] %v15702_v30  ;;  %v15713_v39 = vpop.f32.mrf.mxu0  ;;  %v1427_v55 = vadd.f32 %v23166_v12, %v1154_v29  ;;  %23168 = vst [vmem:[#allocation14_spill] sm:$0xff] %v15741_v58  ;;  %v1417_v29 = vadd.f32 %v23175_v28, %v1144_v11  ;;  %v23176_v12 = vld [vmem:[#allocation18_spill] sm:$0xff]  ;;  %v23178_v58 = vld [vmem:[#allocation20_spill] sm:$0xff]  ;;  %v1733_v28 = vadd.f32 %v15558_v56, %v1439_v48 }
 0x250   :  { %23160 = vst [vmem:[#allocation54_spill] sm:$0xff] %v15713_v39  ;;  %v15715_v40 = vpop.f32.mrf.mxu1  ;;  %v23163_v39 = vld [vmem:[#allocation13_spill] sm:$0xff]  ;;  %v1707_v7 = vadd.f32 %v23176_v12, %v1413_v60 }
 0x251   :  { %23161 = vst [vmem:[#allocation55_spill] sm:$0xff] %v15715_v40  ;;  %v1415_v40 = vadd.f32 %v15461_v31, %v1142_v6  ;;  %v1425_v30 = vadd.f32 %v23163_v39, %v1152_v34  ;;  %v15734_v41 = vpop.f32.mrf.mxu0  ;;  %v15749_v34 = vrot.slane %v43_v32, %v2769_v14  ;;  %v15751_v6 = vrot.slane %v43_v32, %v2773_v63  ;;  %v15767_v60 = vpop.permute.xlu1 %2636  ;;  %v23198_v52 = vld [vmem:[#allocation29_spill] sm:$0xff] }
 0x252   :  { %23164 = vst [vmem:[#allocation13_spill] sm:$0xff] %v15734_v41  ;;  %v15736_v43 = vpop.f32.mrf.mxu1  ;;  %v15753_v39 = vrot.slane %v43_v32, %v2777_v33  ;;  %v23181_v41 = vld [vmem:[#allocation23_spill] sm:$0xff]  ;;  %v15762_v63 = vrot.slane %v43_v32, %v2781_v20  ;;  %v23183_v33 = vld [vmem:[#allocation24_spill] sm:$0xff]  ;;  %v2027_v48 = vadd.f32 %v15624_v10, %v1733_v28  ;;  %v15796_v10 = vadd.f32 %v15655_v51, %v15589_v22  ;;  %v23188_v51 = vld [vmem:[#allocation45_spill] sm:$0xff] }
 0x253   :  { %23165 = vst [vmem:[#allocation57_spill] sm:$0xff] %v15736_v43  ;;  %v15745_v1 = vpop.f32.mrf.mxu0  ;;  %23172 = vst [vmem:[#allocation58_spill] sm:$0xff] %v15749_v34  ;;  %v1719_v44 = vadd.f32 %v23178_v58, %v1425_v30  ;;  %v23179_v43 = vld [vmem:[#allocation21_spill] sm:$0xff]  ;;  %v15771_v30 = vrot.slane %v43_v32, %v2785_v42  ;;  %v23186_v32 = vld [vmem:[#allocation26_spill] sm:$0xff]  ;;  %v15816_v22 = vadd.f32 %v15676_v47, %v15611_v61 }
 0x254   :  { %23170 = vst [vmem:[#allocation15_spill] sm:$0xff] %v15745_v1  ;;  %v15747_v31 = vpop.f32.mrf.mxu1  ;;  %23173 = vst [vmem:[#allocation59_spill] sm:$0xff] %v15751_v6  ;;  %v1441_v38 = vadd.f32 %v23179_v43, %v1168_v49  ;;  %v1731_v1 = vadd.f32 %v23180_v26, %v1437_v45  ;;  %v23184_v6 = vld [vmem:[#allocation25_spill] sm:$0xff]  ;;  %v1723_v43 = vadd.f32 %v15552_v13, %v1429_v24  ;;  %v23195_v47 = vld [vmem:[#allocation50_spill] sm:$0xff] }
 0x255   :  { %23171 = vst [vmem:[#allocation16_spill] sm:$0xff] %v15747_v31  ;;  %23174 = vst [vmem:[#allocation60_spill] sm:$0xff] %v15753_v39  ;;  %v1709_v31 = vadd.f32 %v23181_v41, %v1415_v40  ;;  %v2216_v14 = vpop.f32.mrf.mxu0  ;;  %v1711_v39 = vadd.f32 %v23183_v33, %v1417_v29  ;;  %v1721_v11 = vadd.f32 %v23184_v6, %v1427_v55  ;;  %v23196_v29 = vld [vmem:[#allocation36_spill] sm:$0xff]  ;;  %v23197_v12 = vld [vmem:[#allocation51_spill] sm:$0xff] }
 0x256   :  { %v2273_v34 = vpop.f32.mrf.mxu1  ;;  %23182 = vst [vmem:[#allocation17_spill] sm:$0xff] %v15762_v63  ;;  %23185 = vst [vmem:[#allocation18_spill] sm:$0xff] %v15771_v30  ;;  %v1735_v41 = vadd.f32 %v15567_v37, %v1441_v38  ;;  %v2001_v40 = vadd.f32 %v15577_v8, %v1707_v7  ;;  %v2013_v55 = vadd.f32 %v15596_v9, %v1719_v44  ;;  %v23191_v44 = vld [vmem:[#allocation28_spill] sm:$0xff]  ;;  %v23200_v26 = vld [vmem:[#allocation37_spill] sm:$0xff] }
 0x257   :  { %v2003_v49 = vadd.f32 %v15586_v25, %v1709_v31  ;;  %v2218_v20 = vpop.f32.mrf.mxu0  ;;  %v2015_v56 = vadd.f32 %v15605_v19, %v1721_v11  ;;  %v2025_v58 = vadd.f32 %v15615_v35, %v1731_v1  ;;  %v2288_v42 = vadd.f32 %v15629_v62, %v23186_v32  ;;  %v23194_v1 = vld [vmem:[#allocation48_spill] sm:$0xff]  ;;  %v23201_v33 = vld [vmem:[#allocation53_spill] sm:$0xff] }
 0x258   :  { %v2275_v45 = vpop.f32.mrf.mxu1  ;;  %v2005_v13 = vadd.f32 %v15634_v17, %v1711_v39  ;;  %v2289_v37 = vadd.f32 %v15636_v50, %v15570_v27  ;;  %v2294_v8 = vadd.f32 %v15638_v59, %v15573_v15  ;;  %v2295_v9 = vadd.f32 %v15643_v0, %v2001_v40  ;;  %v15825_v59 = vpop.permute.xlu0 %2641  ;;  %v23199_v24 = vld [vmem:[#allocation52_spill] sm:$0xff] }
 0x259   :  { %v2220_v25 = vpop.f32.mrf.mxu0  ;;  %v15791_v19 = vadd.f32 %v15648_v5, %v15582_v4  ;;  %v2017_v35 = vadd.f32 %v15653_v3, %v1723_v43  ;;  %v15800_v27 = vadd.f32 %v15657_v36, %v15592_v46  ;;  %v15803_v15 = vadd.f32 %v15662_v54, %v2013_v55  ;;  %v23187_v46 = vld [vmem:[#allocation44_spill] sm:$0xff]  ;;  %v23189_v54 = vld [vmem:[#allocation27_spill] sm:$0xff]  ;;  %v23202_v43 = vld [vmem:[#allocation30_spill] sm:$0xff] }
 0x25a   :  { %v2279_v31 = vpop.f32.mrf.mxu1  ;;  %v15807_v0 = vadd.f32 %v15667_v23, %v15601_v18  ;;  %v2029_v4 = vadd.f32 %v15672_v2, %v1735_v41  ;;  %v15812_v17 = vadd.f32 %v15674_v21, %v15608_v53  ;;  %v2290_v36 = vadd.f32 %v23187_v46, %v15575_v57  ;;  %v15823_v18 = vpop.permute.xlu1 %2626  ;;  %v23190_v23 = vld [vmem:[#allocation46_spill] sm:$0xff]  ;;  %v23192_v53 = vld [vmem:[#allocation47_spill] sm:$0xff]  ;;  %v23206_v32 = vld [vmem:[#allocation13_spill] sm:$0xff] }
 0x25b   :  { %v2222_v62 = vpop.f32.mrf.mxu0  ;;  %v15821_v50 = vadd.f32 %v23188_v51, %v2025_v58  ;;  %v2291_v3 = vadd.f32 %v23190_v23, %v23189_v54  ;;  %v2296_v21 = vadd.f32 %v23192_v53, %v23191_v44  ;;  %v23193_v2 = vld [vmem:[#allocation35_spill] sm:$0xff]  ;;  %v15836_v6 = vadd.f32 %v23195_v47, %v2003_v49  ;;  %v23203_v41 = vld [vmem:[#allocation54_spill] sm:$0xff]  ;;  %v23208_v54 = vld [vmem:[#allocation57_spill] sm:$0xff] }
 0x25c   :  { %v2281_v5 = vpop.f32.mrf.mxu1  ;;  %v15833_v61 = vadd.f32 %v23194_v1, %v23193_v2  ;;  %v15840_v7 = vadd.f32 %v23197_v12, %v23196_v29  ;;  %v15844_v38 = vadd.f32 %v23199_v24, %v23198_v52  ;;  %v15848_v11 = vadd.f32 %v23201_v33, %v23200_v26  ;;  %v23204_v49 = vld [vmem:[#allocation55_spill] sm:$0xff]  ;;  %v23207_v51 = vld [vmem:[#allocation38_spill] sm:$0xff]  ;;  %v23211_v47 = vld [vmem:[#allocation16_spill] sm:$0xff] }
 0x25d   :  { %v2427_v39 = vpop.f32.mrf.mxu0  ;;  %v15852_v40 = vadd.f32 %v23203_v41, %v23202_v43  ;;  %v15855_v55 = vadd.f32 %v23204_v49, %v2005_v13  ;;  %v23205_v58 = vld [vmem:[#allocation31_spill] sm:$0xff]  ;;  %v15863_v23 = vadd.f32 %v23208_v54, %v23207_v51  ;;  %v23212_v12 = vld [vmem:[#allocation32_spill] sm:$0xff]  ;;  %v23214_v33 = vld [vmem:[#allocation33_spill] sm:$0xff]  ;;  %v15882_v41 = vadd.f32 %v2275_v45, %v2017_v35 }
 0x25e   :  { %v2283_v57 = vpop.f32.mrf.mxu1  ;;  %v2582_v28 = vadd.f32 %v2427_v39, %v2288_v42  ;;  %v15859_v46 = vadd.f32 %v23206_v32, %v23205_v58  ;;  %v23209_v2 = vld [vmem:[#allocation15_spill] sm:$0xff]  ;;  %v15874_v52 = vadd.f32 %v2216_v14, %v23212_v12  ;;  %v23213_v24 = vld [vmem:[#allocation40_spill] sm:$0xff]  ;;  %v15880_v43 = vadd.f32 %v2218_v20, %v23214_v33 }
 0x25f   :  { %v2429_v53 = vpop.f32.mrf.mxu0  ;;  %v15866_v1 = vadd.f32 %v23209_v2, %v2015_v56  ;;  %v23210_v42 = vld [vmem:[#allocation39_spill] sm:$0xff]  ;;  %v15877_v26 = vadd.f32 %v2273_v34, %v23213_v24  ;;  %v23217_v2 = vld [vmem:[#allocation42_spill] sm:$0xff]  ;;  %v15896_v45 = vadd.f32 %v2222_v62, %v2027_v48 }
 0x260   :  { %v2285_v44 = vpop.f32.mrf.mxu1  ;;  %v15870_v39 = vadd.f32 %v23211_v47, %v23210_v42  ;;  %v2654_v13 = vadd.f32 %v15823_v18, %v2582_v28  ;;  %v2583_v29 = vadd.f32 %v2429_v53, %v2289_v37  ;;  %v15885_v28 = vpop.permute.xlu0 %2631  ;;  %v23215_v37 = vld [vmem:[#allocation34_spill] sm:$0xff]  ;;  %v23216_v53 = vld [vmem:[#allocation41_spill] sm:$0xff]  ;;  %v15894_v20 = vadd.f32 %v2281_v5, %v23217_v2 }
 0x261   :  { %v2431_v56 = vpop.f32.mrf.mxu0  ;;  %v15888_v14 = vadd.f32 %v2220_v25, %v23215_v37  ;;  %v15891_v34 = vadd.f32 %v2279_v31, %v23216_v53  ;;  %v15902_v25 = vadd.f32 %v2285_v44, %v2029_v4  ;;  %v23223_v44 = vld [vmem:[#allocation58_spill] sm:$0xff] }
 0x262   :  { %v2490_v49 = vpop.f32.mrf.mxu1  ;;  %v2690_v58 = vmul.f32 0.01, %v2654_v13  ;;  %v2655_v32 = vadd.f32 %v15823_v18, %v2583_v29  ;;  %v2588_v51 = vadd.f32 %v2431_v56, %v2294_v8  ;;  %23218 = vst [vmem:[#allocation19_spill] sm:$0xff] %v15894_v20  ;;  %v23219_v29 = vld [vmem:[#allocation43_spill] sm:$0xff] }
 0x263   :  { %v2584_v54 = vadd.f32 %v2490_v49, %v2290_v36  ;;  %v2433_v42 = vpop.f32.mrf.mxu0  ;;  %v15900_v24 = vadd.f32 %v2283_v57, %v23219_v29  ;;  %23221 = vst [vmem:[#allocation21_spill] sm:$0xff] %v15902_v25  ;;  %v23222_v49 = vld [vmem:[#allocation14_spill] sm:$0xff] }
 0x264   :  { %v2492_v35 = vpop.f32.mrf.mxu1  ;;  %v2726_v47 = vmax.f32 %v2654_v13, %v2690_v58  ;;  %v2691_v12 = vmul.f32 0.01, %v2655_v32  ;;  %v2660_v31 = vadd.f32 %v15885_v28, %v2588_v51  ;;  %v2589_v33 = vadd.f32 %v2433_v42, %v2295_v9 }
 0x265   :  { %v2656_v8 = vadd.f32 %v15823_v18, %v2584_v54  ;;  %v2585_v36 = vadd.f32 %v2492_v35, %v2291_v3  ;;  %23220 = vst [vmem:[#allocation20_spill] sm:$0xff] %v15900_v24  ;;  %v2437_v56 = vpop.f32.mrf.mxu0 }
 0x266   :  { %v2494_v5 = vpop.f32.mrf.mxu1  ;;  %v2793_v48 = vmul.f32 %v23222_v49, %v2726_v47  ;;  %v2727_v62 = vmax.f32 %v2655_v32, %v2691_v12  ;;  %v2696_v58 = vmul.f32 0.01, %v2660_v31  ;;  %v2661_v54 = vadd.f32 %v15885_v28, %v2589_v33  ;;  %v23224_v33 = vld [vmem:[#allocation59_spill] sm:$0xff] }
 0x267   :  { %v2692_v37 = vmul.f32 0.01, %v2656_v8  ;;  %v2657_v13 = vadd.f32 %v15823_v18, %v2585_v36  ;;  %v2594_v3 = vadd.f32 %v2437_v56, %v15791_v19  ;;  %v2590_v57 = vadd.f32 %v2494_v5, %v2296_v21  ;;  %v2439_v53 = vpop.f32.mrf.mxu0 }
 0x268   :  { %v2496_v4 = vpop.f32.mrf.mxu1  ;;  %v2794_v2 = vmul.f32 %v23223_v44, %v2727_v62  ;;  %v2595_v35 = vadd.f32 %v2439_v53, %v15796_v10  ;;  %v2732_v42 = vmax.f32 %v2660_v31, %v2696_v58  ;;  %v2697_v47 = vmul.f32 0.01, %v2661_v54  ;;  %v23225_v58 = vld [vmem:[#allocation60_spill] sm:$0xff] }
 0x269   :  { %v2728_v51 = vmax.f32 %v2656_v8, %v2692_v37  ;;  %v2693_v9 = vmul.f32 0.01, %v2657_v13  ;;  %v2666_v32 = vadd.f32 %v15767_v60, %v2594_v3  ;;  %v2662_v12 = vadd.f32 %v15885_v28, %v2590_v57  ;;  %v2441_v36 = vpop.f32.mrf.mxu0 }
 0x26a   :  { %v2500_v29 = vpop.f32.mrf.mxu1  ;;  %v2667_v21 = vadd.f32 %v15767_v60, %v2595_v35  ;;  %v2591_v56 = vadd.f32 %v2496_v4, %v15836_v6  ;;  %v2799_v8 = vmul.f32 %v23222_v49, %v2732_v42  ;;  %v2733_v5 = vmax.f32 %v2661_v54, %v2697_v47 }
 0x26b   :  { %v2795_v25 = vmul.f32 %v23224_v33, %v2728_v51  ;;  %v2729_v19 = vmax.f32 %v2657_v13, %v2693_v9  ;;  %v2702_v62 = vmul.f32 0.01, %v2666_v32  ;;  %v2698_v10 = vmul.f32 0.01, %v2662_v12  ;;  %v2443_v31 = vpop.f32.mrf.mxu0 }
 0x26c   :  { %v2502_v37 = vpop.f32.mrf.mxu1  ;;  %v2703_v53 = vmul.f32 0.01, %v2667_v21  ;;  %v2663_v57 = vadd.f32 %v15885_v28, %v2591_v56  ;;  %v2600_v24 = vadd.f32 %v2441_v36, %v15800_v27  ;;  %v15920_v51 = vpack.c.bf16 %v2799_v8, %v2793_v48 }
 0x26d   :  { %v2796_v3 = vmul.f32 %v23225_v58, %v2729_v19  ;;  %v2800_v13 = vmul.f32 %v23223_v44, %v2733_v5  ;;  %v2738_v9 = vmax.f32 %v2666_v32, %v2702_v62  ;;  %v2734_v6 = vmax.f32 %v2662_v12, %v2698_v10  ;;  %v2447_v4 = vpop.f32.mrf.mxu0 }
 0x26e   :  { %v2504_v35 = vpop.f32.mrf.mxu1  ;;  %v2739_v54 = vmax.f32 %v2667_v21, %v2703_v53  ;;  %v2699_v42 = vmul.f32 0.01, %v2663_v57  ;;  %v2672_v47 = vadd.f32 %v15825_v59, %v2600_v24  ;;  %v2596_v20 = vadd.f32 %v2500_v29, %v15844_v38 }
 0x26f   :  { %v15925_v19 = vpack.c.bf16 %v2800_v13, %v2794_v2  ;;  %v2805_v56 = vmul.f32 %v23222_v49, %v2738_v9  ;;  %v2801_v27 = vmul.f32 %v23224_v33, %v2734_v6  ;;  %v2601_v48 = vadd.f32 %v2443_v31, %v15803_v15  ;;  %v2449_v36 = vpop.f32.mrf.mxu0 }
 0x270   :  { %v2506_v8 = vpop.f32.mrf.mxu1  ;;  %v2806_v32 = vmul.f32 %v23223_v44, %v2739_v54  ;;  %v2735_v12 = vmax.f32 %v2663_v57, %v2699_v42  ;;  %v2708_v5 = vmul.f32 0.01, %v2672_v47  ;;  %v2668_v21 = vadd.f32 %v15767_v60, %v2596_v20 }
 0x271   :  { %v15932_v62 = vpack.c.bf16 %v2801_v27, %v2795_v25  ;;  %v2673_v38 = vadd.f32 %v15825_v59, %v2601_v48  ;;  %v2597_v24 = vadd.f32 %v2502_v37, %v15852_v40  ;;  %v2606_v2 = vadd.f32 %v2447_v4, %v15807_v0  ;;  %v2451_v29 = vpop.f32.mrf.mxu0 }
 0x272   :  { %v2510_v10 = vpop.f32.mrf.mxu1  ;;  %v2802_v15 = vmul.f32 %v23225_v58, %v2735_v12  ;;  %v2744_v31 = vmax.f32 %v2672_v47, %v2708_v5  ;;  %v2704_v53 = vmul.f32 0.01, %v2668_v21  ;;  %v2602_v13 = vadd.f32 %v2504_v35, %v15859_v46 }
 0x273   :  { %v2709_v57 = vmul.f32 0.01, %v2673_v38  ;;  %v2669_v9 = vadd.f32 %v15767_v60, %v2597_v24  ;;  %v2678_v20 = vadd.f32 %v15769_v16, %v2606_v2  ;;  %v2607_v25 = vadd.f32 %v2449_v36, %v15812_v17  ;;  %v2453_v6 = vpop.f32.mrf.mxu0 }
 0x274   :  { %v2512_v54 = vpop.f32.mrf.mxu1  ;;  %v15942_v40 = vpack.c.bf16 %v2802_v15, %v2796_v3  ;;  %v2811_v0 = vmul.f32 %v23222_v49, %v2744_v31  ;;  %v2740_v37 = vmax.f32 %v2668_v21, %v2704_v53  ;;  %v2674_v4 = vadd.f32 %v15825_v59, %v2602_v13 }
 0x275   :  { %v2745_v42 = vmax.f32 %v2673_v38, %v2709_v57  ;;  %v2705_v47 = vmul.f32 0.01, %v2669_v9  ;;  %v2714_v27 = vmul.f32 0.01, %v2678_v20  ;;  %v2679_v46 = vadd.f32 %v15769_v16, %v2607_v25  ;;  %v2553_v35 = vpop.f32.mrf.mxu0 }
 0x276   :  { %v15947_v48 = vpack.c.bf16 %v2811_v0, %v2805_v56  ;;  %v2807_v12 = vmul.f32 %v23224_v33, %v2740_v37  ;;  %v2710_v17 = vmul.f32 0.01, %v2674_v4  ;;  %v2603_v36 = vadd.f32 %v2506_v8, %v15866_v1  ;;  %v2514_v2 = vpop.f32.mrf.mxu1  ;;  %v23226_v0 = vld [vmem:[#allocation56_spill] sm:$0xff] }
 0x277   :  { %v2812_v3 = vmul.f32 %v23223_v44, %v2745_v42  ;;  %v2741_v5 = vmax.f32 %v2669_v9, %v2705_v47  ;;  %v2750_v24 = vmax.f32 %v2678_v20, %v2714_v27  ;;  %v2715_v21 = vmul.f32 0.01, %v2679_v46  ;;  %v2555_v15 = vpop.f32.mrf.mxu0 }
 0x278   :  { %v2746_v38 = vmax.f32 %v2674_v4, %v2710_v17  ;;  %v2675_v31 = vadd.f32 %v15825_v59, %v2603_v36  ;;  %v2612_v53 = vadd.f32 %v2451_v29, %v15816_v22  ;;  %v2608_v56 = vadd.f32 %v2510_v10, %v15874_v52  ;;  %v2516_v29 = vpop.f32.mrf.mxu1 }
 0x279   :  { %v15955_v13 = vpack.c.bf16 %v2812_v3, %v2806_v32  ;;  %v2808_v57 = vmul.f32 %v23225_v58, %v2741_v5  ;;  %v2817_v1 = vmul.f32 %v23222_v49, %v2750_v24  ;;  %v2751_v8 = vmax.f32 %v2679_v46, %v2715_v21  ;;  %v2557_v25 = vpop.f32.mrf.mxu0 }
 0x27a   :  { %v2813_v9 = vmul.f32 %v23224_v33, %v2746_v38  ;;  %v2711_v20 = vmul.f32 0.01, %v2675_v31  ;;  %v2684_v37 = vadd.f32 %v23226_v0, %v2612_v53  ;;  %v2680_v4 = vadd.f32 %v15769_v16, %v2608_v56 }
 0x27b   :  { %v2818_v42 = vmul.f32 %v23223_v44, %v2751_v8  ;;  %v2613_v22 = vadd.f32 %v2453_v6, %v15821_v50  ;;  %v2609_v52 = vadd.f32 %v2512_v54, %v15880_v43  ;;  %v2614_v32 = vadd.f32 %v2514_v2, %v15888_v14  ;;  %v2559_v10 = vpop.f32.mrf.mxu0 }
 0x27c   :  { %v15966_v47 = vpack.c.bf16 %v2813_v9, %v2807_v12  ;;  %v2747_v27 = vmax.f32 %v2675_v31, %v2711_v20  ;;  %v2720_v46 = vmul.f32 0.01, %v2684_v37  ;;  %v2716_v17 = vmul.f32 0.01, %v2680_v4 }
 0x27d   :  { %v2685_v36 = vadd.f32 %v23226_v0, %v2613_v22  ;;  %v2681_v3 = vadd.f32 %v15769_v16, %v2609_v52  ;;  %v2686_v5 = vadd.f32 %v23226_v0, %v2614_v32  ;;  %v2586_v24 = vadd.f32 %v2553_v35, %v15833_v61  ;;  %v2563_v50 = vpop.f32.mrf.mxu0 }
 0x27e   :  { %v2814_v43 = vmul.f32 %v23225_v58, %v2747_v27  ;;  %v2756_v6 = vmax.f32 %v2684_v37, %v2720_v46  ;;  %v2752_v14 = vmax.f32 %v2680_v4, %v2716_v17  ;;  %v2615_v54 = vadd.f32 %v2516_v29, %v15896_v45 }
 0x27f   :  { %v2721_v12 = vmul.f32 0.01, %v2685_v36  ;;  %v2717_v21 = vmul.f32 0.01, %v2681_v3  ;;  %v2722_v2 = vmul.f32 0.01, %v2686_v5  ;;  %v2658_v38 = vadd.f32 %v15823_v18, %v2586_v24  ;;  %v2565_v31 = vpop.f32.mrf.mxu0 }
 0x280   :  { %v15975_v53 = vpack.c.bf16 %v2814_v43, %v2808_v57  ;;  %v2823_v56 = vmul.f32 %v23222_v49, %v2756_v6  ;;  %v2819_v8 = vmul.f32 %v23224_v33, %v2752_v14  ;;  %v2687_v61 = vadd.f32 %v23226_v0, %v2615_v54 }
 0x281   :  { %v2757_v35 = vmax.f32 %v2685_v36, %v2721_v12  ;;  %v2753_v9 = vmax.f32 %v2681_v3, %v2717_v21  ;;  %v2758_v20 = vmax.f32 %v2686_v5, %v2722_v2  ;;  %v2694_v37 = vmul.f32 0.01, %v2658_v38  ;;  %v2567_v4 = vpop.f32.mrf.mxu0 }
 0x282   :  { %v15980_v45 = vpack.c.bf16 %v2823_v56, %v2817_v1  ;;  %v2723_v22 = vmul.f32 0.01, %v2687_v61  ;;  %v2587_v52 = vadd.f32 %v2555_v15, %v15840_v7  ;;  %v2592_v32 = vadd.f32 %v2557_v25, %v15848_v11 }
 0x283   :  { %v2824_v57 = vmul.f32 %v23223_v44, %v2757_v35  ;;  %v2820_v29 = vmul.f32 %v23225_v58, %v2753_v9  ;;  %v2825_v27 = vmul.f32 %v23224_v33, %v2758_v20  ;;  %v2730_v46 = vmax.f32 %v2658_v38, %v2694_v37  ;;  %v2569_v17 = vpop.f32.mrf.mxu0 }
 0x284   :  { %v2759_v36 = vmax.f32 %v2687_v61, %v2723_v22  ;;  %v2659_v3 = vadd.f32 %v15823_v18, %v2587_v52  ;;  %v2664_v5 = vadd.f32 %v15885_v28, %v2592_v32  ;;  %v2593_v1 = vadd.f32 %v2559_v10, %v15855_v55  ;;  %2916 = vrot.lane.b32.xlu1 %v15980_v45, %s14400_s27  ;;  %v23227_v22 = vld [vmem:[#allocation19_spill] sm:$0xff] }
 0x285   :  { %v15992_v7 = vpack.c.bf16 %v2824_v57, %v2818_v42  ;;  %v15994_v11 = vpack.c.bf16 %v2825_v27, %v2819_v8  ;;  %v2797_v15 = vmul.f32 %v15762_v63, %v2730_v46  ;;  %v2598_v25 = vadd.f32 %v2563_v50, %v15863_v23  ;;  %v2573_v24 = vpop.f32.mrf.mxu0 }
 0x286   :  { %v2826_v43 = vmul.f32 %v23225_v58, %v2759_v36  ;;  %v2695_v6 = vmul.f32 0.01, %v2659_v3  ;;  %v2700_v18 = vmul.f32 0.01, %v2664_v5  ;;  %v2665_v14 = vadd.f32 %v15885_v28, %v2593_v1 }
 0x287   :  { %v2670_v55 = vadd.f32 %v15767_v60, %v2598_v25  ;;  %v2599_v10 = vadd.f32 %v2565_v31, %v15870_v39  ;;  %2918 = vrot.lane.b32.xlu0 %v15992_v7, %s14400_s27  ;;  %v2604_v42 = vadd.f32 %v2567_v4, %v15877_v26  ;;  %v2605_v54 = vadd.f32 %v2569_v17, %v15882_v41  ;;  %v2575_v12 = vpop.f32.mrf.mxu0 }
 0x288   :  { %v16006_v23 = vpack.c.bf16 %v2826_v43, %v2820_v29  ;;  %v2731_v50 = vmax.f32 %v2659_v3, %v2695_v6  ;;  %v2736_v21 = vmax.f32 %v2664_v5, %v2700_v18  ;;  %v2701_v2 = vmul.f32 0.01, %v2665_v14  ;;  %2904 = vrot.lane.b32.xlu1 %v15947_v48, %s14400_s27  ;;  %v23228_v3 = vld [vmem:[#allocation20_spill] sm:$0xff] }
 0x289   :  { %v2706_v28 = vmul.f32 0.01, %v2670_v55  ;;  %v2671_v38 = vadd.f32 %v15767_v60, %v2599_v10  ;;  %v2676_v39 = vadd.f32 %v15825_v59, %v2604_v42  ;;  %v2677_v31 = vadd.f32 %v15825_v59, %v2605_v54  ;;  %v2577_v56 = vpop.f32.mrf.mxu0 }
 0x28a   :  { %v2798_v26 = vmul.f32 %v15771_v30, %v2731_v50  ;;  %v2803_v41 = vmul.f32 %v15762_v63, %v2736_v21  ;;  %v2737_v8 = vmax.f32 %v2665_v14, %v2701_v2  ;;  %v2610_v61 = vadd.f32 %v2573_v24, %v15891_v34  ;;  %v23229_v24 = vld [vmem:[#allocation21_spill] sm:$0xff] }
 0x28b   :  { %v2742_v35 = vmax.f32 %v2670_v55, %v2706_v28  ;;  %v2707_v9 = vmul.f32 0.01, %v2671_v38  ;;  %v2712_v20 = vmul.f32 0.01, %v2676_v39  ;;  %v2713_v37 = vmul.f32 0.01, %v2677_v31  ;;  %2906 = vrot.lane.b32.xlu0 %v15955_v13, %s14400_s27  ;;  %v2579_v32 = vpop.f32.mrf.mxu0 }
 0x28c   :  { %v16018_v60 = vpack.c.bf16 %v2803_v41, %v2797_v15  ;;  %v2804_v4 = vmul.f32 %v15771_v30, %v2737_v8  ;;  %v2682_v59 = vadd.f32 %v15769_v16, %v2610_v61  ;;  %2892 = vrot.lane.b32.xlu1 %v15920_v51, %s14400_s27  ;;  %v2611_v52 = vadd.f32 %v2575_v12, %v23227_v22  ;;  %v23230_v61 = vld [vmem:[#allocation5_spill] sm:$0xff] }
 0x28d   :  { %v2809_v34 = vmul.f32 %v15762_v63, %v2742_v35  ;;  %v2743_v57 = vmax.f32 %v2671_v38, %v2707_v9  ;;  %v2748_v29 = vmax.f32 %v2676_v39, %v2712_v20  ;;  %v2749_v27 = vmax.f32 %v2677_v31, %v2713_v37 }
 0x28e   :  { %v16026_v46 = vpack.c.bf16 %v2804_v4, %v2798_v26  ;;  %v2718_v17 = vmul.f32 0.01, %v2682_v59  ;;  %v2683_v36 = vadd.f32 %v15769_v16, %v2611_v52  ;;  %v2616_v5 = vadd.f32 %v2577_v56, %v23228_v3  ;;  %v16194_v3 = vld [vmem:[%s23007_s4 + $0x20] sm:$0xff]  }
 0x28f   :  { %v2810_v1 = vmul.f32 %v15771_v30, %v2743_v57  ;;  %v2815_v15 = vmul.f32 %v15762_v63, %v2748_v29  ;;  %v2816_v25 = vmul.f32 %v15771_v30, %v2749_v27  ;;  %2894 = vrot.lane.b32.xlu0 %v15925_v19, %s14400_s27  ;;  %v2617_v43 = vadd.f32 %v2579_v32, %v23229_v24 }
 0x290   :  { %v2719_v6 = vmul.f32 0.01, %v2683_v36  ;;  %v2688_v18 = vadd.f32 %v23226_v0, %v2616_v5  ;;  %2920 = vrot.lane.b32.xlu1 %v15994_v11, %s14400_s27  ;;  %v2754_v10 = vmax.f32 %v2682_v59, %v2718_v17  ;;  %v23231_v27 = vmov 0  }
 0x291   :  { %v16039_v16 = vpack.c.bf16 %v2815_v15, %v2809_v34  ;;  %v16041_v14 = vpack.c.bf16 %v2816_v25, %v2810_v1  ;;  %v2689_v55 = vadd.f32 %v23226_v0, %v2617_v43  ;;  %v16178_v34 = vld [vmem:[%s23007_s4 + $0x18] sm:$0xff]  }
 0x292   :  { %v2724_v42 = vmul.f32 0.01, %v2688_v18  ;;  %v2755_v54 = vmax.f32 %v2683_v36, %v2719_v6  ;;  %v2821_v2 = vmul.f32 %v15762_v63, %v2754_v10  ;;  %v16215_v10 = vld [vmem:[%s23007_s4 + $0x28] sm:$0xff]  }
 0x293   :  { %v2725_v12 = vmul.f32 0.01, %v2689_v55  ;;  %2910 = vrot.lane.b32.xlu0 %v15975_v53, %s14400_s27 }
 0x294   :  { %v2760_v50 = vmax.f32 %v2688_v18, %v2724_v42  ;;  %2908 = vrot.lane.b32.xlu1 %v15966_v47, %s14400_s27  ;;  %v2822_v38 = vmul.f32 %v15771_v30, %v2755_v54 }
 0x295   :  { %v2761_v21 = vmax.f32 %v2689_v55, %v2725_v12 }
 0x296   :  { %v2827_v28 = vmul.f32 %v15762_v63, %v2760_v50 }
 0x297   :  { %v2828_v0 = vmul.f32 %v15771_v30, %v2761_v21  ;;  %2898 = vrot.lane.b32.xlu0 %v15942_v40, %s14400_s27 }
 0x298   :  { %v16054_v39 = vpack.c.bf16 %v2827_v28, %v2821_v2  ;;  %2896 = vrot.lane.b32.xlu1 %v15932_v62, %s14400_s27 }
 0x299   :  { %v16058_v31 = vpack.c.bf16 %v2828_v0, %v2822_v38 }
 0x29b   :  { %2922 = vrot.lane.b32.xlu0 %v16006_v23, %s14400_s27 }
 0x29c   :  { %2924 = vrot.lane.b32.xlu1 %v16054_v39, %s14400_s27 }
 0x29f   :  { %2926 = vrot.lane.b32.xlu0 %v16058_v31, %s14400_s27 }
 0x2a0   :  { %2912 = vrot.lane.b32.xlu1 %v16039_v16, %s14400_s27 }
 0x2a3   :  { %2914 = vrot.lane.b32.xlu0 %v16041_v14, %s14400_s27 }
 0x2a4   :  { %2900 = vrot.lane.b32.xlu1 %v16018_v60, %s14400_s27 }
 0x2a7   :  { %2902 = vrot.lane.b32.xlu0 %v16026_v46, %s14400_s27 }
 0x2a8   :  { %3202 = vrot.lane.b32.xlu1 %v15980_v45, %s14401_s0 }
 0x2ab   :  { %3204 = vrot.lane.b32.xlu0 %v15992_v7, %s14401_s0 }
 0x2ac   :  { %3190 = vrot.lane.b32.xlu1 %v15947_v48, %s14401_s0 }
 0x2af   :  { %3192 = vrot.lane.b32.xlu0 %v15955_v13, %s14401_s0 }
 0x2b0   :  { %3206 = vrot.lane.b32.xlu1 %v15994_v11, %s14401_s0 }
 0x2b3   :  { %3208 = vrot.lane.b32.xlu0 %v16006_v23, %s14401_s0 }
 0x2b4   :  { %3178 = vrot.lane.b32.xlu1 %v15920_v51, %s14401_s0 }
 0x2b7   :  { %3180 = vrot.lane.b32.xlu0 %v15925_v19, %s14401_s0 }
 0x2b8   :  { %3194 = vrot.lane.b32.xlu1 %v15966_v47, %s14401_s0 }
 0x2bb   :  { %3196 = vrot.lane.b32.xlu0 %v15975_v53, %s14401_s0 }
 0x2bc   :  { %3182 = vrot.lane.b32.xlu1 %v15932_v62, %s14401_s0 }
 0x2bf   :  { %3184 = vrot.lane.b32.xlu0 %v15942_v40, %s14401_s0 }
 0x2c0   :  { %3210 = vrot.lane.b32.xlu1 %v16054_v39, %s14401_s0 }
 0x2c3   :  { %3200 = vrot.lane.b32.xlu0 %v16041_v14, %s14401_s0 }
 0x2c4   :  { %3198 = vrot.lane.b32.xlu1 %v16039_v16, %s14401_s0 }
 0x2c7   :  { %3495 = vrot.lane.b32.xlu0 %v15992_v7, %s14402_s16 }
 0x2c8   :  { %3493 = vrot.lane.b32.xlu1 %v15980_v45, %s14402_s16 }
 0x2cb   :  { %3212 = vrot.lane.b32.xlu0 %v16058_v31, %s14401_s0 }
 0x2cc   :  { %3186 = vrot.lane.b32.xlu1 %v16018_v60, %s14401_s0 }
 0x2cf   :  { %3188 = vrot.lane.b32.xlu0 %v16026_v46, %s14401_s0 }
 0x2d0   :  { %3481 = vrot.lane.b32.xlu1 %v15947_v48, %s14402_s16 }
 0x2d3   :  { %3483 = vrot.lane.b32.xlu0 %v15955_v13, %s14402_s16 }
 0x2d4   :  { %3469 = vrot.lane.b32.xlu1 %v15920_v51, %s14402_s16 }
 0x2d7   :  { %3471 = vrot.lane.b32.xlu0 %v15925_v19, %s14402_s16 }
 0x2d8   :  { %3497 = vrot.lane.b32.xlu1 %v15994_v11, %s14402_s16 }
 0x2db   :  { %3499 = vrot.lane.b32.xlu0 %v16006_v23, %s14402_s16 }
 0x2dc   :  { %3485 = vrot.lane.b32.xlu1 %v15966_v47, %s14402_s16 }
 0x2df   :  { %3487 = vrot.lane.b32.xlu0 %v15975_v53, %s14402_s16 }
 0x2e0   :  { %3501 = vrot.lane.b32.xlu1 %v16054_v39, %s14402_s16 }
 0x2e3   :  { %3475 = vrot.lane.b32.xlu0 %v15942_v40, %s14402_s16 }
 0x2e4   :  { %3473 = vrot.lane.b32.xlu1 %v15932_v62, %s14402_s16 }
 0x2e7   :  { %3503 = vrot.lane.b32.xlu0 %v16058_v31, %s14402_s16 }
 0x2e8   :  { %3489 = vrot.lane.b32.xlu1 %v16039_v16, %s14402_s16 }
 0x2eb   :  { %3491 = vrot.lane.b32.xlu0 %v16041_v14, %s14402_s16 }
 0x2ec   :  { %3477 = vrot.lane.b32.xlu1 %v16018_v60, %s14402_s16 }
 0x2ef   :  { %3479 = vrot.lane.b32.xlu0 %v16026_v46, %s14402_s16 }
 0x2f0   :  { %3820 = vrot.lane.b32.xlu1 %v15980_v45, %s14403_s17 }
 0x2f3   :  { %3822 = vrot.lane.b32.xlu0 %v15992_v7, %s14403_s17 }
 0x2f4   :  { %3808 = vrot.lane.b32.xlu1 %v15947_v48, %s14403_s17 }
 0x2f6   :  { %v2917_v56 = vpop.permute.xlu1 %2916 }
 0x2f7   :  { %3810 = vrot.lane.b32.xlu0 %v15955_v13, %s14403_s17  ;;  %v2940_v35 = vsel %vm104_vm0, %v23230_v61, %v2917_v56 }
 0x2f8   :  { %3824 = vrot.lane.b32.xlu1 %v15994_v11, %s14403_s17 }
 0x2f9   :  { %v2919_v26 = vpop.permute.xlu0 %2918 }
 0x2fa   :  { %v2941_v41 = vsel %vm104_vm0, %v2917_v56, %v2919_v26  ;;  %v2905_v8 = vpop.permute.xlu1 %2904 }
 0x2fb   :  { %3826 = vrot.lane.b32.xlu0 %v16006_v23, %s14403_s17  ;;  %2984 = vmatprep.subr.bf16.mxu1 %v2941_v41  ;;  %v2934_v4 = vsel %vm104_vm0, %v23230_v61, %v2905_v8 }
 0x2fc   :  { %2985 = vmatpush1.bf16.msra.mxu1 %v2940_v35  ;;  %3796 = vrot.lane.b32.xlu1 %v15920_v51, %s14403_s17 }
 0x2fd   :  { %v2907_v9 = vpop.permute.xlu0 %2906 }
 0x2fe   :  { %v2935_v20 = vsel %vm104_vm0, %v2905_v8, %v2907_v9  ;;  %v2893_v37 = vpop.permute.xlu1 %2892 }
 0x2ff   :  { %3798 = vrot.lane.b32.xlu0 %v15925_v19, %s14403_s17  ;;  %2986 = vmatprep.subr.bf16.mxu1 %v2935_v20  ;;  %v2928_v32 = vsel %vm104_vm0, %v23230_v61, %v2893_v37 }
 0x300   :  { %2987 = vmatpush1.bf16.msra.mxu1 %v2934_v4  ;;  %3812 = vrot.lane.b32.xlu1 %v15966_v47, %s14403_s17 }
 0x301   :  { %v2895_v59 = vpop.permute.xlu0 %2894 }
 0x302   :  { %v2929_v22 = vsel %vm104_vm0, %v2893_v37, %v2895_v59  ;;  %v2921_v52 = vpop.permute.xlu1 %2920 }
 0x303   :  { %3814 = vrot.lane.b32.xlu0 %v15975_v53, %s14403_s17  ;;  %2988 = vmatprep.subr.bf16.mxu1 %v2929_v22  ;;  %v2942_v25 = vsel %vm104_vm0, %v2919_v26, %v2921_v52 }
 0x304   :  { %2989 = vmatpush1.bf16.msra.mxu1 %v2928_v32  ;;  %3800 = vrot.lane.b32.xlu1 %v15932_v62, %s14403_s17 }
 0x305   :  { %v2911_v57 = vpop.permute.xlu0 %2910 }
 0x306   :  { %v2909_v29 = vpop.permute.xlu1 %2908 }
 0x307   :  { %3802 = vrot.lane.b32.xlu0 %v15942_v40, %s14403_s17  ;;  %13895 = vmatmul.mubr.msk.bf16.vlgmr.msra.gmra.mxu1 %vm2964_vm10, %v16178_v34  ;;  %v2937_v43 = vsel %vm104_vm0, %v2909_v29, %v2911_v57  ;;  %v2936_v42 = vsel %vm104_vm0, %v2907_v9, %v2909_v29  ;;  %v23232_v9 = vld [vmem:[#allocation6_spill] sm:$0xff] }
 0x308   :  { %3828 = vrot.lane.b32.xlu1 %v16054_v39, %s14403_s17  ;;  %3016 = vmatprep.mubr.bf16.mxu1 %v23231_v27 }
 0x309   :  { %v2899_v17 = vpop.permute.xlu0 %2898 }
 0x30a   :  { %v2897_v36 = vpop.permute.xlu1 %2896 }
 0x30b   :  { %3830 = vrot.lane.b32.xlu0 %v16058_v31, %s14403_s17  ;;  %v2931_v12 = vsel %vm104_vm0, %v2897_v36, %v2899_v17  ;;  %v2930_v2 = vsel %vm104_vm0, %v2895_v59, %v2897_v36 }
 0x30c   :  { %3816 = vrot.lane.b32.xlu1 %v16039_v16, %s14403_s17 }
 0x30d   :  { %v2923_v5 = vpop.permute.xlu0 %2922 }
 0x30e   :  { %v2943_v1 = vsel %vm104_vm0, %v2921_v52, %v2923_v5  ;;  %v2925_v15 = vpop.permute.xlu1 %2924 }
 0x30f   :  { %3818 = vrot.lane.b32.xlu0 %v16041_v14, %s14403_s17  ;;  %13896 = vmatmul.mubr.msk.bf16.gmra.mxu1 %vm2964_vm10, %v16194_v3  ;;  %v2944_v55 = vsel %vm104_vm0, %v2923_v5, %v2925_v15 }
 0x310   :  { %3047 = vmatprep.subr.bf16.mxu0 %v2943_v1  ;;  %3804 = vrot.lane.b32.xlu1 %v16018_v60, %s14403_s17 }
 0x311   :  { %3048 = vmatpush1.bf16.msra.mxu0 %v2942_v25  ;;  %v2927_v24 = vpop.permute.xlu0 %2926  ;;  %3026 = vmatprep.mubr.bf16.mxu1 %v23231_v27 }
 0x312   :  { %3049 = vmatprep.subr.bf16.mxu0 %v2937_v43  ;;  %v2945_v6 = vsel %vm104_vm0, %v2925_v15, %v2927_v24  ;;  %v2913_v18 = vpop.permute.xlu1 %2912  ;;  %v16291_v24 = vld [vmem:[%s23007_s4] sm:$0xff]  }
 0x313   :  { %3806 = vrot.lane.b32.xlu0 %v16026_v46, %s14403_s17  ;;  %3110 = vmatprep.subr.bf16.mxu1 %v2945_v6  ;;  %v2938_v28 = vsel %vm104_vm0, %v2911_v57, %v2913_v18 }
 0x314   :  { %3111 = vmatpush1.bf16.msra.mxu1 %v2944_v55  ;;  %4404 = vrot.lane.b32.xlu1 %v15992_v7, %s14404_s18 }
 0x315   :  { %3050 = vmatpush1.bf16.msra.mxu0 %v2936_v42  ;;  %v2915_v54 = vpop.permute.xlu0 %2914 }
 0x316   :  { %3051 = vmatprep.subr.bf16.mxu0 %v2931_v12  ;;  %v2939_v50 = vsel %vm104_vm0, %v2913_v18, %v2915_v54  ;;  %v2901_v21 = vpop.permute.xlu1 %2900  ;;  %v16312_v54 = vld [vmem:[%s23007_s4 + $0x8] sm:$0xff]  }
 0x317   :  { %4406 = vrot.lane.b32.xlu0 %v15994_v11, %s14404_s18  ;;  %13897 = vmatmul.mubr.msk.bf16.gmra.mxu1 %vm2964_vm10, %v16215_v10  ;;  %v2932_v26 = vsel %vm104_vm0, %v2899_v17, %v2901_v21 }
 0x318   :  { %3112 = vmatprep.subr.bf16.mxu1 %v2939_v50  ;;  %4402 = vrot.lane.b32.xlu1 %v15980_v45, %s14404_s18 }
 0x319   :  { %3052 = vmatpush1.bf16.msra.mxu0 %v2930_v2  ;;  %3113 = vmatpush1.bf16.msra.mxu1 %v2938_v28  ;;  %v2903_v38 = vpop.permute.xlu0 %2902  ;;  %v23233_v2 = vld [vmem:[#allocation7_spill] sm:$0xff] }
 0x31a   :  { %v2933_v0 = vsel %vm104_vm0, %v2901_v21, %v2903_v38  ;;  %v3203_v56 = vpop.permute.xlu1 %3202  ;;  %3132 = vmatprep.mubr.bf16.mxu1 %v23231_v27 }
 0x31b   :  { %4392 = vrot.lane.b32.xlu0 %v15955_v13, %s14404_s18  ;;  %3114 = vmatprep.subr.bf16.mxu1 %v2933_v0  ;;  %v3226_v20 = vsel %vm358_vm3, %v23232_v9, %v3203_v56 }
 0x31c   :  { %13898 = vmatmul.mubr.msk.bf16.vlgmr.msra.gmra.mxu0 %vm2964_vm10, %v16178_v34  ;;  %4394 = vrot.lane.b32.xlu1 %v15966_v47, %s14404_s18 }
 0x31d   :  { %3115 = vmatpush1.bf16.msra.mxu1 %v2932_v26  ;;  %v3205_v41 = vpop.permute.xlu0 %3204  ;;  %3079 = vmatprep.mubr.bf16.mxu0 %v23231_v27 }
 0x31e   :  { %v3227_v8 = vsel %vm358_vm3, %v3203_v56, %v3205_v41  ;;  %v3191_v35 = vpop.permute.xlu1 %3190 }
 0x31f   :  { %4408 = vrot.lane.b32.xlu0 %v16006_v23, %s14404_s18  ;;  %3269 = vmatprep.subr.bf16.mxu0 %v3227_v8  ;;  %v3220_v22 = vsel %vm358_vm3, %v23232_v9, %v3191_v35  ;;  %v16341_v8 = vld [vmem:[%s23007_s4 + $0x10] sm:$0xff]  }
 0x320   :  { %13901 = vmatmul.mubr.msk.bf16.vlgmr.msra.gmra.mxu1 %vm2964_vm10, %v16178_v34  ;;  %3270 = vmatpush1.bf16.msra.mxu0 %v3226_v20 }
 0x321   :  { %v3193_v37 = vpop.permute.xlu0 %3192  ;;  %4410 = vrot.lane.b32.xlu1 %v16054_v39, %s14404_s18  ;;  %3142 = vmatprep.mubr.bf16.mxu1 %v23231_v27 }
 0x322   :  { %v3221_v4 = vsel %vm358_vm3, %v3191_v35, %v3193_v37  ;;  %v3207_v59 = vpop.permute.xlu1 %3206 }
 0x323   :  { %4390 = vrot.lane.b32.xlu0 %v15947_v48, %s14404_s18  ;;  %3271 = vmatprep.subr.bf16.mxu0 %v3221_v4  ;;  %v3228_v57 = vsel %vm358_vm3, %v3205_v41, %v3207_v59 }
 0x324   :  { %13899 = vmatmul.mubr.msk.bf16.gmra.mxu0 %vm2964_vm10, %v16194_v3 }
 0x325   :  { %3272 = vmatpush1.bf16.msra.mxu0 %v3220_v22  ;;  %v16257_v52 = vpop.permute.xlu0 %3208  ;;  %4380 = vrot.lane.b32.xlu1 %v15925_v19, %s14404_s18 }
 0x326   :  { %v3229_v32 = vsel %vm358_vm3, %v3207_v59, %v16257_v52  ;;  %v3179_v34 = vpop.permute.xlu1 %3178  ;;  %3089 = vmatprep.mubr.bf16.mxu0 %v23231_v27 }
 0x327   :  { %4382 = vrot.lane.b32.xlu0 %v15932_v62, %s14404_s18  ;;  %3332 = vmatprep.subr.bf16.mxu1 %v3229_v32 }
 0x328   :  { %13902 = vmatmul.mubr.msk.bf16.gmra.mxu1 %vm2964_vm10, %v16194_v3  ;;  %v3214_v3 = vsel %vm358_vm3, %v23232_v9, %v3179_v34 }
 0x329   :  { %3333 = vmatpush1.bf16.msra.mxu1 %v3228_v57  ;;  %v3181_v29 = vpop.permute.xlu0 %3180  ;;  %4396 = vrot.lane.b32.xlu1 %v15975_v53, %s14404_s18 }
 0x32a   :  { %v3215_v17 = vsel %vm358_vm3, %v3179_v34, %v3181_v29  ;;  %v3195_v36 = vpop.permute.xlu1 %3194  ;;  %3152 = vmatprep.mubr.bf16.mxu1 %v23231_v27 }
 0x32b   :  { %4398 = vrot.lane.b32.xlu0 %v16039_v16, %s14404_s18  ;;  %3273 = vmatprep.subr.bf16.mxu0 %v3215_v17  ;;  %v3222_v25 = vsel %vm358_vm3, %v3193_v37, %v3195_v36 }
 0x32c   :  { %13900 = vmatmul.mubr.msk.bf16.gmra.mxu0 %vm2964_vm10, %v16215_v10 }
 0x32d   :  { %3274 = vmatpush1.bf16.msra.mxu0 %v3214_v3  ;;  %v3197_v5 = vpop.permute.xlu0 %3196  ;;  %4378 = vrot.lane.b32.xlu1 %v15920_v51, %s14404_s18  ;;  %v16376_v3 = vld [vmem:[%s23007_s4 + $0x30] sm:$0xff]  }
 0x32e   :  { %v3223_v1 = vsel %vm358_vm3, %v3195_v36, %v3197_v5  ;;  %v3183_v15 = vpop.permute.xlu1 %3182  ;;  %3291 = vmatprep.mubr.bf16.mxu0 %v23231_v27 }
 0x32f   :  { %4384 = vrot.lane.b32.xlu0 %v15942_v40, %s14404_s18  ;;  %3334 = vmatprep.subr.bf16.mxu1 %v3223_v1  ;;  %v3216_v55 = vsel %vm358_vm3, %v3181_v29, %v3183_v15 }
 0x330   :  { %13903 = vmatmul.mubr.msk.bf16.gmra.mxu1 %vm2964_vm10, %v16215_v10 }
 0x331   :  { %3335 = vmatpush1.bf16.msra.mxu1 %v3222_v25  ;;  %v3185_v43 = vpop.permute.xlu0 %3184  ;;  %4386 = vrot.lane.b32.xlu1 %v16018_v60, %s14404_s18 }
 0x332   :  { %v3217_v6 = vsel %vm358_vm3, %v3183_v15, %v3185_v43  ;;  %v3211_v18 = vpop.permute.xlu1 %3210  ;;  %3354 = vmatprep.mubr.bf16.mxu1 %v23231_v27 }
 0x333   :  { %4731 = vrot.lane.b32.xlu0 %v15992_v7, %s14405_s19  ;;  %3336 = vmatprep.subr.bf16.mxu1 %v3217_v6  ;;  %v3230_v26 = vsel %vm358_vm3, %v16257_v52, %v3211_v18 }
 0x334   :  { %13907 = vmatmul.mubr.msk.bf16.vlgmr.msra.gmra.mxu0 %vm2964_vm10, %v16291_v24 }
 0x335   :  { %3337 = vmatpush1.bf16.msra.mxu1 %v3216_v55  ;;  %v3201_v10 = vpop.permute.xlu0 %3200  ;;  %4400 = vrot.lane.b32.xlu1 %v16041_v14, %s14404_s18  ;;  %v16400_v55 = vld [vmem:[%s23007_s4 + $0x38] sm:$0xff]  }
 0x336   :  { %v3199_v42 = vpop.permute.xlu1 %3198  ;;  %3301 = vmatprep.mubr.bf16.mxu0 %v23231_v27 }
 0x337   :  { %4729 = vrot.lane.b32.xlu0 %v15980_v45, %s14405_s19  ;;  %v3225_v41 = vsel %vm358_vm3, %v3199_v42, %v3201_v10  ;;  %v3224_v37 = vsel %vm358_vm3, %v3197_v5, %v3199_v42 }
 0x338   :  { %13910 = vmatmul.mubr.msk.bf16.vlgmr.msra.gmra.mxu1 %vm2964_vm10, %v16291_v24 }
 0x339   :  { %v16314_v12 = vpop.permute.xlu0 %3495  ;;  %4733 = vrot.lane.b32.xlu1 %v15994_v11, %s14405_s19  ;;  %3364 = vmatprep.mubr.bf16.mxu1 %v23231_v27 }
 0x33a   :  { %v3494_v50 = vpop.permute.xlu1 %3493 }
 0x33b   :  { %4412 = vrot.lane.b32.xlu0 %v16058_v31, %s14404_s18  ;;  %v3518_v21 = vsel %vm616_vm4, %v3494_v50, %v16314_v12  ;;  %v3517_v28 = vsel %vm616_vm4, %v23233_v2, %v3494_v50 }
 0x33c   :  { %13908 = vmatmul.mubr.msk.bf16.gmra.mxu0 %vm2964_vm10, %v16312_v54  ;;  %3560 = vmatprep.subr.bf16.mxu1 %v3518_v21 }
 0x33d   :  { %v3213_v38 = vpop.permute.xlu0 %3212  ;;  %4388 = vrot.lane.b32.xlu1 %v16026_v46, %s14404_s18  ;;  %3561 = vmatpush1.bf16.msra.mxu1 %v3517_v28 }
 0x33e   :  { %v3231_v0 = vsel %vm358_vm3, %v3211_v18, %v3213_v38  ;;  %v3187_v56 = vpop.permute.xlu1 %3186  ;;  %3311 = vmatprep.mubr.bf16.mxu0 %v23231_v27 }
 0x33f   :  { %4719 = vrot.lane.b32.xlu0 %v15955_v13, %s14405_s19  ;;  %3395 = vmatprep.subr.bf16.mxu0 %v3231_v0  ;;  %v3218_v32 = vsel %vm358_vm3, %v3185_v43, %v3187_v56  ;;  %v16423_v0 = vld [vmem:[%s23007_s4 + $0x40] sm:$0xff]  }
 0x340   :  { %13911 = vmatmul.mubr.msk.bf16.gmra.mxu1 %vm2964_vm10, %v16312_v54  ;;  %3396 = vmatpush1.bf16.msra.mxu0 %v3230_v26 }
 0x341   :  { %v3189_v35 = vpop.permute.xlu0 %3188  ;;  %4721 = vrot.lane.b32.xlu1 %v15966_v47, %s14405_s19  ;;  %3397 = vmatprep.subr.bf16.mxu0 %v3225_v41 }
 0x342   :  { %v3482_v20 = vpop.permute.xlu1 %3481  ;;  %3374 = vmatprep.mubr.bf16.mxu1 %v23231_v27  ;;  %v3219_v59 = vsel %vm358_vm3, %v3187_v56, %v3189_v35 }
 0x343   :  { %4717 = vrot.lane.b32.xlu0 %v15947_v48, %s14405_s19  ;;  %v3511_v34 = vsel %vm616_vm4, %v23233_v2, %v3482_v20 }
 0x344   :  { %13909 = vmatmul.mubr.msk.bf16.gmra.mxu0 %vm2964_vm10, %v16341_v8 }
 0x345   :  { %3398 = vmatpush1.bf16.msra.mxu0 %v3224_v37  ;;  %v3484_v4 = vpop.permute.xlu0 %3483  ;;  %4707 = vrot.lane.b32.xlu1 %v15925_v19, %s14405_s19 }
 0x346   :  { %3399 = vmatprep.subr.bf16.mxu0 %v3219_v59  ;;  %v3512_v22 = vsel %vm616_vm4, %v3482_v20, %v3484_v4  ;;  %v3470_v52 = vpop.permute.xlu1 %3469  ;;  %3417 = vmatprep.mubr.bf16.mxu0 %v23231_v27 }
 0x347   :  { %4709 = vrot.lane.b32.xlu0 %v15932_v62, %s14405_s19  ;;  %3562 = vmatprep.subr.bf16.mxu1 %v3512_v22  ;;  %v3505_v36 = vsel %vm616_vm4, %v23233_v2, %v3470_v52 }
 0x348   :  { %13912 = vmatmul.mubr.msk.bf16.gmra.mxu1 %vm2964_vm10, %v16341_v8 }
 0x349   :  { %3400 = vmatpush1.bf16.msra.mxu0 %v3218_v32  ;;  %3563 = vmatpush1.bf16.msra.mxu1 %v3511_v34  ;;  %v3472_v57 = vpop.permute.xlu0 %3471  ;;  %v23234_v32 = vld [vmem:[#allocation8_spill] sm:$0xff] }
 0x34a   :  { %4705 = vrot.lane.b32.xlu1 %v15920_v51, %s14405_s19  ;;  %v3506_v29 = vsel %vm616_vm4, %v3470_v52, %v3472_v57  ;;  %v3498_v17 = vpop.permute.xlu1 %3497  ;;  %3582 = vmatprep.mubr.bf16.mxu1 %v23231_v27 }
 0x34b   :  { %4735 = vrot.lane.b32.xlu0 %v16006_v23, %s14405_s19  ;;  %3564 = vmatprep.subr.bf16.mxu1 %v3506_v29  ;;  %v3519_v25 = vsel %vm616_vm4, %v16314_v12, %v3498_v17 }
 0x34c   :  { %13913 = vmatmul.mubr.msk.bf16.vlgmr.msra.gmra.mxu0 %vm2964_vm10, %v16291_v24 }
 0x34d   :  { %3565 = vmatpush1.bf16.msra.mxu1 %v3505_v36  ;;  %v3500_v5 = vpop.permute.xlu0 %3499  ;;  %3427 = vmatprep.mubr.bf16.mxu0 %v23231_v27 }
 0x34e   :  { %4737 = vrot.lane.b32.xlu1 %v16054_v39, %s14405_s19  ;;  %v3520_v1 = vsel %vm616_vm4, %v3498_v17, %v3500_v5  ;;  %v3486_v15 = vpop.permute.xlu1 %3485 }
 0x34f   :  { %4723 = vrot.lane.b32.xlu0 %v15975_v53, %s14405_s19  ;;  %3623 = vmatprep.subr.bf16.mxu0 %v3520_v1  ;;  %v3513_v18 = vsel %vm616_vm4, %v3484_v4, %v3486_v15 }
 0x350   :  { %13919 = vmatmul.mubr.msk.bf16.vlgmr.msra.gmra.mxu1 %vm2964_vm10, %v16376_v3  ;;  %3624 = vmatpush1.bf16.msra.mxu0 %v3519_v25 }
 0x351   :  { %v3488_v24 = vpop.permute.xlu0 %3487  ;;  %3592 = vmatprep.mubr.bf16.mxu1 %v23231_v27 }
 0x352   :  { %4725 = vrot.lane.b32.xlu1 %v16039_v16, %s14405_s19  ;;  %v3514_v43 = vsel %vm616_vm4, %v3486_v15, %v3488_v24  ;;  %v3502_v6 = vpop.permute.xlu1 %3501 }
 0x353   :  { %4713 = vrot.lane.b32.xlu0 %v16018_v60, %s14405_s19  ;;  %3625 = vmatprep.subr.bf16.mxu0 %v3514_v43  ;;  %v3521_v38 = vsel %vm616_vm4, %v3500_v5, %v3502_v6 }
 0x354   :  { %13914 = vmatmul.mubr.msk.bf16.gmra.mxu0 %vm2964_vm10, %v16312_v54 }
 0x355   :  { %3626 = vmatpush1.bf16.msra.mxu0 %v3513_v18  ;;  %v3476_v10 = vpop.permute.xlu0 %3475  ;;  %3437 = vmatprep.mubr.bf16.mxu0 %v23231_v27 }
 0x356   :  { %4711 = vrot.lane.b32.xlu1 %v15942_v40, %s14405_s19  ;;  %v3474_v42 = vpop.permute.xlu1 %3473 }
 0x357   :  { %4739 = vrot.lane.b32.xlu0 %v16058_v31, %s14405_s19  ;;  %v3508_v54 = vsel %vm616_vm4, %v3474_v42, %v3476_v10  ;;  %v3507_v12 = vsel %vm616_vm4, %v3472_v57, %v3474_v42 }
 0x358   :  { %13920 = vmatmul.mubr.msk.bf16.gmra.mxu1 %vm2964_vm10, %v16400_v55  ;;  %3627 = vmatprep.subr.bf16.mxu0 %v3508_v54  ;;  %v16494_v54 = vld [vmem:[%s23007_s4 + $0x48] sm:$0xff]  }
 0x359   :  { %v3504_v50 = vpop.permute.xlu0 %3503  ;;  %3628 = vmatpush1.bf16.msra.mxu0 %v3507_v12  ;;  %3602 = vmatprep.mubr.bf16.mxu1 %v23231_v27 }
 0x35a   :  { %4727 = vrot.lane.b32.xlu1 %v16041_v14, %s14405_s19  ;;  %v3522_v21 = vsel %vm616_vm4, %v3502_v6, %v3504_v50  ;;  %v3490_v28 = vpop.permute.xlu1 %3489 }
 0x35b   :  { %4715 = vrot.lane.b32.xlu0 %v16026_v46, %s14405_s19  ;;  %3686 = vmatprep.subr.bf16.mxu1 %v3522_v21 }
 0x35c   :  { %13915 = vmatmul.mubr.msk.bf16.gmra.mxu0 %vm2964_vm10, %v16341_v8  ;;  %3687 = vmatpush1.bf16.msra.mxu1 %v3521_v38  ;;  %v3515_v8 = vsel %vm616_vm4, %v3488_v24, %v3490_v28 }
 0x35d   :  { %v3492_v56 = vpop.permute.xlu0 %3491  ;;  %3645 = vmatprep.mubr.bf16.mxu0 %v23231_v27 }
 0x35e   :  { %5058 = vrot.lane.b32.xlu1 %v15992_v7, %s14406_s20  ;;  %v3516_v26 = vsel %vm616_vm4, %v3490_v28, %v3492_v56  ;;  %v3478_v41 = vpop.permute.xlu1 %3477 }
 0x35f   :  { %5060 = vrot.lane.b32.xlu0 %v15994_v11, %s14406_s20  ;;  %3688 = vmatprep.subr.bf16.mxu1 %v3516_v26  ;;  %v3509_v4 = vsel %vm616_vm4, %v3476_v10, %v3478_v41 }
 0x360   :  { %13921 = vmatmul.mubr.msk.bf16.gmra.mxu1 %vm2964_vm10, %v16423_v0 }
 0x361   :  { %3689 = vmatpush1.bf16.msra.mxu1 %v3515_v8  ;;  %v3480_v35 = vpop.permute.xlu0 %3479  ;;  %3708 = vmatprep.mubr.bf16.mxu1 %v23231_v27 }
 0x362   :  { %5056 = vrot.lane.b32.xlu1 %v15980_v45, %s14406_s20  ;;  %v3510_v20 = vsel %vm616_vm4, %v3478_v41, %v3480_v35  ;;  %v3821_v37 = vpop.permute.xlu1 %3820  ;;  %v16518_v41 = vld [vmem:[%s23007_s4 + $0x50] sm:$0xff]  }
 0x363   :  { %5046 = vrot.lane.b32.xlu0 %v15955_v13, %s14406_s20  ;;  %3690 = vmatprep.subr.bf16.mxu1 %v3510_v20  ;;  %v3844_v34 = vsel %vm910_vm5, %v23234_v32, %v3821_v37 }
 0x364   :  { %13922 = vmatmul.mubr.msk.bf16.vlgmr.msra.gmra.mxu0 %vm2964_vm10, %v16376_v3 }
 0x365   :  { %3691 = vmatpush1.bf16.msra.mxu1 %v3509_v4  ;;  %v3823_v59 = vpop.permute.xlu0 %3822  ;;  %3655 = vmatprep.mubr.bf16.mxu0 %v23231_v27 }
 0x366   :  { %5048 = vrot.lane.b32.xlu1 %v15966_v47, %s14406_s20  ;;  %v3845_v22 = vsel %vm910_vm5, %v3821_v37, %v3823_v59  ;;  %v3809_v52 = vpop.permute.xlu1 %3808 }
 0x367   :  { %5062 = vrot.lane.b32.xlu0 %v16006_v23, %s14406_s20  ;;  %3887 = vmatprep.subr.bf16.mxu0 %v3845_v22  ;;  %v3838_v36 = vsel %vm910_vm5, %v23234_v32, %v3809_v52  ;;  %v14301_v22 = vld [vmem:[%s23007_s4 + $0x58] sm:$0xff]  }
 0x368   :  { %13925 = vmatmul.mubr.msk.bf16.vlgmr.msra.gmra.mxu1 %vm2964_vm10, %v16376_v3  ;;  %3888 = vmatpush1.bf16.msra.mxu0 %v3844_v34 }
 0x369   :  { %v3811_v57 = vpop.permute.xlu0 %3810  ;;  %3718 = vmatprep.mubr.bf16.mxu1 %v23231_v27 }
 0x36a   :  { %5064 = vrot.lane.b32.xlu1 %v16054_v39, %s14406_s20  ;;  %v3839_v29 = vsel %vm910_vm5, %v3809_v52, %v3811_v57  ;;  %v3825_v17 = vpop.permute.xlu1 %3824 }
 0x36b   :  { %5044 = vrot.lane.b32.xlu0 %v15947_v48, %s14406_s20  ;;  %3889 = vmatprep.subr.bf16.mxu0 %v3839_v29  ;;  %v3846_v15 = vsel %vm910_vm5, %v3823_v59, %v3825_v17 }
 0x36c   :  { %13923 = vmatmul.mubr.msk.bf16.gmra.mxu0 %vm2964_vm10, %v16400_v55 }
 0x36d   :  { %3890 = vmatpush1.bf16.msra.mxu0 %v3838_v36  ;;  %v3827_v3 = vpop.permute.xlu0 %3826  ;;  %3665 = vmatprep.mubr.bf16.mxu0 %v23231_v27  ;;  %v5670_v36 = vld [vmem:[%s23008_s5 + $0x28] sm:$0xff] }
 0x36e   :  { %5034 = vrot.lane.b32.xlu1 %v15925_v19, %s14406_s20  ;;  %v3847_v5 = vsel %vm910_vm5, %v3825_v17, %v3827_v3  ;;  %v3797_v1 = vpop.permute.xlu1 %3796 }
 0x36f   :  { %5036 = vrot.lane.b32.xlu0 %v15932_v62, %s14406_s20  ;;  %3950 = vmatprep.subr.bf16.mxu1 %v3847_v5  ;;  %v3832_v6 = vsel %vm910_vm5, %v23234_v32, %v3797_v1  ;;  %v5667_v5 = vld [vmem:[%s23008_s5 + $0x10] sm:$0xff] }
 0x370   :  { %13926 = vmatmul.mubr.msk.bf16.gmra.mxu1 %vm2964_vm10, %v16400_v55 }
 0x371   :  { %3951 = vmatpush1.bf16.msra.mxu1 %v3846_v15  ;;  %v3799_v25 = vpop.permute.xlu0 %3798  ;;  %3728 = vmatprep.mubr.bf16.mxu1 %v23231_v27 }
 0x372   :  { %5050 = vrot.lane.b32.xlu1 %v15975_v53, %s14406_s20  ;;  %v3833_v24 = vsel %vm910_vm5, %v3797_v1, %v3799_v25  ;;  %v3813_v43 = vpop.permute.xlu1 %3812  ;;  %v5668_v1 = vld [vmem:[%s23008_s5 + $0x18] sm:$0xff] }
 0x373   :  { %5052 = vrot.lane.b32.xlu0 %v16039_v16, %s14406_s20  ;;  %3891 = vmatprep.subr.bf16.mxu0 %v3833_v24  ;;  %v3840_v42 = vsel %vm910_vm5, %v3811_v57, %v3813_v43 }
 0x374   :  { %13924 = vmatmul.mubr.msk.bf16.gmra.mxu0 %vm2964_vm10, %v16423_v0 }
 0x375   :  { %3892 = vmatpush1.bf16.msra.mxu0 %v3832_v6  ;;  %v3815_v18 = vpop.permute.xlu0 %3814  ;;  %3909 = vmatprep.mubr.bf16.mxu0 %v23231_v27  ;;  %v5666_v6 = vld [vmem:[%s23008_s5 + $0x8] sm:$0xff] }
 0x376   :  { %5032 = vrot.lane.b32.xlu1 %v15920_v51, %s14406_s20  ;;  %v3841_v55 = vsel %vm910_vm5, %v3813_v43, %v3815_v18  ;;  %v3801_v10 = vpop.permute.xlu1 %3800  ;;  %v5665_v43 = vld [vmem:[%s23008_s5] sm:$0xff] }
 0x377   :  { %5038 = vrot.lane.b32.xlu0 %v15942_v40, %s14406_s20  ;;  %3952 = vmatprep.subr.bf16.mxu1 %v3841_v55  ;;  %v3834_v28 = vsel %vm910_vm5, %v3799_v25, %v3801_v10 }
 0x378   :  { %13927 = vmatmul.mubr.msk.bf16.gmra.mxu1 %vm2964_vm10, %v16423_v0 }
 0x379   :  { %3953 = vmatpush1.bf16.msra.mxu1 %v3840_v42  ;;  %v3803_v12 = vpop.permute.xlu0 %3802  ;;  %3972 = vmatprep.mubr.bf16.mxu1 %v23231_v27 }
 0x37a   :  { %5040 = vrot.lane.b32.xlu1 %v16018_v60, %s14406_s20  ;;  %v3835_v50 = vsel %vm910_vm5, %v3801_v10, %v3803_v12  ;;  %v3829_v21 = vpop.permute.xlu1 %3828 }
 0x37b   :  { %5385 = vrot.lane.b32.xlu0 %v15992_v7, %s14407_s28  ;;  %3954 = vmatprep.subr.bf16.mxu1 %v3835_v50  ;;  %v3848_v26 = vsel %vm910_vm5, %v3827_v3, %v3829_v21  ;;  %v14304_v3 = vld [vmem:[%s23007_s4 + $0x70] sm:$0xff]  }
 0x37c   :  { %13931 = vmatmul.mubr.msk.bf16.vlgmr.msra.gmra.mxu0 %vm2964_vm10, %v16494_v54 }
 0x37d   :  { %3955 = vmatpush1.bf16.msra.mxu1 %v3834_v28  ;;  %v3831_v38 = vpop.permute.xlu0 %3830  ;;  %3919 = vmatprep.mubr.bf16.mxu0 %v23231_v27 }
 0x37e   :  { %5054 = vrot.lane.b32.xlu1 %v16041_v14, %s14406_s20  ;;  %4142 = vmatprep.subr.bf16.mxu1 %v15992_v7  ;;  %v3849_v0 = vsel %vm910_vm5, %v3829_v21, %v3831_v38  ;;  %v3817_v56 = vpop.permute.xlu1 %3816 }
 0x37f   :  { %5383 = vrot.lane.b32.xlu0 %v15980_v45, %s14407_s28  ;;  %4013 = vmatprep.subr.bf16.mxu0 %v3849_v0 }
 0x380   :  { %13934 = vmatmul.mubr.msk.bf16.vlgmr.msra.gmra.mxu1 %vm2964_vm10, %v16494_v54  ;;  %4014 = vmatpush1.bf16.msra.mxu0 %v3848_v26  ;;  %v23235_v26 = vld [vmem:[#allocation9_spill] sm:$0xff] }
 0x381   :  { %4143 = vmatpush1.bf16.msra.mxu1 %v15980_v45  ;;  %v3819_v7 = vpop.permute.xlu0 %3818  ;;  %3982 = vmatprep.mubr.bf16.mxu1 %v23231_v27  ;;  %v3842_v45 = vsel %vm910_vm5, %v3815_v18, %v3817_v56 }
 0x382   :  { %5387 = vrot.lane.b32.xlu1 %v15994_v11, %s14407_s28  ;;  %4144 = vmatprep.subr.bf16.mxu1 %v15955_v13  ;;  %v3843_v8 = vsel %vm910_vm5, %v3817_v56, %v3819_v7  ;;  %v3805_v35 = vpop.permute.xlu1 %3804 }
 0x383   :  { %5066 = vrot.lane.b32.xlu0 %v16058_v31, %s14406_s20  ;;  %4015 = vmatprep.subr.bf16.mxu0 %v3843_v8  ;;  %v3836_v59 = vsel %vm910_vm5, %v3803_v12, %v3805_v35 }
 0x384   :  { %13932 = vmatmul.mubr.msk.bf16.gmra.mxu0 %vm2964_vm10, %v16518_v41 }
 0x385   :  { %4016 = vmatpush1.bf16.msra.mxu0 %v3842_v45  ;;  %4145 = vmatpush1.bf16.msra.mxu1 %v15947_v48  ;;  %v3807_v20 = vpop.permute.xlu0 %3806 }
 0x386   :  { %5042 = vrot.lane.b32.xlu1 %v16026_v46, %s14406_s20  ;;  %4146 = vmatprep.subr.bf16.mxu1 %v15925_v19  ;;  %v3837_v37 = vsel %vm910_vm5, %v3805_v35, %v3807_v20  ;;  %v16536_v4 = vpop.permute.xlu1 %4404 }
 0x387   :  { %5373 = vrot.lane.b32.xlu0 %v15955_v13, %s14407_s28  ;;  %4017 = vmatprep.subr.bf16.mxu0 %v3837_v37 }
 0x388   :  { %13935 = vmatmul.mubr.msk.bf16.gmra.mxu1 %vm2964_vm10, %v16518_v41  ;;  %3929 = vmatprep.mubr.bf16.mxu0 %v23231_v27 }
 0x389   :  { %4018 = vmatpush1.bf16.msra.mxu0 %v3836_v59  ;;  %4147 = vmatpush1.bf16.msra.mxu1 %v15920_v51  ;;  %v16548_v52 = vpop.permute.xlu0 %4406 }
 0x38a   :  { %5375 = vrot.lane.b32.xlu1 %v15966_v47, %s14407_s28  ;;  %4205 = vmatprep.subr.bf16.mxu0 %v16006_v23  ;;  %v16553_v13 = vpop.permute.xlu1 %4402 }
 0x38b   :  { %4268 = vmatprep.subr.bf16.mxu1 %v16058_v31  ;;  %5371 = vrot.lane.b32.xlu0 %v15947_v48, %s14407_s28  ;;  %v4426_v24 = vsel %vm1477_vm6, %v16553_v13, %v16536_v4 }
 0x38c   :  { %13933 = vmatmul.mubr.msk.bf16.gmra.mxu0 %vm2964_vm10, %v14301_v22  ;;  %3992 = vmatprep.mubr.bf16.mxu1 %v23231_v27 }
 0x38d   :  { %v16560_v34 = vpop.permute.xlu0 %4392  ;;  %4035 = vmatprep.mubr.bf16.mxu0 %v23231_v27 }
 0x38e   :  { %5361 = vrot.lane.b32.xlu1 %v15925_v19, %s14407_s28  ;;  %v16565_v57 = vpop.permute.xlu1 %4394  ;;  %v16584_v19 = vld [vmem:[%s23007_s4 + $0x60] sm:$0xff]  }
 0x38f   :  { %5363 = vrot.lane.b32.xlu0 %v15932_v62, %s14407_s28  ;;  %v4421_v18 = vsel %vm1477_vm6, %v16560_v34, %v16565_v57 }
 0x390   :  { %13936 = vmatmul.mubr.msk.bf16.gmra.mxu1 %vm2964_vm10, %v14301_v22 }
 0x391   :  { %v16570_v29 = vpop.permute.xlu0 %4408  ;;  %4164 = vmatprep.mubr.bf16.mxu1 %v23231_v27 }
 0x392   :  { %5359 = vrot.lane.b32.xlu1 %v15920_v51, %s14407_s28 }
 0x393   :  { %5389 = vrot.lane.b32.xlu0 %v16006_v23, %s14407_s28  ;;  %v16577_v48 = vpop.permute.xlu1 %4410  ;;  %v4427_v23 = vsel %vm1477_vm6, %v16536_v4, %v16548_v52 }
 0x394   :  { %13937 = vmatmul.mubr.msk.bf16.vlgmr.msra.gmra.mxu0 %vm2964_vm10, %v16494_v54  ;;  %v4428_v54 = vsel %vm1477_vm6, %v16548_v52, %v16570_v29 }
 0x395   :  { %4206 = vmatpush1.bf16.msra.mxu0 %v15994_v11  ;;  %v16587_v17 = vpop.permute.xlu0 %4390  ;;  %4045 = vmatprep.mubr.bf16.mxu0 %v23231_v27 }
 0x396   :  { %4207 = vmatprep.subr.bf16.mxu0 %v15975_v53  ;;  %5391 = vrot.lane.b32.xlu1 %v16054_v39, %s14407_s28  ;;  %v4420_v42 = vsel %vm1477_vm6, %v16587_v17, %v16560_v34 }
 0x397   :  { %5377 = vrot.lane.b32.xlu0 %v15975_v53, %s14407_s28  ;;  %v16595_v51 = vpop.permute.xlu1 %4380 }
 0x398   :  { %13943 = vmatmul.mubr.msk.bf16.vlgmr.msra.gmra.mxu1 %vm2964_vm10, %v16584_v19 }
 0x399   :  { %4208 = vmatpush1.bf16.msra.mxu0 %v15966_v47  ;;  %4269 = vmatpush1.bf16.msra.mxu1 %v16054_v39  ;;  %v16601_v11 = vpop.permute.xlu0 %4382  ;;  %v16617_v47 = vld [vmem:[%s23007_s4 + $0x68] sm:$0xff]  }
 0x39a   :  { %4209 = vmatprep.subr.bf16.mxu0 %v15942_v40  ;;  %4270 = vmatprep.subr.bf16.mxu1 %v16041_v14  ;;  %v4415_v12 = vsel %vm1477_vm6, %v16595_v51, %v16601_v11 }
 0x39b   :  { %5379 = vrot.lane.b32.xlu1 %v16039_v16, %s14407_s28  ;;  %5393 = vrot.lane.b32.xlu0 %v16058_v31, %s14407_s28  ;;  %v16609_v53 = vpop.permute.xlu1 %4396 }
 0x39c   :  { %13938 = vmatmul.mubr.msk.bf16.gmra.mxu0 %vm2964_vm10, %v16518_v41  ;;  %4174 = vmatprep.mubr.bf16.mxu1 %v23231_v27  ;;  %v4422_v0 = vsel %vm1477_vm6, %v16565_v57, %v16609_v53 }
 0x39d   :  { %4210 = vmatpush1.bf16.msra.mxu0 %v15932_v62  ;;  %4271 = vmatpush1.bf16.msra.mxu1 %v16039_v16  ;;  %v16624_v39 = vpop.permute.xlu0 %4398  ;;  %v4429_v62 = vsel %vm1477_vm6, %v16570_v29, %v16577_v48 }
 0x39e   :  { %4272 = vmatprep.subr.bf16.mxu1 %v16026_v46  ;;  %4469 = vmatprep.subr.bf16.mxu0 %v4427_v23  ;;  %v4423_v50 = vsel %vm1477_vm6, %v16609_v53, %v16624_v39 }
 0x39f   :  { %5365 = vrot.lane.b32.xlu1 %v15942_v40, %s14407_s28  ;;  %5367 = vrot.lane.b32.xlu0 %v16018_v60, %s14407_s28  ;;  %v4379_v31 = vpop.permute.xlu1 %4378 }
 0x3a0   :  { %13944 = vmatmul.mubr.msk.bf16.gmra.mxu1 %vm2964_vm10, %v16617_v47  ;;  %4055 = vmatprep.mubr.bf16.mxu0 %v23231_v27  ;;  %v4414_v38 = vsel %vm1477_vm6, %v4379_v31, %v16595_v51 }
 0x3a1   :  { %4273 = vmatpush1.bf16.msra.mxu1 %v16018_v60  ;;  %v4385_v16 = vpop.permute.xlu0 %4384  ;;  %4184 = vmatprep.mubr.bf16.mxu1 %v23231_v27  ;;  %v5669_v60 = vld [vmem:[%s23008_s5 + $0x20] sm:$0xff] }
 0x3a2   :  { %4532 = vmatprep.subr.bf16.mxu1 %v4429_v62  ;;  %v4416_v35 = vsel %vm1477_vm6, %v16601_v11, %v4385_v16  ;;  %v16770_v11 = vld [vmem:[%s23007_s4 + $0x80] sm:$0xff]  }
 0x3a3   :  { %5381 = vrot.lane.b32.xlu1 %v16041_v14, %s14407_s28  ;;  %5369 = vrot.lane.b32.xlu0 %v16026_v46, %s14407_s28  ;;  %v16643_v40 = vpop.permute.xlu1 %4386 }
 0x3a4   :  { %13939 = vmatmul.mubr.msk.bf16.gmra.mxu0 %vm2964_vm10, %v14301_v22  ;;  %v4417_v56 = vsel %vm1477_vm6, %v4385_v16, %v16643_v40  ;;  %v16738_v22 = vld [vmem:[%s23007_s4 + $0x78] sm:$0xff]  }
 0x3a5   :  { %v16655_v14 = vpop.permute.xlu0 %4731  ;;  %4227 = vmatprep.mubr.bf16.mxu0 %v23231_v27 }
 0x3a7   :  { %5693 = vperm.xlu1 %14262, %v5669_v60   ;;  %5698 = vperm.xlu0 %14261, %v5670_v36   ;;  %v16658_v46 = vpop.permute.xlu1 %4400 }
 0x3a8   :  { %13945 = vmatmul.mubr.msk.bf16.gmra.mxu1 %vm2964_vm10, %v14304_v3  ;;  %v4425_v57 = vsel %vm1477_vm6, %v16658_v46, %v23235_v26 }
 0x3a9   :  { %v16667_v15 = vpop.permute.xlu0 %4729  ;;  %4290 = vmatprep.mubr.bf16.mxu1 %v23231_v27 }
 0x3aa   :  { %v4753_v17 = vsel %vm1771_vm7, %v16667_v15, %v16655_v14  ;;  %v16810_v15 = vld [vmem:[%s23007_s4 + $0x88] sm:$0xff]  }
 0x3ab   :  { %5683 = vperm.xlu1 %14262, %v5667_v5   ;;  %5688 = vperm.xlu0 %14261, %v5668_v1   ;;  %v16670_v25 = vpop.permute.xlu1 %4733 }
 0x3ac   :  { %13946 = vmatmul.mubr.msk.bf16.vlgmr.msra.gmra.mxu0 %vm2964_vm10, %v16584_v19  ;;  %v4754_v45 = vsel %vm1771_vm7, %v16655_v14, %v16670_v25 }
 0x3ad   :  { %4470 = vmatpush1.bf16.msra.mxu0 %v4426_v24  ;;  %v4413_v55 = vpop.permute.xlu0 %4412  ;;  %4237 = vmatprep.mubr.bf16.mxu0 %v23231_v27  ;;  %v23236_v24 = vld [vmem:[#allocation10_spill] sm:$0xff] }
 0x3ae   :  { %4471 = vmatprep.subr.bf16.mxu0 %v4421_v18  ;;  %v4431_v41 = vsel %vm1477_vm6, %v4413_v55, %v23235_v26  ;;  %v4430_v13 = vsel %vm1477_vm6, %v16577_v48, %v4413_v55  ;;  %v4424_v48 = vsel %vm1477_vm6, %v16624_v39, %v16658_v46 }
 0x3af   :  { %5673 = vperm.xlu1 %14262, %v5665_v43   ;;  %5678 = vperm.xlu0 %14261, %v5666_v6   ;;  %v16687_v10 = vpop.permute.xlu1 %4388 }
 0x3b0   :  { %13949 = vmatmul.mubr.msk.bf16.vlgmr.msra.gmra.mxu1 %vm2964_vm10, %v16584_v19  ;;  %v4419_v53 = vsel %vm1477_vm6, %v16687_v10, %v23235_v26  ;;  %v4418_v16 = vsel %vm1477_vm6, %v16643_v40, %v16687_v10 }
 0x3b1   :  { %4472 = vmatpush1.bf16.msra.mxu0 %v4420_v42  ;;  %4533 = vmatpush1.bf16.msra.mxu1 %v4428_v54  ;;  %v4720_v21 = vpop.permute.xlu0 %4719 }
 0x3b2   :  { %4473 = vmatprep.subr.bf16.mxu0 %v4415_v12  ;;  %4534 = vmatprep.subr.bf16.mxu1 %v4423_v50 }
 0x3b3   :  { %v16703_v28 = vpop.permute.xlu1 %4721  ;;  %4300 = vmatprep.mubr.bf16.mxu1 %v23231_v27 }
 0x3b4   :  { %13947 = vmatmul.mubr.msk.bf16.gmra.mxu0 %vm2964_vm10, %v16617_v47 }
 0x3b5   :  { %4474 = vmatpush1.bf16.msra.mxu0 %v4414_v38  ;;  %4535 = vmatpush1.bf16.msra.mxu1 %v4422_v0  ;;  %v4718_v7 = vpop.permute.xlu0 %4717 }
 0x3b6   :  { %4536 = vmatprep.subr.bf16.mxu1 %v4417_v56  ;;  %4595 = vmatprep.subr.bf16.mxu0 %v4431_v41  ;;  %v4747_v62 = vsel %vm1771_vm7, %v4718_v7, %v4720_v21 }
 0x3b7   :  { %v4708_v8 = vpop.permute.xlu1 %4707  ;;  %4247 = vmatprep.mubr.bf16.mxu0 %v23231_v27 }
 0x3b8   :  { %13950 = vmatmul.mubr.msk.bf16.gmra.mxu1 %vm2964_vm10, %v16617_v47  ;;  %v4748_v47 = vsel %vm1771_vm7, %v4720_v21, %v16703_v28 }
 0x3b9   :  { %4537 = vmatpush1.bf16.msra.mxu1 %v4416_v35  ;;  %v16725_v20 = vpop.permute.xlu0 %4709  ;;  %4310 = vmatprep.mubr.bf16.mxu1 %v23231_v27 }
 0x3ba   :  { %4796 = vmatprep.subr.bf16.mxu1 %v4754_v45  ;;  %v4742_v36 = vsel %vm1771_vm7, %v4708_v8, %v16725_v20 }
 0x3bc   :  { %13948 = vmatmul.mubr.msk.bf16.gmra.mxu0 %vm2964_vm10, %v14304_v3  ;;  %v4706_v37 = vpop.permute.xlu1 %4705 }
 0x3bd   :  { %v16729_v4 = vpop.permute.xlu0 %4735  ;;  %4491 = vmatprep.mubr.bf16.mxu0 %v23231_v27  ;;  %v4741_v40 = vsel %vm1771_vm7, %v4706_v37, %v4708_v8  ;;  %v16855_v8 = vld [vmem:[%s23007_s4 + $0x90] sm:$0xff]  }
 0x3be   :  { %v4755_v41 = vsel %vm1771_vm7, %v16670_v25, %v16729_v4 }
 0x3c0   :  { %13951 = vmatmul.mubr.msk.bf16.gmra.mxu1 %vm2964_vm10, %v14304_v3  ;;  %v16733_v59 = vpop.permute.xlu1 %4737 }
 0x3c1   :  { %v16740_v52 = vpop.permute.xlu0 %4723  ;;  %4554 = vmatprep.mubr.bf16.mxu1 %v23231_v27  ;;  %v4756_v3 = vsel %vm1771_vm7, %v16729_v4, %v16733_v59 }
 0x3c4   :  { %13955 = vmatmul.mubr.msk.bf16.vlgmr.msra.gmra.mxu0 %vm2964_vm10, %v16738_v22  ;;  %v16747_v34 = vpop.permute.xlu1 %4725 }
 0x3c5   :  { %4596 = vmatpush1.bf16.msra.mxu0 %v4430_v13  ;;  %v16752_v29 = vpop.permute.xlu0 %4713  ;;  %4501 = vmatprep.mubr.bf16.mxu0 %v23231_v27  ;;  %v4750_v35 = vsel %vm1771_vm7, %v16740_v52, %v16747_v34  ;;  %v4749_v13 = vsel %vm1771_vm7, %v16703_v28, %v16740_v52 }
 0x3c6   :  { %4597 = vmatprep.subr.bf16.mxu0 %v4425_v57 }
 0x3c7   :  { %v16755_v19 = vpop.f32.mrf.mxu1 }
 0x3c8   :  { %13958 = vmatmul.mubr.msk.bf16.vlgmr.msra.gmra.mxu1 %vm2964_vm10, %v16738_v22  ;;  %v16765_v51 = vpop.permute.xlu1 %4711 }
 0x3c9   :  { %4598 = vmatpush1.bf16.msra.mxu0 %v4424_v48  ;;  %4797 = vmatpush1.bf16.msra.mxu1 %v4753_v17  ;;  %v4740_v23 = vpop.permute.xlu0 %4739  ;;  %v16777_v31 = vpop.f32.mrf.mxu1  ;;  %v4744_v48 = vsel %vm1771_vm7, %v16765_v51, %v16752_v29 }
 0x3ca   :  { %4599 = vmatprep.subr.bf16.mxu0 %v4419_v53  ;;  %4798 = vmatprep.subr.bf16.mxu1 %v4748_v47  ;;  %v4758_v43 = vsel %vm1771_vm7, %v4740_v23, %v23236_v24  ;;  %v4757_v57 = vsel %vm1771_vm7, %v16733_v59, %v4740_v23 }
 0x3cb   :  { %v16779_v39 = vpop.f32.mrf.mxu1  ;;  %4564 = vmatprep.mubr.bf16.mxu1 %v23231_v27 }
 0x3cc   :  { %13956 = vmatmul.mubr.msk.bf16.gmra.mxu0 %vm2964_vm10, %v16770_v11  ;;  %v16788_v60 = vpop.permute.xlu1 %4727 }
 0x3cd   :  { %4600 = vmatpush1.bf16.msra.mxu0 %v4418_v16  ;;  %4799 = vmatpush1.bf16.msra.mxu1 %v4747_v62  ;;  %v16795_v14 = vpop.permute.xlu0 %4715  ;;  %v16797_v46 = vpop.f32.mrf.mxu1  ;;  %v4752_v53 = vsel %vm1771_vm7, %v16788_v60, %v23236_v24  ;;  %v4743_v62 = vsel %vm1771_vm7, %v16725_v20, %v16765_v51  ;;  %v4751_v16 = vsel %vm1771_vm7, %v16747_v34, %v16788_v60 }
 0x3ce   :  { %4800 = vmatprep.subr.bf16.mxu1 %v4742_v36  ;;  %4859 = vmatprep.subr.bf16.mxu0 %v4756_v3  ;;  %v16908_v36 = vld [vmem:[%s23007_s4 + $0x98] sm:$0xff]  }
 0x3cf   :  { %v16799_v5 = vpop.f32.mrf.mxu1  ;;  %4511 = vmatprep.mubr.bf16.mxu0 %v23231_v27 }
 0x3d0   :  { %13959 = vmatmul.mubr.msk.bf16.gmra.mxu1 %vm2964_vm10, %v16770_v11  ;;  %v16805_v1 = vpop.permute.xlu1 %5058 }
 0x3d1   :  { %4801 = vmatpush1.bf16.msra.mxu1 %v4741_v40  ;;  %v16814_v6 = vpop.permute.xlu0 %5060  ;;  %v16816_v18 = vpop.f32.mrf.mxu1  ;;  %4574 = vmatprep.mubr.bf16.mxu1 %v23231_v27 }
 0x3d2   :  { %4922 = vmatprep.subr.bf16.mxu1 %v4758_v43  ;;  %v5081_v20 = vsel %vm2065_vm8, %v16805_v1, %v16814_v6 }
 0x3d3   :  { %v16819_v55 = vpop.f32.mrf.mxu1 }
 0x3d4   :  { %13957 = vmatmul.mubr.msk.bf16.gmra.mxu0 %vm2964_vm10, %v16810_v15  ;;  %v16823_v10 = vpop.permute.xlu1 %5056 }
 0x3d5   :  { %v16825_v42 = vpop.permute.xlu0 %5046  ;;  %v16827_v54 = vpop.f32.mrf.mxu1  ;;  %4617 = vmatprep.mubr.bf16.mxu0 %v23231_v27  ;;  %v5080_v9 = vsel %vm2065_vm8, %v16823_v10, %v16805_v1 }
 0x3d7   :  { %v16830_v12 = vpop.f32.mrf.mxu1 }
 0x3d8   :  { %13960 = vmatmul.mubr.msk.bf16.gmra.mxu1 %vm2964_vm10, %v16810_v15  ;;  %v16834_v50 = vpop.permute.xlu1 %5048 }
 0x3d9   :  { %v16836_v21 = vpop.permute.xlu0 %5062  ;;  %v16838_v38 = vpop.f32.mrf.mxu1  ;;  %4818 = vmatprep.mubr.bf16.mxu1 %v23231_v27  ;;  %v5075_v33 = vsel %vm2065_vm8, %v16825_v42, %v16834_v50 }
 0x3db   :  { %v16841_v0 = vpop.f32.mrf.mxu1 }
 0x3dc   :  { %v16843_v56 = vpop.f32.mrf.mxu0  ;;  %13961 = vmatmul.mubr.msk.bf16.vlgmr.msra.gmra.mxu0 %vm2964_vm10, %v16738_v22  ;;  %v16850_v7 = vpop.permute.xlu1 %5064 }
 0x3dd   :  { %4860 = vmatpush1.bf16.msra.mxu0 %v4755_v41  ;;  %v16860_v45 = vpop.permute.xlu0 %5044  ;;  %v16862_v37 = vpop.f32.mrf.mxu1  ;;  %4627 = vmatprep.mubr.bf16.mxu0 %v23231_v27  ;;  %v4745_v41 = vsel %vm1771_vm7, %v16752_v29, %v16795_v14  ;;  %v16953_v29 = vld [vmem:[%s23007_s4 + $0xa0] sm:$0xff]  }
 0x3de   :  { %4861 = vmatprep.subr.bf16.mxu0 %v4750_v35  ;;  %v16865_v25 = vpop.f32.mrf.mxu0 }
 0x3e0   :  { %v16867_v4 = vpop.f32.mrf.mxu0  ;;  %v16869_v22 = vpop.f32.mrf.mxu1  ;;  %13967 = vmatmul.mubr.msk.bf16.vlgmr.msra.gmra.mxu1 %vm2964_vm10, %v16855_v8 }
 0x3e1   :  { %4862 = vmatpush1.bf16.msra.mxu0 %v4749_v13  ;;  %4923 = vmatpush1.bf16.msra.mxu1 %v4757_v57  ;;  %v16878_v17 = vpop.permute.xlu1 %5034  ;;  %v16886_v47 = vpop.permute.xlu0 %5036  ;;  %v5083_v13 = vsel %vm2065_vm8, %v16836_v21, %v16850_v7 }
 0x3e2   :  { %4863 = vmatprep.subr.bf16.mxu0 %v4744_v48  ;;  %4924 = vmatprep.subr.bf16.mxu1 %v4752_v53  ;;  %v16888_v28 = vpop.f32.mrf.mxu0  ;;  %v16890_v52 = vpop.f32.mrf.mxu1 }
 0x3e3   :  { %4828 = vmatprep.mubr.bf16.mxu1 %v23231_v27 }
 0x3e4   :  { %v16893_v59 = vpop.f32.mrf.mxu0  ;;  %v16895_v23 = vpop.f32.mrf.mxu1  ;;  %13962 = vmatmul.mubr.msk.bf16.gmra.mxu0 %vm2964_vm10, %v16770_v11  ;;  %v4746_v11 = vsel %vm1771_vm7, %v16795_v14, %v23236_v24 }
 0x3e5   :  { %4864 = vmatpush1.bf16.msra.mxu0 %v4743_v62  ;;  %4925 = vmatpush1.bf16.msra.mxu1 %v4751_v16  ;;  %v16910_v3 = vpop.permute.xlu1 %5050  ;;  %v16918_v51 = vpop.permute.xlu0 %5052 }
 0x3e6   :  { %4926 = vmatprep.subr.bf16.mxu1 %v4746_v11  ;;  %5123 = vmatprep.subr.bf16.mxu0 %v5081_v20  ;;  %v16920_v34 = vpop.f32.mrf.mxu0  ;;  %v16922_v60 = vpop.f32.mrf.mxu1 }
 0x3e7   :  { %4637 = vmatprep.mubr.bf16.mxu0 %v23231_v27 }
 0x3e8   :  { %v16925_v40 = vpop.f32.mrf.mxu0  ;;  %v16927_v43 = vpop.f32.mrf.mxu1  ;;  %13968 = vmatmul.mubr.msk.bf16.gmra.mxu1 %vm2964_vm10, %v16908_v36 }
 0x3e9   :  { %4927 = vmatpush1.bf16.msra.mxu1 %v4745_v41  ;;  %v5033_v35 = vpop.permute.xlu1 %5032  ;;  %v16937_v57 = vpop.permute.xlu0 %5038  ;;  %4838 = vmatprep.mubr.bf16.mxu1 %v23231_v27 }
 0x3ea   :  { %5186 = vmatprep.subr.bf16.mxu1 %v5083_v13  ;;  %v16940_v48 = vpop.f32.mrf.mxu0  ;;  %v16942_v53 = vpop.f32.mrf.mxu1 }
 0x3ec   :  { %v16944_v62 = vpop.f32.mrf.mxu0  ;;  %v16946_v16 = vpop.f32.mrf.mxu1  ;;  %13963 = vmatmul.mubr.msk.bf16.gmra.mxu0 %vm2964_vm10, %v16810_v15 }
 0x3ed   :  { %v16955_v14 = vpop.permute.xlu1 %5040  ;;  %v16957_v11 = vpop.permute.xlu0 %5385  ;;  %4881 = vmatprep.mubr.bf16.mxu0 %v23231_v27 }
 0x3ee   :  { %v16960_v20 = vpop.f32.mrf.mxu0  ;;  %v16962_v41 = vpop.f32.mrf.mxu1 }
 0x3f0   :  { %v16964_v13 = vpop.f32.mrf.mxu0  ;;  %v16966_v24 = vpop.f32.mrf.mxu1  ;;  %13969 = vmatmul.mubr.msk.bf16.gmra.mxu1 %vm2964_vm10, %v16953_v29 }
 0x3f1   :  { %v16970_v15 = vpop.permute.xlu1 %5054  ;;  %v16972_v26 = vpop.permute.xlu0 %5383  ;;  %4944 = vmatprep.mubr.bf16.mxu1 %v23231_v27 }
 0x3f2   :  { %v16975_v32 = vpop.f32.mrf.mxu0  ;;  %v16977_v2 = vpop.f32.mrf.mxu1 }
 0x3f4   :  { %v16982_v61 = vpop.f32.mrf.mxu1  ;;  %v3293_v30 = vpop.f32.mrf.mxu0  ;;  %13970 = vmatmul.mubr.msk.bf16.vlgmr.msra.gmra.mxu0 %vm2964_vm10, %v16855_v8 }
 0x3f5   :  { %23237 = vst [vmem:[#allocation22_spill] sm:$0xff] %v16982_v61  ;;  %v16987_v63 = vadd.f32 %v3293_v30, %v16755_v19  ;;  %5124 = vmatpush1.bf16.msra.mxu0 %v5080_v9  ;;  %v16989_v58 = vpop.permute.xlu1 %5387  ;;  %v16994_v44 = vpop.permute.xlu0 %5066  ;;  %4891 = vmatprep.mubr.bf16.mxu0 %v23231_v27  ;;  %v5074_v30 = vsel %vm2065_vm8, %v16860_v45, %v16825_v42 }
 0x3f6   :  { %5125 = vmatprep.subr.bf16.mxu0 %v5075_v33  ;;  %v16997_v1 = vpop.f32.mrf.mxu1  ;;  %v3295_v10 = vpop.f32.mrf.mxu0  ;;  %v5082_v61 = vsel %vm2065_vm8, %v16814_v6, %v16836_v21  ;;  %v5069_v33 = vsel %vm2065_vm8, %v16878_v17, %v16886_v47 }
 0x3f7   :  { %v17000_v49 = vadd.f32 %v3295_v10, %v16777_v31 }
 0x3f8   :  { %v3297_v9 = vpop.f32.mrf.mxu0  ;;  %v3356_v19 = vpop.f32.mrf.mxu1  ;;  %13973 = vmatmul.mubr.msk.bf16.vlgmr.msra.gmra.mxu1 %vm2964_vm10, %v16855_v8  ;;  %v5077_v8 = vsel %vm2065_vm8, %v16910_v3, %v16918_v51 }
 0x3f9   :  { %v17014_v31 = vadd.f32 %v3297_v9, %v16779_v39  ;;  %v17017_v10 = vadd.f32 %v3356_v19, %v16843_v56  ;;  %5126 = vmatpush1.bf16.msra.mxu0 %v5074_v30  ;;  %5187 = vmatpush1.bf16.msra.mxu1 %v5082_v61  ;;  %v17019_v42 = vpop.permute.xlu1 %5042  ;;  %v17024_v45 = vpop.permute.xlu0 %5373  ;;  %v5068_v61 = vsel %vm2065_vm8, %v5033_v35, %v16878_v17  ;;  %v23238_v17 = vld [vmem:[#allocation11_spill] sm:$0xff] }
 0x3fa   :  { %5127 = vmatprep.subr.bf16.mxu0 %v5069_v33  ;;  %5188 = vmatprep.subr.bf16.mxu1 %v5077_v8  ;;  %v3299_v6 = vpop.f32.mrf.mxu0  ;;  %v3358_v21 = vpop.f32.mrf.mxu1  ;;  %v5076_v19 = vsel %vm2065_vm8, %v16834_v50, %v16910_v3  ;;  %v5085_v35 = vsel %vm2065_vm8, %v16994_v44, %v23238_v17 }
 0x3fb   :  { %v17027_v39 = vadd.f32 %v3299_v6, %v16797_v46  ;;  %v17030_v56 = vadd.f32 %v3358_v21, %v16865_v25  ;;  %4954 = vmatprep.mubr.bf16.mxu1 %v23231_v27  ;;  %v5071_v46 = vsel %vm2065_vm8, %v16937_v57, %v16955_v14 }
 0x3fc   :  { %v3303_v30 = vpop.f32.mrf.mxu0  ;;  %v3360_v9 = vpop.f32.mrf.mxu1  ;;  %13971 = vmatmul.mubr.msk.bf16.gmra.mxu0 %vm2964_vm10, %v16908_v36 }
 0x3fd   :  { %v17044_v25 = vadd.f32 %v3303_v30, %v16799_v5  ;;  %v17047_v33 = vadd.f32 %v3360_v9, %v16867_v4  ;;  %5128 = vmatpush1.bf16.msra.mxu0 %v5068_v61  ;;  %5189 = vmatpush1.bf16.msra.mxu1 %v5076_v19  ;;  %v17052_v8 = vpop.permute.xlu0 %5371  ;;  %v17054_v6 = vpop.permute.xlu1 %5375  ;;  %v5070_v30 = vsel %vm2065_vm8, %v16886_v47, %v16937_v57 }
 0x3fe   :  { %5190 = vmatprep.subr.bf16.mxu1 %v5071_v46  ;;  %5249 = vmatprep.subr.bf16.mxu0 %v5085_v35  ;;  %v3305_v50 = vpop.f32.mrf.mxu0  ;;  %v3362_v3 = vpop.f32.mrf.mxu1 }
 0x3ff   :  { %v17057_v5 = vadd.f32 %v3305_v50, %v16816_v18  ;;  %v17060_v4 = vadd.f32 %v3362_v3, %v16888_v28  ;;  %4901 = vmatprep.mubr.bf16.mxu0 %v23231_v27  ;;  %v5408_v28 = vsel %vm2359_vm9, %v16957_v11, %v16989_v58 }
 0x400   :  { %v3307_v21 = vpop.f32.mrf.mxu0  ;;  %v3366_v61 = vpop.f32.mrf.mxu1  ;;  %13974 = vmatmul.mubr.msk.bf16.gmra.mxu1 %vm2964_vm10, %v16908_v36 }
 0x401   :  { %v17069_v9 = vadd.f32 %v3307_v21, %v16819_v55  ;;  %v17072_v18 = vadd.f32 %v3366_v61, %v16893_v59  ;;  %5191 = vmatpush1.bf16.msra.mxu1 %v5070_v30  ;;  %4964 = vmatprep.mubr.bf16.mxu1 %v23231_v27  ;;  %v17078_v46 = vpop.permute.xlu0 %5363  ;;  %v17088_v35 = vpop.permute.xlu1 %5361 }
 0x402   :  { %5450 = vmatprep.subr.bf16.mxu1 %v5408_v28  ;;  %v3309_v19 = vpop.f32.mrf.mxu0  ;;  %v3368_v36 = vpop.f32.mrf.mxu1 }
 0x403   :  { %v17081_v47 = vadd.f32 %v3309_v19, %v16827_v54  ;;  %v17084_v55 = vadd.f32 %v3368_v36, %v16920_v34 }
 0x404   :  { %v3313_v59 = vpop.f32.mrf.mxu0  ;;  %v3370_v57 = vpop.f32.mrf.mxu1  ;;  %13972 = vmatmul.mubr.msk.bf16.gmra.mxu0 %vm2964_vm10, %v16953_v29 }
 0x405   :  { %v17091_v50 = vadd.f32 %v3313_v59, %v16830_v12  ;;  %v17094_v3 = vadd.f32 %v3370_v57, %v16925_v40  ;;  %5145 = vmatprep.mubr.bf16.mxu0 %v23231_v27  ;;  %v17108_v12 = vld [vmem:[%s23007_s4 + $0xa8] sm:$0xff]   ;;  %v17110_v40 = vpop.permute.xlu0 %5389  ;;  %v5360_v59 = vpop.permute.xlu1 %5359 }
 0x406   :  { %v3315_v54 = vpop.f32.mrf.mxu0  ;;  %v3372_v21 = vpop.f32.mrf.mxu1 }
 0x407   :  { %v17098_v34 = vadd.f32 %v3315_v54, %v16838_v38  ;;  %v17101_v61 = vadd.f32 %v3372_v21, %v16940_v48 }
 0x408   :  { %v3317_v30 = vpop.f32.mrf.mxu0  ;;  %v3376_v28 = vpop.f32.mrf.mxu1  ;;  %13975 = vmatmul.mubr.msk.bf16.gmra.mxu1 %vm2964_vm10, %v16953_v29 }
 0x409   :  { %v17113_v19 = vadd.f32 %v3317_v30, %v16841_v0  ;;  %v17116_v38 = vadd.f32 %v3376_v28, %v16944_v62  ;;  %5208 = vmatprep.mubr.bf16.mxu1 %v23231_v27  ;;  %v5084_v0 = vsel %vm2065_vm8, %v16850_v7, %v16994_v44 }
 0x40a   :  { %v3319_v48 = vpop.f32.mrf.mxu0  ;;  %v3378_v36 = vpop.f32.mrf.mxu1 }
 0x40b   :  { %v17120_v29 = vadd.f32 %v3319_v48, %v16862_v37  ;;  %v17123_v57 = vadd.f32 %v3378_v36, %v16960_v20  ;;  %v5079_v37 = vsel %vm2065_vm8, %v16970_v15, %v23238_v17  ;;  %v17140_v48 = vpop.permute.xlu0 %5377 }
 0x40c   :  { %v3380_v54 = vpop.f32.mrf.mxu1  ;;  %v3419_v21 = vpop.f32.mrf.mxu0  ;;  %13979 = vmatmul.mubr.msk.bf16.vlgmr.msra.gmra.mxu0 %vm2964_vm10, %v17108_v12 }
 0x40d   :  { %v17131_v62 = vadd.f32 %v3380_v54, %v16964_v13  ;;  %v17134_v30 = vadd.f32 %v3419_v21, %v16869_v22  ;;  %5250 = vmatpush1.bf16.msra.mxu0 %v5084_v0  ;;  %5155 = vmatprep.mubr.bf16.mxu0 %v23231_v27  ;;  %v5407_v22 = vsel %vm2359_vm9, %v16972_v26, %v16957_v11  ;;  %v17164_v21 = vpop.permute.xlu1 %5391 }
 0x40e   :  { %5251 = vmatprep.subr.bf16.mxu0 %v5079_v37  ;;  %v3382_v20 = vpop.f32.mrf.mxu1  ;;  %v3421_v28 = vpop.f32.mrf.mxu0  ;;  %v5078_v54 = vsel %vm2065_vm8, %v16918_v51, %v16970_v15  ;;  %v5402_v51 = vsel %vm2359_vm9, %v17024_v45, %v17054_v6 }
 0x40f   :  { %v17143_v44 = vadd.f32 %v3382_v20, %v16975_v32  ;;  %v17146_v7 = vadd.f32 %v3421_v28, %v16890_v52  ;;  %v5073_v32 = vsel %vm2065_vm8, %v17019_v42, %v23238_v17  ;;  %v17162_v52 = vld [vmem:[%s23007_s4 + $0xb0] sm:$0xff]  }
 0x410   :  { %v3423_v13 = vpop.f32.mrf.mxu0  ;;  %v3584_v36 = vpop.f32.mrf.mxu1  ;;  %13982 = vmatmul.mubr.msk.bf16.vlgmr.msra.gmra.mxu1 %vm2964_vm10, %v17108_v12 }
 0x411   :  { %v17167_v26 = vadd.f32 %v3423_v13, %v16895_v23  ;;  %v17170_v11 = vadd.f32 %v3584_v36, %v16987_v63  ;;  %5252 = vmatpush1.bf16.msra.mxu0 %v5078_v54  ;;  %5451 = vmatpush1.bf16.msra.mxu1 %v5407_v22  ;;  %v5401_v63 = vsel %vm2359_vm9, %v17052_v8, %v17024_v45 }
 0x412   :  { %5253 = vmatprep.subr.bf16.mxu0 %v5073_v32  ;;  %5452 = vmatprep.subr.bf16.mxu1 %v5402_v51  ;;  %v3425_v15 = vpop.f32.mrf.mxu0  ;;  %v3586_v0 = vpop.f32.mrf.mxu1  ;;  %v5072_v22 = vsel %vm2065_vm8, %v16955_v14, %v17019_v42  ;;  %v5410_v8 = vsel %vm2359_vm9, %v17110_v40, %v17164_v21  ;;  %v17218_v51 = vld [vmem:[%s23007_s4 + $0xb8] sm:$0xff]  }
 0x413   :  { %v17176_v37 = vadd.f32 %v3425_v15, %v16922_v60  ;;  %v17179_v20 = vadd.f32 %v3586_v0, %v17000_v49  ;;  %5218 = vmatprep.mubr.bf16.mxu1 %v23231_v27  ;;  %v5396_v49 = vsel %vm2359_vm9, %v17088_v35, %v17078_v46  ;;  %v17193_v60 = vpop.permute.xlu0 %5393 }
 0x414   :  { %v3429_v23 = vpop.f32.mrf.mxu0  ;;  %v3588_v28 = vpop.f32.mrf.mxu1  ;;  %13980 = vmatmul.mubr.msk.bf16.gmra.mxu0 %vm2964_vm10, %v17162_v52 }
 0x415   :  { %v17196_v13 = vadd.f32 %v3429_v23, %v16927_v43  ;;  %v17199_v45 = vadd.f32 %v3588_v28, %v17014_v31  ;;  %5254 = vmatpush1.bf16.msra.mxu0 %v5072_v22  ;;  %5453 = vmatpush1.bf16.msra.mxu1 %v5401_v63  ;;  %v5395_v43 = vsel %vm2359_vm9, %v5360_v59, %v17088_v35  ;;  %v23239_v35 = vld [vmem:[#allocation12_spill] sm:$0xff] }
 0x416   :  { %5454 = vmatprep.subr.bf16.mxu1 %v5396_v49  ;;  %5513 = vmatprep.subr.bf16.mxu0 %v5410_v8  ;;  %v3431_v14 = vpop.f32.mrf.mxu0  ;;  %v3590_v42 = vpop.f32.mrf.mxu1  ;;  %v5412_v59 = vsel %vm2359_vm9, %v17193_v60, %v23239_v35 }
 0x417   :  { %v17205_v36 = vadd.f32 %v3431_v14, %v16942_v53  ;;  %v17208_v54 = vadd.f32 %v3590_v42, %v17027_v39  ;;  %5165 = vmatprep.mubr.bf16.mxu0 %v23231_v27  ;;  %v17220_v53 = vpop.permute.xlu1 %5379 }
 0x418   :  { %v3433_v31 = vpop.f32.mrf.mxu0  ;;  %v3594_v32 = vpop.f32.mrf.mxu1  ;;  %13983 = vmatmul.mubr.msk.bf16.gmra.mxu1 %vm2964_vm10, %v17162_v52 }
 0x419   :  { %v17223_v39 = vadd.f32 %v3433_v31, %v16946_v16  ;;  %v17226_v15 = vadd.f32 %v3594_v32, %v17044_v25  ;;  %5455 = vmatpush1.bf16.msra.mxu1 %v5395_v43  ;;  %5228 = vmatprep.mubr.bf16.mxu1 %v23231_v27 }
 0x41a   :  { %5576 = vmatprep.subr.bf16.mxu1 %v5412_v59  ;;  %v3435_v0 = vpop.f32.mrf.mxu0  ;;  %v3596_v63 = vpop.f32.mrf.mxu1 }
 0x41b   :  { %v17233_v23 = vadd.f32 %v3435_v0, %v16962_v41  ;;  %v17236_v28 = vadd.f32 %v3596_v63, %v17057_v5  ;;  %v5366_v41 = vpop.permute.xlu1 %5365 }
 0x41c   :  { %v3439_v16 = vpop.f32.mrf.mxu0  ;;  %v3598_v22 = vpop.f32.mrf.mxu1  ;;  %13981 = vmatmul.mubr.msk.bf16.gmra.mxu0 %vm2964_vm10, %v17218_v51 }
 0x41d   :  { %v17241_v25 = vadd.f32 %v3439_v16, %v16966_v24  ;;  %v17244_v49 = vadd.f32 %v3598_v22, %v17069_v9  ;;  %5271 = vmatprep.mubr.bf16.mxu0 %v23231_v27  ;;  %v23240_v24 = vld [vmem:[#allocation22_spill] sm:$0xff]  ;;  %v17276_v22 = vld [vmem:[%s23007_s4 + $0xc0] sm:$0xff]  }
 0x41e   :  { %v3441_v8 = vpop.f32.mrf.mxu0  ;;  %v3600_v14 = vpop.f32.mrf.mxu1 }
 0x41f   :  { %v17248_v42 = vadd.f32 %v3441_v8, %v16977_v2  ;;  %v17251_v5 = vadd.f32 %v3600_v14, %v17081_v47  ;;  %v5368_v47 = vpop.permute.xlu0 %5367 }
 0x420   :  { %v3443_v43 = vpop.f32.mrf.mxu0  ;;  %v3604_v31 = vpop.f32.mrf.mxu1  ;;  %13984 = vmatmul.mubr.msk.bf16.gmra.mxu1 %vm2964_vm10, %v17218_v51 }
 0x421   :  { %v17256_v32 = vadd.f32 %v3443_v43, %v23240_v24  ;;  %v17259_v9 = vadd.f32 %v3604_v31, %v17091_v50  ;;  %5472 = vmatprep.mubr.bf16.mxu1 %v23231_v27  ;;  %v5409_v50 = vsel %vm2359_vm9, %v16989_v58, %v17110_v40  ;;  %v5403_v24 = vsel %vm2359_vm9, %v17054_v6, %v17140_v48 }
 0x422   :  { %v3445_v59 = vpop.f32.mrf.mxu0  ;;  %v3606_v0 = vpop.f32.mrf.mxu1 }
 0x423   :  { %v17263_v2 = vadd.f32 %v3445_v59, %v16997_v1  ;;  %v17266_v63 = vadd.f32 %v3606_v0, %v17098_v34  ;;  %v5404_v34 = vsel %vm2359_vm9, %v17140_v48, %v17220_v53 }
 0x424   :  { %v3647_v16 = vpop.f32.mrf.mxu0  ;;  %13985 = vmatmul.mubr.msk.bf16.vlgmr.msra.gmra.mxu0 %vm2964_vm10, %v17108_v12  ;;  %v3608_v1 = vpop.f32.mrf.mxu1 }
 0x425   :  { %v17279_v8 = vadd.f32 %v3647_v16, %v17017_v10  ;;  %5514 = vmatpush1.bf16.msra.mxu0 %v5409_v50  ;;  %5281 = vmatprep.mubr.bf16.mxu0 %v23231_v27  ;;  %v5382_v12 = vpop.permute.xlu1 %5381  ;;  %v17286_v14 = vadd.f32 %v3608_v1, %v17113_v19  ;;  %v5411_v19 = vsel %vm2359_vm9, %v17164_v21, %v17193_v60  ;;  %v5370_v16 = vpop.permute.xlu0 %5369 }
 0x426   :  { %5515 = vmatprep.subr.bf16.mxu0 %v5404_v34  ;;  %v3649_v58 = vpop.f32.mrf.mxu0  ;;  %v3610_v40 = vpop.f32.mrf.mxu1  ;;  %v5406_v0 = vsel %vm2359_vm9, %v5382_v12, %v23239_v35  ;;  %v5405_v1 = vsel %vm2359_vm9, %v17220_v53, %v5382_v12 }
 0x427   :  { %v17289_v43 = vadd.f32 %v3649_v58, %v17030_v56  ;;  %v17292_v10 = vadd.f32 %v3610_v40, %v17120_v29  ;;  %v5398_v29 = vsel %vm2359_vm9, %v5366_v41, %v5368_v47  ;;  %v5399_v40 = vsel %vm2359_vm9, %v5368_v47, %v5370_v16 }
 0x428   :  { %v3651_v31 = vpop.f32.mrf.mxu0  ;;  %13991 = vmatmul.mubr.msk.bf16.vlgmr.msra.gmra.mxu1 %vm2964_vm10, %v17276_v22  ;;  %v3710_v56 = vpop.f32.mrf.mxu1 }
 0x429   :  { %v17303_v59 = vadd.f32 %v3651_v31, %v17047_v33  ;;  %5516 = vmatpush1.bf16.msra.mxu0 %v5403_v24  ;;  %5577 = vmatpush1.bf16.msra.mxu1 %v5411_v19  ;;  %v17309_v50 = vadd.f32 %v3710_v56, %v17134_v30  ;;  %v5397_v30 = vsel %vm2359_vm9, %v17078_v46, %v5366_v41 }
 0x42a   :  { %5517 = vmatprep.subr.bf16.mxu0 %v5398_v29  ;;  %5578 = vmatprep.subr.bf16.mxu1 %v5406_v0  ;;  %v3653_v6 = vpop.f32.mrf.mxu0  ;;  %v3712_v33 = vpop.f32.mrf.mxu1 }
 0x42b   :  { %v17312_v48 = vadd.f32 %v3653_v6, %v17060_v4  ;;  %5482 = vmatprep.mubr.bf16.mxu1 %v23231_v27  ;;  %v17316_v21 = vadd.f32 %v3712_v33, %v17146_v7  ;;  %v17327_v4 = vld [vmem:[%s23007_s4 + $0xc8] sm:$0xff]  }
 0x42c   :  { %v3657_v60 = vpop.f32.mrf.mxu0  ;;  %13986 = vmatmul.mubr.msk.bf16.gmra.mxu0 %vm2964_vm10, %v17162_v52  ;;  %v3714_v7 = vpop.f32.mrf.mxu1  ;;  %v5400_v52 = vsel %vm2359_vm9, %v5370_v16, %v23239_v35 }
 0x42d   :  { %v17330_v34 = vadd.f32 %v3657_v60, %v17072_v18  ;;  %5518 = vmatpush1.bf16.msra.mxu0 %v5397_v30  ;;  %5579 = vmatpush1.bf16.msra.mxu1 %v5405_v1  ;;  %v17335_v58 = vadd.f32 %v3714_v7, %v17167_v26 }
 0x42e   :  { %5580 = vmatprep.subr.bf16.mxu1 %v5400_v52  ;;  %v3659_v46 = vpop.f32.mrf.mxu0  ;;  %5291 = vmatprep.mubr.bf16.mxu0 %v23231_v27  ;;  %v3716_v41 = vpop.f32.mrf.mxu1 }
 0x42f   :  { %v17339_v53 = vadd.f32 %v3659_v46, %v17084_v55  ;;  %v17342_v18 = vadd.f32 %v3716_v41, %v17176_v37 }
 0x430   :  { %v3661_v12 = vpop.f32.mrf.mxu0  ;;  %13992 = vmatmul.mubr.msk.bf16.gmra.mxu1 %vm2964_vm10, %v17327_v4  ;;  %v3720_v31 = vpop.f32.mrf.mxu1 }
 0x431   :  { %v17348_v26 = vadd.f32 %v3661_v12, %v17094_v3  ;;  %5581 = vmatpush1.bf16.msra.mxu1 %v5399_v40  ;;  %5492 = vmatprep.mubr.bf16.mxu1 %v23231_v27  ;;  %v17352_v55 = vadd.f32 %v3720_v31, %v17196_v13  ;;  %v17365_v3 = vld [vmem:[%s23007_s4 + $0xd0] sm:$0xff]  }
 0x432   :  { %v3663_v24 = vpop.f32.mrf.mxu0  ;;  %v3722_v19 = vpop.f32.mrf.mxu1 }
 0x433   :  { %v17355_v37 = vadd.f32 %v3663_v24, %v17101_v61  ;;  %v17358_v56 = vadd.f32 %v3722_v19, %v17205_v36 }
 0x434   :  { %v3667_v29 = vpop.f32.mrf.mxu0  ;;  %13987 = vmatmul.mubr.msk.bf16.gmra.mxu0 %vm2964_vm10, %v17218_v51  ;;  %v3724_v47 = vpop.f32.mrf.mxu1 }
 0x435   :  { %v17368_v13 = vadd.f32 %v3667_v29, %v17116_v38  ;;  %5535 = vmatprep.mubr.bf16.mxu0 %v23231_v27  ;;  %v17372_v61 = vadd.f32 %v3724_v47, %v17223_v39 }
 0x436   :  { %v3669_v36 = vpop.f32.mrf.mxu0  ;;  %v3726_v16 = vpop.f32.mrf.mxu1 }
 0x437   :  { %v17375_v0 = vadd.f32 %v3669_v36, %v17123_v57  ;;  %v17378_v51 = vadd.f32 %v3726_v16, %v17233_v23 }
 0x438   :  { %v3671_v6 = vpop.f32.mrf.mxu0  ;;  %13993 = vmatmul.mubr.msk.bf16.gmra.mxu1 %vm2964_vm10, %v17365_v3  ;;  %v3730_v33 = vpop.f32.mrf.mxu1 }
 0x439   :  { %v17383_v38 = vadd.f32 %v3671_v6, %v17131_v62  ;;  %5598 = vmatprep.mubr.bf16.mxu1 %v23231_v27  ;;  %v17387_v39 = vadd.f32 %v3730_v33, %v17241_v25 }
 0x43a   :  { %v17389_v60 = vpop.f32.mrf.mxu0  ;;  %v3732_v57 = vpop.f32.mrf.mxu1 }
 0x43b   :  { %v17392_v30 = vadd.f32 %v3732_v57, %v17248_v42 }
 0x43c   :  { %v3911_v23 = vpop.f32.mrf.mxu0  ;;  %13994 = vmatmul.mubr.msk.bf16.vlgmr.msra.gmra.mxu0 %vm2964_vm10, %v17276_v22  ;;  %v3734_v1 = vpop.f32.mrf.mxu1 }
 0x43d   :  { %v4066_v62 = vadd.f32 %v3911_v23, %v17170_v11  ;;  %5545 = vmatprep.mubr.bf16.mxu0 %v23231_v27  ;;  %v17399_v7 = vadd.f32 %v3734_v1, %v17256_v32 }
 0x43e   :  { %v3913_v25 = vpop.f32.mrf.mxu0  ;;  %v17401_v52 = vpop.f32.mrf.mxu1 }
 0x43f   :  { %v4067_v46 = vadd.f32 %v3913_v25, %v17179_v20 }
 0x440   :  { %v3915_v41 = vpop.f32.mrf.mxu0  ;;  %13997 = vmatmul.mubr.msk.bf16.vlgmr.msra.gmra.mxu1 %vm2964_vm10, %v17276_v22  ;;  %v3974_v12 = vpop.f32.mrf.mxu1 }
 0x441   :  { %v4072_v42 = vadd.f32 %v3915_v41, %v17199_v45  ;;  %5608 = vmatprep.mubr.bf16.mxu1 %v23231_v27  ;;  %v17409_v11 = vadd.f32 %v3974_v12, %v17279_v8 }
 0x442   :  { %v17411_v40 = vpop.f32.mrf.mxu0  ;;  %v3976_v32 = vpop.f32.mrf.mxu1 }
 0x443   :  { %v17414_v31 = vadd.f32 %v3976_v32, %v17289_v43 }
 0x444   :  { %v3921_v24 = vpop.f32.mrf.mxu0  ;;  %13995 = vmatmul.mubr.msk.bf16.gmra.mxu0 %vm2964_vm10, %v17327_v4  ;;  %v3978_v22 = vpop.f32.mrf.mxu1 }
 0x445   :  { %v4078_v20 = vadd.f32 %v3921_v24, %v17226_v15  ;;  %5555 = vmatprep.mubr.bf16.mxu0 %v23231_v27  ;;  %v17421_v45 = vadd.f32 %v3978_v22, %v17303_v59 }
 0x446   :  { %v3923_v8 = vpop.f32.mrf.mxu0  ;;  %v17424_v29 = vpop.f32.mrf.mxu1 }
 0x447   :  { %v4079_v19 = vadd.f32 %v3923_v8, %v17236_v28 }
 0x448   :  { %v3925_v47 = vpop.f32.mrf.mxu0  ;;  %13998 = vmatmul.mubr.msk.bf16.gmra.mxu1 %vm2964_vm10, %v17327_v4  ;;  %v3984_v36 = vpop.f32.mrf.mxu1 }
 0x449   :  { %v4084_v43 = vadd.f32 %v3925_v47, %v17244_v49  ;;  %5618 = vmatprep.mubr.bf16.mxu1 %v23231_v27  ;;  %v17431_v15 = vadd.f32 %v3984_v36, %v17330_v34 }
 0x44a   :  { %v17433_v16 = vpop.f32.mrf.mxu0  ;;  %v3986_v59 = vpop.f32.mrf.mxu1 }
 0x44b   :  { %v17436_v6 = vadd.f32 %v3986_v59, %v17339_v53 }
 0x44c   :  { %v3931_v28 = vpop.f32.mrf.mxu0  ;;  %13996 = vmatmul.mubr.msk.bf16.gmra.mxu0 %vm2964_vm10, %v17365_v3  ;;  %v3988_v33 = vpop.f32.mrf.mxu1 }
 0x44d   :  { %v4090_v4 = vadd.f32 %v3931_v28, %v17259_v9  ;;  %6021 = vmatprep.mubr.bf16.mxu0 %v23231_v27  ;;  %v17443_v49 = vadd.f32 %v3988_v33, %v17348_v26 }
 0x44e   :  { %v3933_v34 = vpop.f32.mrf.mxu0  ;;  %v17446_v23 = vpop.f32.mrf.mxu1 }
 0x44f   :  { %v4091_v57 = vadd.f32 %v3933_v34, %v17266_v63 }
 0x450   :  { %v3935_v1 = vpop.f32.mrf.mxu0  ;;  %13999 = vmatmul.mubr.msk.bf16.gmra.mxu1 %vm2964_vm10, %v17365_v3  ;;  %v3994_v25 = vpop.f32.mrf.mxu1 }
 0x451   :  { %v4096_v53 = vadd.f32 %v3935_v1, %v17286_v14  ;;  %6084 = vmatprep.mubr.bf16.mxu1 %v23231_v27  ;;  %v17453_v9 = vadd.f32 %v3994_v25, %v17368_v13 }
 0x452   :  { %v17455_v41 = vpop.f32.mrf.mxu0  ;;  %v3996_v26 = vpop.f32.mrf.mxu1 }
 0x453   :  { %v17458_v12 = vadd.f32 %v3996_v26, %v17375_v0 }
 0x454   :  { %v4037_v63 = vpop.f32.mrf.mxu0  ;;  %v3998_v32 = vpop.f32.mrf.mxu1 }
 0x455   :  { %v4070_v24 = vadd.f32 %v4037_v63, %v17309_v50  ;;  %v17462_v3 = vadd.f32 %v3998_v32, %v17383_v38 }
 0x456   :  { %v4039_v14 = vpop.f32.mrf.mxu0  ;;  %v17464_v22 = vpop.f32.mrf.mxu1 }
 0x457   :  { %v4071_v8 = vadd.f32 %v4039_v14, %v17316_v21 }
 0x458   :  { %v4041_v13 = vpop.f32.mrf.mxu0  ;;  %v4166_v36 = vpop.f32.mrf.mxu1 }
 0x459   :  { %v4076_v47 = vadd.f32 %v4041_v13, %v17335_v58  ;;  %v17468_v59 = vadd.f32 %v4166_v36, %v4066_v62 }
 0x45a   :  { %v17470_v0 = vpop.f32.mrf.mxu0  ;;  %v4168_v28 = vpop.f32.mrf.mxu1 }
 0x45b   :  { %v17472_v33 = vadd.f32 %v4168_v28, %v4067_v46 }
 0x45c   :  { %v4047_v50 = vpop.f32.mrf.mxu0  ;;  %v4170_v34 = vpop.f32.mrf.mxu1 }
 0x45d   :  { %v4082_v38 = vadd.f32 %v4047_v50, %v17352_v55  ;;  %v17475_v1 = vadd.f32 %v4170_v34, %v4072_v42 }
 0x45e   :  { %v4049_v25 = vpop.f32.mrf.mxu0  ;;  %v17478_v26 = vpop.f32.mrf.mxu1 }
 0x45f   :  { %v4083_v21 = vadd.f32 %v4049_v25, %v17358_v56 }
 0x460   :  { %v4051_v58 = vpop.f32.mrf.mxu0  ;;  %v4176_v63 = vpop.f32.mrf.mxu1 }
 0x461   :  { %v4088_v62 = vadd.f32 %v4051_v58, %v17372_v61  ;;  %v17481_v32 = vadd.f32 %v4176_v63, %v4078_v20 }
 0x462   :  { %v17483_v14 = vpop.f32.mrf.mxu0  ;;  %v4178_v46 = vpop.f32.mrf.mxu1 }
 0x463   :  { %v17485_v13 = vadd.f32 %v4178_v46, %v4079_v19 }
 0x464   :  { %v4057_v55 = vpop.f32.mrf.mxu0  ;;  %v4180_v36 = vpop.f32.mrf.mxu1 }
 0x465   :  { %v4094_v42 = vadd.f32 %v4057_v55, %v17387_v39  ;;  %v17488_v28 = vadd.f32 %v4180_v36, %v4084_v43 }
 0x466   :  { %v4059_v56 = vpop.f32.mrf.mxu0  ;;  %v17491_v34 = vpop.f32.mrf.mxu1 }
 0x467   :  { %v4095_v50 = vadd.f32 %v4059_v56, %v17392_v30 }
 0x468   :  { %v4061_v61 = vpop.f32.mrf.mxu0  ;;  %v4186_v25 = vpop.f32.mrf.mxu1 }
 0x469   :  { %v4100_v20 = vadd.f32 %v4061_v61, %v17399_v7  ;;  %v17494_v58 = vadd.f32 %v4186_v25, %v4090_v4 }
 0x46a   :  { %v17496_v63 = vpop.f32.mrf.mxu0  ;;  %v4188_v19 = vpop.f32.mrf.mxu1 }
 0x46b   :  { %v17498_v46 = vadd.f32 %v4188_v19, %v4091_v57 }
 0x46c   :  { %v4229_v39 = vpop.f32.mrf.mxu0  ;;  %v4190_v55 = vpop.f32.mrf.mxu1 }
 0x46d   :  { %v4323_v43 = vadd.f32 %v4229_v39, %v17409_v11  ;;  %v17501_v36 = vadd.f32 %v4190_v55, %v4096_v53 }
 0x46e   :  { %v4231_v30 = vpop.f32.mrf.mxu0  ;;  %v17503_v56 = vpop.f32.mrf.mxu1 }
 0x46f   :  { %23241 = vst [vmem:[#allocation23_spill] sm:$0xff] %v17503_v56  ;;  %v4324_v35 = vadd.f32 %v4231_v30, %v17414_v31 }
 0x470   :  { %v4233_v7 = vpop.f32.mrf.mxu0  ;;  %v4292_v61 = vpop.f32.mrf.mxu1 }
 0x471   :  { %v4329_v4 = vadd.f32 %v4233_v7, %v17421_v45  ;;  %v17507_v25 = vadd.f32 %v4292_v61, %v4070_v24 }
 0x472   :  { %v17509_v17 = vpop.f32.mrf.mxu0  ;;  %v4294_v57 = vpop.f32.mrf.mxu1 }
 0x473   :  { %23242 = vst [vmem:[#allocation24_spill] sm:$0xff] %v17509_v17  ;;  %v17511_v19 = vadd.f32 %v4294_v57, %v4071_v8 }
 0x474   :  { %v4239_v27 = vpop.f32.mrf.mxu0  ;;  %v4296_v53 = vpop.f32.mrf.mxu1 }
 0x475   :  { %v4335_v11 = vadd.f32 %v4239_v27, %v17431_v15  ;;  %v17514_v39 = vadd.f32 %v4296_v53, %v4076_v47 }
 0x476   :  { %v4241_v55 = vpop.f32.mrf.mxu0  ;;  %v17517_v30 = vpop.f32.mrf.mxu1 }
 0x477   :  { %v4336_v31 = vadd.f32 %v4241_v55, %v17436_v6  ;;  %23243 = vst [vmem:[#allocation25_spill] sm:$0xff] %v17517_v30 }
 0x478   :  { %v4243_v45 = vpop.f32.mrf.mxu0  ;;  %v4302_v7 = vpop.f32.mrf.mxu1 }
 0x479   :  { %v4341_v24 = vadd.f32 %v4243_v45, %v17443_v49  ;;  %v17520_v61 = vadd.f32 %v4302_v7, %v4082_v38 }
 0x47a   :  { %v17522_v17 = vpop.f32.mrf.mxu0  ;;  %v4304_v8 = vpop.f32.mrf.mxu1 }
 0x47b   :  { %23244 = vst [vmem:[#allocation26_spill] sm:$0xff] %v17522_v17  ;;  %v17524_v57 = vadd.f32 %v4304_v8, %v4083_v21 }
 0x47c   :  { %v4249_v27 = vpop.f32.mrf.mxu0  ;;  %v4306_v47 = vpop.f32.mrf.mxu1 }
 0x47d   :  { %v4347_v15 = vadd.f32 %v4249_v27, %v17453_v9  ;;  %v17527_v53 = vadd.f32 %v4306_v47, %v4088_v62 }
 0x47e   :  { %v4251_v6 = vpop.f32.mrf.mxu0  ;;  %v17530_v30 = vpop.f32.mrf.mxu1 }
 0x47f   :  { %v4348_v55 = vadd.f32 %v4251_v6, %v17458_v12  ;;  %23245 = vst [vmem:[#allocation44_spill] sm:$0xff] %v17530_v30 }
 0x480   :  { %v4253_v49 = vpop.f32.mrf.mxu0  ;;  %v4312_v45 = vpop.f32.mrf.mxu1 }
 0x481   :  { %v4353_v38 = vadd.f32 %v4253_v49, %v17462_v3  ;;  %v17533_v7 = vadd.f32 %v4312_v45, %v4094_v42 }
 0x482   :  { %v17535_v17 = vpop.f32.mrf.mxu0  ;;  %v4314_v21 = vpop.f32.mrf.mxu1 }
 0x483   :  { %23246 = vst [vmem:[#allocation45_spill] sm:$0xff] %v17535_v17  ;;  %v17537_v8 = vadd.f32 %v4314_v21, %v4095_v50 }
 0x484   :  { %v4493_v9 = vpop.f32.mrf.mxu0  ;;  %v4316_v27 = vpop.f32.mrf.mxu1 }
 0x485   :  { %v4648_v62 = vadd.f32 %v4493_v9, %v17468_v59  ;;  %v17540_v47 = vadd.f32 %v4316_v27, %v4100_v20 }
 0x486   :  { %v4495_v12 = vpop.f32.mrf.mxu0  ;;  %v17542_v6 = vpop.f32.mrf.mxu1 }
 0x487   :  { %23247 = vst [vmem:[#allocation27_spill] sm:$0xff] %v17542_v6  ;;  %v4649_v30 = vadd.f32 %v4495_v12, %v17472_v33 }
 0x488   :  { %v4497_v3 = vpop.f32.mrf.mxu0  ;;  %v4556_v49 = vpop.f32.mrf.mxu1 }
 0x489   :  { %v4654_v42 = vadd.f32 %v4497_v3, %v17475_v1  ;;  %v17546_v45 = vadd.f32 %v4556_v49, %v4323_v43 }
 0x48a   :  { %v17548_v17 = vpop.f32.mrf.mxu0  ;;  %v4558_v50 = vpop.f32.mrf.mxu1 }
 0x48b   :  { %23248 = vst [vmem:[#allocation46_spill] sm:$0xff] %v17548_v17  ;;  %v17550_v21 = vadd.f32 %v4558_v50, %v4324_v35 }
 0x48c   :  { %v4503_v56 = vpop.f32.mrf.mxu0  ;;  %v4560_v20 = vpop.f32.mrf.mxu1 }
 0x48d   :  { %v4660_v59 = vadd.f32 %v4503_v56, %v17481_v32  ;;  %v17553_v9 = vadd.f32 %v4560_v20, %v4329_v4 }
 0x48e   :  { %v4505_v27 = vpop.f32.mrf.mxu0  ;;  %v17556_v12 = vpop.f32.mrf.mxu1 }
 0x48f   :  { %v4661_v33 = vadd.f32 %v4505_v27, %v17485_v13  ;;  %23249 = vst [vmem:[#allocation28_spill] sm:$0xff] %v17556_v12 }
 0x490   :  { %v4507_v1 = vpop.f32.mrf.mxu0  ;;  %v4566_v3 = vpop.f32.mrf.mxu1 }
 0x491   :  { %v4666_v43 = vadd.f32 %v4507_v1, %v17488_v28  ;;  %v17559_v49 = vadd.f32 %v4566_v3, %v4335_v11 }
 0x492   :  { %v17561_v17 = vpop.f32.mrf.mxu0  ;;  %v4568_v35 = vpop.f32.mrf.mxu1 }
 0x493   :  { %23250 = vst [vmem:[#allocation47_spill] sm:$0xff] %v17561_v17  ;;  %v17563_v50 = vadd.f32 %v4568_v35, %v4336_v31 }
 0x494   :  { %v4513_v32 = vpop.f32.mrf.mxu0  ;;  %v4570_v4 = vpop.f32.mrf.mxu1 }
 0x495   :  { %v4672_v56 = vadd.f32 %v4513_v32, %v17494_v58  ;;  %v17566_v20 = vadd.f32 %v4570_v4, %v4341_v24 }
 0x496   :  { %v4515_v13 = vpop.f32.mrf.mxu0  ;;  %v17569_v12 = vpop.f32.mrf.mxu1 }
 0x497   :  { %v4673_v27 = vadd.f32 %v4515_v13, %v17498_v46  ;;  %23251 = vst [vmem:[#allocation35_spill] sm:$0xff] %v17569_v12 }
 0x498   :  { %v4517_v28 = vpop.f32.mrf.mxu0  ;;  %v4576_v1 = vpop.f32.mrf.mxu1 }
 0x499   :  { %v4678_v11 = vadd.f32 %v4517_v28, %v17501_v36  ;;  %v17572_v3 = vadd.f32 %v4576_v1, %v4347_v15 }
 0x49a   :  { %v17574_v17 = vpop.f32.mrf.mxu0  ;;  %v4578_v31 = vpop.f32.mrf.mxu1 }
 0x49b   :  { %23252 = vst [vmem:[#allocation48_spill] sm:$0xff] %v17574_v17  ;;  %v17576_v35 = vadd.f32 %v4578_v31, %v4348_v55 }
 0x49c   :  { %v4619_v58 = vpop.f32.mrf.mxu0  ;;  %v4580_v32 = vpop.f32.mrf.mxu1 }
 0x49d   :  { %v4652_v24 = vadd.f32 %v4619_v58, %v17507_v25  ;;  %v17579_v4 = vadd.f32 %v4580_v32, %v4353_v38 }
 0x49e   :  { %v4621_v46 = vpop.f32.mrf.mxu0  ;;  %v17581_v13 = vpop.f32.mrf.mxu1 }
 0x49f   :  { %v4653_v12 = vadd.f32 %v4621_v46, %v17511_v19 }
 0x4a0   :  { %v4623_v36 = vpop.f32.mrf.mxu0  ;;  %v4820_v28 = vpop.f32.mrf.mxu1 }
 0x4a1   :  { %v4658_v15 = vadd.f32 %v4623_v36, %v17514_v39  ;;  %v17585_v1 = vadd.f32 %v4820_v28, %v4648_v62 }
 0x4a2   :  { %v17587_v17 = vpop.f32.mrf.mxu0  ;;  %v4822_v55 = vpop.f32.mrf.mxu1 }
 0x4a3   :  { %23253 = vst [vmem:[#allocation50_spill] sm:$0xff] %v17587_v17  ;;  %v17589_v31 = vadd.f32 %v4822_v55, %v4649_v30 }
 0x4a4   :  { %v4629_v6 = vpop.f32.mrf.mxu0  ;;  %v4824_v38 = vpop.f32.mrf.mxu1 }
 0x4a5   :  { %v4664_v25 = vadd.f32 %v4629_v6, %v17520_v61  ;;  %v17592_v58 = vadd.f32 %v4824_v38, %v4654_v42 }
 0x4a6   :  { %v4631_v32 = vpop.f32.mrf.mxu0  ;;  %v17595_v46 = vpop.f32.mrf.mxu1 }
 0x4a7   :  { %23254 = vst [vmem:[#allocation36_spill] sm:$0xff] %v17592_v58  ;;  %v4665_v19 = vadd.f32 %v4631_v32, %v17524_v57 }
 0x4a8   :  { %v4633_v39 = vpop.f32.mrf.mxu0  ;;  %v4830_v36 = vpop.f32.mrf.mxu1 }
 0x4a9   :  { %v4670_v62 = vadd.f32 %v4633_v39, %v17527_v53  ;;  %v17598_v28 = vadd.f32 %v4830_v36, %v4660_v59 }
 0x4aa   :  { %v17600_v17 = vpop.f32.mrf.mxu0  ;;  %v4832_v30 = vpop.f32.mrf.mxu1 }
 0x4ab   :  { %23255 = vst [vmem:[#allocation51_spill] sm:$0xff] %v17598_v28  ;;  %v17602_v55 = vadd.f32 %v4832_v30, %v4661_v33 }
 0x4ac   :  { %v4639_v61 = vpop.f32.mrf.mxu0  ;;  %v4834_v42 = vpop.f32.mrf.mxu1 }
 0x4ad   :  { %v4676_v6 = vadd.f32 %v4639_v61, %v17533_v7  ;;  %v17605_v38 = vadd.f32 %v4834_v42, %v4666_v43 }
 0x4ae   :  { %v4641_v57 = vpop.f32.mrf.mxu0  ;;  %v17608_v58 = vpop.f32.mrf.mxu1 }
 0x4af   :  { %23256 = vst [vmem:[#allocation29_spill] sm:$0xff] %v17605_v38  ;;  %v4677_v32 = vadd.f32 %v4641_v57, %v17537_v8 }
 0x4b0   :  { %v4643_v53 = vpop.f32.mrf.mxu0  ;;  %v4840_v39 = vpop.f32.mrf.mxu1 }
 0x4b1   :  { %v4682_v59 = vadd.f32 %v4643_v53, %v17540_v47  ;;  %v17611_v36 = vadd.f32 %v4840_v39, %v4672_v56 }
 0x4b2   :  { %v17613_v28 = vpop.f32.mrf.mxu0  ;;  %v4842_v33 = vpop.f32.mrf.mxu1 }
 0x4b3   :  { %v17615_v30 = vadd.f32 %v4842_v33, %v4673_v27 }
 0x4b4   :  { %v4883_v7 = vpop.f32.mrf.mxu0  ;;  %v4844_v61 = vpop.f32.mrf.mxu1 }
 0x4b5   :  { %23257 = vst [vmem:[#allocation52_spill] sm:$0xff] %v17615_v30  ;;  %v4977_v43 = vadd.f32 %v4883_v7, %v17546_v45  ;;  %v17618_v42 = vadd.f32 %v4844_v61, %v4678_v11 }
 0x4b6   :  { %v4885_v8 = vpop.f32.mrf.mxu0  ;;  %v17620_v57 = vpop.f32.mrf.mxu1 }
 0x4b7   :  { %23258 = vst [vmem:[#allocation37_spill] sm:$0xff] %v17618_v42  ;;  %v17623_v38 = vadd.f32 %v4885_v8, %v17550_v21 }
 0x4b8   :  { %v4887_v47 = vpop.f32.mrf.mxu0  ;;  %v4946_v53 = vpop.f32.mrf.mxu1 }
 0x4b9   :  { %v4983_v56 = vadd.f32 %v4887_v47, %v17553_v9  ;;  %v17626_v39 = vadd.f32 %v4946_v53, %v4652_v24 }
 0x4ba   :  { %v17628_v27 = vpop.f32.mrf.mxu0  ;;  %v4948_v33 = vpop.f32.mrf.mxu1 }
 0x4bb   :  { %v17630_v30 = vadd.f32 %v4948_v33, %v4653_v12 }
 0x4bc   :  { %v4893_v45 = vpop.f32.mrf.mxu0  ;;  %v4950_v7 = vpop.f32.mrf.mxu1 }
 0x4bd   :  { %23259 = vst [vmem:[#allocation53_spill] sm:$0xff] %v17630_v30  ;;  %v4989_v11 = vadd.f32 %v4893_v45, %v17559_v49  ;;  %v17633_v61 = vadd.f32 %v4950_v7, %v4658_v15 }
 0x4be   :  { %v4895_v42 = vpop.f32.mrf.mxu0  ;;  %v17638_v8 = vpop.f32.mrf.mxu1 }
 0x4bf   :  { %23260 = vst [vmem:[#allocation30_spill] sm:$0xff] %v17633_v61  ;;  %v17636_v21 = vadd.f32 %v4895_v42, %v17563_v50 }
 0x4c0   :  { %v4897_v9 = vpop.f32.mrf.mxu0  ;;  %v4956_v47 = vpop.f32.mrf.mxu1 }
 0x4c1   :  { %v17641_v24 = vadd.f32 %v4897_v9, %v17566_v20  ;;  %v17643_v53 = vadd.f32 %v4956_v47, %v4664_v25 }
 0x4c2   :  { %v17645_v12 = vpop.f32.mrf.mxu0  ;;  %v4958_v33 = vpop.f32.mrf.mxu1 }
 0x4c3   :  { %23261 = vst [vmem:[#allocation54_spill] sm:$0xff] %v17643_v53  ;;  %v17647_v49 = vadd.f32 %v4958_v33, %v4665_v19 }
 0x4c4   :  { %v4903_v15 = vpop.f32.mrf.mxu0  ;;  %v4960_v50 = vpop.f32.mrf.mxu1 }
 0x4c5   :  { %23262 = vst [vmem:[#allocation55_spill] sm:$0xff] %v17647_v49  ;;  %v17650_v45 = vadd.f32 %v4903_v15, %v17572_v3  ;;  %v17652_v42 = vadd.f32 %v4960_v50, %v4670_v62 }
 0x4c6   :  { %v4905_v7 = vpop.f32.mrf.mxu0  ;;  %v17657_v20 = vpop.f32.mrf.mxu1 }
 0x4c7   :  { %23263 = vst [vmem:[#allocation31_spill] sm:$0xff] %v17650_v45  ;;  %23264 = vst [vmem:[#allocation13_spill] sm:$0xff] %v17652_v42  ;;  %v17655_v61 = vadd.f32 %v4905_v7, %v17576_v35  ;;  %v17718_v45 = vpop.permute.xlu0 %5698 }
 0x4c8   :  { %v4907_v25 = vpop.f32.mrf.mxu0  ;;  %v4966_v47 = vpop.f32.mrf.mxu1  ;;  %23277 = vst [vmem:[#allocation56_spill] sm:$0xff] %v17718_v45 }
 0x4c9   :  { %23265 = vst [vmem:[#allocation38_spill] sm:$0xff] %v17655_v61  ;;  %v17660_v9 = vadd.f32 %v4907_v25, %v17579_v4  ;;  %v17662_v19 = vadd.f32 %v4966_v47, %v4676_v6 }
 0x4ca   :  { %v17664_v33 = vpop.f32.mrf.mxu0  ;;  %v4968_v3 = vpop.f32.mrf.mxu1 }
 0x4cb   :  { %23266 = vst [vmem:[#allocation57_spill] sm:$0xff] %v17660_v9  ;;  %23267 = vst [vmem:[#allocation15_spill] sm:$0xff] %v17662_v19  ;;  %v17666_v15 = vadd.f32 %v4968_v3, %v4677_v32 }
 0x4cc   :  { %v5147_v62 = vpop.f32.mrf.mxu0  ;;  %v4970_v50 = vpop.f32.mrf.mxu1 }
 0x4cd   :  { %23268 = vst [vmem:[#allocation39_spill] sm:$0xff] %v17666_v15  ;;  %v17668_v42 = vadd.f32 %v4970_v50, %v4682_v59 }
 0x4ce   :  { %v17670_v35 = vpop.f32.mrf.mxu0  ;;  %v17672_v7 = vpop.f32.mrf.mxu1 }
 0x4cf   :  { %23269 = vst [vmem:[#allocation16_spill] sm:$0xff] %v17668_v42 }
 0x4d0   :  { %v17674_v49 = vpop.f32.mrf.mxu0  ;;  %v5210_v4 = vpop.f32.mrf.mxu1 }
 0x4d1   :  { %v17676_v25 = vadd.f32 %v5210_v4, %v4977_v43 }
 0x4d2   :  { %v17678_v6 = vpop.f32.mrf.mxu0  ;;  %v17680_v47 = vpop.f32.mrf.mxu1 }
 0x4d3   :  { %23270 = vst [vmem:[#allocation32_spill] sm:$0xff] %v17676_v25 }
 0x4d4   :  { %v17682_v19 = vpop.f32.mrf.mxu0  ;;  %v5214_v32 = vpop.f32.mrf.mxu1 }
 0x4d5   :  { %v17684_v3 = vadd.f32 %v5214_v32, %v4983_v56  ;;  %v17704_v56 = vpop.permute.xlu1 %5693 }
 0x4d6   :  { %v17686_v59 = vpop.f32.mrf.mxu0  ;;  %v17688_v50 = vpop.f32.mrf.mxu1  ;;  %23274 = vst [vmem:[#allocation41_spill] sm:$0xff] %v17704_v56  ;;  %v4075_v56 = vadd.f32 %v17424_v29, %v17312_v48 }
 0x4d7   :  { %23271 = vst [vmem:[#allocation40_spill] sm:$0xff] %v17684_v3 }
 0x4d8   :  { %v17690_v42 = vpop.f32.mrf.mxu0  ;;  %v5220_v15 = vpop.f32.mrf.mxu1 }
 0x4d9   :  { %v17692_v53 = vadd.f32 %v5220_v15, %v4989_v11  ;;  %v3772_v11 = vadd.f32 %v17389_v60, %v17143_v44  ;;  %v4073_v15 = vadd.f32 %v17411_v40, %v17208_v54  ;;  %v4097_v54 = vadd.f32 %v17455_v41, %v17292_v10  ;;  %v17736_v48 = vpop.permute.xlu1 %5683 }
 0x4da   :  { %v17694_v43 = vpop.f32.mrf.mxu0  ;;  %v17696_v4 = vpop.f32.mrf.mxu1  ;;  %v4077_v40 = vadd.f32 %v17470_v0, %v17342_v18  ;;  %23278 = vst [vmem:[#allocation19_spill] sm:$0xff] %v17736_v48  ;;  %v23281_v18 = vld [vmem:[#allocation24_spill] sm:$0xff]  ;;  %v23282_v0 = vld [vmem:[#allocation25_spill] sm:$0xff]  ;;  %v23287_v48 = vld [vmem:[#allocation46_spill] sm:$0xff] }
 0x4db   :  { %23272 = vst [vmem:[#allocation33_spill] sm:$0xff] %v17692_v53  ;;  %v4099_v60 = vadd.f32 %v17464_v22, %v3772_v11  ;;  %v4330_v22 = vadd.f32 %v23281_v18, %v4075_v56  ;;  %v23283_v11 = vld [vmem:[#allocation26_spill] sm:$0xff]  ;;  %v23290_v18 = vld [vmem:[#allocation35_spill] sm:$0xff] }
 0x4dc   :  { %v17698_v25 = vpop.f32.mrf.mxu0  ;;  %v17700_v30 = vpop.f32.mrf.mxu1 }
 0x4de   :  { %v17702_v9 = vpop.f32.mrf.mxu0  ;;  %v17706_v32 = vpop.f32.mrf.mxu1 }
 0x4df   :  { %23273 = vst [vmem:[#allocation34_spill] sm:$0xff] %v17702_v9  ;;  %v3774_v9 = vadd.f32 %v17401_v52, %v17263_v2  ;;  %v4328_v2 = vadd.f32 %v17478_v26, %v4073_v15  ;;  %v4332_v26 = vadd.f32 %v23282_v0, %v4077_v40 }
 0x4e0   :  { %v17708_v3 = vpop.f32.mrf.mxu0  ;;  %v17710_v61 = vpop.f32.mrf.mxu1 }
 0x4e1   :  { %23275 = vst [vmem:[#allocation42_spill] sm:$0xff] %v17708_v3  ;;  %23276 = vst [vmem:[#allocation43_spill] sm:$0xff] %v17710_v61  ;;  %v4085_v3 = vadd.f32 %v17433_v16, %v17251_v5  ;;  %v4087_v61 = vadd.f32 %v17446_v23, %v17355_v37  ;;  %v4089_v5 = vadd.f32 %v17483_v14, %v17378_v51  ;;  %v23280_v23 = vld [vmem:[#allocation23_spill] sm:$0xff]  ;;  %v23284_v51 = vld [vmem:[#allocation44_spill] sm:$0xff] }
 0x4e2   :  { %v17716_v53 = vpop.f32.mrf.mxu0  ;;  %v17728_v44 = vpop.f32.mrf.mxu1  ;;  %v4101_v29 = vadd.f32 %v17496_v63, %v3774_v9  ;;  %v4352_v41 = vadd.f32 %v23280_v23, %v4097_v54  ;;  %v23286_v63 = vld [vmem:[#allocation27_spill] sm:$0xff] }
 0x4e3   :  { %v4340_v37 = vadd.f32 %v17491_v34, %v4085_v3  ;;  %v4342_v15 = vadd.f32 %v23283_v11, %v4087_v61  ;;  %v4344_v14 = vadd.f32 %v23284_v51, %v4089_v5  ;;  %v23285_v34 = vld [vmem:[#allocation45_spill] sm:$0xff]  ;;  %v23289_v23 = vld [vmem:[#allocation47_spill] sm:$0xff]  ;;  %v5302_v61 = vadd.f32 %v5147_v62, %v17585_v1  ;;  %v17765_v11 = vpop.permute.xlu0 %5688  ;;  %v23291_v5 = vld [vmem:[#allocation48_spill] sm:$0xff] }
 0x4e4   :  { %v5273_v52 = vpop.f32.mrf.mxu0  ;;  %v17742_v16 = vpop.f32.mrf.mxu1  ;;  %v4354_v3 = vadd.f32 %v23285_v34, %v4099_v60  ;;  %v4356_v9 = vadd.f32 %v23286_v63, %v4101_v29  ;;  %v4679_v60 = vadd.f32 %v23291_v5, %v4352_v41  ;;  %v23292_v51 = vld [vmem:[#allocation50_spill] sm:$0xff]  ;;  %v5303_v1 = vadd.f32 %v17670_v35, %v17589_v31 }
 0x4e5   :  { %23279 = vst [vmem:[#allocation20_spill] sm:$0xff] %v17742_v16  ;;  %v17745_v10 = vadd.f32 %v5273_v52, %v17626_v39  ;;  %v4655_v16 = vadd.f32 %v23287_v48, %v4328_v2  ;;  %v23288_v52 = vld [vmem:[#allocation28_spill] sm:$0xff]  ;;  %v4667_v56 = vadd.f32 %v23289_v23, %v4340_v37  ;;  %v4669_v40 = vadd.f32 %v23290_v18, %v4342_v15  ;;  %v17777_v63 = vpop.permute.xlu1 %5673  ;;  %v23295_v18 = vld [vmem:[#allocation29_spill] sm:$0xff] }
 0x4e6   :  { %v17751_v45 = vpop.f32.mrf.mxu0  ;;  %v17757_v39 = vpop.f32.mrf.mxu1  ;;  %v4657_v54 = vadd.f32 %v23288_v52, %v4330_v22  ;;  %v4681_v29 = vadd.f32 %v17581_v13, %v4354_v3  ;;  %v4659_v2 = vadd.f32 %v23292_v51, %v4332_v26  ;;  %v4671_v22 = vadd.f32 %v17600_v17, %v4344_v14  ;;  %v23296_v51 = vld [vmem:[#allocation52_spill] sm:$0xff] }
 0x4e7   :  { %v4982_v48 = vadd.f32 %v17595_v46, %v4655_v16  ;;  %v4994_v37 = vadd.f32 %v17608_v58, %v4667_v56  ;;  %v4683_v41 = vadd.f32 %v17613_v28, %v4356_v9  ;;  %v5006_v13 = vadd.f32 %v17620_v57, %v4679_v60  ;;  %v23293_v16 = vld [vmem:[#allocation36_spill] sm:$0xff]  ;;  %v17804_v56 = vpop.permute.xlu0 %5678 }
 0x4e8   :  { %v17763_v0 = vpop.f32.mrf.mxu0  ;;  %v5474_v34 = vpop.f32.mrf.mxu1  ;;  %v4984_v26 = vadd.f32 %v17628_v27, %v4657_v54  ;;  %v17783_v46 = vadd.f32 %v17638_v8, %v4659_v2  ;;  %v4996_v58 = vadd.f32 %v17645_v12, %v4669_v40  ;;  %v5308_v31 = vadd.f32 %v17674_v49, %v23293_v16 }
 0x4e9   :  { %v5629_v62 = vadd.f32 %v5474_v34, %v5302_v61  ;;  %v17792_v28 = vadd.f32 %v17657_v20, %v4671_v22  ;;  %v5008_v57 = vadd.f32 %v17664_v33, %v4681_v29  ;;  %v17796_v27 = vadd.f32 %v17672_v7, %v4683_v41  ;;  %v23294_v20 = vld [vmem:[#allocation51_spill] sm:$0xff] }
 0x4ea   :  { %v17775_v15 = vpop.f32.mrf.mxu0  ;;  %v5476_v17 = vpop.f32.mrf.mxu1  ;;  %v5309_v8 = vadd.f32 %v17678_v6, %v4982_v48  ;;  %v17801_v12 = vadd.f32 %v17680_v47, %v17623_v38  ;;  %v5314_v33 = vadd.f32 %v17682_v19, %v23294_v20  ;;  %v5315_v7 = vadd.f32 %v17686_v59, %v17602_v55 }
 0x4eb   :  { %v5701_v35 = vadd.f32 %v17777_v63, %v5629_v62  ;;  %v5630_v14 = vadd.f32 %v5476_v17, %v5303_v1  ;;  %v17811_v6 = vadd.f32 %v17688_v50, %v4984_v26  ;;  %v5320_v38 = vadd.f32 %v17690_v42, %v23295_v18 }
 0x4ec   :  { %v17789_v3 = vpop.f32.mrf.mxu0  ;;  %v5478_v9 = vpop.f32.mrf.mxu1  ;;  %v5321_v40 = vadd.f32 %v17694_v43, %v4994_v37  ;;  %v17819_v19 = vadd.f32 %v17696_v4, %v17636_v21  ;;  %v5326_v55 = vadd.f32 %v17698_v25, %v17611_v36  ;;  %v17825_v59 = vadd.f32 %v17700_v30, %v17641_v24  ;;  %v23297_v43 = vld [vmem:[#allocation34_spill] sm:$0xff]  ;;  %v23298_v4 = vld [vmem:[#allocation37_spill] sm:$0xff]  ;;  %v23300_v36 = vld [vmem:[#allocation31_spill] sm:$0xff] }
 0x4ed   :  { %v5737_v49 = vmul.f32 0.01, %v5701_v35  ;;  %v5702_v52 = vadd.f32 %v17777_v63, %v5630_v14  ;;  %v5635_v54 = vadd.f32 %v5478_v9, %v5308_v31  ;;  %v5327_v2 = vadd.f32 %v23297_v43, %v23296_v51  ;;  %v23299_v37 = vld [vmem:[#allocation42_spill] sm:$0xff]  ;;  %v23301_v25 = vld [vmem:[#allocation43_spill] sm:$0xff]  ;;  %v23303_v14 = vld [vmem:[#allocation57_spill] sm:$0xff] }
 0x4ee   :  { %v5285_v23 = vpop.f32.mrf.mxu0  ;;  %v5480_v47 = vpop.f32.mrf.mxu1  ;;  %v17830_v48 = vadd.f32 %v17706_v32, %v4996_v58  ;;  %v5332_v1 = vadd.f32 %v23299_v37, %v23298_v4  ;;  %v17837_v62 = vadd.f32 %v23301_v25, %v23300_v36  ;;  %v17840_v26 = vadd.f32 %v17716_v53, %v5006_v13  ;;  %v23302_v31 = vld [vmem:[#allocation38_spill] sm:$0xff] }
 0x4ef   :  { %v5738_v61 = vmul.f32 0.01, %v5702_v52  ;;  %v5707_v5 = vadd.f32 %v17804_v56, %v5635_v54  ;;  %v5636_v60 = vadd.f32 %v5480_v47, %v5309_v8  ;;  %v5773_v42 = vmax.f32 %v5701_v35, %v5737_v49  ;;  %v23304_v8 = vld [vmem:[#allocation20_spill] sm:$0xff]  ;;  %v23305_v49 = vld [vmem:[#allocation14_spill] sm:$0xff] }
 0x4f0   :  { %v5287_v29 = vpop.f32.mrf.mxu0  ;;  %v5484_v50 = vpop.f32.mrf.mxu1  ;;  %v17844_v35 = vadd.f32 %v17728_v44, %v23302_v31  ;;  %v17848_v9 = vadd.f32 %v23304_v8, %v23303_v14  ;;  %v23307_v44 = vld [vmem:[#allocation53_spill] sm:$0xff]  ;;  %v23309_v37 = vld [vmem:[#allocation30_spill] sm:$0xff]  ;;  %v23311_v31 = vld [vmem:[#allocation55_spill] sm:$0xff] }
 0x4f1   :  { %v5743_v34 = vmul.f32 0.01, %v5707_v5  ;;  %v5708_v22 = vadd.f32 %v17804_v56, %v5636_v60  ;;  %v5774_v30 = vmax.f32 %v5702_v52, %v5738_v61  ;;  %v5641_v24 = vadd.f32 %v5484_v50, %v5314_v33  ;;  %v23306_v52 = vld [vmem:[#allocation19_spill] sm:$0xff]  ;;  %v23308_v60 = vld [vmem:[#allocation58_spill] sm:$0xff]  ;;  %v23312_v14 = vld [vmem:[#allocation13_spill] sm:$0xff] }
 0x4f2   :  { %v5289_v21 = vpop.f32.mrf.mxu0  ;;  %v5486_v41 = vpop.f32.mrf.mxu1  ;;  %v5809_v54 = vmul.f32 %v5773_v42, %v23305_v49  ;;  %v17855_v61 = vadd.f32 %v17757_v39, %v5008_v57  ;;  %v17868_v39 = vadd.f32 %v17763_v0, %v23309_v37  ;;  %v17883_v0 = vadd.f32 %v5285_v23, %v23311_v31 }
 0x4f3   :  { %v5779_v17 = vmax.f32 %v5707_v5, %v5743_v34  ;;  %v5744_v32 = vmul.f32 0.01, %v5708_v22  ;;  %v5642_v58 = vadd.f32 %v5486_v41, %v5315_v7  ;;  %v5713_v20 = vadd.f32 %v23306_v52, %v5641_v24 }
 0x4f4   :  { %v5293_v16 = vpop.f32.mrf.mxu0  ;;  %v5488_v33 = vpop.f32.mrf.mxu1  ;;  %v17859_v5 = vadd.f32 %v17751_v45, %v23307_v44  ;;  %v5810_v50 = vmul.f32 %v5774_v30, %v23308_v60  ;;  %v17872_v45 = vadd.f32 %v17775_v15, %v17783_v46  ;;  %v23310_v30 = vld [vmem:[#allocation54_spill] sm:$0xff]  ;;  %v17886_v8 = vadd.f32 %v5287_v29, %v23312_v14 }
 0x4f5   :  { %v5815_v53 = vmul.f32 %v5779_v17, %v23305_v49  ;;  %v5780_v13 = vmax.f32 %v5708_v22, %v5744_v32  ;;  %v5714_v18 = vadd.f32 %v23306_v52, %v5642_v58  ;;  %v5647_v7 = vadd.f32 %v5488_v33, %v5320_v38 }
 0x4f6   :  { %v5295_v47 = vpop.f32.mrf.mxu0  ;;  %v5749_v42 = vmul.f32 0.01, %v5713_v20  ;;  %v5490_v51 = vpop.f32.mrf.mxu1  ;;  %v17876_v24 = vadd.f32 %v17789_v3, %v23310_v30  ;;  %v23316_v30 = vld [vmem:[#allocation56_spill] sm:$0xff] }
 0x4f7   :  { %v17862_v43 = vpack.c.bf16 %v5815_v53, %v5809_v54  ;;  %v5816_v34 = vmul.f32 %v5780_v13, %v23308_v60  ;;  %v5750_v22 = vmul.f32 0.01, %v5714_v18  ;;  %v5719_v4 = vadd.f32 %v17765_v11, %v5647_v7  ;;  %v23314_v7 = vld [vmem:[#allocation15_spill] sm:$0xff] }
 0x4f8   :  { %v5297_v38 = vpop.f32.mrf.mxu0  ;;  %v5785_v57 = vmax.f32 %v5713_v20, %v5749_v42  ;;  %v5648_v36 = vadd.f32 %v5490_v51, %v5321_v40  ;;  %v5494_v25 = vpop.f32.mrf.mxu1  ;;  %v17890_v54 = vadd.f32 %v5289_v21, %v17792_v28  ;;  %v23313_v20 = vld [vmem:[#allocation41_spill] sm:$0xff]  ;;  %v17895_v23 = vadd.f32 %v5293_v16, %v23314_v7 }
 0x4f9   :  { %v17878_v41 = vpack.c.bf16 %v5816_v34, %v5810_v50  ;;  %v5755_v17 = vmul.f32 0.01, %v5719_v4  ;;  %v5653_v32 = vadd.f32 %v5494_v25, %v5326_v55  ;;  %v5786_v15 = vmax.f32 %v5714_v18, %v5750_v22  ;;  %v23315_v50 = vld [vmem:[#allocation32_spill] sm:$0xff] }
 0x4fa   :  { %v17880_v58 = vpop.f32.mrf.mxu0  ;;  %v5720_v46 = vadd.f32 %v17765_v11, %v5648_v36  ;;  %v5496_v40 = vpop.f32.mrf.mxu1  ;;  %v5821_v13 = vmul.f32 %v5785_v57, %v23305_v49 }
 0x4fb   :  { %v5791_v3 = vmax.f32 %v5719_v4, %v5755_v17  ;;  %v5725_v33 = vadd.f32 %v23313_v20, %v5653_v32  ;;  %v5654_v53 = vadd.f32 %v5496_v40, %v5327_v2  ;;  %v5822_v22 = vmul.f32 %v5786_v15, %v23308_v60  ;;  %v23317_v40 = vld [vmem:[#allocation39_spill] sm:$0xff] }
 0x4fc   :  { %v5537_v55 = vpop.f32.mrf.mxu0  ;;  %v5756_v44 = vmul.f32 0.01, %v5720_v46  ;;  %v5498_v29 = vpop.f32.mrf.mxu1 }
 0x4fd   :  { %v5631_v18 = vadd.f32 %v5537_v55, %v23315_v50  ;;  %v5827_v42 = vmul.f32 %v5791_v3, %v23305_v49  ;;  %v5761_v51 = vmul.f32 0.01, %v5725_v33  ;;  %v5726_v28 = vadd.f32 %v23313_v20, %v5654_v53  ;;  %v23318_v55 = vld [vmem:[#allocation40_spill] sm:$0xff] }
 0x4fe   :  { %v5659_v21 = vadd.f32 %v5498_v29, %v5332_v1  ;;  %v5539_v34 = vpop.f32.mrf.mxu0  ;;  %v5792_v2 = vmax.f32 %v5720_v46, %v5756_v44  ;;  %v5500_v37 = vpop.f32.mrf.mxu1  ;;  %v17910_v3 = vadd.f32 %v5295_v47, %v23317_v40  ;;  %v23319_v44 = vld [vmem:[#allocation16_spill] sm:$0xff] }
 0x4ff   :  { %v5703_v4 = vadd.f32 %v17777_v63, %v5631_v18  ;;  %v5632_v16 = vadd.f32 %v5539_v34, %v17801_v12  ;;  %v17903_v57 = vpack.c.bf16 %v5827_v42, %v5821_v13  ;;  %v5797_v36 = vmax.f32 %v5725_v33, %v5761_v51 }
 0x500   :  { %v5762_v25 = vmul.f32 0.01, %v5726_v28  ;;  %v5731_v17 = vadd.f32 %v23316_v30, %v5659_v21  ;;  %v5541_v32 = vpop.f32.mrf.mxu0  ;;  %v5828_v31 = vmul.f32 %v5792_v2, %v23308_v60  ;;  %v5660_v1 = vadd.f32 %v5500_v37, %v17840_v26  ;;  %v5600_v46 = vpop.f32.mrf.mxu1 }
 0x501   :  { %v5739_v14 = vmul.f32 0.01, %v5703_v4  ;;  %v5704_v15 = vadd.f32 %v17777_v63, %v5632_v16  ;;  %v5637_v13 = vadd.f32 %v5541_v32, %v23318_v55  ;;  %v17916_v29 = vadd.f32 %v5297_v38, %v23319_v44 }
 0x502   :  { %v5798_v53 = vmax.f32 %v5726_v28, %v5762_v25  ;;  %v5767_v12 = vmul.f32 0.01, %v5731_v17  ;;  %v5543_v33 = vpop.f32.mrf.mxu0  ;;  %v17913_v7 = vpack.c.bf16 %v5828_v31, %v5822_v22  ;;  %v5732_v50 = vadd.f32 %v23316_v30, %v5660_v1  ;;  %v5602_v26 = vpop.f32.mrf.mxu1 }
 0x503   :  { %v5740_v18 = vmul.f32 0.01, %v5704_v15  ;;  %v5833_v42 = vmul.f32 %v5797_v36, %v23305_v49  ;;  %v5709_v47 = vadd.f32 %v17804_v56, %v5637_v13  ;;  %v5633_v28 = vadd.f32 %v5600_v46, %v17745_v10  ;;  %v23320_v46 = vld [vmem:[#allocation33_spill] sm:$0xff] }
 0x504   :  { %v5803_v51 = vmax.f32 %v5731_v17, %v5767_v12  ;;  %v5547_v21 = vpop.f32.mrf.mxu0  ;;  %v5834_v34 = vmul.f32 %v5798_v53, %v23308_v60  ;;  %v5775_v2 = vmax.f32 %v5703_v4, %v5739_v14  ;;  %v5768_v22 = vmul.f32 0.01, %v5732_v50  ;;  %v5604_v38 = vpop.f32.mrf.mxu1 }
 0x505   :  { %v5638_v37 = vadd.f32 %v5543_v33, %v17811_v6  ;;  %v5745_v25 = vmul.f32 0.01, %v5709_v47  ;;  %v5705_v32 = vadd.f32 %v17777_v63, %v5633_v28  ;;  %v5634_v36 = vadd.f32 %v5602_v26, %v17859_v5 }
 0x506   :  { %v5839_v16 = vmul.f32 %v5803_v51, %v23305_v49  ;;  %v5549_v17 = vpop.f32.mrf.mxu0  ;;  %v5804_v31 = vmax.f32 %v5732_v50, %v5768_v22  ;;  %v5776_v1 = vmax.f32 %v5704_v15, %v5740_v18  ;;  %v5643_v40 = vadd.f32 %v5547_v21, %v23320_v46  ;;  %v5606_v53 = vpop.f32.mrf.mxu1  ;;  %v23321_v50 = vld [vmem:[#allocation59_spill] sm:$0xff] }
 0x507   :  { %v5710_v10 = vadd.f32 %v17804_v56, %v5638_v37  ;;  %v5781_v14 = vmax.f32 %v5709_v47, %v5745_v25  ;;  %v5741_v6 = vmul.f32 0.01, %v5705_v32  ;;  %v5706_v12 = vadd.f32 %v17777_v63, %v5634_v36  ;;  %v23322_v25 = vld [vmem:[#allocation60_spill] sm:$0xff] }
 0x508   :  { %v17929_v4 = vpack.c.bf16 %v5839_v16, %v5833_v42  ;;  %v5551_v55 = vpop.f32.mrf.mxu0  ;;  %v5840_v13 = vmul.f32 %v5804_v31, %v23308_v60  ;;  %v17934_v5 = vadd.f32 %v23306_v52, %v5643_v40  ;;  %v5639_v15 = vadd.f32 %v5604_v38, %v17868_v39  ;;  %v5610_v44 = vpop.f32.mrf.mxu1 }
 0x509   :  { %v5746_v33 = vmul.f32 0.01, %v5710_v10  ;;  %v5811_v18 = vmul.f32 %v5775_v2, %v23321_v50  ;;  %v5817_v26 = vmul.f32 %v5781_v14, %v23321_v50  ;;  %v5777_v42 = vmax.f32 %v5705_v32, %v5741_v6 }
 0x50a   :  { %v5644_v51 = vadd.f32 %v5549_v17, %v17819_v19  ;;  %5932 = vrot.lane.b32.xlu1 %v17929_v4, %s14400_s27  ;;  %v5553_v63 = vpop.f32.mrf.mxu0  ;;  %v17942_v47 = vpack.c.bf16 %v5840_v13, %v5834_v34  ;;  %v5742_v21 = vmul.f32 0.01, %v5706_v12  ;;  %v5711_v22 = vadd.f32 %v17804_v56, %v5639_v15  ;;  %v5612_v37 = vpop.f32.mrf.mxu1 }
 0x50b   :  { %v5782_v28 = vmax.f32 %v5710_v10, %v5746_v33  ;;  %v17947_v39 = vadd.f32 %v17880_v58, %v17796_v27  ;;  %v17949_v2 = vpack.c.bf16 %v5817_v26, %v5811_v18  ;;  %v5751_v38 = vmul.f32 0.01, %v17934_v5  ;;  %v23323_v27 = vld [vmem:[#allocation17_spill] sm:$0xff] }
 0x50c   :  { %v5716_v19 = vadd.f32 %v23306_v52, %v5644_v51  ;;  %v5557_v16 = vpop.f32.mrf.mxu0  ;;  %v5812_v32 = vmul.f32 %v5776_v1, %v23322_v25  ;;  %v5747_v36 = vmul.f32 0.01, %v5711_v22  ;;  %v5640_v17 = vadd.f32 %v5606_v53, %v17872_v45  ;;  %5934 = vrot.lane.b32.xlu0 %v17942_v47, %s14400_s27  ;;  %v5614_v31 = vpop.f32.mrf.mxu1 }
 0x50d   :  { %v5818_v34 = vmul.f32 %v5782_v28, %v23322_v25  ;;  %v5813_v58 = vmul.f32 %v5777_v42, %v23323_v27  ;;  %v5649_v46 = vadd.f32 %v5551_v55, %v17825_v59  ;;  %v5645_v40 = vadd.f32 %v5610_v44, %v17876_v24 }
 0x50e   :  { %v5752_v10 = vmul.f32 0.01, %v5716_v19  ;;  %5920 = vrot.lane.b32.xlu1 %v17903_v57, %s14400_s27  ;;  %v5778_v14 = vmax.f32 %v5706_v12, %v5742_v21  ;;  %v5783_v6 = vmax.f32 %v5711_v22, %v5747_v36  ;;  %v5712_v45 = vadd.f32 %v17804_v56, %v5640_v17  ;;  %v5616_v53 = vpop.f32.mrf.mxu1  ;;  %v5559_v55 = vpop.f32.mrf.mxu0 }
 0x50f   :  { %v17963_v1 = vpack.c.bf16 %v5818_v34, %v5812_v32  ;;  %v5787_v13 = vmax.f32 %v17934_v5, %v5751_v38  ;;  %v5721_v33 = vadd.f32 %v17765_v11, %v5649_v46  ;;  %v5717_v15 = vadd.f32 %v23306_v52, %v5645_v40 }
 0x510   :  { %v5650_v59 = vadd.f32 %v5553_v63, %v17830_v48  ;;  %v5819_v24 = vmul.f32 %v5783_v6, %v23323_v27  ;;  %v5748_v44 = vmul.f32 0.01, %v5712_v45  ;;  %v5646_v18 = vadd.f32 %v5612_v37, %v17883_v0  ;;  %5922 = vrot.lane.b32.xlu0 %v17913_v7, %s14400_s27  ;;  %v5620_v56 = vpop.f32.mrf.mxu1 }
 0x511   :  { %v5655_v12 = vadd.f32 %v5557_v16, %v17837_v62  ;;  %v5788_v26 = vmax.f32 %v5716_v19, %v5752_v10  ;;  %v5757_v5 = vmul.f32 0.01, %v5721_v33  ;;  %v5753_v42 = vmul.f32 0.01, %v5717_v15  ;;  %v23324_v62 = vld [vmem:[#allocation18_spill] sm:$0xff]  ;;  %v5561_v19 = vpop.f32.mrf.mxu0 }
 0x512   :  { %v5722_v51 = vadd.f32 %v17765_v11, %v5650_v59  ;;  %5908 = vrot.lane.b32.xlu1 %v17862_v43, %s14400_s27  ;;  %v17978_v48 = vpack.c.bf16 %v5819_v24, %v5813_v58  ;;  %v5784_v63 = vmax.f32 %v5712_v45, %v5748_v44  ;;  %v5718_v28 = vadd.f32 %v23306_v52, %v5646_v18  ;;  %v5622_v16 = vpop.f32.mrf.mxu1 }
 0x513   :  { %v5727_v0 = vadd.f32 %v23313_v20, %v5655_v12  ;;  %v5814_v21 = vmul.f32 %v5778_v14, %v23324_v62  ;;  %v5793_v22 = vmax.f32 %v5721_v33, %v5757_v5  ;;  %v5651_v38 = vadd.f32 %v5614_v31, %v17886_v8 }
 0x514   :  { %v5758_v37 = vmul.f32 0.01, %v5722_v51  ;;  %v5820_v32 = vmul.f32 %v5784_v63, %v23324_v62  ;;  %v5789_v34 = vmax.f32 %v5717_v15, %v5753_v42  ;;  %v5754_v36 = vmul.f32 0.01, %v5718_v28  ;;  %5910 = vrot.lane.b32.xlu0 %v17878_v41, %s14400_s27  ;;  %v5624_v15 = vpop.f32.mrf.mxu1 }
 0x515   :  { %v5656_v17 = vadd.f32 %v5559_v55, %v17844_v35  ;;  %v5823_v52 = vmul.f32 %v5787_v13, %v23321_v50  ;;  %v5829_v58 = vmul.f32 %v5793_v22, %v23321_v50  ;;  %v5723_v46 = vadd.f32 %v17765_v11, %v5651_v38  ;;  %v5563_v13 = vpop.f32.mrf.mxu0 }
 0x516   :  { %v5794_v10 = vmax.f32 %v5722_v51, %v5758_v37  ;;  %v5824_v8 = vmul.f32 %v5788_v26, %v23322_v25  ;;  %v17992_v31 = vpack.c.bf16 %v5820_v32, %v5814_v21  ;;  %v5763_v40 = vmul.f32 0.01, %v5727_v0  ;;  %v5626_v22 = vpop.f32.mrf.mxu1 }
 0x517   :  { %v5728_v14 = vadd.f32 %v23313_v20, %v5656_v17  ;;  %v17995_v6 = vpack.c.bf16 %v5829_v58, %v5823_v52  ;;  %v5759_v45 = vmul.f32 0.01, %v5723_v46  ;;  %v5652_v33 = vadd.f32 %v5616_v53, %v17890_v54 }
 0x518   :  { %v5830_v35 = vmul.f32 %v5794_v10, %v23322_v25  ;;  %v5825_v59 = vmul.f32 %v5789_v34, %v23323_v27  ;;  %v5790_v55 = vmax.f32 %v5718_v28, %v5754_v36  ;;  %v5661_v44 = vadd.f32 %v5561_v19, %v17848_v9 }
 0x519   :  { %v5764_v24 = vmul.f32 0.01, %v5728_v14  ;;  %v5795_v12 = vmax.f32 %v5723_v46, %v5759_v45  ;;  %v5724_v26 = vadd.f32 %v17765_v11, %v5652_v33  ;;  %v5657_v5 = vadd.f32 %v5620_v56, %v17895_v23 }
 0x51a   :  { %v18001_v18 = vpack.c.bf16 %v5830_v35, %v5824_v8  ;;  %v5799_v42 = vmax.f32 %v5727_v0, %v5763_v40  ;;  %v5733_v51 = vadd.f32 %v23316_v30, %v5661_v44  ;;  %v5662_v54 = vadd.f32 %v5563_v13, %v17855_v61 }
 0x51b   :  { %v5658_v53 = vadd.f32 %v5622_v16, %v17910_v3  ;;  %v5831_v63 = vmul.f32 %v5795_v12, %v23323_v27  ;;  %v5760_v28 = vmul.f32 0.01, %v5724_v26  ;;  %v5729_v21 = vadd.f32 %v23313_v20, %v5657_v5 }
 0x51c   :  { %v5663_v9 = vadd.f32 %v5624_v15, %v17916_v29  ;;  %5926 = vrot.lane.b32.xlu0 %v18001_v18, %s14400_s27  ;;  %v5800_v11 = vmax.f32 %v5728_v14, %v5764_v24  ;;  %v5769_v23 = vmul.f32 0.01, %v5733_v51  ;;  %v5734_v56 = vadd.f32 %v23316_v30, %v5662_v54  ;;  %v23325_v54 = vld [vmem:[#allocation5_spill] sm:$0xff] }
 0x51d   :  { %v5730_v0 = vadd.f32 %v23313_v20, %v5658_v53  ;;  %v18015_v61 = vpack.c.bf16 %v5831_v63, %v5825_v59  ;;  %v5796_v3 = vmax.f32 %v5724_v26, %v5760_v28  ;;  %v5765_v37 = vmul.f32 0.01, %v5729_v21 }
 0x51e   :  { %v5735_v38 = vadd.f32 %v23316_v30, %v5663_v9  ;;  %v5805_v19 = vmax.f32 %v5733_v51, %v5769_v23  ;;  %v5770_v16 = vmul.f32 0.01, %v5734_v56  ;;  %v5664_v29 = vadd.f32 %v5626_v22, %v17947_v39 }
 0x51f   :  { %v5766_v32 = vmul.f32 0.01, %v5730_v0  ;;  %v5826_v34 = vmul.f32 %v5790_v55, %v23324_v62  ;;  %v5832_v36 = vmul.f32 %v5796_v3, %v23324_v62  ;;  %v5801_v17 = vmax.f32 %v5729_v21, %v5765_v37  ;;  %v18172_v37 = vld [vmem:[%s23009_s6 + $0x20] sm:$0xff]  }
 0x520   :  { %v5771_v52 = vmul.f32 0.01, %v5735_v38  ;;  %5914 = vrot.lane.b32.xlu0 %v17963_v1, %s14400_s27  ;;  %v5835_v20 = vmul.f32 %v5799_v42, %v23321_v50  ;;  %v5841_v58 = vmul.f32 %v5805_v19, %v23321_v50  ;;  %v5806_v10 = vmax.f32 %v5734_v56, %v5770_v16  ;;  %v18156_v56 = vld [vmem:[%s23009_s6 + $0x18] sm:$0xff]  }
 0x521   :  { %v5736_v46 = vadd.f32 %v23316_v30, %v5664_v29  ;;  %v5836_v8 = vmul.f32 %v5800_v11, %v23322_v25  ;;  %v18027_v40 = vpack.c.bf16 %v5832_v36, %v5826_v34  ;;  %v5802_v45 = vmax.f32 %v5730_v0, %v5766_v32  ;;  %v18189_v29 = vld [vmem:[%s23009_s6 + $0x28] sm:$0xff]  }
 0x522   :  { %v5807_v39 = vmax.f32 %v5735_v38, %v5771_v52  ;;  %v18029_v14 = vpack.c.bf16 %v5841_v58, %v5835_v20  ;;  %v5842_v35 = vmul.f32 %v5806_v10, %v23322_v25  ;;  %v5837_v13 = vmul.f32 %v5801_v17, %v23323_v27 }
 0x523   :  { %v5772_v33 = vmul.f32 0.01, %v5736_v46  ;;  %v5838_v24 = vmul.f32 %v5802_v45, %v23324_v62  ;;  %v23326_v3 = vmov 0  }
 0x524   :  { %v5843_v15 = vmul.f32 %v5807_v39, %v23323_v27  ;;  %v18034_v59 = vpack.c.bf16 %v5842_v35, %v5836_v8  ;;  %5936 = vrot.lane.b32.xlu1 %v18029_v14, %s14400_s27 }
 0x525   :  { %v5808_v55 = vmax.f32 %v5736_v46, %v5772_v33 }
 0x526   :  { %v18038_v30 = vpack.c.bf16 %v5843_v15, %v5837_v13  ;;  %5938 = vrot.lane.b32.xlu0 %v18034_v59, %s14400_s27 }
 0x527   :  { %v5844_v44 = vmul.f32 %v5808_v55, %v23324_v62 }
 0x528   :  { %5924 = vrot.lane.b32.xlu1 %v17995_v6, %s14400_s27 }
 0x529   :  { %v18044_v12 = vpack.c.bf16 %v5844_v44, %v5838_v24 }
 0x52b   :  { %5942 = vrot.lane.b32.xlu0 %v18044_v12, %s14400_s27 }
 0x52c   :  { %5912 = vrot.lane.b32.xlu1 %v17949_v2, %s14400_s27 }
 0x52f   :  { %5930 = vrot.lane.b32.xlu0 %v18027_v40, %s14400_s27 }
 0x530   :  { %5940 = vrot.lane.b32.xlu1 %v18038_v30, %s14400_s27 }
 0x533   :  { %5918 = vrot.lane.b32.xlu0 %v17992_v31, %s14400_s27 }
 0x534   :  { %5928 = vrot.lane.b32.xlu1 %v18015_v61, %s14400_s27 }
 0x537   :  { %6219 = vrot.lane.b32.xlu0 %v17942_v47, %s14401_s0 }
 0x538   :  { %5916 = vrot.lane.b32.xlu1 %v17978_v48, %s14400_s27 }
 0x53b   :  { %6207 = vrot.lane.b32.xlu0 %v17913_v7, %s14401_s0 }
 0x53c   :  { %6217 = vrot.lane.b32.xlu1 %v17929_v4, %s14401_s0 }
 0x53f   :  { %6223 = vrot.lane.b32.xlu0 %v18034_v59, %s14401_s0 }
 0x540   :  { %6205 = vrot.lane.b32.xlu1 %v17903_v57, %s14401_s0 }
 0x543   :  { %6195 = vrot.lane.b32.xlu0 %v17878_v41, %s14401_s0 }
 0x544   :  { %6221 = vrot.lane.b32.xlu1 %v18029_v14, %s14401_s0 }
 0x547   :  { %6211 = vrot.lane.b32.xlu0 %v18001_v18, %s14401_s0 }
 0x548   :  { %6193 = vrot.lane.b32.xlu1 %v17862_v43, %s14401_s0 }
 0x54b   :  { %6199 = vrot.lane.b32.xlu0 %v17963_v1, %s14401_s0 }
 0x54c   :  { %6209 = vrot.lane.b32.xlu1 %v17995_v6, %s14401_s0 }
 0x54f   :  { %6215 = vrot.lane.b32.xlu0 %v18027_v40, %s14401_s0 }
 0x550   :  { %6197 = vrot.lane.b32.xlu1 %v17949_v2, %s14401_s0 }
 0x553   :  { %6510 = vrot.lane.b32.xlu0 %v17942_v47, %s14402_s16 }
 0x554   :  { %6225 = vrot.lane.b32.xlu1 %v18038_v30, %s14401_s0 }
 0x557   :  { %6227 = vrot.lane.b32.xlu0 %v18044_v12, %s14401_s0 }
 0x558   :  { %6213 = vrot.lane.b32.xlu1 %v18015_v61, %s14401_s0 }
 0x55b   :  { %6203 = vrot.lane.b32.xlu0 %v17992_v31, %s14401_s0 }
 0x55c   :  { %6508 = vrot.lane.b32.xlu1 %v17929_v4, %s14402_s16 }
 0x55f   :  { %6498 = vrot.lane.b32.xlu0 %v17913_v7, %s14402_s16 }
 0x560   :  { %6201 = vrot.lane.b32.xlu1 %v17978_v48, %s14401_s0 }
 0x563   :  { %6486 = vrot.lane.b32.xlu0 %v17878_v41, %s14402_s16 }
 0x564   :  { %6496 = vrot.lane.b32.xlu1 %v17903_v57, %s14402_s16 }
 0x567   :  { %6514 = vrot.lane.b32.xlu0 %v18034_v59, %s14402_s16 }
 0x568   :  { %6484 = vrot.lane.b32.xlu1 %v17862_v43, %s14402_s16 }
 0x56b   :  { %6502 = vrot.lane.b32.xlu0 %v18001_v18, %s14402_s16 }
 0x56c   :  { %6512 = vrot.lane.b32.xlu1 %v18029_v14, %s14402_s16 }
 0x56f   :  { %6490 = vrot.lane.b32.xlu0 %v17963_v1, %s14402_s16 }
 0x570   :  { %6500 = vrot.lane.b32.xlu1 %v17995_v6, %s14402_s16 }
 0x573   :  { %6518 = vrot.lane.b32.xlu0 %v18044_v12, %s14402_s16 }
 0x574   :  { %6516 = vrot.lane.b32.xlu1 %v18038_v30, %s14402_s16 }
 0x577   :  { %6506 = vrot.lane.b32.xlu0 %v18027_v40, %s14402_s16 }
 0x578   :  { %6488 = vrot.lane.b32.xlu1 %v17949_v2, %s14402_s16 }
 0x57b   :  { %6494 = vrot.lane.b32.xlu0 %v17992_v31, %s14402_s16 }
 0x57c   :  { %v5933_v26 = vpop.permute.xlu1 %5932  ;;  %6504 = vrot.lane.b32.xlu1 %v18015_v61, %s14402_s16 }
 0x57d   :  { %v5956_v53 = vsel %vm104_vm0, %v23325_v54, %v5933_v26 }
 0x57e   :  { %v5935_v5 = vpop.permute.xlu0 %5934 }
 0x57f   :  { %6837 = vrot.lane.b32.xlu0 %v17942_v47, %s14403_s17  ;;  %v5957_v42 = vsel %vm104_vm0, %v5933_v26, %v5935_v5 }
 0x580   :  { %v5921_v51 = vpop.permute.xlu1 %5920  ;;  %6492 = vrot.lane.b32.xlu1 %v17978_v48, %s14402_s16  ;;  %5999 = vmatprep.subr.bf16.mxu0 %v5957_v42 }
 0x581   :  { %6000 = vmatpush1.bf16.msra.mxu0 %v5956_v53  ;;  %v5950_v21 = vsel %vm104_vm0, %v23325_v54, %v5921_v51 }
 0x582   :  { %v5923_v63 = vpop.permute.xlu0 %5922 }
 0x583   :  { %6825 = vrot.lane.b32.xlu0 %v17913_v7, %s14403_s17  ;;  %v5951_v28 = vsel %vm104_vm0, %v5921_v51, %v5923_v63 }
 0x584   :  { %6835 = vrot.lane.b32.xlu1 %v17929_v4, %s14403_s17  ;;  %6001 = vmatprep.subr.bf16.mxu0 %v5951_v28  ;;  %v5909_v9 = vpop.permute.xlu1 %5908 }
 0x585   :  { %6002 = vmatpush1.bf16.msra.mxu0 %v5950_v21  ;;  %v5944_v23 = vsel %vm104_vm0, %v23325_v54, %v5909_v9 }
 0x586   :  { %v5911_v22 = vpop.permute.xlu0 %5910 }
 0x587   :  { %6841 = vrot.lane.b32.xlu0 %v18034_v59, %s14403_s17  ;;  %v5945_v11 = vsel %vm104_vm0, %v5909_v9, %v5911_v22 }
 0x588   :  { %6823 = vrot.lane.b32.xlu1 %v17903_v57, %s14403_s17  ;;  %6003 = vmatprep.subr.bf16.mxu0 %v5945_v11 }
 0x589   :  { %6004 = vmatpush1.bf16.msra.mxu0 %v5944_v23 }
 0x58b   :  { %6813 = vrot.lane.b32.xlu0 %v17878_v41, %s14403_s17 }
 0x58c   :  { %6839 = vrot.lane.b32.xlu1 %v18029_v14, %s14403_s17  ;;  %14003 = vmatmul.mubr.msk.bf16.vlgmr.msra.gmra.mxu0 %vm2964_vm10, %v18156_v56 }
 0x58d   :  { %6031 = vmatprep.mubr.bf16.mxu0 %v23326_v3 }
 0x58e   :  { %v5927_v0 = vpop.permute.xlu0 %5926 }
 0x58f   :  { %6829 = vrot.lane.b32.xlu0 %v18001_v18, %s14403_s17 }
 0x590   :  { %6811 = vrot.lane.b32.xlu1 %v17862_v43, %s14403_s17 }
 0x592   :  { %v5915_v38 = vpop.permute.xlu0 %5914 }
 0x593   :  { %6817 = vrot.lane.b32.xlu0 %v17963_v1, %s14403_s17 }
 0x594   :  { %6827 = vrot.lane.b32.xlu1 %v17995_v6, %s14403_s17  ;;  %14004 = vmatmul.mubr.msk.bf16.gmra.mxu0 %vm2964_vm10, %v18172_v37 }
 0x595   :  { %6041 = vmatprep.mubr.bf16.mxu0 %v23326_v3 }
 0x596   :  { %v5937_v19 = vpop.permute.xlu1 %5936 }
 0x597   :  { %6845 = vrot.lane.b32.xlu0 %v18044_v12, %s14403_s17  ;;  %v5958_v36 = vsel %vm104_vm0, %v5935_v5, %v5937_v19 }
 0x598   :  { %v5939_v16 = vpop.permute.xlu0 %5938  ;;  %6815 = vrot.lane.b32.xlu1 %v17949_v2, %s14403_s17 }
 0x599   :  { %v5959_v32 = vsel %vm104_vm0, %v5937_v19, %v5939_v16 }
 0x59a   :  { %6062 = vmatprep.subr.bf16.mxu1 %v5959_v32  ;;  %v5925_v34 = vpop.permute.xlu1 %5924 }
 0x59b   :  { %6833 = vrot.lane.b32.xlu0 %v18027_v40, %s14403_s17  ;;  %6063 = vmatpush1.bf16.msra.mxu1 %v5958_v36  ;;  %v5953_v17 = vsel %vm104_vm0, %v5925_v34, %v5927_v0  ;;  %v5952_v58 = vsel %vm104_vm0, %v5923_v63, %v5925_v34  ;;  %v23327_v63 = vld [vmem:[#allocation6_spill] sm:$0xff] }
 0x59c   :  { %6843 = vrot.lane.b32.xlu1 %v18038_v30, %s14403_s17  ;;  %6064 = vmatprep.subr.bf16.mxu1 %v5953_v17 }
 0x59d   :  { %v5943_v52 = vpop.permute.xlu0 %5942  ;;  %14005 = vmatmul.mubr.msk.bf16.gmra.mxu0 %vm2964_vm10, %v18189_v29 }
 0x59e   :  { %v5913_v20 = vpop.permute.xlu1 %5912  ;;  %6147 = vmatprep.mubr.bf16.mxu0 %v23326_v3 }
 0x59f   :  { %6821 = vrot.lane.b32.xlu0 %v17992_v31, %s14403_s17  ;;  %6065 = vmatpush1.bf16.msra.mxu1 %v5952_v58  ;;  %v5947_v10 = vsel %vm104_vm0, %v5913_v20, %v5915_v38  ;;  %v5946_v39 = vsel %vm104_vm0, %v5911_v22, %v5913_v20 }
 0x5a0   :  { %6831 = vrot.lane.b32.xlu1 %v18015_v61, %s14403_s17  ;;  %6066 = vmatprep.subr.bf16.mxu1 %v5947_v10 }
 0x5a1   :  { %v5931_v46 = vpop.permute.xlu0 %5930 }
 0x5a2   :  { %v5941_v8 = vpop.permute.xlu1 %5940 }
 0x5a3   :  { %7421 = vrot.lane.b32.xlu0 %v18029_v14, %s14404_s18  ;;  %6067 = vmatpush1.bf16.msra.mxu1 %v5946_v39  ;;  %v5961_v35 = vsel %vm104_vm0, %v5941_v8, %v5943_v52  ;;  %v5960_v45 = vsel %vm104_vm0, %v5939_v16, %v5941_v8 }
 0x5a4   :  { %6819 = vrot.lane.b32.xlu1 %v17978_v48, %s14403_s17  ;;  %6125 = vmatprep.subr.bf16.mxu0 %v5961_v35 }
 0x5a5   :  { %v5919_v33 = vpop.permute.xlu0 %5918  ;;  %6126 = vmatpush1.bf16.msra.mxu0 %v5960_v45 }
 0x5a6   :  { %14006 = vmatmul.mubr.msk.bf16.vlgmr.msra.gmra.mxu1 %vm2964_vm10, %v18156_v56  ;;  %v5929_v13 = vpop.permute.xlu1 %5928 }
 0x5a7   :  { %7407 = vrot.lane.b32.xlu0 %v17913_v7, %s14404_s18  ;;  %v5955_v15 = vsel %vm104_vm0, %v5929_v13, %v5931_v46  ;;  %v5954_v55 = vsel %vm104_vm0, %v5927_v0, %v5929_v13  ;;  %6094 = vmatprep.mubr.bf16.mxu1 %v23326_v3 }
 0x5a8   :  { %7419 = vrot.lane.b32.xlu1 %v17942_v47, %s14404_s18  ;;  %6127 = vmatprep.subr.bf16.mxu0 %v5955_v15 }
 0x5a9   :  { %v6220_v24 = vpop.permute.xlu0 %6219  ;;  %6128 = vmatpush1.bf16.msra.mxu0 %v5954_v55 }
 0x5aa   :  { %v5917_v44 = vpop.permute.xlu1 %5916 }
 0x5ab   :  { %7423 = vrot.lane.b32.xlu0 %v18034_v59, %s14404_s18  ;;  %v5949_v26 = vsel %vm104_vm0, %v5917_v44, %v5919_v33  ;;  %v5948_v5 = vsel %vm104_vm0, %v5915_v38, %v5917_v44  ;;  %v18321_v44 = vld [vmem:[%s23009_s6 + $0x10] sm:$0xff]  }
 0x5ac   :  { %7417 = vrot.lane.b32.xlu1 %v17929_v4, %s14404_s18  ;;  %6129 = vmatprep.subr.bf16.mxu0 %v5949_v26 }
 0x5ad   :  { %v6208_v42 = vpop.permute.xlu0 %6207  ;;  %6130 = vmatpush1.bf16.msra.mxu0 %v5948_v5 }
 0x5ae   :  { %14007 = vmatmul.mubr.msk.bf16.gmra.mxu1 %vm2964_vm10, %v18172_v37  ;;  %v6218_v51 = vpop.permute.xlu1 %6217 }
 0x5af   :  { %7405 = vrot.lane.b32.xlu0 %v17903_v57, %s14404_s18  ;;  %v6242_v53 = vsel %vm358_vm3, %v6218_v51, %v6220_v24  ;;  %v6241_v28 = vsel %vm358_vm3, %v23327_v63, %v6218_v51  ;;  %6104 = vmatprep.mubr.bf16.mxu1 %v23326_v3  ;;  %v23328_v51 = vld [vmem:[#allocation7_spill] sm:$0xff] }
 0x5b0   :  { %7409 = vrot.lane.b32.xlu1 %v17995_v6, %s14404_s18  ;;  %14009 = vmatmul.mubr.msk.bf16.vlgmr.msra.gmra.mxu0 %vm2964_vm10, %v18156_v56 }
 0x5b1   :  { %v18236_v21 = vpop.permute.xlu0 %6223  ;;  %6284 = vmatprep.subr.bf16.mxu1 %v6242_v53  ;;  %6157 = vmatprep.mubr.bf16.mxu0 %v23326_v3 }
 0x5b2   :  { %6285 = vmatpush1.bf16.msra.mxu1 %v6241_v28  ;;  %v6206_v9 = vpop.permute.xlu1 %6205 }
 0x5b3   :  { %7397 = vrot.lane.b32.xlu0 %v17949_v2, %s14404_s18  ;;  %v6236_v22 = vsel %vm358_vm3, %v6206_v9, %v6208_v42  ;;  %v6235_v11 = vsel %vm358_vm3, %v23327_v63, %v6206_v9 }
 0x5b4   :  { %7425 = vrot.lane.b32.xlu1 %v18038_v30, %s14404_s18  ;;  %6286 = vmatprep.subr.bf16.mxu1 %v6236_v22 }
 0x5b5   :  { %v6196_v23 = vpop.permute.xlu0 %6195 }
 0x5b6   :  { %6287 = vmatpush1.bf16.msra.mxu1 %v6235_v11  ;;  %v6222_v56 = vpop.permute.xlu1 %6221 }
 0x5b7   :  { %7413 = vrot.lane.b32.xlu0 %v18015_v61, %s14404_s18  ;;  %14008 = vmatmul.mubr.msk.bf16.gmra.mxu1 %vm2964_vm10, %v18189_v29  ;;  %v6244_v0 = vsel %vm358_vm3, %v6222_v56, %v18236_v21  ;;  %v6243_v38 = vsel %vm358_vm3, %v6220_v24, %v6222_v56 }
 0x5b8   :  { %7395 = vrot.lane.b32.xlu1 %v17878_v41, %s14404_s18  ;;  %14010 = vmatmul.mubr.msk.bf16.gmra.mxu0 %vm2964_vm10, %v18172_v37  ;;  %v18273_v37 = vld [vmem:[%s23009_s6] sm:$0xff]  }
 0x5b9   :  { %v6212_v19 = vpop.permute.xlu0 %6211  ;;  %6347 = vmatprep.subr.bf16.mxu0 %v6244_v0  ;;  %6167 = vmatprep.mubr.bf16.mxu0 %v23326_v3 }
 0x5ba   :  { %6348 = vmatpush1.bf16.msra.mxu0 %v6243_v38  ;;  %v6194_v16 = vpop.permute.xlu1 %6193  ;;  %6306 = vmatprep.mubr.bf16.mxu1 %v23326_v3 }
 0x5bb   :  { %7399 = vrot.lane.b32.xlu0 %v17963_v1, %s14404_s18  ;;  %v6230_v32 = vsel %vm358_vm3, %v6194_v16, %v6196_v23  ;;  %v6229_v34 = vsel %vm358_vm3, %v23327_v63, %v6194_v16 }
 0x5bc   :  { %7411 = vrot.lane.b32.xlu1 %v18001_v18, %s14404_s18  ;;  %6288 = vmatprep.subr.bf16.mxu1 %v6230_v32 }
 0x5bd   :  { %v6200_v36 = vpop.permute.xlu0 %6199  ;;  %6289 = vmatpush1.bf16.msra.mxu1 %v6229_v34 }
 0x5be   :  { %v6210_v17 = vpop.permute.xlu1 %6209 }
 0x5bf   :  { %7746 = vrot.lane.b32.xlu0 %v17942_v47, %s14405_s19  ;;  %v6238_v52 = vsel %vm358_vm3, %v6210_v17, %v6212_v19  ;;  %v6237_v20 = vsel %vm358_vm3, %v6208_v42, %v6210_v17 }
 0x5c0   :  { %7393 = vrot.lane.b32.xlu1 %v17862_v43, %s14404_s18  ;;  %14011 = vmatmul.mubr.msk.bf16.gmra.mxu0 %vm2964_vm10, %v18189_v29  ;;  %v18298_v29 = vld [vmem:[%s23009_s6 + $0x8] sm:$0xff]  }
 0x5c1   :  { %v6216_v58 = vpop.permute.xlu0 %6215  ;;  %14015 = vmatmul.mubr.msk.bf16.vlgmr.msra.gmra.mxu1 %vm2964_vm10, %v18273_v37  ;;  %6349 = vmatprep.subr.bf16.mxu0 %v6238_v52 }
 0x5c2   :  { %6350 = vmatpush1.bf16.msra.mxu0 %v6237_v20  ;;  %v6198_v10 = vpop.permute.xlu1 %6197  ;;  %6316 = vmatprep.mubr.bf16.mxu1 %v23326_v3 }
 0x5c3   :  { %7744 = vrot.lane.b32.xlu0 %v17929_v4, %s14405_s19  ;;  %v6232_v46 = vsel %vm358_vm3, %v6198_v10, %v6200_v36  ;;  %v6231_v8 = vsel %vm358_vm3, %v6196_v23, %v6198_v10  ;;  %6369 = vmatprep.mubr.bf16.mxu0 %v23326_v3 }
 0x5c4   :  { %7401 = vrot.lane.b32.xlu1 %v17978_v48, %s14404_s18  ;;  %6351 = vmatprep.subr.bf16.mxu0 %v6232_v46 }
 0x5c5   :  { %v18291_v39 = vpop.permute.xlu0 %6510 }
 0x5c6   :  { %6352 = vmatpush1.bf16.msra.mxu0 %v6231_v8  ;;  %v6226_v35 = vpop.permute.xlu1 %6225 }
 0x5c7   :  { %7427 = vrot.lane.b32.xlu0 %v18044_v12, %s14404_s18  ;;  %v6245_v15 = vsel %vm358_vm3, %v18236_v21, %v6226_v35 }
 0x5c8   :  { %7415 = vrot.lane.b32.xlu1 %v18027_v40, %s14404_s18 }
 0x5c9   :  { %v6228_v45 = vpop.permute.xlu0 %6227  ;;  %14016 = vmatmul.mubr.msk.bf16.gmra.mxu1 %vm2964_vm10, %v18298_v29  ;;  %14018 = vmatmul.mubr.msk.bf16.vlgmr.msra.gmra.mxu0 %vm2964_vm10, %v18273_v37 }
 0x5ca   :  { %v6246_v33 = vsel %vm358_vm3, %v6226_v35, %v6228_v45  ;;  %v6214_v13 = vpop.permute.xlu1 %6213  ;;  %6326 = vmatprep.mubr.bf16.mxu1 %v23326_v3  ;;  %6379 = vmatprep.mubr.bf16.mxu0 %v23326_v3 }
 0x5cb   :  { %7734 = vrot.lane.b32.xlu0 %v17913_v7, %s14405_s19  ;;  %6410 = vmatprep.subr.bf16.mxu1 %v6246_v33  ;;  %v6240_v55 = vsel %vm358_vm3, %v6214_v13, %v6216_v58  ;;  %v6239_v5 = vsel %vm358_vm3, %v6212_v19, %v6214_v13 }
 0x5cc   :  { %6411 = vmatpush1.bf16.msra.mxu1 %v6245_v15  ;;  %7748 = vrot.lane.b32.xlu1 %v18029_v14, %s14405_s19 }
 0x5cd   :  { %v6204_v24 = vpop.permute.xlu0 %6203  ;;  %6412 = vmatprep.subr.bf16.mxu1 %v6240_v55 }
 0x5ce   :  { %v6509_v26 = vpop.permute.xlu1 %6508 }
 0x5cf   :  { %7732 = vrot.lane.b32.xlu0 %v17903_v57, %s14405_s19  ;;  %v6533_v42 = vsel %vm616_vm4, %v6509_v26, %v18291_v39  ;;  %v6532_v53 = vsel %vm616_vm4, %v23328_v51, %v6509_v26 }
 0x5d0   :  { %6413 = vmatpush1.bf16.msra.mxu1 %v6239_v5  ;;  %7403 = vrot.lane.b32.xlu1 %v17992_v31, %s14404_s18 }
 0x5d1   :  { %v6499_v28 = vpop.permute.xlu0 %6498  ;;  %6575 = vmatprep.subr.bf16.mxu0 %v6533_v42  ;;  %14017 = vmatmul.mubr.msk.bf16.gmra.mxu1 %vm2964_vm10, %v18321_v44 }
 0x5d2   :  { %14019 = vmatmul.mubr.msk.bf16.gmra.mxu0 %vm2964_vm10, %v18298_v29  ;;  %v6202_v21 = vpop.permute.xlu1 %6201  ;;  %6432 = vmatprep.mubr.bf16.mxu1 %v23326_v3 }
 0x5d3   :  { %6576 = vmatpush1.bf16.msra.mxu0 %v6532_v53  ;;  %7724 = vrot.lane.b32.xlu0 %v17949_v2, %s14405_s19  ;;  %v6234_v9 = vsel %vm358_vm3, %v6202_v21, %v6204_v24  ;;  %v6233_v22 = vsel %vm358_vm3, %v6200_v36, %v6202_v21  ;;  %v18367_v36 = vld [vmem:[%s23009_s6 + $0x30] sm:$0xff]  }
 0x5d4   :  { %6389 = vmatprep.mubr.bf16.mxu0 %v23326_v3  ;;  %7736 = vrot.lane.b32.xlu1 %v17995_v6, %s14405_s19 }
 0x5d5   :  { %v6487_v11 = vpop.permute.xlu0 %6486  ;;  %6414 = vmatprep.subr.bf16.mxu1 %v6234_v9 }
 0x5d6   :  { %6415 = vmatpush1.bf16.msra.mxu1 %v6233_v22  ;;  %v6497_v23 = vpop.permute.xlu1 %6496 }
 0x5d7   :  { %7750 = vrot.lane.b32.xlu0 %v18034_v59, %s14405_s19  ;;  %v6527_v56 = vsel %vm616_vm4, %v6497_v23, %v6499_v28  ;;  %v6526_v0 = vsel %vm616_vm4, %v23328_v51, %v6497_v23 }
 0x5d8   :  { %7722 = vrot.lane.b32.xlu1 %v17878_v41, %s14405_s19  ;;  %6577 = vmatprep.subr.bf16.mxu0 %v6527_v56  ;;  %v23329_v56 = vld [vmem:[#allocation8_spill] sm:$0xff] }
 0x5d9   :  { %v6515_v38 = vpop.permute.xlu0 %6514  ;;  %14021 = vmatmul.mubr.msk.bf16.vlgmr.msra.gmra.mxu1 %vm2964_vm10, %v18273_v37  ;;  %6578 = vmatpush1.bf16.msra.mxu0 %v6526_v0 }
 0x5da   :  { %14020 = vmatmul.mubr.msk.bf16.gmra.mxu0 %vm2964_vm10, %v18321_v44  ;;  %v6485_v19 = vpop.permute.xlu1 %6484  ;;  %6442 = vmatprep.mubr.bf16.mxu1 %v23326_v3 }
 0x5db   :  { %7738 = vrot.lane.b32.xlu0 %v18001_v18, %s14405_s19  ;;  %v6521_v16 = vsel %vm616_vm4, %v6485_v19, %v6487_v11  ;;  %v6520_v32 = vsel %vm616_vm4, %v23328_v51, %v6485_v19  ;;  %6597 = vmatprep.mubr.bf16.mxu0 %v23326_v3 }
 0x5dc   :  { %7720 = vrot.lane.b32.xlu1 %v17862_v43, %s14405_s19  ;;  %6579 = vmatprep.subr.bf16.mxu0 %v6521_v16 }
 0x5dd   :  { %v6503_v34 = vpop.permute.xlu0 %6502  ;;  %6580 = vmatpush1.bf16.msra.mxu0 %v6520_v32 }
 0x5de   :  { %v6513_v37 = vpop.permute.xlu1 %6512 }
 0x5df   :  { %7728 = vrot.lane.b32.xlu0 %v17978_v48, %s14405_s19  ;;  %v6535_v17 = vsel %vm616_vm4, %v6513_v37, %v6515_v38  ;;  %v6534_v52 = vsel %vm616_vm4, %v18291_v39, %v6513_v37  ;;  %v18391_v39 = vld [vmem:[%s23009_s6 + $0x38] sm:$0xff]  }
 0x5e0   :  { %7752 = vrot.lane.b32.xlu1 %v18038_v30, %s14405_s19  ;;  %6638 = vmatprep.subr.bf16.mxu1 %v6535_v17 }
 0x5e1   :  { %v6491_v20 = vpop.permute.xlu0 %6490  ;;  %14022 = vmatmul.mubr.msk.bf16.gmra.mxu1 %vm2964_vm10, %v18298_v29 }
 0x5e2   :  { %14027 = vmatmul.mubr.msk.bf16.vlgmr.msra.gmra.mxu0 %vm2964_vm10, %v18367_v36  ;;  %6639 = vmatpush1.bf16.msra.mxu1 %v6534_v52  ;;  %v6501_v58 = vpop.permute.xlu1 %6500 }
 0x5e3   :  { %7754 = vrot.lane.b32.xlu0 %v18044_v12, %s14405_s19  ;;  %v6529_v10 = vsel %vm616_vm4, %v6501_v58, %v6503_v34  ;;  %v6528_v46 = vsel %vm616_vm4, %v6499_v28, %v6501_v58  ;;  %6452 = vmatprep.mubr.bf16.mxu1 %v23326_v3 }
 0x5e4   :  { %6607 = vmatprep.mubr.bf16.mxu0 %v23326_v3  ;;  %7740 = vrot.lane.b32.xlu1 %v18015_v61, %s14405_s19 }
 0x5e5   :  { %v6519_v8 = vpop.permute.xlu0 %6518  ;;  %6640 = vmatprep.subr.bf16.mxu1 %v6529_v10 }
 0x5e6   :  { %6641 = vmatpush1.bf16.msra.mxu1 %v6528_v46  ;;  %v6517_v29 = vpop.permute.xlu1 %6516 }
 0x5e7   :  { %7730 = vrot.lane.b32.xlu0 %v17992_v31, %s14405_s19  ;;  %v6537_v35 = vsel %vm616_vm4, %v6517_v29, %v6519_v8  ;;  %v6536_v45 = vsel %vm616_vm4, %v6515_v38, %v6517_v29  ;;  %v18479_v8 = vld [vmem:[%s23009_s6 + $0x48] sm:$0xff]  }
 0x5e8   :  { %7726 = vrot.lane.b32.xlu1 %v17963_v1, %s14405_s19  ;;  %6701 = vmatprep.subr.bf16.mxu0 %v6537_v35 }
 0x5e9   :  { %v6507_v33 = vpop.permute.xlu0 %6506  ;;  %14023 = vmatmul.mubr.msk.bf16.gmra.mxu1 %vm2964_vm10, %v18321_v44  ;;  %6702 = vmatpush1.bf16.msra.mxu0 %v6536_v45  ;;  %v18414_v44 = vld [vmem:[%s23009_s6 + $0x40] sm:$0xff]  }
 0x5ea   :  { %14028 = vmatmul.mubr.msk.bf16.gmra.mxu0 %vm2964_vm10, %v18391_v39  ;;  %v6489_v13 = vpop.permute.xlu1 %6488  ;;  %6660 = vmatprep.mubr.bf16.mxu1 %v23326_v3 }
 0x5eb   :  { %8075 = vrot.lane.b32.xlu0 %v18029_v14, %s14406_s20  ;;  %v6523_v15 = vsel %vm616_vm4, %v6489_v13, %v6491_v20  ;;  %v6522_v55 = vsel %vm616_vm4, %v6487_v11, %v6489_v13  ;;  %6617 = vmatprep.mubr.bf16.mxu0 %v23326_v3 }
 0x5ec   :  { %7742 = vrot.lane.b32.xlu1 %v18027_v40, %s14405_s19  ;;  %6642 = vmatprep.subr.bf16.mxu1 %v6523_v15 }
 0x5ed   :  { %v6495_v24 = vpop.permute.xlu0 %6494  ;;  %6643 = vmatpush1.bf16.msra.mxu1 %v6522_v55 }
 0x5ee   :  { %v6505_v26 = vpop.permute.xlu1 %6504 }
 0x5ef   :  { %8061 = vrot.lane.b32.xlu0 %v17913_v7, %s14406_s20  ;;  %v6531_v5 = vsel %vm616_vm4, %v6505_v26, %v6507_v33  ;;  %v6530_v42 = vsel %vm616_vm4, %v6503_v34, %v6505_v26 }
 0x5f0   :  { %8073 = vrot.lane.b32.xlu1 %v17942_v47, %s14406_s20  ;;  %6703 = vmatprep.subr.bf16.mxu0 %v6531_v5 }
 0x5f1   :  { %v6838_v53 = vpop.permute.xlu0 %6837  ;;  %14030 = vmatmul.mubr.msk.bf16.vlgmr.msra.gmra.mxu1 %vm2964_vm10, %v18367_v36  ;;  %6704 = vmatpush1.bf16.msra.mxu0 %v6530_v42 }
 0x5f2   :  { %14029 = vmatmul.mubr.msk.bf16.gmra.mxu0 %vm2964_vm10, %v18414_v44  ;;  %v6493_v28 = vpop.permute.xlu1 %6492  ;;  %6670 = vmatprep.mubr.bf16.mxu1 %v23326_v3 }
 0x5f3   :  { %8077 = vrot.lane.b32.xlu0 %v18034_v59, %s14406_s20  ;;  %v6525_v21 = vsel %vm616_vm4, %v6493_v28, %v6495_v24  ;;  %v6524_v9 = vsel %vm616_vm4, %v6491_v20, %v6493_v28  ;;  %6723 = vmatprep.mubr.bf16.mxu0 %v23326_v3  ;;  %v18502_v24 = vld [vmem:[%s23009_s6 + $0x50] sm:$0xff]  }
 0x5f4   :  { %8071 = vrot.lane.b32.xlu1 %v17929_v4, %s14406_s20  ;;  %6705 = vmatprep.subr.bf16.mxu0 %v6525_v21 }
 0x5f5   :  { %v6826_v22 = vpop.permute.xlu0 %6825  ;;  %6706 = vmatpush1.bf16.msra.mxu0 %v6524_v9 }
 0x5f6   :  { %v6836_v11 = vpop.permute.xlu1 %6835 }
 0x5f7   :  { %8059 = vrot.lane.b32.xlu0 %v17903_v57, %s14406_s20  ;;  %v6860_v23 = vsel %vm910_vm5, %v6836_v11, %v6838_v53  ;;  %v6859_v0 = vsel %vm910_vm5, %v23329_v56, %v6836_v11 }
 0x5f8   :  { %8063 = vrot.lane.b32.xlu1 %v17995_v6, %s14406_s20  ;;  %6902 = vmatprep.subr.bf16.mxu1 %v6860_v23 }
 0x5f9   :  { %v18439_v38 = vpop.permute.xlu0 %6841  ;;  %14031 = vmatmul.mubr.msk.bf16.gmra.mxu1 %vm2964_vm10, %v18391_v39 }
 0x5fa   :  { %14033 = vmatmul.mubr.msk.bf16.vlgmr.msra.gmra.mxu0 %vm2964_vm10, %v18367_v36  ;;  %6903 = vmatpush1.bf16.msra.mxu1 %v6859_v0  ;;  %v6824_v19 = vpop.permute.xlu1 %6823 }
 0x5fb   :  { %8051 = vrot.lane.b32.xlu0 %v17949_v2, %s14406_s20  ;;  %v6854_v16 = vsel %vm910_vm5, %v6824_v19, %v6826_v22  ;;  %v6853_v32 = vsel %vm910_vm5, %v23329_v56, %v6824_v19  ;;  %6680 = vmatprep.mubr.bf16.mxu1 %v23326_v3 }
 0x5fc   :  { %6733 = vmatprep.mubr.bf16.mxu0 %v23326_v3  ;;  %8079 = vrot.lane.b32.xlu1 %v18038_v30, %s14406_s20 }
 0x5fd   :  { %v6814_v34 = vpop.permute.xlu0 %6813  ;;  %6904 = vmatprep.subr.bf16.mxu1 %v6854_v16 }
 0x5fe   :  { %6905 = vmatpush1.bf16.msra.mxu1 %v6853_v32  ;;  %v6840_v36 = vpop.permute.xlu1 %6839 }
 0x5ff   :  { %8067 = vrot.lane.b32.xlu0 %v18015_v61, %s14406_s20  ;;  %v6862_v37 = vsel %vm910_vm5, %v6840_v36, %v18439_v38  ;;  %v6861_v17 = vsel %vm910_vm5, %v6838_v53, %v6840_v36  ;;  %v18654_v36 = vld [vmem:[%s23009_s6 + $0x70] sm:$0xff]  }
 0x600   :  { %8049 = vrot.lane.b32.xlu1 %v17878_v41, %s14406_s20  ;;  %6965 = vmatprep.subr.bf16.mxu0 %v6862_v37 }
 0x601   :  { %v6830_v52 = vpop.permute.xlu0 %6829  ;;  %14032 = vmatmul.mubr.msk.bf16.gmra.mxu1 %vm2964_vm10, %v18414_v44  ;;  %6966 = vmatpush1.bf16.msra.mxu0 %v6861_v17 }
 0x602   :  { %14034 = vmatmul.mubr.msk.bf16.gmra.mxu0 %vm2964_vm10, %v18391_v39  ;;  %v6812_v20 = vpop.permute.xlu1 %6811  ;;  %6924 = vmatprep.mubr.bf16.mxu1 %v23326_v3 }
 0x603   :  { %8053 = vrot.lane.b32.xlu0 %v17963_v1, %s14406_s20  ;;  %v6848_v58 = vsel %vm910_vm5, %v6812_v20, %v6814_v34  ;;  %v6847_v10 = vsel %vm910_vm5, %v23329_v56, %v6812_v20  ;;  %6743 = vmatprep.mubr.bf16.mxu0 %v23326_v3  ;;  %v8682_v20 = vld [vmem:[%s23010_s7 + $0x10] sm:$0xff] }
 0x604   :  { %8065 = vrot.lane.b32.xlu1 %v18001_v18, %s14406_s20  ;;  %6906 = vmatprep.subr.bf16.mxu1 %v6848_v58 }
 0x605   :  { %v6818_v46 = vpop.permute.xlu0 %6817  ;;  %6907 = vmatpush1.bf16.msra.mxu1 %v6847_v10 }
 0x606   :  { %v6828_v39 = vpop.permute.xlu1 %6827 }
 0x607   :  { %8400 = vrot.lane.b32.xlu0 %v17942_v47, %s14407_s28  ;;  %v6856_v29 = vsel %vm910_vm5, %v6828_v39, %v6830_v52  ;;  %v6855_v35 = vsel %vm910_vm5, %v6826_v22, %v6828_v39  ;;  %v8680_v39 = vld [vmem:[%s23010_s7] sm:$0xff] }
 0x608   :  { %8047 = vrot.lane.b32.xlu1 %v17862_v43, %s14406_s20  ;;  %6967 = vmatprep.subr.bf16.mxu0 %v6856_v29 }
 0x609   :  { %v6846_v45 = vpop.permute.xlu0 %6845  ;;  %14039 = vmatmul.mubr.msk.bf16.vlgmr.msra.gmra.mxu1 %vm2964_vm10, %v18479_v8  ;;  %6968 = vmatpush1.bf16.msra.mxu0 %v6855_v35 }
 0x60a   :  { %14035 = vmatmul.mubr.msk.bf16.gmra.mxu0 %vm2964_vm10, %v18414_v44  ;;  %v6816_v33 = vpop.permute.xlu1 %6815  ;;  %6934 = vmatprep.mubr.bf16.mxu1 %v23326_v3 }
 0x60b   :  { %8398 = vrot.lane.b32.xlu0 %v17929_v4, %s14407_s28  ;;  %v6850_v13 = vsel %vm910_vm5, %v6816_v33, %v6818_v46  ;;  %v6849_v15 = vsel %vm910_vm5, %v6814_v34, %v6816_v33  ;;  %6987 = vmatprep.mubr.bf16.mxu0 %v23326_v3  ;;  %v8684_v34 = vld [vmem:[%s23010_s7 + $0x20] sm:$0xff] }
 0x60c   :  { %8055 = vrot.lane.b32.xlu1 %v17978_v48, %s14406_s20  ;;  %6969 = vmatprep.subr.bf16.mxu0 %v6850_v13 }
 0x60d   :  { %v6834_v55 = vpop.permute.xlu0 %6833  ;;  %6970 = vmatpush1.bf16.msra.mxu0 %v6849_v15 }
 0x60e   :  { %v6844_v44 = vpop.permute.xlu1 %6843  ;;  %7157 = vmatprep.subr.bf16.mxu0 %v17942_v47 }
 0x60f   :  { %8081 = vrot.lane.b32.xlu0 %v18044_v12, %s14406_s20  ;;  %v6864_v26 = vsel %vm910_vm5, %v6844_v44, %v6846_v45  ;;  %v6863_v5 = vsel %vm910_vm5, %v18439_v38, %v6844_v44 }
 0x610   :  { %8069 = vrot.lane.b32.xlu1 %v18027_v40, %s14406_s20  ;;  %7028 = vmatprep.subr.bf16.mxu1 %v6864_v26 }
 0x611   :  { %v6822_v42 = vpop.permute.xlu0 %6821  ;;  %14040 = vmatmul.mubr.msk.bf16.gmra.mxu1 %vm2964_vm10, %v18502_v24 }
 0x612   :  { %14042 = vmatmul.mubr.msk.bf16.vlgmr.msra.gmra.mxu0 %vm2964_vm10, %v18479_v8  ;;  %7029 = vmatpush1.bf16.msra.mxu1 %v6863_v5  ;;  %v6832_v47 = vpop.permute.xlu1 %6831 }
 0x613   :  { %7158 = vmatpush1.bf16.msra.mxu0 %v17929_v4  ;;  %8388 = vrot.lane.b32.xlu0 %v17913_v7, %s14407_s28  ;;  %v6858_v53 = vsel %vm910_vm5, %v6832_v47, %v6834_v55  ;;  %v6857_v28 = vsel %vm910_vm5, %v6830_v52, %v6832_v47  ;;  %v18531_v4 = vld [vmem:[%s23009_s6 + $0x58] sm:$0xff]   ;;  %v8681_v52 = vld [vmem:[%s23010_s7 + $0x8] sm:$0xff] }
 0x614   :  { %7159 = vmatprep.subr.bf16.mxu0 %v17913_v7  ;;  %8402 = vrot.lane.b32.xlu1 %v18029_v14, %s14407_s28  ;;  %v23330_v55 = vld [vmem:[#allocation9_spill] sm:$0xff] }
 0x615   :  { %v18522_v21 = vpop.permute.xlu0 %7421  ;;  %7030 = vmatprep.subr.bf16.mxu1 %v6858_v53  ;;  %6944 = vmatprep.mubr.bf16.mxu1 %v23326_v3 }
 0x616   :  { %6997 = vmatprep.mubr.bf16.mxu0 %v23326_v3  ;;  %7031 = vmatpush1.bf16.msra.mxu1 %v6857_v28  ;;  %v6820_v7 = vpop.permute.xlu1 %6819 }
 0x617   :  { %7160 = vmatpush1.bf16.msra.mxu0 %v17903_v57  ;;  %8386 = vrot.lane.b32.xlu0 %v17903_v57, %s14407_s28  ;;  %v6852_v9 = vsel %vm910_vm5, %v6820_v7, %v6822_v42  ;;  %v6851_v22 = vsel %vm910_vm5, %v6818_v46, %v6820_v7 }
 0x618   :  { %7161 = vmatprep.subr.bf16.mxu0 %v17878_v41  ;;  %8057 = vrot.lane.b32.xlu1 %v17992_v31, %s14406_s20 }
 0x619   :  { %v18539_v11 = vpop.permute.xlu0 %7407  ;;  %7032 = vmatprep.subr.bf16.mxu1 %v6852_v9  ;;  %14041 = vmatmul.mubr.msk.bf16.gmra.mxu1 %vm2964_vm10, %v18531_v4 }
 0x61a   :  { %14043 = vmatmul.mubr.msk.bf16.gmra.mxu0 %vm2964_vm10, %v18502_v24  ;;  %7033 = vmatpush1.bf16.msra.mxu1 %v6851_v22  ;;  %v18548_v57 = vpop.permute.xlu1 %7419  ;;  %v18738_v22 = vld [vmem:[%s23009_s6 + $0x78] sm:$0xff]  }
 0x61b   :  { %7162 = vmatpush1.bf16.msra.mxu0 %v17862_v43  ;;  %8378 = vrot.lane.b32.xlu0 %v17949_v2, %s14407_s28 }
 0x61c   :  { %7220 = vmatprep.subr.bf16.mxu1 %v18034_v59  ;;  %7283 = vmatprep.subr.bf16.mxu0 %v18044_v12 }
 0x61d   :  { %v18554_v23 = vpop.permute.xlu0 %7423  ;;  %8390 = vrot.lane.b32.xlu1 %v17995_v6, %s14407_s28  ;;  %7007 = vmatprep.mubr.bf16.mxu0 %v23326_v3 }
 0x61e   :  { %7050 = vmatprep.mubr.bf16.mxu1 %v23326_v3  ;;  %v7418_v0 = vpop.permute.xlu1 %7417  ;;  %v7443_v13 = vsel %vm1477_vm6, %v18522_v21, %v18554_v23 }
 0x61f   :  { %8404 = vrot.lane.b32.xlu0 %v18034_v59, %s14407_s28 }
 0x621   :  { %v18562_v38 = vpop.permute.xlu0 %7405  ;;  %8376 = vrot.lane.b32.xlu1 %v17878_v41, %s14407_s28  ;;  %14045 = vmatmul.mubr.msk.bf16.vlgmr.msra.gmra.mxu1 %vm2964_vm10, %v18479_v8  ;;  %v18585_v41 = vld [vmem:[%s23009_s6 + $0x60] sm:$0xff]  }
 0x622   :  { %14044 = vmatmul.mubr.msk.bf16.gmra.mxu0 %vm2964_vm10, %v18531_v4  ;;  %7221 = vmatpush1.bf16.msra.mxu1 %v18029_v14  ;;  %v18571_v19 = vpop.permute.xlu1 %7409  ;;  %v7435_v8 = vsel %vm1477_vm6, %v18562_v38, %v18539_v11 }
 0x623   :  { %7060 = vmatprep.mubr.bf16.mxu1 %v23326_v3  ;;  %7222 = vmatprep.subr.bf16.mxu1 %v18001_v18  ;;  %v7436_v58 = vsel %vm1477_vm6, %v18539_v11, %v18571_v19 }
 0x624   :  { %8392 = vrot.lane.b32.xlu0 %v18001_v18, %s14407_s28  ;;  %7179 = vmatprep.mubr.bf16.mxu0 %v23326_v3 }
 0x625   :  { %v18577_v59 = vpop.permute.xlu0 %7397  ;;  %8374 = vrot.lane.b32.xlu1 %v17862_v43, %s14407_s28  ;;  %v7442_v43 = vsel %vm1477_vm6, %v18548_v57, %v18522_v21 }
 0x626   :  { %7223 = vmatpush1.bf16.msra.mxu1 %v17995_v6  ;;  %v18588_v14 = vpop.permute.xlu1 %7425 }
 0x627   :  { %7224 = vmatprep.subr.bf16.mxu1 %v17963_v1 }
 0x628   :  { %8408 = vrot.lane.b32.xlu0 %v18044_v12, %s14407_s28 }
 0x629   :  { %v18593_v18 = vpop.permute.xlu0 %7413  ;;  %8406 = vrot.lane.b32.xlu1 %v18038_v30, %s14407_s28  ;;  %14046 = vmatmul.mubr.msk.bf16.gmra.mxu1 %vm2964_vm10, %v18502_v24 }
 0x62a   :  { %14051 = vmatmul.mubr.msk.bf16.vlgmr.msra.gmra.mxu0 %vm2964_vm10, %v18585_v41  ;;  %7225 = vmatpush1.bf16.msra.mxu1 %v17949_v2  ;;  %v7396_v6 = vpop.permute.xlu1 %7395  ;;  %v18618_v2 = vld [vmem:[%s23009_s6 + $0x68] sm:$0xff]  }
 0x62b   :  { %7284 = vmatpush1.bf16.msra.mxu0 %v18038_v30  ;;  %7484 = vmatprep.subr.bf16.mxu1 %v7442_v43  ;;  %v7430_v29 = vsel %vm1477_vm6, %v7396_v6, %v18577_v59 }
 0x62c   :  { %7285 = vmatprep.subr.bf16.mxu0 %v18027_v40  ;;  %8382 = vrot.lane.b32.xlu0 %v17978_v48, %s14407_s28 }
 0x62d   :  { %v18609_v12 = vpop.permute.xlu0 %7399  ;;  %8394 = vrot.lane.b32.xlu1 %v18015_v61, %s14407_s28  ;;  %7070 = vmatprep.mubr.bf16.mxu1 %v23326_v3 }
 0x62e   :  { %7189 = vmatprep.mubr.bf16.mxu0 %v23326_v3  ;;  %v7412_v30 = vpop.permute.xlu1 %7411  ;;  %v7431_v28 = vsel %vm1477_vm6, %v18577_v59, %v18609_v12 }
 0x62f   :  { %7286 = vmatpush1.bf16.msra.mxu0 %v18015_v61  ;;  %v8685_v61 = vld [vmem:[%s23010_s7 + $0x28] sm:$0xff]  ;;  %v7438_v15 = vsel %vm1477_vm6, %v7412_v30, %v18593_v18  ;;  %v7437_v5 = vsel %vm1477_vm6, %v18571_v19, %v7412_v30 }
 0x630   :  { %7287 = vmatprep.subr.bf16.mxu0 %v17992_v31  ;;  %8384 = vrot.lane.b32.xlu0 %v17992_v31, %s14407_s28  ;;  %v7444_v31 = vsel %vm1477_vm6, %v18554_v23, %v18588_v14 }
 0x631   :  { %v18624_v16 = vpop.permute.xlu0 %7746  ;;  %8380 = vrot.lane.b32.xlu1 %v17963_v1, %s14407_s28  ;;  %14047 = vmatmul.mubr.msk.bf16.gmra.mxu1 %vm2964_vm10, %v18531_v4 }
 0x632   :  { %14052 = vmatmul.mubr.msk.bf16.gmra.mxu0 %vm2964_vm10, %v18618_v2  ;;  %v7394_v32 = vpop.permute.xlu1 %7393  ;;  %7242 = vmatprep.mubr.bf16.mxu1 %v23326_v3 }
 0x633   :  { %7288 = vmatpush1.bf16.msra.mxu0 %v17978_v48  ;;  %7199 = vmatprep.mubr.bf16.mxu0 %v23326_v3  ;;  %v8683_v48 = vld [vmem:[%s23010_s7 + $0x18] sm:$0xff]  ;;  %v7429_v33 = vsel %vm1477_vm6, %v7394_v32, %v7396_v6 }
 0x634   :  { %7547 = vmatprep.subr.bf16.mxu0 %v7444_v31  ;;  %8713 = vperm.xlu0 %14261, %v8685_v61  }
 0x635   :  { %v18641_v1 = vpop.permute.xlu0 %7744  ;;  %8396 = vrot.lane.b32.xlu1 %v18027_v40, %s14407_s28  ;;  %v7441_v40 = vsel %vm1477_vm6, %v7418_v0, %v18548_v57 }
 0x636   :  { %v18656_v37 = vpop.permute.xlu1 %7401 }
 0x637   :  { %v7432_v42 = vsel %vm1477_vm6, %v18609_v12, %v18656_v37  ;;  %v18772_v12 = vld [vmem:[%s23009_s6 + $0x80] sm:$0xff]  }
 0x638   :  { %8703 = vperm.xlu0 %14261, %v8683_v48  }
 0x639   :  { %v18658_v17 = vpop.permute.xlu0 %7427  ;;  %8708 = vperm.xlu1 %14262, %v8684_v34   ;;  %14054 = vmatmul.mubr.msk.bf16.vlgmr.msra.gmra.mxu1 %vm2964_vm10, %v18585_v41 }
 0x63a   :  { %14053 = vmatmul.mubr.msk.bf16.gmra.mxu0 %vm2964_vm10, %v18654_v36  ;;  %7485 = vmatpush1.bf16.msra.mxu1 %v7441_v40  ;;  %v18675_v10 = vpop.permute.xlu1 %7415  ;;  %v7446_v24 = vsel %vm1477_vm6, %v18658_v17, %v23330_v55  ;;  %v7445_v38 = vsel %vm1477_vm6, %v18588_v14, %v18658_v17  ;;  %v18809_v17 = vld [vmem:[%s23009_s6 + $0x88] sm:$0xff]  }
 0x63b   :  { %7252 = vmatprep.mubr.bf16.mxu1 %v23326_v3  ;;  %7486 = vmatprep.subr.bf16.mxu1 %v7436_v58  ;;  %v7440_v19 = vsel %vm1477_vm6, %v18675_v10, %v23330_v55  ;;  %v7439_v14 = vsel %vm1477_vm6, %v18593_v18, %v18675_v10  ;;  %v7768_v18 = vsel %vm1771_vm7, %v18641_v1, %v18624_v16 }
 0x63c   :  { %7305 = vmatprep.mubr.bf16.mxu0 %v23326_v3  ;;  %8693 = vperm.xlu0 %14261, %v8681_v52  }
 0x63d   :  { %v18679_v46 = vpop.permute.xlu0 %7734  ;;  %8698 = vperm.xlu1 %14262, %v8682_v20  }
 0x63e   :  { %7487 = vmatpush1.bf16.msra.mxu1 %v7435_v8  ;;  %v18689_v35 = vpop.permute.xlu1 %7748 }
 0x63f   :  { %7488 = vmatprep.subr.bf16.mxu1 %v7430_v29  ;;  %v7769_v21 = vsel %vm1771_vm7, %v18624_v16, %v18689_v35 }
 0x641   :  { %v18691_v45 = vpop.permute.xlu0 %7732  ;;  %8688 = vperm.xlu1 %14262, %v8680_v39   ;;  %14055 = vmatmul.mubr.msk.bf16.gmra.mxu1 %vm2964_vm10, %v18618_v2 }
 0x642   :  { %14057 = vmatmul.mubr.msk.bf16.vlgmr.msra.gmra.mxu0 %vm2964_vm10, %v18585_v41  ;;  %7489 = vmatpush1.bf16.msra.mxu1 %v7429_v33  ;;  %v7404_v44 = vpop.permute.xlu1 %7403 }
 0x643   :  { %7548 = vmatpush1.bf16.msra.mxu0 %v7443_v13  ;;  %7610 = vmatprep.subr.bf16.mxu1 %v7446_v24  ;;  %v7433_v32 = vsel %vm1477_vm6, %v18656_v37, %v7404_v44  ;;  %v7762_v37 = vsel %vm1771_vm7, %v18691_v45, %v18679_v46 }
 0x644   :  { %7549 = vmatprep.subr.bf16.mxu0 %v7438_v15  ;;  %7262 = vmatprep.mubr.bf16.mxu1 %v23326_v3 }
 0x645   :  { %v18706_v26 = vpop.permute.xlu0 %7724  ;;  %7315 = vmatprep.mubr.bf16.mxu0 %v23326_v3 }
 0x646   :  { %v18715_v47 = vpop.permute.xlu1 %7736 }
 0x647   :  { %7550 = vmatpush1.bf16.msra.mxu0 %v7437_v5  ;;  %v7763_v48 = vsel %vm1771_vm7, %v18679_v46, %v18715_v47  ;;  %v23331_v46 = vld [vmem:[#allocation10_spill] sm:$0xff] }
 0x648   :  { %7551 = vmatprep.subr.bf16.mxu0 %v7432_v42 }
 0x649   :  { %v18717_v53 = vpop.permute.xlu0 %7750  ;;  %14056 = vmatmul.mubr.msk.bf16.gmra.mxu1 %vm2964_vm10, %v18654_v36 }
 0x64a   :  { %14058 = vmatmul.mubr.msk.bf16.gmra.mxu0 %vm2964_vm10, %v18618_v2  ;;  %v7723_v4 = vpop.permute.xlu1 %7722  ;;  %7506 = vmatprep.mubr.bf16.mxu1 %v23326_v3  ;;  %v7434_v2 = vsel %vm1477_vm6, %v7404_v44, %v23330_v55  ;;  %v7770_v5 = vsel %vm1771_vm7, %v18689_v35, %v18717_v53 }
 0x64b   :  { %7552 = vmatpush1.bf16.msra.mxu0 %v7431_v28  ;;  %7325 = vmatprep.mubr.bf16.mxu0 %v23326_v3  ;;  %v7757_v40 = vsel %vm1771_vm7, %v7723_v4, %v18706_v26 }
 0x64c   :  { %7811 = vmatprep.subr.bf16.mxu0 %v7769_v21  ;;  %v18733_v9 = vpop.f32.mrf.mxu0 }
 0x64d   :  { %v18731_v7 = vpop.permute.xlu0 %7738 }
 0x64e   :  { %v7721_v11 = vpop.permute.xlu1 %7720  ;;  %v18740_v57 = vpop.f32.mrf.mxu0  ;;  %v7764_v35 = vsel %vm1771_vm7, %v18715_v47, %v18731_v7 }
 0x64f   :  { %v7756_v10 = vsel %vm1771_vm7, %v7721_v11, %v7723_v4 }
 0x650   :  { %v18744_v0 = vpop.f32.mrf.mxu0 }
 0x651   :  { %v18742_v23 = vpop.permute.xlu0 %7728  ;;  %14063 = vmatmul.mubr.msk.bf16.vlgmr.msra.gmra.mxu1 %vm2964_vm10, %v18738_v22 }
 0x652   :  { %14059 = vmatmul.mubr.msk.bf16.gmra.mxu0 %vm2964_vm10, %v18654_v36  ;;  %7611 = vmatpush1.bf16.msra.mxu1 %v7445_v38  ;;  %v18756_v59 = vpop.permute.xlu1 %7752  ;;  %v18759_v41 = vpop.f32.mrf.mxu0 }
 0x653   :  { %7516 = vmatprep.mubr.bf16.mxu1 %v23326_v3  ;;  %7612 = vmatprep.subr.bf16.mxu1 %v7440_v19  ;;  %v7771_v34 = vsel %vm1771_vm7, %v18717_v53, %v18756_v59  ;;  %v18873_v53 = vld [vmem:[%s23009_s6 + $0x90] sm:$0xff]  }
 0x654   :  { %7569 = vmatprep.mubr.bf16.mxu0 %v23326_v3  ;;  %v18764_v6 = vpop.f32.mrf.mxu0 }
 0x655   :  { %v18762_v43 = vpop.permute.xlu0 %7754 }
 0x656   :  { %7613 = vmatpush1.bf16.msra.mxu1 %v7439_v14  ;;  %v18776_v30 = vpop.permute.xlu1 %7740  ;;  %v18778_v61 = vpop.f32.mrf.mxu0  ;;  %v7773_v8 = vsel %vm1771_vm7, %v18762_v43, %v23331_v46 }
 0x657   :  { %7614 = vmatprep.subr.bf16.mxu1 %v7434_v2  ;;  %v7765_v42 = vsel %vm1771_vm7, %v18731_v7, %v18776_v30 }
 0x658   :  { %v18797_v1 = vpop.f32.mrf.mxu0 }
 0x659   :  { %v18780_v31 = vpop.permute.xlu0 %7730  ;;  %14064 = vmatmul.mubr.msk.bf16.gmra.mxu1 %vm2964_vm10, %v18772_v12 }
 0x65a   :  { %14066 = vmatmul.mubr.msk.bf16.vlgmr.msra.gmra.mxu0 %vm2964_vm10, %v18738_v22  ;;  %7615 = vmatpush1.bf16.msra.mxu1 %v7433_v32  ;;  %v7727_v16 = vpop.permute.xlu1 %7726  ;;  %v18815_v20 = vpop.f32.mrf.mxu0 }
 0x65b   :  { %7812 = vmatpush1.bf16.msra.mxu0 %v7768_v18  ;;  %7874 = vmatprep.subr.bf16.mxu1 %v7771_v34  ;;  %v7759_v38 = vsel %vm1771_vm7, %v7727_v16, %v18742_v23  ;;  %v7758_v7 = vsel %vm1771_vm7, %v18706_v26, %v7727_v16 }
 0x65c   :  { %7813 = vmatprep.subr.bf16.mxu0 %v7763_v48  ;;  %7526 = vmatprep.mubr.bf16.mxu1 %v23326_v3  ;;  %v7772_v48 = vsel %vm1771_vm7, %v18756_v59, %v18762_v43 }
 0x65d   :  { %v18799_v36 = vpop.permute.xlu0 %8075  ;;  %7579 = vmatprep.mubr.bf16.mxu0 %v23326_v3  ;;  %v18830_v29 = vpop.f32.mrf.mxu0 }
 0x65e   :  { %v18813_v52 = vpop.permute.xlu1 %7742 }
 0x65f   :  { %7814 = vmatpush1.bf16.msra.mxu0 %v7762_v37  ;;  %v18839_v15 = vpop.f32.mrf.mxu0  ;;  %v7767_v34 = vsel %vm1771_vm7, %v18813_v52, %v23331_v46 }
 0x660   :  { %7815 = vmatprep.subr.bf16.mxu0 %v7757_v40 }
 0x661   :  { %v18817_v58 = vpop.permute.xlu0 %8061  ;;  %14065 = vmatmul.mubr.msk.bf16.gmra.mxu1 %vm2964_vm10, %v18809_v17  ;;  %v18860_v4 = vpop.f32.mrf.mxu0 }
 0x662   :  { %14067 = vmatmul.mubr.msk.bf16.gmra.mxu0 %vm2964_vm10, %v18772_v12  ;;  %v18827_v39 = vpop.permute.xlu1 %8073  ;;  %7632 = vmatprep.mubr.bf16.mxu1 %v23326_v3 }
 0x663   :  { %7816 = vmatpush1.bf16.msra.mxu0 %v7756_v10  ;;  %7589 = vmatprep.mubr.bf16.mxu0 %v23326_v3  ;;  %v18881_v2 = vpop.f32.mrf.mxu0  ;;  %v7766_v10 = vsel %vm1771_vm7, %v18776_v30, %v18813_v52 }
 0x664   :  { %7937 = vmatprep.subr.bf16.mxu0 %v7773_v8  ;;  %v18924_v8 = vld [vmem:[%s23009_s6 + $0x98] sm:$0xff]  }
 0x665   :  { %v18833_v45 = vpop.permute.xlu0 %8077 }
 0x666   :  { %v18835_v33 = vpop.f32.mrf.mxu1  ;;  %v18837_v13 = vpop.permute.xlu1 %8071 }
 0x667   :  { %v8095_v55 = vsel %vm2065_vm8, %v18837_v13, %v18827_v39 }
 0x668   :  { %v18843_v44 = vpop.f32.mrf.mxu1 }
 0x669   :  { %v18841_v24 = vpop.permute.xlu0 %8059  ;;  %14069 = vmatmul.mubr.msk.bf16.vlgmr.msra.gmra.mxu1 %vm2964_vm10, %v18738_v22 }
 0x66a   :  { %14068 = vmatmul.mubr.msk.bf16.gmra.mxu0 %vm2964_vm10, %v18809_v17  ;;  %7875 = vmatpush1.bf16.msra.mxu1 %v7770_v5  ;;  %v18855_v28 = vpop.f32.mrf.mxu1  ;;  %v18857_v21 = vpop.permute.xlu1 %8063  ;;  %v7761_v5 = vsel %vm1771_vm7, %v18780_v31, %v23331_v46 }
 0x66b   :  { %7642 = vmatprep.mubr.bf16.mxu1 %v23326_v3  ;;  %7876 = vmatprep.subr.bf16.mxu1 %v7765_v42  ;;  %v8090_v62 = vsel %vm2065_vm8, %v18817_v58, %v18857_v21 }
 0x66c   :  { %7833 = vmatprep.mubr.bf16.mxu0 %v23326_v3  ;;  %v18865_v11 = vpop.f32.mrf.mxu1 }
 0x66d   :  { %v18863_v22 = vpop.permute.xlu0 %8051 }
 0x66e   :  { %7877 = vmatpush1.bf16.msra.mxu1 %v7764_v35  ;;  %v18877_v19 = vpop.f32.mrf.mxu1  ;;  %v18879_v14 = vpop.permute.xlu1 %8079 }
 0x66f   :  { %7878 = vmatprep.subr.bf16.mxu1 %v7759_v38 }
 0x670   :  { %v18885_v32 = vpop.f32.mrf.mxu1  ;;  %v18887_v47 = vpop.f32.mrf.mxu0 }
 0x671   :  { %v18883_v18 = vpop.permute.xlu0 %8067  ;;  %14070 = vmatmul.mubr.msk.bf16.gmra.mxu1 %vm2964_vm10, %v18772_v12  ;;  %v8096_v12 = vsel %vm2065_vm8, %v18827_v39, %v18799_v36 }
 0x672   :  { %14075 = vmatmul.mubr.msk.bf16.vlgmr.msra.gmra.mxu0 %vm2964_vm10, %v18873_v53  ;;  %7879 = vmatpush1.bf16.msra.mxu1 %v7758_v7  ;;  %v18904_v37 = vpop.f32.mrf.mxu1  ;;  %v18906_v40 = vpop.permute.xlu1 %8049 }
 0x673   :  { %7938 = vmatpush1.bf16.msra.mxu0 %v7772_v48  ;;  %8138 = vmatprep.subr.bf16.mxu1 %v8096_v12  ;;  %v18908_v26 = vpop.f32.mrf.mxu0  ;;  %v7760_v48 = vsel %vm1771_vm7, %v18742_v23, %v18780_v31  ;;  %v18964_v23 = vld [vmem:[%s23009_s6 + $0xa0] sm:$0xff]  }
 0x674   :  { %7939 = vmatprep.subr.bf16.mxu0 %v7767_v34  ;;  %v18912_v59 = vpop.f32.mrf.mxu1  ;;  %7652 = vmatprep.mubr.bf16.mxu1 %v23326_v3  ;;  %v8098_v34 = vsel %vm2065_vm8, %v18833_v45, %v18879_v14 }
 0x675   :  { %v18910_v16 = vpop.permute.xlu0 %8053  ;;  %7843 = vmatprep.mubr.bf16.mxu0 %v23326_v3  ;;  %v18916_v43 = vpop.f32.mrf.mxu0 }
 0x676   :  { %v18929_v42 = vpop.permute.xlu1 %8065 }
 0x677   :  { %7940 = vmatpush1.bf16.msra.mxu0 %v7766_v10  ;;  %v18931_v35 = vpop.f32.mrf.mxu1  ;;  %v18933_v38 = vpop.f32.mrf.mxu0 }
 0x678   :  { %7941 = vmatprep.subr.bf16.mxu0 %v7761_v5 }
 0x679   :  { %v18935_v7 = vpop.permute.xlu0 %8400  ;;  %v18937_v30 = vpop.f32.mrf.mxu1  ;;  %14071 = vmatmul.mubr.msk.bf16.gmra.mxu1 %vm2964_vm10, %v18809_v17 }
 0x67a   :  { %v18939_v52 = vpop.f32.mrf.mxu0  ;;  %14076 = vmatmul.mubr.msk.bf16.gmra.mxu0 %vm2964_vm10, %v18924_v8  ;;  %v8048_v12 = vpop.permute.xlu1 %8047  ;;  %7896 = vmatprep.mubr.bf16.mxu1 %v23326_v3 }
 0x67b   :  { %7942 = vmatpush1.bf16.msra.mxu0 %v7760_v48  ;;  %7853 = vmatprep.mubr.bf16.mxu0 %v23326_v3  ;;  %v18952_v10 = vpop.f32.mrf.mxu1 }
 0x67c   :  { %8201 = vmatprep.subr.bf16.mxu0 %v8098_v34  ;;  %v18954_v5 = vpop.f32.mrf.mxu0 }
 0x67d   :  { %v18957_v17 = vpop.permute.xlu0 %8398  ;;  %v18968_v48 = vpop.f32.mrf.mxu1 }
 0x67e   :  { %v18959_v46 = vpop.f32.mrf.mxu0  ;;  %v18966_v31 = vpop.permute.xlu1 %8055 }
 0x680   :  { %v18970_v34 = vpop.f32.mrf.mxu0 }
 0x681   :  { %v6308_v51 = vpop.f32.mrf.mxu1  ;;  %14078 = vmatmul.mubr.msk.bf16.vlgmr.msra.gmra.mxu1 %vm2964_vm10, %v18873_v53  ;;  %v18981_v63 = vpop.permute.xlu0 %8081 }
 0x682   :  { %v18975_v56 = vpop.f32.mrf.mxu0  ;;  %14077 = vmatmul.mubr.msk.bf16.gmra.mxu0 %vm2964_vm10, %v18964_v23  ;;  %v18984_v54 = vadd.f32 %v6308_v51, %v18733_v9  ;;  %8139 = vmatpush1.bf16.msra.mxu1 %v8095_v55  ;;  %v18989_v39 = vpop.permute.xlu1 %8069  ;;  %v8089_v51 = vsel %vm2065_vm8, %v18841_v24, %v18817_v58  ;;  %v8083_v58 = vsel %vm2065_vm8, %v8048_v12, %v18906_v40 }
 0x683   :  { %7906 = vmatprep.mubr.bf16.mxu1 %v23326_v3  ;;  %8140 = vmatprep.subr.bf16.mxu1 %v8090_v62  ;;  %v6310_v27 = vpop.f32.mrf.mxu1  ;;  %v8084_v62 = vsel %vm2065_vm8, %v18906_v40, %v18863_v22  ;;  %v23332_v40 = vld [vmem:[#allocation11_spill] sm:$0xff] }
 0x684   :  { %v18992_v13 = vpop.f32.mrf.mxu0  ;;  %7959 = vmatprep.mubr.bf16.mxu0 %v23326_v3  ;;  %v18996_v25 = vadd.f32 %v6310_v27, %v18740_v57  ;;  %v8100_v12 = vsel %vm2065_vm8, %v18981_v63, %v23332_v40 }
 0x685   :  { %v6312_v9 = vpop.f32.mrf.mxu1  ;;  %v19015_v24 = vpop.permute.xlu0 %8388 }
 0x686   :  { %v19001_v55 = vpop.f32.mrf.mxu0  ;;  %8141 = vmatpush1.bf16.msra.mxu1 %v8089_v51  ;;  %v19006_v50 = vpop.permute.xlu1 %8402  ;;  %v19009_v60 = vadd.f32 %v6312_v9, %v18744_v0  ;;  %v8097_v0 = vsel %vm2065_vm8, %v18799_v36, %v18833_v45 }
 0x687   :  { %8142 = vmatprep.subr.bf16.mxu1 %v8084_v62  ;;  %v6314_v57 = vpop.f32.mrf.mxu1 }
 0x688   :  { %v19011_v27 = vpop.f32.mrf.mxu0  ;;  %v19018_v51 = vadd.f32 %v6314_v57, %v18759_v41  ;;  %v8092_v41 = vsel %vm2065_vm8, %v18929_v42, %v18883_v18 }
 0x689   :  { %14079 = vmatmul.mubr.msk.bf16.gmra.mxu1 %vm2964_vm10, %v18924_v8  ;;  %v6318_v9 = vpop.f32.mrf.mxu1 }
 0x68a   :  { %v6371_v49 = vpop.f32.mrf.mxu0  ;;  %14081 = vmatmul.mubr.msk.bf16.vlgmr.msra.gmra.mxu0 %vm2964_vm10, %v18873_v53  ;;  %8143 = vmatpush1.bf16.msra.mxu1 %v8083_v58  ;;  %v19036_v57 = vpop.permute.xlu1 %8057  ;;  %v19039_v53 = vadd.f32 %v6318_v9, %v18764_v6  ;;  %v8091_v6 = vsel %vm2065_vm8, %v18857_v21, %v18929_v42 }
 0x68b   :  { %v19028_v62 = vadd.f32 %v6371_v49, %v18835_v33  ;;  %8202 = vmatpush1.bf16.msra.mxu0 %v8097_v0  ;;  %8264 = vmatprep.subr.bf16.mxu1 %v8100_v12  ;;  %v6320_v49 = vpop.f32.mrf.mxu1  ;;  %v19060_v12 = vpop.permute.xlu0 %8386 }
 0x68c   :  { %8203 = vmatprep.subr.bf16.mxu0 %v8092_v41  ;;  %v6373_v36 = vpop.f32.mrf.mxu0  ;;  %7916 = vmatprep.mubr.bf16.mxu1 %v23326_v3  ;;  %v19047_v33 = vadd.f32 %v6320_v49, %v18778_v61 }
 0x68d   :  { %v19042_v45 = vadd.f32 %v6373_v36, %v18843_v44  ;;  %7969 = vmatprep.mubr.bf16.mxu0 %v23326_v3  ;;  %v6322_v0 = vpop.f32.mrf.mxu1  ;;  %v8086_v44 = vsel %vm2065_vm8, %v18910_v16, %v18966_v31 }
 0x68e   :  { %v6375_v58 = vpop.f32.mrf.mxu0  ;;  %v19063_v61 = vadd.f32 %v6322_v0, %v18797_v1  ;;  %v8085_v1 = vsel %vm2065_vm8, %v18863_v22, %v18910_v16 }
 0x68f   :  { %v19053_v9 = vadd.f32 %v6375_v58, %v18855_v28  ;;  %8204 = vmatpush1.bf16.msra.mxu0 %v8091_v6  ;;  %v19058_v41 = vpop.permute.xlu1 %8390  ;;  %v6324_v49 = vpop.f32.mrf.mxu1 }
 0x690   :  { %8205 = vmatprep.subr.bf16.mxu0 %v8086_v44  ;;  %v6377_v36 = vpop.f32.mrf.mxu0  ;;  %v19069_v28 = vadd.f32 %v6324_v49, %v18815_v20  ;;  %v8423_v20 = vsel %vm2359_vm9, %v18935_v7, %v19006_v50  ;;  %v19094_v16 = vpop.permute.xlu0 %8378 }
 0x691   :  { %v19066_v21 = vadd.f32 %v6377_v36, %v18865_v11  ;;  %14080 = vmatmul.mubr.msk.bf16.gmra.mxu1 %vm2964_vm10, %v18964_v23  ;;  %v6328_v58 = vpop.f32.mrf.mxu1 }
 0x692   :  { %v6381_v42 = vpop.f32.mrf.mxu0  ;;  %14082 = vmatmul.mubr.msk.bf16.gmra.mxu0 %vm2964_vm10, %v18924_v8  ;;  %v19086_v11 = vadd.f32 %v6328_v58, %v18830_v29  ;;  %8160 = vmatprep.mubr.bf16.mxu1 %v23326_v3  ;;  %v19102_v29 = vld [vmem:[%s23009_s6 + $0xa8] sm:$0xff]  }
 0x693   :  { %v19079_v6 = vadd.f32 %v6381_v42, %v18877_v19  ;;  %8206 = vmatpush1.bf16.msra.mxu0 %v8085_v1  ;;  %7979 = vmatprep.mubr.bf16.mxu0 %v23326_v3  ;;  %v19088_v0 = vpop.permute.xlu1 %8376  ;;  %v6330_v22 = vpop.f32.mrf.mxu1 }
 0x694   :  { %8465 = vmatprep.subr.bf16.mxu0 %v8423_v20  ;;  %v6383_v8 = vpop.f32.mrf.mxu0  ;;  %v19097_v44 = vadd.f32 %v6330_v22, %v18839_v15 }
 0x695   :  { %v19092_v19 = vadd.f32 %v6383_v8, %v18885_v32  ;;  %v6332_v49 = vpop.f32.mrf.mxu1 }
 0x696   :  { %v6385_v36 = vpop.f32.mrf.mxu0  ;;  %v19108_v1 = vadd.f32 %v6332_v49, %v18860_v4  ;;  %v8099_v4 = vsel %vm2065_vm8, %v18879_v14, %v18981_v63 }
 0x697   :  { %v19105_v42 = vadd.f32 %v6385_v36, %v18904_v37  ;;  %v6334_v58 = vpop.f32.mrf.mxu1  ;;  %v19116_v8 = vpop.permute.xlu1 %8374 }
 0x698   :  { %v6387_v32 = vpop.f32.mrf.mxu0  ;;  %v19114_v15 = vadd.f32 %v6334_v58, %v18881_v2  ;;  %v8094_v2 = vsel %vm2065_vm8, %v18989_v39, %v23332_v40  ;;  %v19132_v36 = vpop.permute.xlu0 %8404  ;;  %v8093_v58 = vsel %vm2065_vm8, %v18883_v18, %v18989_v39 }
 0x699   :  { %v19111_v20 = vadd.f32 %v6387_v32, %v18912_v59  ;;  %14087 = vmatmul.mubr.msk.bf16.vlgmr.msra.gmra.mxu1 %vm2964_vm10, %v19102_v29  ;;  %v6434_v59 = vpop.f32.mrf.mxu1 }
 0x69a   :  { %v6391_v22 = vpop.f32.mrf.mxu0  ;;  %14083 = vmatmul.mubr.msk.bf16.gmra.mxu0 %vm2964_vm10, %v18964_v23  ;;  %8265 = vmatpush1.bf16.msra.mxu1 %v8099_v4  ;;  %v19135_v23 = vadd.f32 %v6434_v59, %v18887_v47  ;;  %v19150_v47 = vld [vmem:[%s23009_s6 + $0xb0] sm:$0xff]  }
 0x69b   :  { %v19126_v37 = vadd.f32 %v6391_v22, %v18931_v35  ;;  %8170 = vmatprep.mubr.bf16.mxu1 %v23326_v3  ;;  %8266 = vmatprep.subr.bf16.mxu1 %v8094_v2  ;;  %v6436_v14 = vpop.f32.mrf.mxu1 }
 0x69c   :  { %v6393_v49 = vpop.f32.mrf.mxu0  ;;  %8223 = vmatprep.mubr.bf16.mxu0 %v23326_v3  ;;  %v19142_v35 = vadd.f32 %v6436_v14, %v18908_v26  ;;  %v8088_v26 = vsel %vm2065_vm8, %v19036_v57, %v23332_v40 }
 0x69d   :  { %v19139_v63 = vadd.f32 %v6393_v49, %v18937_v30  ;;  %v6438_v4 = vpop.f32.mrf.mxu1  ;;  %v19158_v30 = vpop.permute.xlu1 %8406 }
 0x69e   :  { %v6395_v32 = vpop.f32.mrf.mxu0  ;;  %8267 = vmatpush1.bf16.msra.mxu1 %v8093_v58  ;;  %v19161_v59 = vadd.f32 %v6438_v4, %v18916_v43  ;;  %v19169_v49 = vpop.permute.xlu0 %8392  ;;  %v8087_v43 = vsel %vm2065_vm8, %v18966_v31, %v19036_v57  ;;  %v8416_v4 = vsel %vm2359_vm9, %v19060_v12, %v19015_v24 }
 0x69f   :  { %v19153_v22 = vadd.f32 %v6395_v32, %v18952_v10  ;;  %8268 = vmatprep.subr.bf16.mxu1 %v8088_v26  ;;  %v6440_v2 = vpop.f32.mrf.mxu1  ;;  %v8422_v10 = vsel %vm2359_vm9, %v18957_v17, %v18935_v7  ;;  %v8425_v7 = vsel %vm2359_vm9, %v19132_v36, %v19158_v30 }
 0x6a0   :  { %v6397_v18 = vpop.f32.mrf.mxu0  ;;  %v19172_v14 = vadd.f32 %v6440_v2, %v18933_v38  ;;  %v8417_v38 = vsel %vm2359_vm9, %v19015_v24, %v19058_v41 }
 0x6a1   :  { %v19164_v39 = vadd.f32 %v6397_v18, %v18968_v48  ;;  %14088 = vmatmul.mubr.msk.bf16.gmra.mxu1 %vm2964_vm10, %v19150_v47  ;;  %v6444_v48 = vpop.f32.mrf.mxu1  ;;  %v19207_v18 = vld [vmem:[%s23009_s6 + $0xb8] sm:$0xff]  }
 0x6a2   :  { %v6599_v32 = vpop.f32.mrf.mxu0  ;;  %14090 = vmatmul.mubr.msk.bf16.vlgmr.msra.gmra.mxu0 %vm2964_vm10, %v19102_v29  ;;  %8269 = vmatpush1.bf16.msra.mxu1 %v8087_v43  ;;  %v19191_v17 = vadd.f32 %v6444_v48, %v18939_v52 }
 0x6a3   :  { %v19182_v58 = vadd.f32 %v6599_v32, %v18984_v54  ;;  %8466 = vmatpush1.bf16.msra.mxu0 %v8422_v10  ;;  %8528 = vmatprep.subr.bf16.mxu1 %v8425_v7  ;;  %v6446_v57 = vpop.f32.mrf.mxu1  ;;  %v8411_v10 = vsel %vm2359_vm9, %v19088_v0, %v19094_v16  ;;  %v19215_v32 = vpop.permute.xlu0 %8408 }
 0x6a4   :  { %8467 = vmatprep.subr.bf16.mxu0 %v8417_v38  ;;  %v6601_v31 = vpop.f32.mrf.mxu0  ;;  %8180 = vmatprep.mubr.bf16.mxu1 %v23326_v3  ;;  %v19202_v26 = vadd.f32 %v6446_v57, %v18954_v5 }
 0x6a5   :  { %v19194_v54 = vadd.f32 %v6601_v31, %v18996_v25  ;;  %8233 = vmatprep.mubr.bf16.mxu0 %v23326_v3  ;;  %v6448_v2 = vpop.f32.mrf.mxu1 }
 0x6a6   :  { %v6603_v52 = vpop.f32.mrf.mxu0  ;;  %v19218_v5 = vadd.f32 %v6448_v2, %v18959_v46 }
 0x6a7   :  { %v19210_v25 = vadd.f32 %v6603_v52, %v19009_v60  ;;  %8468 = vmatpush1.bf16.msra.mxu0 %v8416_v4  ;;  %v6450_v12 = vpop.f32.mrf.mxu1  ;;  %v8410_v60 = vsel %vm2359_vm9, %v19116_v8, %v19088_v0 }
 0x6a8   :  { %8469 = vmatprep.subr.bf16.mxu0 %v8411_v10  ;;  %v6605_v24 = vpop.f32.mrf.mxu0  ;;  %v19227_v48 = vadd.f32 %v6450_v12, %v18970_v34  ;;  %v19240_v34 = vpop.permute.xlu1 %8394 }
 0x6a9   :  { %v19221_v43 = vadd.f32 %v6605_v24, %v19018_v51  ;;  %14089 = vmatmul.mubr.msk.bf16.gmra.mxu1 %vm2964_vm10, %v19207_v18  ;;  %v6454_v46 = vpop.f32.mrf.mxu1  ;;  %v23333_v51 = vld [vmem:[#allocation12_spill] sm:$0xff] }
 0x6aa   :  { %v6609_v38 = vpop.f32.mrf.mxu0  ;;  %14091 = vmatmul.mubr.msk.bf16.gmra.mxu0 %vm2964_vm10, %v19150_v47  ;;  %v8427_v31 = vsel %vm2359_vm9, %v19215_v32, %v23333_v51  ;;  %v19243_v0 = vadd.f32 %v6454_v46, %v18975_v56  ;;  %8286 = vmatprep.mubr.bf16.mxu1 %v23326_v3 }
 0x6ab   :  { %v19234_v7 = vadd.f32 %v6609_v38, %v19039_v53  ;;  %8470 = vmatpush1.bf16.msra.mxu0 %v8410_v60  ;;  %8243 = vmatprep.mubr.bf16.mxu0 %v23326_v3  ;;  %v6456_v57 = vpop.f32.mrf.mxu1 }
 0x6ac   :  { %8591 = vmatprep.subr.bf16.mxu0 %v8427_v31  ;;  %v6611_v8 = vpop.f32.mrf.mxu0  ;;  %v19250_v4 = vadd.f32 %v6456_v57, %v18992_v13  ;;  %v8381_v38 = vpop.permute.xlu1 %8380  ;;  %v8424_v13 = vsel %vm2359_vm9, %v19006_v50, %v19132_v36  ;;  %v8418_v57 = vsel %vm2359_vm9, %v19058_v41, %v19169_v49 }
 0x6ad   :  { %v19247_v53 = vadd.f32 %v6611_v8, %v19047_v33  ;;  %v6458_v2 = vpop.f32.mrf.mxu1  ;;  %v8383_v36 = vpop.permute.xlu0 %8382 }
 0x6ae   :  { %v6613_v52 = vpop.f32.mrf.mxu0  ;;  %v19256_v24 = vadd.f32 %v6458_v2, %v19001_v55  ;;  %v8413_v2 = vsel %vm2359_vm9, %v8381_v38, %v8383_v36 }
 0x6af   :  { %v19253_v10 = vadd.f32 %v6613_v52, %v19063_v61  ;;  %v6460_v12 = vpop.f32.mrf.mxu1 }
 0x6b0   :  { %v6615_v56 = vpop.f32.mrf.mxu0  ;;  %v19262_v33 = vadd.f32 %v6460_v12, %v19011_v27  ;;  %v8419_v27 = vsel %vm2359_vm9, %v19169_v49, %v19240_v34 }
 0x6b1   :  { %v19259_v60 = vadd.f32 %v6615_v56, %v19069_v28  ;;  %14093 = vmatmul.mubr.msk.bf16.vlgmr.msra.gmra.mxu1 %vm2964_vm10, %v19102_v29  ;;  %v6662_v61 = vpop.f32.mrf.mxu1  ;;  %v8397_v56 = vpop.permute.xlu1 %8396 }
 0x6b2   :  { %v6619_v46 = vpop.f32.mrf.mxu0  ;;  %14092 = vmatmul.mubr.msk.bf16.gmra.mxu0 %vm2964_vm10, %v19207_v18  ;;  %8529 = vmatpush1.bf16.msra.mxu1 %v8424_v13  ;;  %v19279_v28 = vadd.f32 %v6662_v61, %v19028_v62  ;;  %v19294_v62 = vld [vmem:[%s23009_s6 + $0xc0] sm:$0xff]  }
 0x6b3   :  { %v19272_v55 = vadd.f32 %v6619_v46, %v19086_v11  ;;  %8296 = vmatprep.mubr.bf16.mxu1 %v23326_v3  ;;  %8530 = vmatprep.subr.bf16.mxu1 %v8419_v27  ;;  %v6664_v11 = vpop.f32.mrf.mxu1 }
 0x6b4   :  { %v6621_v29 = vpop.f32.mrf.mxu0  ;;  %8487 = vmatprep.mubr.bf16.mxu0 %v23326_v3  ;;  %v19286_v31 = vadd.f32 %v6664_v11, %v19042_v45 }
 0x6b5   :  { %v19283_v50 = vadd.f32 %v6621_v29, %v19097_v44  ;;  %v6666_v44 = vpop.f32.mrf.mxu1 }
 0x6b6   :  { %v6623_v8 = vpop.f32.mrf.mxu0  ;;  %8531 = vmatpush1.bf16.msra.mxu1 %v8418_v57  ;;  %v19301_v45 = vadd.f32 %v6666_v44, %v19053_v9  ;;  %v8412_v9 = vsel %vm2359_vm9, %v19094_v16, %v8381_v38  ;;  %v8420_v38 = vsel %vm2359_vm9, %v19240_v34, %v8397_v56 }
 0x6b7   :  { %v19297_v52 = vadd.f32 %v6623_v8, %v19108_v1  ;;  %8532 = vmatprep.subr.bf16.mxu1 %v8413_v2  ;;  %v6668_v49 = vpop.f32.mrf.mxu1  ;;  %v8426_v1 = vsel %vm2359_vm9, %v19158_v30, %v19215_v32 }
 0x6b8   :  { %v6625_v12 = vpop.f32.mrf.mxu0  ;;  %v19307_v46 = vadd.f32 %v6668_v49, %v19066_v21  ;;  %v8421_v21 = vsel %vm2359_vm9, %v8397_v56, %v23333_v51 }
 0x6b9   :  { %v19304_v41 = vadd.f32 %v6625_v12, %v19114_v15  ;;  %14094 = vmatmul.mubr.msk.bf16.gmra.mxu1 %vm2964_vm10, %v19150_v47  ;;  %v6672_v15 = vpop.f32.mrf.mxu1  ;;  %v8385_v47 = vpop.permute.xlu0 %8384 }
 0x6ba   :  { %v6725_v13 = vpop.f32.mrf.mxu0  ;;  %14099 = vmatmul.mubr.msk.bf16.vlgmr.msra.gmra.mxu0 %vm2964_vm10, %v19294_v62  ;;  %8533 = vmatpush1.bf16.msra.mxu1 %v8412_v9  ;;  %v19324_v27 = vadd.f32 %v6672_v15, %v19079_v6  ;;  %v19339_v6 = vld [vmem:[%s23009_s6 + $0xc8] sm:$0xff]  }
 0x6bb   :  { %v19319_v61 = vadd.f32 %v6725_v13, %v19135_v23  ;;  %8592 = vmatpush1.bf16.msra.mxu0 %v8426_v1  ;;  %8306 = vmatprep.mubr.bf16.mxu1 %v23326_v3  ;;  %v6674_v16 = vpop.f32.mrf.mxu1 }
 0x6bc   :  { %8593 = vmatprep.subr.bf16.mxu0 %v8421_v21  ;;  %v6727_v29 = vpop.f32.mrf.mxu0  ;;  %8497 = vmatprep.mubr.bf16.mxu0 %v23326_v3  ;;  %v19332_v23 = vadd.f32 %v6674_v16, %v19092_v19 }
 0x6bd   :  { %v19328_v30 = vadd.f32 %v6727_v29, %v19142_v35  ;;  %v6676_v11 = vpop.f32.mrf.mxu1  ;;  %v8415_v35 = vsel %vm2359_vm9, %v8385_v47, %v23333_v51 }
 0x6be   :  { %v6729_v32 = vpop.f32.mrf.mxu0  ;;  %v19347_v19 = vadd.f32 %v6676_v11, %v19105_v42 }
 0x6bf   :  { %v19342_v8 = vadd.f32 %v6729_v32, %v19161_v59  ;;  %8594 = vmatpush1.bf16.msra.mxu0 %v8420_v38  ;;  %v6678_v44 = vpop.f32.mrf.mxu1  ;;  %v8414_v59 = vsel %vm2359_vm9, %v8383_v36, %v8385_v47 }
 0x6c0   :  { %8595 = vmatprep.subr.bf16.mxu0 %v8415_v35  ;;  %v6731_v57 = vpop.f32.mrf.mxu0  ;;  %v19353_v2 = vadd.f32 %v6678_v44, %v19111_v20 }
 0x6c1   :  { %v19350_v34 = vadd.f32 %v6731_v57, %v19172_v14  ;;  %14095 = vmatmul.mubr.msk.bf16.gmra.mxu1 %vm2964_vm10, %v19207_v18  ;;  %v6682_v42 = vpop.f32.mrf.mxu1 }
 0x6c2   :  { %v6735_v56 = vpop.f32.mrf.mxu0  ;;  %14100 = vmatmul.mubr.msk.bf16.gmra.mxu0 %vm2964_vm10, %v19339_v6  ;;  %v19365_v14 = vadd.f32 %v6682_v42, %v19126_v37  ;;  %8550 = vmatprep.mubr.bf16.mxu1 %v23326_v3 }
 0x6c3   :  { %v19361_v12 = vadd.f32 %v6735_v56, %v19191_v17  ;;  %8596 = vmatpush1.bf16.msra.mxu0 %v8414_v59  ;;  %8507 = vmatprep.mubr.bf16.mxu0 %v23326_v3  ;;  %v6684_v49 = vpop.f32.mrf.mxu1  ;;  %v14343_v17 = vld [vmem:[%s23009_s6 + $0xd0] sm:$0xff]  }
 0x6c4   :  { %v6737_v20 = vpop.f32.mrf.mxu0  ;;  %v19372_v13 = vadd.f32 %v6684_v49, %v19139_v63 }
 0x6c5   :  { %v19369_v18 = vadd.f32 %v6737_v20, %v19202_v26  ;;  %v6686_v9 = vpop.f32.mrf.mxu1 }
 0x6c6   :  { %v6739_v36 = vpop.f32.mrf.mxu0  ;;  %v19381_v37 = vadd.f32 %v6686_v9, %v19153_v22 }
 0x6c7   :  { %v19378_v1 = vadd.f32 %v6739_v36, %v19218_v5  ;;  %v19383_v21 = vpop.f32.mrf.mxu1 }
 0x6c8   :  { %v6741_v15 = vpop.f32.mrf.mxu0 }
 0x6c9   :  { %v19386_v26 = vadd.f32 %v6741_v15, %v19227_v48  ;;  %14102 = vmatmul.mubr.msk.bf16.vlgmr.msra.gmra.mxu1 %vm2964_vm10, %v19294_v62  ;;  %v6926_v5 = vpop.f32.mrf.mxu1 }
 0x6ca   :  { %v6745_v63 = vpop.f32.mrf.mxu0  ;;  %14101 = vmatmul.mubr.msk.bf16.gmra.mxu0 %vm2964_vm10, %v14343_v17  ;;  %8560 = vmatprep.mubr.bf16.mxu1 %v23326_v3  ;;  %v19397_v22 = vadd.f32 %v6926_v5, %v19182_v58 }
 0x6cb   :  { %v19392_v47 = vadd.f32 %v6745_v63, %v19243_v0  ;;  %8613 = vmatprep.mubr.bf16.mxu0 %v23326_v3  ;;  %v6928_v16 = vpop.f32.mrf.mxu1 }
 0x6cc   :  { %v6747_v29 = vpop.f32.mrf.mxu0  ;;  %v19403_v32 = vadd.f32 %v6928_v16, %v19194_v54 }
 0x6cd   :  { %v19400_v48 = vadd.f32 %v6747_v29, %v19250_v4  ;;  %v6930_v11 = vpop.f32.mrf.mxu1 }
 0x6ce   :  { %v6749_v38 = vpop.f32.mrf.mxu0  ;;  %v19409_v35 = vadd.f32 %v6930_v11, %v19210_v25 }
 0x6cf   :  { %v19406_v0 = vadd.f32 %v6749_v38, %v19256_v24  ;;  %v19413_v58 = vpop.f32.mrf.mxu1 }
 0x6d0   :  { %v19411_v57 = vpop.f32.mrf.mxu0 }
 0x6d1   :  { %14103 = vmatmul.mubr.msk.bf16.gmra.mxu1 %vm2964_vm10, %v19339_v6  ;;  %v6936_v54 = vpop.f32.mrf.mxu1 }
 0x6d2   :  { %v6989_v44 = vpop.f32.mrf.mxu0  ;;  %14105 = vmatmul.mubr.msk.bf16.vlgmr.msra.gmra.mxu0 %vm2964_vm10, %v19294_v62  ;;  %8570 = vmatprep.mubr.bf16.mxu1 %v23326_v3  ;;  %v7093_v25 = vadd.f32 %v6936_v54, %v19234_v7 }
 0x6d3   :  { %v19420_v4 = vadd.f32 %v6989_v44, %v19279_v28  ;;  %8623 = vmatprep.mubr.bf16.mxu0 %v23326_v3  ;;  %v6938_v56 = vpop.f32.mrf.mxu1 }
 0x6d4   :  { %v6991_v24 = vpop.f32.mrf.mxu0  ;;  %v7094_v42 = vadd.f32 %v6938_v56, %v19247_v53 }
 0x6d5   :  { %v19426_v59 = vadd.f32 %v6991_v24, %v19286_v31  ;;  %v6940_v49 = vpop.f32.mrf.mxu1 }
 0x6d6   :  { %v6993_v20 = vpop.f32.mrf.mxu0  ;;  %v7099_v28 = vadd.f32 %v6940_v49, %v19253_v10 }
 0x6d7   :  { %v19430_v62 = vadd.f32 %v6993_v20, %v19301_v45  ;;  %v19435_v9 = vpop.f32.mrf.mxu1 }
 0x6d8   :  { %v19433_v36 = vpop.f32.mrf.mxu0 }
 0x6d9   :  { %14104 = vmatmul.mubr.msk.bf16.gmra.mxu1 %vm2964_vm10, %v14343_v17  ;;  %v6946_v7 = vpop.f32.mrf.mxu1 }
 0x6da   :  { %v6999_v15 = vpop.f32.mrf.mxu0  ;;  %14106 = vmatmul.mubr.msk.bf16.gmra.mxu0 %vm2964_vm10, %v19339_v6  ;;  %9036 = vmatprep.mubr.bf16.mxu1 %v23326_v3  ;;  %v7105_v10 = vadd.f32 %v6946_v7, %v19272_v55 }
 0x6db   :  { %v19441_v53 = vadd.f32 %v6999_v15, %v19324_v27  ;;  %8633 = vmatprep.mubr.bf16.mxu0 %v23326_v3  ;;  %v6948_v45 = vpop.f32.mrf.mxu1 }
 0x6dc   :  { %v7001_v31 = vpop.f32.mrf.mxu0  ;;  %v7106_v5 = vadd.f32 %v6948_v45, %v19283_v50 }
 0x6dd   :  { %v19447_v63 = vadd.f32 %v7001_v31, %v19332_v23  ;;  %v6950_v16 = vpop.f32.mrf.mxu1 }
 0x6de   :  { %v7003_v29 = vpop.f32.mrf.mxu0  ;;  %v7111_v27 = vadd.f32 %v6950_v16, %v19297_v52 }
 0x6df   :  { %v19451_v6 = vadd.f32 %v7003_v29, %v19347_v19  ;;  %v19456_v11 = vpop.f32.mrf.mxu1 }
 0x6e0   :  { %v19454_v38 = vpop.f32.mrf.mxu0 }
 0x6e1   :  { %v7052_v23 = vpop.f32.mrf.mxu1 }
 0x6e2   :  { %v7009_v44 = vpop.f32.mrf.mxu0  ;;  %14107 = vmatmul.mubr.msk.bf16.gmra.mxu0 %vm2964_vm10, %v14343_v17  ;;  %v7085_v50 = vadd.f32 %v7052_v23, %v19319_v61 }
 0x6e3   :  { %v19460_v55 = vadd.f32 %v7009_v44, %v19365_v14  ;;  %9099 = vmatprep.mubr.bf16.mxu0 %v23326_v3  ;;  %v7054_v52 = vpop.f32.mrf.mxu1 }
 0x6e4   :  { %v7011_v54 = vpop.f32.mrf.mxu0  ;;  %v7086_v24 = vadd.f32 %v7054_v52, %v19328_v30 }
 0x6e5   :  { %v19465_v19 = vadd.f32 %v7011_v54, %v19372_v13  ;;  %v7056_v17 = vpop.f32.mrf.mxu1 }
 0x6e6   :  { %v7013_v56 = vpop.f32.mrf.mxu0  ;;  %v7091_v14 = vadd.f32 %v7056_v17, %v19342_v8 }
 0x6e7   :  { %v19469_v20 = vadd.f32 %v7013_v56, %v19381_v37  ;;  %v19474_v15 = vpop.f32.mrf.mxu1 }
 0x6e8   :  { %v19472_v49 = vpop.f32.mrf.mxu0 }
 0x6e9   :  { %v7062_v61 = vpop.f32.mrf.mxu1 }
 0x6ea   :  { %v7181_v7 = vpop.f32.mrf.mxu0  ;;  %v7097_v13 = vadd.f32 %v7062_v61, %v19361_v12 }
 0x6eb   :  { %v19477_v31 = vadd.f32 %v7181_v7, %v19397_v22  ;;  %v7064_v30 = vpop.f32.mrf.mxu1 }
 0x6ec   :  { %v7183_v45 = vpop.f32.mrf.mxu0  ;;  %v7098_v37 = vadd.f32 %v7064_v30, %v19369_v18 }
 0x6ed   :  { %v19481_v29 = vadd.f32 %v7183_v45, %v19403_v32  ;;  %v7066_v8 = vpop.f32.mrf.mxu1 }
 0x6ee   :  { %v7185_v16 = vpop.f32.mrf.mxu0  ;;  %v7103_v23 = vadd.f32 %v7066_v8, %v19378_v1 }
 0x6ef   :  { %v19485_v44 = vadd.f32 %v7185_v16, %v19409_v35  ;;  %v19490_v22 = vpop.f32.mrf.mxu1 }
 0x6f0   :  { %v19488_v54 = vpop.f32.mrf.mxu0 }
 0x6f1   :  { %v7072_v12 = vpop.f32.mrf.mxu1 }
 0x6f2   :  { %v7191_v52 = vpop.f32.mrf.mxu0  ;;  %v7109_v32 = vadd.f32 %v7072_v12, %v19392_v47 }
 0x6f3   :  { %v19492_v56 = vadd.f32 %v7191_v52, %v7093_v25  ;;  %v7074_v7 = vpop.f32.mrf.mxu1 }
 0x6f4   :  { %v7193_v17 = vpop.f32.mrf.mxu0  ;;  %v7110_v61 = vadd.f32 %v7074_v7, %v19400_v48 }
 0x6f5   :  { %v19495_v18 = vadd.f32 %v7193_v17, %v7094_v42  ;;  %v7076_v45 = vpop.f32.mrf.mxu1 }
 0x6f6   :  { %v7195_v35 = vpop.f32.mrf.mxu0  ;;  %v7115_v1 = vadd.f32 %v7076_v45, %v19406_v0 }
 0x6f7   :  { %v19498_v30 = vadd.f32 %v7195_v35, %v7099_v28  ;;  %v19503_v8 = vpop.f32.mrf.mxu1 }
 0x6f8   :  { %v19501_v16 = vpop.f32.mrf.mxu0 }
 0x6f9   :  { %v7244_v47 = vpop.f32.mrf.mxu1 }
 0x6fa   :  { %v7201_v25 = vpop.f32.mrf.mxu0  ;;  %v7338_v12 = vadd.f32 %v7244_v47, %v19420_v4 }
 0x6fb   :  { %v19505_v52 = vadd.f32 %v7201_v25, %v7105_v10  ;;  %v7246_v48 = vpop.f32.mrf.mxu1 }
 0x6fc   :  { %v7203_v42 = vpop.f32.mrf.mxu0  ;;  %v7339_v7 = vadd.f32 %v7246_v48, %v19426_v59 }
 0x6fd   :  { %v19508_v17 = vadd.f32 %v7203_v42, %v7106_v5  ;;  %v7248_v0 = vpop.f32.mrf.mxu1 }
 0x6fe   :  { %v7205_v28 = vpop.f32.mrf.mxu0  ;;  %v7344_v45 = vadd.f32 %v7248_v0, %v19430_v62 }
 0x6ff   :  { %v19511_v35 = vadd.f32 %v7205_v28, %v7111_v27  ;;  %v19516_v40 = vpop.f32.mrf.mxu1 }
 0x700   :  { %v19514_v51 = vpop.f32.mrf.mxu0  ;;  %23335 = vst [vmem:[#allocation22_spill] sm:$0xff] %v19516_v40 }
 0x701   :  { %23334 = vst [vmem:[#allocation21_spill] sm:$0xff] %v19514_v51  ;;  %v7254_v25 = vpop.f32.mrf.mxu1 }
 0x702   :  { %v7307_v10 = vpop.f32.mrf.mxu0  ;;  %v7350_v4 = vadd.f32 %v7254_v25, %v19441_v53 }
 0x703   :  { %v19518_v3 = vadd.f32 %v7307_v10, %v7085_v50  ;;  %v7256_v47 = vpop.f32.mrf.mxu1 }
 0x704   :  { %v7309_v5 = vpop.f32.mrf.mxu0  ;;  %v7351_v59 = vadd.f32 %v7256_v47, %v19447_v63 }
 0x705   :  { %v19521_v42 = vadd.f32 %v7309_v5, %v7086_v24  ;;  %v7258_v48 = vpop.f32.mrf.mxu1 }
 0x706   :  { %v7311_v27 = vpop.f32.mrf.mxu0  ;;  %v7356_v62 = vadd.f32 %v7258_v48, %v19451_v6 }
 0x707   :  { %v19524_v28 = vadd.f32 %v7311_v27, %v7091_v14  ;;  %v19529_v40 = vpop.f32.mrf.mxu1 }
 0x708   :  { %v19527_v0 = vpop.f32.mrf.mxu0  ;;  %23337 = vst [vmem:[#allocation24_spill] sm:$0xff] %v19529_v40 }
 0x709   :  { %23336 = vst [vmem:[#allocation23_spill] sm:$0xff] %v19527_v0  ;;  %v7264_v10 = vpop.f32.mrf.mxu1 }
 0x70a   :  { %v7317_v50 = vpop.f32.mrf.mxu0  ;;  %v7362_v53 = vadd.f32 %v7264_v10, %v19460_v55 }
 0x70b   :  { %v19531_v51 = vadd.f32 %v7317_v50, %v7097_v13  ;;  %v7266_v25 = vpop.f32.mrf.mxu1 }
 0x70c   :  { %v7319_v24 = vpop.f32.mrf.mxu0  ;;  %v7363_v63 = vadd.f32 %v7266_v25, %v19465_v19 }
 0x70d   :  { %v19534_v5 = vadd.f32 %v7319_v24, %v7098_v37  ;;  %v7268_v47 = vpop.f32.mrf.mxu1 }
 0x70e   :  { %v7321_v14 = vpop.f32.mrf.mxu0  ;;  %v7368_v6 = vadd.f32 %v7268_v47, %v19469_v20 }
 0x70f   :  { %v19537_v27 = vadd.f32 %v7321_v14, %v7103_v23  ;;  %v19542_v0 = vpop.f32.mrf.mxu1 }
 0x710   :  { %v19540_v48 = vpop.f32.mrf.mxu0  ;;  %23339 = vst [vmem:[#allocation26_spill] sm:$0xff] %v19542_v0 }
 0x711   :  { %23338 = vst [vmem:[#allocation25_spill] sm:$0xff] %v19540_v48  ;;  %v7508_v55 = vpop.f32.mrf.mxu1 }
 0x712   :  { %v7327_v13 = vpop.f32.mrf.mxu0  ;;  %v7663_v10 = vadd.f32 %v7508_v55, %v19477_v31 }
 0x713   :  { %v19544_v50 = vadd.f32 %v7327_v13, %v7109_v32  ;;  %v7510_v19 = vpop.f32.mrf.mxu1 }
 0x714   :  { %v7329_v37 = vpop.f32.mrf.mxu0  ;;  %v7664_v25 = vadd.f32 %v7510_v19, %v19481_v29 }
 0x715   :  { %v19547_v24 = vadd.f32 %v7329_v37, %v7110_v61  ;;  %v7512_v20 = vpop.f32.mrf.mxu1 }
 0x716   :  { %v7331_v23 = vpop.f32.mrf.mxu0  ;;  %v7669_v47 = vadd.f32 %v7512_v20, %v19485_v44 }
 0x717   :  { %v19550_v14 = vadd.f32 %v7331_v23, %v7115_v1  ;;  %v19555_v0 = vpop.f32.mrf.mxu1 }
 0x718   :  { %v19553_v48 = vpop.f32.mrf.mxu0  ;;  %23341 = vst [vmem:[#allocation45_spill] sm:$0xff] %v19555_v0 }
 0x719   :  { %23340 = vst [vmem:[#allocation44_spill] sm:$0xff] %v19553_v48  ;;  %v7518_v13 = vpop.f32.mrf.mxu1 }
 0x71a   :  { %v7571_v32 = vpop.f32.mrf.mxu0  ;;  %v7675_v31 = vadd.f32 %v7518_v13, %v19492_v56 }
 0x71b   :  { %v19557_v40 = vadd.f32 %v7571_v32, %v7338_v12  ;;  %v7520_v55 = vpop.f32.mrf.mxu1 }
 0x71c   :  { %v7573_v61 = vpop.f32.mrf.mxu0  ;;  %v7676_v29 = vadd.f32 %v7520_v55, %v19495_v18 }
 0x71d   :  { %v19560_v37 = vadd.f32 %v7573_v61, %v7339_v7  ;;  %v7522_v19 = vpop.f32.mrf.mxu1 }
 0x71e   :  { %v7575_v1 = vpop.f32.mrf.mxu0  ;;  %v7681_v44 = vadd.f32 %v7522_v19, %v19498_v30 }
 0x71f   :  { %v19563_v23 = vadd.f32 %v7575_v1, %v7344_v45  ;;  %v19568_v0 = vpop.f32.mrf.mxu1 }
 0x720   :  { %v19566_v20 = vpop.f32.mrf.mxu0  ;;  %23343 = vst [vmem:[#allocation46_spill] sm:$0xff] %v19568_v0 }
 0x721   :  { %23342 = vst [vmem:[#allocation27_spill] sm:$0xff] %v19566_v20  ;;  %v7528_v32 = vpop.f32.mrf.mxu1 }
 0x722   :  { %v7581_v12 = vpop.f32.mrf.mxu0  ;;  %v7687_v56 = vadd.f32 %v7528_v32, %v19505_v52 }
 0x723   :  { %v19570_v48 = vadd.f32 %v7581_v12, %v7350_v4  ;;  %v7530_v13 = vpop.f32.mrf.mxu1 }
 0x724   :  { %v7583_v7 = vpop.f32.mrf.mxu0  ;;  %v7688_v18 = vadd.f32 %v7530_v13, %v19508_v17 }
 0x725   :  { %v19573_v61 = vadd.f32 %v7583_v7, %v7351_v59  ;;  %v7532_v55 = vpop.f32.mrf.mxu1 }
 0x726   :  { %v7585_v45 = vpop.f32.mrf.mxu0  ;;  %v7693_v30 = vadd.f32 %v7532_v55, %v19511_v35 }
 0x727   :  { %v19576_v1 = vadd.f32 %v7585_v45, %v7356_v62  ;;  %v19581_v20 = vpop.f32.mrf.mxu1 }
 0x728   :  { %v19579_v19 = vpop.f32.mrf.mxu0  ;;  %23345 = vst [vmem:[#allocation47_spill] sm:$0xff] %v19581_v20 }
 0x729   :  { %23344 = vst [vmem:[#allocation28_spill] sm:$0xff] %v19579_v19  ;;  %v7634_v52 = vpop.f32.mrf.mxu1 }
 0x72a   :  { %v7591_v4 = vpop.f32.mrf.mxu0  ;;  %v7667_v32 = vadd.f32 %v7634_v52, %v19518_v3 }
 0x72b   :  { %v19583_v12 = vadd.f32 %v7591_v4, %v7362_v53  ;;  %v7636_v17 = vpop.f32.mrf.mxu1 }
 0x72c   :  { %v7593_v59 = vpop.f32.mrf.mxu0  ;;  %v7668_v13 = vadd.f32 %v7636_v17, %v19521_v42 }
 0x72d   :  { %v19586_v7 = vadd.f32 %v7593_v59, %v7363_v63  ;;  %v7638_v35 = vpop.f32.mrf.mxu1 }
 0x72e   :  { %v7595_v62 = vpop.f32.mrf.mxu0  ;;  %v7673_v55 = vadd.f32 %v7638_v35, %v19524_v28 }
 0x72f   :  { %v19589_v45 = vadd.f32 %v7595_v62, %v7368_v6  ;;  %v19594_v20 = vpop.f32.mrf.mxu1 }
 0x730   :  { %v19592_v19 = vpop.f32.mrf.mxu0  ;;  %23346 = vst [vmem:[#allocation35_spill] sm:$0xff] %v19594_v20 }
 0x731   :  { %v7644_v4 = vpop.f32.mrf.mxu1 }
 0x732   :  { %v7835_v53 = vpop.f32.mrf.mxu0  ;;  %v7679_v3 = vadd.f32 %v7644_v4, %v19531_v51 }
 0x733   :  { %v19596_v0 = vadd.f32 %v7835_v53, %v7663_v10  ;;  %v7646_v52 = vpop.f32.mrf.mxu1 }
 0x734   :  { %v7837_v63 = vpop.f32.mrf.mxu0  ;;  %v7680_v42 = vadd.f32 %v7646_v52, %v19534_v5 }
 0x735   :  { %23347 = vst [vmem:[#allocation48_spill] sm:$0xff] %v19596_v0  ;;  %v19599_v59 = vadd.f32 %v7837_v63, %v7664_v25  ;;  %v7648_v17 = vpop.f32.mrf.mxu1 }
 0x736   :  { %v7839_v6 = vpop.f32.mrf.mxu0  ;;  %v7685_v28 = vadd.f32 %v7648_v17, %v19537_v27 }
 0x737   :  { %v19602_v62 = vadd.f32 %v7839_v6, %v7669_v47  ;;  %v19607_v20 = vpop.f32.mrf.mxu1 }
 0x738   :  { %v19605_v35 = vpop.f32.mrf.mxu0 }
 0x739   :  { %23348 = vst [vmem:[#allocation50_spill] sm:$0xff] %v19602_v62  ;;  %v7654_v53 = vpop.f32.mrf.mxu1 }
 0x73a   :  { %v7845_v10 = vpop.f32.mrf.mxu0  ;;  %v7691_v51 = vadd.f32 %v7654_v53, %v19544_v50 }
 0x73b   :  { %v19609_v0 = vadd.f32 %v7845_v10, %v7675_v31  ;;  %v7656_v4 = vpop.f32.mrf.mxu1 }
 0x73c   :  { %v7847_v25 = vpop.f32.mrf.mxu0  ;;  %v7692_v5 = vadd.f32 %v7656_v4, %v19547_v24 }
 0x73d   :  { %v19612_v63 = vadd.f32 %v7847_v25, %v7676_v29  ;;  %v7658_v52 = vpop.f32.mrf.mxu1 }
 0x73e   :  { %v7849_v47 = vpop.f32.mrf.mxu0  ;;  %v7697_v27 = vadd.f32 %v7658_v52, %v19550_v14 }
 0x73f   :  { %v19615_v6 = vadd.f32 %v7849_v47, %v7681_v44  ;;  %v19620_v62 = vpop.f32.mrf.mxu1 }
 0x740   :  { %v19618_v17 = vpop.f32.mrf.mxu0 }
 0x741   :  { %23349 = vst [vmem:[#allocation36_spill] sm:$0xff] %v19615_v6  ;;  %v7898_v50 = vpop.f32.mrf.mxu1 }
 0x742   :  { %v7855_v31 = vpop.f32.mrf.mxu0  ;;  %v7992_v53 = vadd.f32 %v7898_v50, %v19557_v40 }
 0x743   :  { %v19622_v10 = vadd.f32 %v7855_v31, %v7687_v56  ;;  %v7900_v24 = vpop.f32.mrf.mxu1 }
 0x744   :  { %v7857_v29 = vpop.f32.mrf.mxu0  ;;  %v19628_v4 = vadd.f32 %v7900_v24, %v19560_v37 }
 0x745   :  { %23350 = vst [vmem:[#allocation51_spill] sm:$0xff] %v19622_v10  ;;  %v19625_v25 = vadd.f32 %v7857_v29, %v7688_v18  ;;  %v7902_v14 = vpop.f32.mrf.mxu1 }
 0x746   :  { %v7859_v44 = vpop.f32.mrf.mxu0  ;;  %v7998_v52 = vadd.f32 %v7902_v14, %v19563_v23 }
 0x747   :  { %v19630_v47 = vadd.f32 %v7859_v44, %v7693_v30  ;;  %v19635_v56 = vpop.f32.mrf.mxu1 }
 0x748   :  { %v19633_v6 = vpop.f32.mrf.mxu0 }
 0x749   :  { %23351 = vst [vmem:[#allocation29_spill] sm:$0xff] %v19630_v47  ;;  %v7908_v10 = vpop.f32.mrf.mxu1 }
 0x74a   :  { %v7961_v31 = vpop.f32.mrf.mxu0  ;;  %v19640_v18 = vadd.f32 %v7908_v10, %v19570_v48 }
 0x74b   :  { %v19637_v40 = vadd.f32 %v7961_v31, %v7667_v32  ;;  %v7910_v37 = vpop.f32.mrf.mxu1 }
 0x74c   :  { %v7963_v50 = vpop.f32.mrf.mxu0  ;;  %v19645_v30 = vadd.f32 %v7910_v37, %v19573_v61 }
 0x74d   :  { %v19642_v29 = vadd.f32 %v7963_v50, %v7668_v13  ;;  %v7912_v23 = vpop.f32.mrf.mxu1 }
 0x74e   :  { %v7965_v24 = vpop.f32.mrf.mxu0  ;;  %v19650_v14 = vadd.f32 %v7912_v23, %v19576_v1 }
 0x74f   :  { %23352 = vst [vmem:[#allocation52_spill] sm:$0xff] %v19642_v29  ;;  %v19647_v44 = vadd.f32 %v7965_v24, %v7673_v55  ;;  %v19654_v32 = vpop.f32.mrf.mxu1 }
 0x750   :  { %23354 = vst [vmem:[#allocation37_spill] sm:$0xff] %v19650_v14  ;;  %v19652_v47 = vpop.f32.mrf.mxu0  ;;  %v7088_v14 = vadd.f32 %v19413_v58, %v19221_v43  ;;  %v7092_v43 = vadd.f32 %v19474_v15, %v19350_v34 }
 0x751   :  { %23353 = vst [vmem:[#allocation34_spill] sm:$0xff] %v19647_v44  ;;  %v7918_v10 = vpop.f32.mrf.mxu1 }
 0x752   :  { %v7971_v48 = vpop.f32.mrf.mxu0  ;;  %v19659_v13 = vadd.f32 %v7918_v10, %v19583_v12  ;;  %v7343_v58 = vadd.f32 %v19488_v54, %v7088_v14  ;;  %v23377_v54 = vld [vmem:[#allocation23_spill] sm:$0xff] }
 0x753   :  { %v19656_v31 = vadd.f32 %v7971_v48, %v7679_v3  ;;  %v7920_v50 = vpop.f32.mrf.mxu1 }
 0x754   :  { %23356 = vst [vmem:[#allocation31_spill] sm:$0xff] %v19659_v13  ;;  %v7973_v61 = vpop.f32.mrf.mxu0  ;;  %v19664_v55 = vadd.f32 %v7920_v50, %v19586_v7  ;;  %v6789_v13 = vadd.f32 %v19411_v57, %v19262_v33  ;;  %v19742_v57 = vpop.permute.xlu0 %8713 }
 0x755   :  { %23355 = vst [vmem:[#allocation42_spill] sm:$0xff] %v19656_v31  ;;  %v19661_v37 = vadd.f32 %v7973_v61, %v7680_v42  ;;  %v7922_v24 = vpop.f32.mrf.mxu1  ;;  %23370 = vst [vmem:[#allocation56_spill] sm:$0xff] %v19742_v57 }
 0x756   :  { %23358 = vst [vmem:[#allocation38_spill] sm:$0xff] %v19664_v55  ;;  %v7975_v1 = vpop.f32.mrf.mxu0  ;;  %v19669_v44 = vadd.f32 %v7922_v24, %v19589_v45  ;;  %v19719_v55 = vpop.permute.xlu1 %8708 }
 0x757   :  { %23357 = vst [vmem:[#allocation43_spill] sm:$0xff] %v19661_v37  ;;  %v19666_v23 = vadd.f32 %v7975_v1, %v7685_v28  ;;  %v19673_v3 = vpop.f32.mrf.mxu1  ;;  %23368 = vst [vmem:[#allocation15_spill] sm:$0xff] %v19719_v55  ;;  %v7100_v55 = vadd.f32 %v19435_v9, %v19259_v60  ;;  %v23372_v9 = vld [vmem:[#allocation21_spill] sm:$0xff] }
 0x758   :  { %23360 = vst [vmem:[#allocation20_spill] sm:$0xff] %v19669_v44  ;;  %v19671_v29 = vpop.f32.mrf.mxu0 }
 0x759   :  { %23359 = vst [vmem:[#allocation57_spill] sm:$0xff] %v19666_v23  ;;  %v19677_v10 = vpop.f32.mrf.mxu1 }
 0x75a   :  { %v7981_v12 = vpop.f32.mrf.mxu0  ;;  %v19760_v34 = vpop.permute.xlu1 %8698 }
 0x75b   :  { %v19675_v48 = vadd.f32 %v7981_v12, %v7691_v51  ;;  %v19681_v7 = vpop.f32.mrf.mxu1  ;;  %23375 = vst [vmem:[#allocation16_spill] sm:$0xff] %v19760_v34  ;;  %v23384_v34 = vld [vmem:[#allocation47_spill] sm:$0xff] }
 0x75c   :  { %v7983_v42 = vpop.f32.mrf.mxu0 }
 0x75d   :  { %23361 = vst [vmem:[#allocation19_spill] sm:$0xff] %v19675_v48  ;;  %v19679_v61 = vadd.f32 %v7983_v42, %v7692_v5  ;;  %v19685_v1 = vpop.f32.mrf.mxu1 }
 0x75e   :  { %v7985_v50 = vpop.f32.mrf.mxu0 }
 0x75f   :  { %23362 = vst [vmem:[#allocation53_spill] sm:$0xff] %v19679_v61  ;;  %v19683_v28 = vadd.f32 %v7985_v50, %v7697_v27  ;;  %v19689_v24 = vpop.f32.mrf.mxu1 }
 0x760   :  { %v19687_v45 = vpop.f32.mrf.mxu0 }
 0x761   :  { %23363 = vst [vmem:[#allocation30_spill] sm:$0xff] %v19683_v28  ;;  %v19691_v37 = vpop.f32.mrf.mxu1 }
 0x762   :  { %v8225_v23 = vpop.f32.mrf.mxu0 }
 0x763   :  { %v19693_v51 = vadd.f32 %v8225_v23, %v7992_v53  ;;  %v19697_v5 = vpop.f32.mrf.mxu1 }
 0x764   :  { %v19695_v12 = vpop.f32.mrf.mxu0 }
 0x765   :  { %23364 = vst [vmem:[#allocation54_spill] sm:$0xff] %v19693_v51  ;;  %v19699_v61 = vpop.f32.mrf.mxu1 }
 0x766   :  { %v8229_v42 = vpop.f32.mrf.mxu0 }
 0x767   :  { %v19701_v27 = vadd.f32 %v8229_v42, %v7998_v52  ;;  %v19705_v28 = vpop.f32.mrf.mxu1  ;;  %v6787_v42 = vadd.f32 %v19383_v21, %v19164_v39  ;;  %v7102_v39 = vadd.f32 %v19454_v38, %v19353_v2  ;;  %v7116_v2 = vadd.f32 %v19503_v8, %v6789_v13  ;;  %v23380_v8 = vld [vmem:[#allocation44_spill] sm:$0xff]  ;;  %v23381_v13 = vld [vmem:[#allocation45_spill] sm:$0xff] }
 0x768   :  { %v19703_v50 = vpop.f32.mrf.mxu0 }
 0x769   :  { %23365 = vst [vmem:[#allocation55_spill] sm:$0xff] %v19701_v27  ;;  %v19709_v31 = vpop.f32.mrf.mxu1  ;;  %v7114_v21 = vadd.f32 %v19472_v49, %v6787_v42 }
 0x76a   :  { %v19707_v48 = vpop.f32.mrf.mxu0 }
 0x76b   :  { %v19713_v53 = vpop.f32.mrf.mxu1 }
 0x76c   :  { %v19711_v44 = vpop.f32.mrf.mxu0 }
 0x76d   :  { %23366 = vst [vmem:[#allocation13_spill] sm:$0xff] %v19711_v44  ;;  %v19717_v51 = vpop.f32.mrf.mxu1 }
 0x76e   :  { %v19715_v23 = vpop.f32.mrf.mxu0 }
 0x76f   :  { %23367 = vst [vmem:[#allocation41_spill] sm:$0xff] %v19715_v23  ;;  %v19725_v27 = vpop.f32.mrf.mxu1  ;;  %v7090_v23 = vadd.f32 %v19433_v36, %v19307_v46  ;;  %v7104_v46 = vadd.f32 %v19490_v22, %v19386_v26  ;;  %v7355_v36 = vadd.f32 %v19501_v16, %v7100_v55  ;;  %v23376_v26 = vld [vmem:[#allocation24_spill] sm:$0xff]  ;;  %v7347_v22 = vadd.f32 %v23377_v54, %v7092_v43  ;;  %v23386_v54 = vld [vmem:[#allocation35_spill] sm:$0xff] }
 0x770   :  { %v19721_v52 = vpop.f32.mrf.mxu0  ;;  %v7357_v15 = vadd.f32 %v23376_v26, %v7102_v39  ;;  %v7371_v16 = vadd.f32 %v23380_v8, %v7116_v2  ;;  %v7670_v55 = vadd.f32 %v23381_v13, %v7343_v58  ;;  %v23385_v26 = vld [vmem:[#allocation28_spill] sm:$0xff]  ;;  %v19799_v13 = vpop.permute.xlu1 %8688 }
 0x771   :  { %23369 = vst [vmem:[#allocation32_spill] sm:$0xff] %v19721_v52  ;;  %v7112_v52 = vadd.f32 %v19456_v11, %v19304_v41  ;;  %v8288_v33 = vpop.f32.mrf.mxu1  ;;  %v23373_v11 = vld [vmem:[#allocation22_spill] sm:$0xff] }
 0x772   :  { %v19733_v44 = vpop.f32.mrf.mxu0  ;;  %v19750_v60 = vadd.f32 %v8288_v33, %v19637_v40  ;;  %v7345_v49 = vadd.f32 %v23373_v11, %v7090_v23  ;;  %v23378_v40 = vld [vmem:[#allocation26_spill] sm:$0xff]  ;;  %v23379_v33 = vld [vmem:[#allocation25_spill] sm:$0xff]  ;;  %v7684_v43 = vadd.f32 %v23385_v26, %v7357_v15  ;;  %v7997_v58 = vadd.f32 %v19605_v35, %v7670_v55 }
 0x773   :  { %v7367_v38 = vadd.f32 %v23372_v9, %v7112_v52  ;;  %v19758_v42 = vpop.f32.mrf.mxu1  ;;  %v7369_v14 = vadd.f32 %v23378_v40, %v7114_v21  ;;  %v23382_v52 = vld [vmem:[#allocation46_spill] sm:$0xff]  ;;  %v23383_v9 = vld [vmem:[#allocation27_spill] sm:$0xff] }
 0x774   :  { %23371 = vst [vmem:[#allocation39_spill] sm:$0xff] %v19750_v60  ;;  %v19752_v41 = vpop.f32.mrf.mxu0  ;;  %23374 = vst [vmem:[#allocation40_spill] sm:$0xff] %v19758_v42  ;;  %v7359_v60 = vadd.f32 %v23379_v33, %v7104_v46  ;;  %v7682_v23 = vadd.f32 %v23382_v52, %v7355_v36  ;;  %v7672_v11 = vadd.f32 %v23383_v9, %v7345_v49  ;;  %v23387_v33 = vld [vmem:[#allocation48_spill] sm:$0xff] }
 0x775   :  { %v19772_v42 = vpop.f32.mrf.mxu1  ;;  %v7694_v39 = vadd.f32 %v23384_v34, %v7367_v38  ;;  %v7696_v21 = vadd.f32 %v19592_v19, %v7369_v14  ;;  %v7674_v46 = vadd.f32 %v23386_v54, %v7347_v22  ;;  %v8317_v49 = vadd.f32 %v19677_v10, %v23387_v33  ;;  %v19787_v38 = vpop.permute.xlu0 %8703  ;;  %v23389_v52 = vld [vmem:[#allocation36_spill] sm:$0xff] }
 0x776   :  { %v19766_v57 = vpop.f32.mrf.mxu0  ;;  %v7686_v2 = vadd.f32 %v19607_v20, %v7359_v60  ;;  %v8009_v36 = vadd.f32 %v19618_v17, %v7682_v23  ;;  %v7698_v34 = vadd.f32 %v19620_v62, %v7371_v16  ;;  %v7999_v15 = vadd.f32 %v19635_v56, %v7672_v11 }
 0x777   :  { %v19785_v8 = vpop.f32.mrf.mxu1  ;;  %v8021_v19 = vadd.f32 %v19633_v6, %v7694_v39  ;;  %v8001_v22 = vadd.f32 %v19652_v47, %v7674_v46  ;;  %v8011_v35 = vadd.f32 %v19654_v32, %v7684_v43  ;;  %v8318_v10 = vadd.f32 %v19681_v7, %v19599_v59  ;;  %v23388_v6 = vld [vmem:[#allocation50_spill] sm:$0xff] }
 0x778   :  { %v19778_v40 = vpop.f32.mrf.mxu0  ;;  %v19795_v17 = vadd.f32 %v19671_v29, %v7686_v2  ;;  %v8023_v62 = vadd.f32 %v19673_v3, %v7696_v21  ;;  %v8323_v56 = vadd.f32 %v19685_v1, %v23388_v6  ;;  %v19805_v47 = vadd.f32 %v19687_v45, %v7698_v34  ;;  %v23394_v21 = vld [vmem:[#allocation29_spill] sm:$0xff] }
 0x779   :  { %v8298_v60 = vpop.f32.mrf.mxu1  ;;  %v8324_v32 = vadd.f32 %v19689_v24, %v7997_v58  ;;  %v8329_v29 = vadd.f32 %v19691_v37, %v19609_v0  ;;  %v19812_v59 = vadd.f32 %v19695_v12, %v19628_v4  ;;  %v8330_v1 = vadd.f32 %v19697_v5, %v19612_v63  ;;  %v19828_v39 = vpop.permute.xlu0 %8693  ;;  %v23390_v63 = vld [vmem:[#allocation51_spill] sm:$0xff]  ;;  %v23391_v5 = vld [vmem:[#allocation13_spill] sm:$0xff] }
 0x77a   :  { %v8489_v20 = vpop.f32.mrf.mxu0  ;;  %v8335_v45 = vadd.f32 %v19699_v61, %v23389_v52  ;;  %v8336_v24 = vadd.f32 %v19705_v28, %v8009_v36  ;;  %v19821_v23 = vadd.f32 %v19703_v50, %v7999_v15  ;;  %v19825_v4 = vadd.f32 %v19707_v48, %v19640_v18  ;;  %v23392_v18 = vld [vmem:[#allocation37_spill] sm:$0xff]  ;;  %v23396_v36 = vld [vmem:[#allocation31_spill] sm:$0xff]  ;;  %v23397_v15 = vld [vmem:[#allocation38_spill] sm:$0xff] }
 0x77b   :  { %v8644_v14 = vadd.f32 %v8489_v20, %v8317_v49  ;;  %v8300_v55 = vpop.f32.mrf.mxu1  ;;  %v8341_v61 = vadd.f32 %v19709_v31, %v23390_v63  ;;  %v19834_v28 = vadd.f32 %v19713_v53, %v19625_v25  ;;  %v19838_v50 = vadd.f32 %v23391_v5, %v19645_v30  ;;  %v23393_v48 = vld [vmem:[#allocation41_spill] sm:$0xff]  ;;  %v23395_v53 = vld [vmem:[#allocation32_spill] sm:$0xff]  ;;  %v23402_v5 = vld [vmem:[#allocation42_spill] sm:$0xff] }
 0x77c   :  { %v8491_v16 = vpop.f32.mrf.mxu0  ;;  %v19842_v26 = vadd.f32 %v23393_v48, %v23392_v18  ;;  %v19846_v54 = vadd.f32 %v19717_v51, %v23394_v21  ;;  %v19850_v25 = vadd.f32 %v19725_v27, %v8021_v19  ;;  %v19853_v30 = vadd.f32 %v23395_v53, %v8011_v35  ;;  %v23398_v20 = vld [vmem:[#allocation52_spill] sm:$0xff]  ;;  %v23403_v18 = vld [vmem:[#allocation14_spill] sm:$0xff] }
 0x77d   :  { %v8716_v7 = vadd.f32 %v19799_v13, %v8644_v14  ;;  %v8645_v3 = vadd.f32 %v8491_v16, %v8318_v10  ;;  %v8302_v9 = vpop.f32.mrf.mxu1  ;;  %v19857_v33 = vadd.f32 %v19733_v44, %v23396_v36  ;;  %v19861_v51 = vadd.f32 %v19752_v41, %v23397_v15  ;;  %v23399_v10 = vld [vmem:[#allocation40_spill] sm:$0xff]  ;;  %v23401_v44 = vld [vmem:[#allocation34_spill] sm:$0xff] }
 0x77e   :  { %v8493_v0 = vpop.f32.mrf.mxu0  ;;  %v19865_v14 = vadd.f32 %v23399_v10, %v23398_v20  ;;  %v23400_v35 = vld [vmem:[#allocation20_spill] sm:$0xff]  ;;  %v19880_v63 = vadd.f32 %v19785_v8, %v8001_v22  ;;  %v23406_v8 = vld [vmem:[#allocation58_spill] sm:$0xff] }
 0x77f   :  { %v8752_v37 = vmul.f32 0.01, %v8716_v7  ;;  %v8717_v12 = vadd.f32 %v19799_v13, %v8645_v3  ;;  %v8650_v11 = vadd.f32 %v8493_v0, %v8323_v56  ;;  %v8304_v2 = vpop.f32.mrf.mxu1  ;;  %v19870_v56 = vadd.f32 %v19766_v57, %v23400_v35 }
 0x780   :  { %v8495_v43 = vpop.f32.mrf.mxu0  ;;  %v19877_v3 = vadd.f32 %v19778_v40, %v8023_v62  ;;  %v19883_v57 = vadd.f32 %v8298_v60, %v23402_v5  ;;  %v23410_v5 = vld [vmem:[#allocation30_spill] sm:$0xff] }
 0x781   :  { %v8753_v46 = vmul.f32 0.01, %v8717_v12  ;;  %v8722_v31 = vadd.f32 %v19828_v39, %v8650_v11  ;;  %v8651_v58 = vadd.f32 %v8495_v43, %v8324_v32  ;;  %v8788_v49 = vmax.f32 %v8716_v7, %v8752_v37  ;;  %v8308_v19 = vpop.f32.mrf.mxu1 }
 0x782   :  { %v8499_v34 = vpop.f32.mrf.mxu0  ;;  %v19874_v32 = vadd.f32 %v19772_v42, %v23401_v44  ;;  %v23404_v42 = vld [vmem:[#allocation16_spill] sm:$0xff] }
 0x783   :  { %v8758_v6 = vmul.f32 0.01, %v8722_v31  ;;  %v8723_v27 = vadd.f32 %v19828_v39, %v8651_v58  ;;  %v8789_v16 = vmax.f32 %v8717_v12, %v8753_v46  ;;  %v8656_v7 = vadd.f32 %v8499_v34, %v8329_v29  ;;  %v8310_v37 = vpop.f32.mrf.mxu1  ;;  %v23407_v58 = vld [vmem:[#allocation57_spill] sm:$0xff] }
 0x784   :  { %v8501_v41 = vpop.f32.mrf.mxu0  ;;  %v8824_v48 = vmul.f32 %v8788_v49, %v23403_v18  ;;  %v19894_v60 = vadd.f32 %v8302_v9, %v23407_v58 }
 0x785   :  { %v8794_v52 = vmax.f32 %v8722_v31, %v8758_v6  ;;  %v8759_v0 = vmul.f32 0.01, %v8723_v27  ;;  %v8657_v11 = vadd.f32 %v8501_v41, %v8330_v1  ;;  %v8728_v43 = vadd.f32 %v23404_v42, %v8656_v7  ;;  %v8312_v62 = vpop.f32.mrf.mxu1  ;;  %v23405_v31 = vld [vmem:[#allocation43_spill] sm:$0xff] }
 0x786   :  { %v8503_v12 = vpop.f32.mrf.mxu0  ;;  %v19890_v1 = vadd.f32 %v8300_v55, %v23405_v31  ;;  %v8825_v22 = vmul.f32 %v8789_v16, %v23406_v8  ;;  %v23408_v55 = vld [vmem:[#allocation19_spill] sm:$0xff] }
 0x787   :  { %v8830_v29 = vmul.f32 %v8794_v52, %v23403_v18  ;;  %v8795_v21 = vmax.f32 %v8723_v27, %v8759_v0  ;;  %v8729_v40 = vadd.f32 %v23404_v42, %v8657_v11  ;;  %v8662_v46 = vadd.f32 %v8503_v12, %v8335_v45  ;;  %v19900_v10 = vpop.f32.mrf.mxu1  ;;  %v23409_v0 = vld [vmem:[#allocation53_spill] sm:$0xff] }
 0x788   :  { %v8764_v53 = vmul.f32 0.01, %v8728_v43  ;;  %v8505_v36 = vpop.f32.mrf.mxu0  ;;  %v19903_v45 = vadd.f32 %v8304_v2, %v19795_v17  ;;  %v19906_v6 = vadd.f32 %v8308_v19, %v23408_v55  ;;  %v19911_v11 = vadd.f32 %v8310_v37, %v23409_v0  ;;  %v23411_v2 = vld [vmem:[#allocation54_spill] sm:$0xff] }
 0x789   :  { %v19896_v49 = vpack.c.bf16 %v8830_v29, %v8824_v48  ;;  %v8831_v34 = vmul.f32 %v8795_v21, %v23406_v8  ;;  %v8765_v15 = vmul.f32 0.01, %v8729_v40  ;;  %v8734_v20 = vadd.f32 %v19787_v38, %v8662_v46  ;;  %v8552_v52 = vpop.f32.mrf.mxu1  ;;  %v23412_v29 = vld [vmem:[#allocation15_spill] sm:$0xff] }
 0x78a   :  { %v8800_v27 = vmax.f32 %v8728_v43, %v8764_v53  ;;  %v8663_v9 = vadd.f32 %v8505_v36, %v8336_v24  ;;  %v8509_v35 = vpop.f32.mrf.mxu0  ;;  %v19914_v48 = vadd.f32 %v8312_v62, %v23410_v5  ;;  %v8646_v19 = vadd.f32 %v8552_v52, %v23411_v2 }
 0x78b   :  { %v19908_v44 = vpack.c.bf16 %v8831_v34, %v8825_v22  ;;  %v8801_v16 = vmax.f32 %v8729_v40, %v8765_v15  ;;  %v8770_v7 = vmul.f32 0.01, %v8734_v20  ;;  %v8668_v41 = vadd.f32 %v8509_v35, %v8341_v61  ;;  %v8554_v61 = vpop.f32.mrf.mxu1 }
 0x78c   :  { %v8735_v17 = vadd.f32 %v19787_v38, %v8663_v9  ;;  %v8511_v12 = vpop.f32.mrf.mxu0  ;;  %v8836_v24 = vmul.f32 %v8800_v27, %v23403_v18  ;;  %v8718_v31 = vadd.f32 %v19799_v13, %v8646_v19  ;;  %v8647_v62 = vadd.f32 %v8554_v61, %v19812_v59  ;;  %v23413_v27 = vld [vmem:[#allocation55_spill] sm:$0xff] }
 0x78d   :  { %v8806_v43 = vmax.f32 %v8734_v20, %v8770_v7  ;;  %v8740_v21 = vadd.f32 %v23412_v29, %v8668_v41  ;;  %v8669_v40 = vadd.f32 %v8511_v12, %v19834_v28  ;;  %v8837_v46 = vmul.f32 %v8801_v16, %v23406_v8  ;;  %v8556_v15 = vpop.f32.mrf.mxu1  ;;  %v23414_v41 = vld [vmem:[#allocation56_spill] sm:$0xff] }
 0x78e   :  { %v8771_v37 = vmul.f32 0.01, %v8735_v17  ;;  %v8513_v22 = vpop.f32.mrf.mxu0  ;;  %v8754_v55 = vmul.f32 0.01, %v8718_v31  ;;  %v8719_v28 = vadd.f32 %v19799_v13, %v8647_v62  ;;  %v8652_v9 = vadd.f32 %v8556_v15, %v23413_v27 }
 0x78f   :  { %v8842_v58 = vmul.f32 %v8806_v43, %v23403_v18  ;;  %v8776_v53 = vmul.f32 0.01, %v8740_v21  ;;  %v8741_v36 = vadd.f32 %v23412_v29, %v8669_v40  ;;  %v8674_v34 = vadd.f32 %v8513_v22, %v19846_v54  ;;  %v8558_v0 = vpop.f32.mrf.mxu1 }
 0x790   :  { %v8807_v20 = vmax.f32 %v8735_v17, %v8771_v37  ;;  %v8515_v35 = vpop.f32.mrf.mxu0  ;;  %v8790_v2 = vmax.f32 %v8718_v31, %v8754_v55  ;;  %v8755_v19 = vmul.f32 0.01, %v8719_v28  ;;  %v8724_v54 = vadd.f32 %v19828_v39, %v8652_v9 }
 0x791   :  { %v19929_v16 = vpack.c.bf16 %v8842_v58, %v8836_v24  ;;  %v8812_v7 = vmax.f32 %v8740_v21, %v8776_v53  ;;  %v8777_v59 = vmul.f32 0.01, %v8741_v36  ;;  %v8746_v52 = vadd.f32 %v23414_v41, %v8674_v34  ;;  %v8562_v24 = vpop.f32.mrf.mxu1  ;;  %v23415_v21 = vld [vmem:[#allocation59_spill] sm:$0xff] }
 0x792   :  { %v8843_v5 = vmul.f32 %v8807_v20, %v23406_v8  ;;  %v8615_v17 = vpop.f32.mrf.mxu0  ;;  %v8675_v61 = vadd.f32 %v8515_v35, %v19850_v25  ;;  %v8826_v62 = vmul.f32 %v8790_v2, %v23415_v21  ;;  %v8791_v22 = vmax.f32 %v8719_v28, %v8755_v19 }
 0x793   :  { %v8848_v12 = vmul.f32 %v8812_v7, %v23403_v18  ;;  %v8813_v43 = vmax.f32 %v8741_v36, %v8777_v59  ;;  %v8782_v40 = vmul.f32 0.01, %v8746_v52  ;;  %v8760_v58 = vmul.f32 0.01, %v8724_v54  ;;  %v8564_v55 = vpop.f32.mrf.mxu1  ;;  %v23416_v36 = vld [vmem:[#allocation60_spill] sm:$0xff] }
 0x794   :  { %v19936_v37 = vpack.c.bf16 %v8843_v5, %v8837_v46  ;;  %v8617_v53 = vpop.f32.mrf.mxu0  ;;  %v8747_v15 = vadd.f32 %v23414_v41, %v8675_v61  ;;  %v8653_v20 = vadd.f32 %v8558_v0, %v19821_v23  ;;  %v8827_v27 = vmul.f32 %v8791_v22, %v23416_v36  ;;  %v23417_v46 = vld [vmem:[#allocation39_spill] sm:$0xff] }
 0x795   :  { %v8849_v31 = vmul.f32 %v8813_v43, %v23406_v8  ;;  %v8818_v34 = vmax.f32 %v8746_v52, %v8782_v40  ;;  %v8796_v9 = vmax.f32 %v8724_v54, %v8760_v58  ;;  %v8658_v25 = vadd.f32 %v8562_v24, %v19825_v4  ;;  %v8566_v2 = vpop.f32.mrf.mxu1 }
 0x796   :  { %v8648_v35 = vadd.f32 %v8615_v17, %v23417_v46  ;;  %v8619_v7 = vpop.f32.mrf.mxu0  ;;  %v8783_v59 = vmul.f32 0.01, %v8747_v15  ;;  %v8725_v5 = vadd.f32 %v19828_v39, %v8653_v20  ;;  %v8659_v52 = vadd.f32 %v8564_v55, %v19838_v50 }
 0x797   :  { %v8854_v28 = vmul.f32 %v8818_v34, %v23403_v18  ;;  %v8832_v19 = vmul.f32 %v8796_v9, %v23415_v21  ;;  %v8730_v23 = vadd.f32 %v23404_v42, %v8658_v25  ;;  %v8649_v54 = vadd.f32 %v8617_v53, %v19865_v14  ;;  %v8568_v24 = vpop.f32.mrf.mxu1 }
 0x798   :  { %v8720_v0 = vadd.f32 %v19799_v13, %v8648_v35  ;;  %v8621_v4 = vpop.f32.mrf.mxu0  ;;  %v8819_v17 = vmax.f32 %v8747_v15, %v8783_v59  ;;  %v8761_v40 = vmul.f32 0.01, %v8725_v5  ;;  %v8731_v61 = vadd.f32 %v23404_v42, %v8659_v52 }
 0x799   :  { %v19952_v43 = vpack.c.bf16 %v8854_v28, %v8848_v12  ;;  %v19955_v22 = vpack.c.bf16 %v8832_v19, %v8826_v62  ;;  %v8766_v50 = vmul.f32 0.01, %v8730_v23  ;;  %v19958_v34 = vadd.f32 %v19799_v13, %v8649_v54  ;;  %v8572_v53 = vpop.f32.mrf.mxu1 }
 0x79a   :  { %v8756_v58 = vmul.f32 0.01, %v8720_v0  ;;  %v8625_v20 = vpop.f32.mrf.mxu0  ;;  %v8855_v55 = vmul.f32 %v8819_v17, %v23406_v8  ;;  %v8797_v9 = vmax.f32 %v8725_v5, %v8761_v40  ;;  %v8767_v14 = vmul.f32 0.01, %v8731_v61 }
 0x79b   :  { %v8664_v12 = vadd.f32 %v8566_v2, %v19842_v26  ;;  %8947 = vrot.lane.b32.xlu1 %v19952_v43, %s14400_s27  ;;  %v8802_v15 = vmax.f32 %v8730_v23, %v8766_v50  ;;  %v8757_v62 = vmul.f32 0.01, %v19958_v34  ;;  %v8654_v46 = vadd.f32 %v8619_v7, %v19874_v32  ;;  %v23418_v2 = vld [vmem:[#allocation17_spill] sm:$0xff] }
 0x79c   :  { %v8792_v25 = vmax.f32 %v8720_v0, %v8756_v58  ;;  %v8627_v35 = vpop.f32.mrf.mxu0  ;;  %v19966_v13 = vpack.c.bf16 %v8855_v55, %v8849_v31  ;;  %v8833_v28 = vmul.f32 %v8797_v9, %v23416_v36  ;;  %v8803_v59 = vmax.f32 %v8731_v61, %v8767_v14  ;;  %v8574_v0 = vpop.f32.mrf.mxu1 }
 0x79d   :  { %v8736_v5 = vadd.f32 %v19787_v38, %v8664_v12  ;;  %v19972_v26 = vadd.f32 %v19900_v10, %v19805_v47  ;;  %v8838_v52 = vmul.f32 %v8802_v15, %v23415_v21  ;;  %v8726_v23 = vadd.f32 %v19828_v39, %v8654_v46 }
 0x79e   :  { %v8828_v19 = vmul.f32 %v8792_v25, %v23418_v2  ;;  %v8629_v32 = vpop.f32.mrf.mxu0  ;;  %v19977_v7 = vpack.c.bf16 %v8833_v28, %v8827_v27  ;;  %v8793_v31 = vmax.f32 %v19958_v34, %v8757_v62  ;;  %v8665_v17 = vadd.f32 %v8568_v24, %v19853_v30  ;;  %8949 = vrot.lane.b32.xlu0 %v19966_v13, %s14400_s27  ;;  %v8576_v15 = vpop.f32.mrf.mxu1 }
 0x79f   :  { %v8772_v54 = vmul.f32 0.01, %v8736_v5  ;;  %8935 = vrot.lane.b32.xlu1 %v19929_v16, %s14400_s27  ;;  %v8839_v47 = vmul.f32 %v8803_v59, %v23416_v36  ;;  %v8762_v10 = vmul.f32 0.01, %v8726_v23  ;;  %v8655_v40 = vadd.f32 %v8621_v4, %v19880_v63 }
 0x7a0   :  { %v8670_v61 = vadd.f32 %v8572_v53, %v19857_v33  ;;  %v8631_v27 = vpop.f32.mrf.mxu0  ;;  %v8737_v58 = vadd.f32 %v19787_v38, %v8665_v17  ;;  %v8660_v34 = vadd.f32 %v8625_v20, %v19883_v57  ;;  %v8671_v30 = vadd.f32 %v8574_v0, %v19861_v51 }
 0x7a1   :  { %v8808_v50 = vmax.f32 %v8736_v5, %v8772_v54  ;;  %v8798_v24 = vmax.f32 %v8726_v23, %v8762_v10  ;;  %v8727_v55 = vadd.f32 %v19828_v39, %v8655_v40  ;;  %v8661_v14 = vadd.f32 %v8627_v35, %v19890_v1  ;;  %v8578_v40 = vpop.f32.mrf.mxu1 }
 0x7a2   :  { %v8742_v9 = vadd.f32 %v23412_v29, %v8670_v61  ;;  %v8635_v12 = vpop.f32.mrf.mxu0  ;;  %v8773_v4 = vmul.f32 0.01, %v8737_v58  ;;  %v8732_v33 = vadd.f32 %v23404_v42, %v8660_v34  ;;  %v8743_v53 = vadd.f32 %v23412_v29, %v8671_v30  ;;  %8937 = vrot.lane.b32.xlu0 %v19936_v37, %s14400_s27 }
 0x7a3   :  { %v8844_v63 = vmul.f32 %v8808_v50, %v23415_v21  ;;  %8923 = vrot.lane.b32.xlu1 %v19896_v49, %s14400_s27  ;;  %v8834_v39 = vmul.f32 %v8798_v24, %v23418_v2  ;;  %v8763_v51 = vmul.f32 0.01, %v8727_v55  ;;  %v20003_v1 = vadd.f32 %v23404_v42, %v8661_v14 }
 0x7a4   :  { %v8778_v57 = vmul.f32 0.01, %v8742_v9  ;;  %v8637_v20 = vpop.f32.mrf.mxu0  ;;  %v8809_v62 = vmax.f32 %v8737_v58, %v8773_v4  ;;  %v8768_v46 = vmul.f32 0.01, %v8732_v33  ;;  %v8779_v35 = vmul.f32 0.01, %v8743_v53 }
 0x7a5   :  { %v20005_v25 = vpack.c.bf16 %v8844_v63, %v8838_v52  ;;  %v20007_v28 = vpack.c.bf16 %v8834_v39, %v8828_v19  ;;  %v8799_v59 = vmax.f32 %v8727_v55, %v8763_v51  ;;  %v8769_v23 = vmul.f32 0.01, %v20003_v1  ;;  %v23419_v52 = vld [vmem:[#allocation18_spill] sm:$0xff] }
 0x7a6   :  { %v8814_v5 = vmax.f32 %v8742_v9, %v8778_v57  ;;  %v8639_v0 = vpop.f32.mrf.mxu0  ;;  %v8845_v54 = vmul.f32 %v8809_v62, %v23416_v36  ;;  %v8804_v17 = vmax.f32 %v8732_v33, %v8768_v46  ;;  %v8815_v10 = vmax.f32 %v8743_v53, %v8779_v35  ;;  %8925 = vrot.lane.b32.xlu0 %v19908_v44, %s14400_s27 }
 0x7a7   :  { %v8676_v42 = vadd.f32 %v8576_v15, %v19870_v56  ;;  %v8829_v61 = vmul.f32 %v8793_v31, %v23419_v52  ;;  %v8835_v19 = vmul.f32 %v8799_v59, %v23419_v52  ;;  %v8666_v58 = vadd.f32 %v8629_v32, %v19894_v60 }
 0x7a8   :  { %v8850_v50 = vmul.f32 %v8814_v5, %v23415_v21  ;;  %v20018_v34 = vpack.c.bf16 %v8845_v54, %v8839_v47  ;;  %v8840_v30 = vmul.f32 %v8804_v17, %v23418_v2  ;;  %v8805_v24 = vmax.f32 %v20003_v1, %v8769_v23  ;;  %v8641_v55 = vpop.f32.mrf.mxu0 }
 0x7a9   :  { %v8748_v56 = vadd.f32 %v23414_v41, %v8676_v42  ;;  %v20023_v9 = vpack.c.bf16 %v8835_v19, %v8829_v61  ;;  %v8851_v14 = vmul.f32 %v8815_v10, %v23416_v36  ;;  %v8738_v31 = vadd.f32 %v19787_v38, %v8666_v58 }
 0x7aa   :  { %v8677_v63 = vadd.f32 %v8578_v40, %v19877_v3  ;;  %v8667_v60 = vadd.f32 %v8631_v27, %v19903_v45  ;;  %v8672_v32 = vadd.f32 %v8635_v12, %v19906_v6  ;;  %v8673_v47 = vadd.f32 %v8637_v20, %v19911_v11  ;;  %8941 = vrot.lane.b32.xlu0 %v20018_v34, %s14400_s27 }
 0x7ab   :  { %v8784_v4 = vmul.f32 0.01, %v8748_v56  ;;  %v8774_v33 = vmul.f32 0.01, %v8738_v31  ;;  %v8678_v15 = vadd.f32 %v8639_v0, %v19914_v48  ;;  %v8679_v39 = vadd.f32 %v8641_v55, %v19972_v26 }
 0x7ac   :  { %v8749_v53 = vadd.f32 %v23414_v41, %v8677_v63  ;;  %v8739_v3 = vadd.f32 %v19787_v38, %v8667_v60  ;;  %v8744_v57 = vadd.f32 %v23412_v29, %v8672_v32  ;;  %v8745_v45 = vadd.f32 %v23412_v29, %v8673_v47 }
 0x7ad   :  { %v8820_v51 = vmax.f32 %v8748_v56, %v8784_v4  ;;  %v8810_v6 = vmax.f32 %v8738_v31, %v8774_v33  ;;  %v8750_v11 = vadd.f32 %v23414_v41, %v8678_v15  ;;  %v8751_v12 = vadd.f32 %v23414_v41, %v8679_v39  ;;  %v23420_v4 = vld [vmem:[#allocation5_spill] sm:$0xff] }
 0x7ae   :  { %v8785_v27 = vmul.f32 0.01, %v8749_v53  ;;  %v8775_v20 = vmul.f32 0.01, %v8739_v3  ;;  %v8780_v62 = vmul.f32 0.01, %v8744_v57  ;;  %8929 = vrot.lane.b32.xlu0 %v19977_v7, %s14400_s27  ;;  %v8841_v10 = vmul.f32 %v8805_v24, %v23419_v52 }
 0x7af   :  { %v8856_v1 = vmul.f32 %v8820_v51, %v23415_v21  ;;  %v8781_v48 = vmul.f32 0.01, %v8745_v45  ;;  %v8846_v38 = vmul.f32 %v8810_v6, %v23418_v2  ;;  %v8786_v46 = vmul.f32 0.01, %v8750_v11 }
 0x7b0   :  { %v8821_v26 = vmax.f32 %v8749_v53, %v8785_v27  ;;  %v8787_v35 = vmul.f32 0.01, %v8751_v12  ;;  %v8811_v59 = vmax.f32 %v8739_v3, %v8775_v20  ;;  %v8816_v5 = vmax.f32 %v8744_v57, %v8780_v62  ;;  %v20182_v3 = vld [vmem:[%s23011_s8 + $0x18] sm:$0xff]   ;;  %v20198_v27 = vld [vmem:[%s23011_s8 + $0x20] sm:$0xff]  }
 0x7b1   :  { %v20045_v29 = vpack.c.bf16 %v8856_v1, %v8850_v50  ;;  %v8817_v23 = vmax.f32 %v8745_v45, %v8781_v48  ;;  %v20047_v0 = vpack.c.bf16 %v8846_v38, %v8840_v30  ;;  %v8822_v54 = vmax.f32 %v8750_v11, %v8786_v46 }
 0x7b2   :  { %v8857_v41 = vmul.f32 %v8821_v26, %v23416_v36  ;;  %v8823_v17 = vmax.f32 %v8751_v12, %v8787_v35  ;;  %v8847_v42 = vmul.f32 %v8811_v59, %v23419_v52  ;;  %v8852_v40 = vmul.f32 %v8816_v5, %v23418_v2  ;;  %v20217_v26 = vld [vmem:[%s23011_s8 + $0x28] sm:$0xff]  }
 0x7b3   :  { %8951 = vrot.lane.b32.xlu1 %v20045_v29, %s14400_s27  ;;  %v8853_v19 = vmul.f32 %v8817_v23, %v23419_v52  ;;  %v8858_v50 = vmul.f32 %v8822_v54, %v23418_v2  ;;  %v23421_v45 = vmov 0  }
 0x7b4   :  { %v20055_v61 = vpack.c.bf16 %v8857_v41, %v8851_v14  ;;  %v8859_v58 = vmul.f32 %v8823_v17, %v23419_v52  ;;  %v20060_v30 = vpack.c.bf16 %v8847_v42, %v8841_v10 }
 0x7b5   :  { %v20062_v56 = vpack.c.bf16 %v8858_v50, %v8852_v40 }
 0x7b6   :  { %v20064_v24 = vpack.c.bf16 %v8859_v58, %v8853_v19  ;;  %8953 = vrot.lane.b32.xlu0 %v20055_v61, %s14400_s27 }
 0x7b7   :  { %8939 = vrot.lane.b32.xlu1 %v20005_v25, %s14400_s27 }
 0x7ba   :  { %8957 = vrot.lane.b32.xlu0 %v20064_v24, %s14400_s27 }
 0x7bb   :  { %8927 = vrot.lane.b32.xlu1 %v19955_v22, %s14400_s27 }
 0x7be   :  { %8945 = vrot.lane.b32.xlu0 %v20060_v30, %s14400_s27 }
 0x7bf   :  { %8955 = vrot.lane.b32.xlu1 %v20062_v56, %s14400_s27 }
 0x7c2   :  { %8933 = vrot.lane.b32.xlu0 %v20023_v9, %s14400_s27 }
 0x7c3   :  { %8943 = vrot.lane.b32.xlu1 %v20047_v0, %s14400_s27 }
 0x7c6   :  { %9234 = vrot.lane.b32.xlu0 %v19966_v13, %s14401_s0 }
 0x7c7   :  { %8931 = vrot.lane.b32.xlu1 %v20007_v28, %s14400_s27 }
 0x7ca   :  { %9222 = vrot.lane.b32.xlu0 %v19936_v37, %s14401_s0 }
 0x7cb   :  { %9232 = vrot.lane.b32.xlu1 %v19952_v43, %s14401_s0 }
 0x7ce   :  { %9238 = vrot.lane.b32.xlu0 %v20055_v61, %s14401_s0 }
 0x7cf   :  { %9220 = vrot.lane.b32.xlu1 %v19929_v16, %s14401_s0 }
 0x7d2   :  { %9210 = vrot.lane.b32.xlu0 %v19908_v44, %s14401_s0 }
 0x7d3   :  { %9236 = vrot.lane.b32.xlu1 %v20045_v29, %s14401_s0 }
 0x7d6   :  { %9226 = vrot.lane.b32.xlu0 %v20018_v34, %s14401_s0 }
 0x7d7   :  { %9208 = vrot.lane.b32.xlu1 %v19896_v49, %s14401_s0 }
 0x7da   :  { %9214 = vrot.lane.b32.xlu0 %v19977_v7, %s14401_s0 }
 0x7db   :  { %9224 = vrot.lane.b32.xlu1 %v20005_v25, %s14401_s0 }
 0x7de   :  { %9230 = vrot.lane.b32.xlu0 %v20060_v30, %s14401_s0 }
 0x7df   :  { %9212 = vrot.lane.b32.xlu1 %v19955_v22, %s14401_s0 }
 0x7e2   :  { %9525 = vrot.lane.b32.xlu0 %v19966_v13, %s14402_s16 }
 0x7e3   :  { %9240 = vrot.lane.b32.xlu1 %v20062_v56, %s14401_s0 }
 0x7e6   :  { %9242 = vrot.lane.b32.xlu0 %v20064_v24, %s14401_s0 }
 0x7e7   :  { %9228 = vrot.lane.b32.xlu1 %v20047_v0, %s14401_s0 }
 0x7ea   :  { %9218 = vrot.lane.b32.xlu0 %v20023_v9, %s14401_s0 }
 0x7eb   :  { %9523 = vrot.lane.b32.xlu1 %v19952_v43, %s14402_s16 }
 0x7ee   :  { %9513 = vrot.lane.b32.xlu0 %v19936_v37, %s14402_s16 }
 0x7ef   :  { %9216 = vrot.lane.b32.xlu1 %v20007_v28, %s14401_s0 }
 0x7f2   :  { %9501 = vrot.lane.b32.xlu0 %v19908_v44, %s14402_s16 }
 0x7f3   :  { %9511 = vrot.lane.b32.xlu1 %v19929_v16, %s14402_s16 }
 0x7f6   :  { %9529 = vrot.lane.b32.xlu0 %v20055_v61, %s14402_s16 }
 0x7f7   :  { %9499 = vrot.lane.b32.xlu1 %v19896_v49, %s14402_s16 }
 0x7fa   :  { %9517 = vrot.lane.b32.xlu0 %v20018_v34, %s14402_s16 }
 0x7fb   :  { %9527 = vrot.lane.b32.xlu1 %v20045_v29, %s14402_s16 }
 0x7fe   :  { %9505 = vrot.lane.b32.xlu0 %v19977_v7, %s14402_s16 }
 0x7ff   :  { %9515 = vrot.lane.b32.xlu1 %v20005_v25, %s14402_s16 }
 0x802   :  { %9533 = vrot.lane.b32.xlu0 %v20064_v24, %s14402_s16 }
 0x803   :  { %9531 = vrot.lane.b32.xlu1 %v20062_v56, %s14402_s16 }
 0x806   :  { %9521 = vrot.lane.b32.xlu0 %v20060_v30, %s14402_s16 }
 0x807   :  { %9503 = vrot.lane.b32.xlu1 %v19955_v22, %s14402_s16 }
 0x80a   :  { %9509 = vrot.lane.b32.xlu0 %v20023_v9, %s14402_s16 }
 0x80b   :  { %9519 = vrot.lane.b32.xlu1 %v20047_v0, %s14402_s16 }
 0x80d   :  { %v8948_v55 = vpop.permute.xlu1 %8947 }
 0x80e   :  { %9852 = vrot.lane.b32.xlu0 %v19966_v13, %s14403_s17  ;;  %v8971_v60 = vsel %vm104_vm0, %v23420_v4, %v8948_v55 }
 0x80f   :  { %9507 = vrot.lane.b32.xlu1 %v20007_v28, %s14402_s16 }
 0x810   :  { %v8950_v14 = vpop.permute.xlu0 %8949 }
 0x811   :  { %v8972_v31 = vsel %vm104_vm0, %v8948_v55, %v8950_v14  ;;  %v8936_v63 = vpop.permute.xlu1 %8935 }
 0x812   :  { %9840 = vrot.lane.b32.xlu0 %v19936_v37, %s14403_s17  ;;  %9014 = vmatprep.subr.bf16.mxu1 %v8972_v31  ;;  %v8965_v33 = vsel %vm104_vm0, %v23420_v4, %v8936_v63 }
 0x813   :  { %9850 = vrot.lane.b32.xlu1 %v19952_v43, %s14403_s17  ;;  %9015 = vmatpush1.bf16.msra.mxu1 %v8971_v60 }
 0x814   :  { %v8938_v32 = vpop.permute.xlu0 %8937 }
 0x815   :  { %v8966_v47 = vsel %vm104_vm0, %v8936_v63, %v8938_v32  ;;  %v8924_v53 = vpop.permute.xlu1 %8923 }
 0x816   :  { %9856 = vrot.lane.b32.xlu0 %v20055_v61, %s14403_s17  ;;  %9016 = vmatprep.subr.bf16.mxu1 %v8966_v47  ;;  %v8959_v51 = vsel %vm104_vm0, %v23420_v4, %v8924_v53 }
 0x817   :  { %9838 = vrot.lane.b32.xlu1 %v19929_v16, %s14403_s17  ;;  %9017 = vmatpush1.bf16.msra.mxu1 %v8965_v33 }
 0x818   :  { %v8926_v15 = vpop.permute.xlu0 %8925 }
 0x819   :  { %v8960_v39 = vsel %vm104_vm0, %v8924_v53, %v8926_v15 }
 0x81a   :  { %9828 = vrot.lane.b32.xlu0 %v19908_v44, %s14403_s17  ;;  %9018 = vmatprep.subr.bf16.mxu1 %v8960_v39 }
 0x81b   :  { %9854 = vrot.lane.b32.xlu1 %v20045_v29, %s14403_s17  ;;  %9019 = vmatpush1.bf16.msra.mxu1 %v8959_v51 }
 0x81c   :  { %v8942_v57 = vpop.permute.xlu0 %8941 }
 0x81e   :  { %9844 = vrot.lane.b32.xlu0 %v20018_v34, %s14403_s17  ;;  %14111 = vmatmul.mubr.msk.bf16.vlgmr.msra.gmra.mxu1 %vm2964_vm10, %v20182_v3 }
 0x81f   :  { %9826 = vrot.lane.b32.xlu1 %v19896_v49, %s14403_s17  ;;  %9046 = vmatprep.mubr.bf16.mxu1 %v23421_v45 }
 0x820   :  { %v8930_v6 = vpop.permute.xlu0 %8929 }
 0x822   :  { %9832 = vrot.lane.b32.xlu0 %v19977_v7, %s14403_s17 }
 0x823   :  { %9842 = vrot.lane.b32.xlu1 %v20005_v25, %s14403_s17 }
 0x825   :  { %v8952_v11 = vpop.permute.xlu1 %8951 }
 0x826   :  { %9860 = vrot.lane.b32.xlu0 %v20064_v24, %s14403_s17  ;;  %14112 = vmatmul.mubr.msk.bf16.gmra.mxu1 %vm2964_vm10, %v20198_v27  ;;  %v8973_v62 = vsel %vm104_vm0, %v8950_v14, %v8952_v11 }
 0x827   :  { %9830 = vrot.lane.b32.xlu1 %v19955_v22, %s14403_s17  ;;  %9056 = vmatprep.mubr.bf16.mxu1 %v23421_v45 }
 0x828   :  { %v8954_v12 = vpop.permute.xlu0 %8953 }
 0x829   :  { %v8940_v1 = vpop.permute.xlu1 %8939  ;;  %v8974_v20 = vsel %vm104_vm0, %v8952_v11, %v8954_v12 }
 0x82a   :  { %9848 = vrot.lane.b32.xlu0 %v20060_v30, %s14403_s17  ;;  %9077 = vmatprep.subr.bf16.mxu0 %v8974_v20  ;;  %v8968_v48 = vsel %vm104_vm0, %v8940_v1, %v8942_v57  ;;  %v8967_v35 = vsel %vm104_vm0, %v8938_v32, %v8940_v1  ;;  %v23422_v32 = vld [vmem:[#allocation6_spill] sm:$0xff] }
 0x82b   :  { %9858 = vrot.lane.b32.xlu1 %v20062_v56, %s14403_s17  ;;  %9078 = vmatpush1.bf16.msra.mxu0 %v8973_v62  ;;  %v20295_v62 = vld [vmem:[%s23011_s8] sm:$0xff]  }
 0x82c   :  { %v8958_v38 = vpop.permute.xlu0 %8957  ;;  %9079 = vmatprep.subr.bf16.mxu0 %v8968_v48 }
 0x82d   :  { %v8928_v46 = vpop.permute.xlu1 %8927 }
 0x82e   :  { %9836 = vrot.lane.b32.xlu0 %v20023_v9, %s14403_s17  ;;  %v8962_v59 = vsel %vm104_vm0, %v8928_v46, %v8930_v6  ;;  %14113 = vmatmul.mubr.msk.bf16.gmra.mxu1 %vm2964_vm10, %v20217_v26  ;;  %v8961_v17 = vsel %vm104_vm0, %v8926_v15, %v8928_v46 }
 0x82f   :  { %9846 = vrot.lane.b32.xlu1 %v20047_v0, %s14403_s17  ;;  %9080 = vmatpush1.bf16.msra.mxu0 %v8967_v35 }
 0x830   :  { %v8946_v5 = vpop.permute.xlu0 %8945  ;;  %9081 = vmatprep.subr.bf16.mxu0 %v8962_v59  ;;  %9162 = vmatprep.mubr.bf16.mxu1 %v23421_v45 }
 0x831   :  { %v8956_v23 = vpop.permute.xlu1 %8955 }
 0x832   :  { %v8976_v41 = vsel %vm104_vm0, %v8956_v23, %v8958_v38  ;;  %v8975_v54 = vsel %vm104_vm0, %v8954_v12, %v8956_v23  ;;  %10436 = vrot.lane.b32.xlu0 %v20045_v29, %s14404_s18 }
 0x833   :  { %9834 = vrot.lane.b32.xlu1 %v20007_v28, %s14403_s17  ;;  %9140 = vmatprep.subr.bf16.mxu1 %v8976_v41  ;;  %v20320_v41 = vld [vmem:[%s23011_s8 + $0x8] sm:$0xff]  }
 0x834   :  { %9141 = vmatpush1.bf16.msra.mxu1 %v8975_v54  ;;  %9082 = vmatpush1.bf16.msra.mxu0 %v8961_v17  ;;  %v8934_v10 = vpop.permute.xlu0 %8933 }
 0x835   :  { %v8944_v42 = vpop.permute.xlu1 %8943 }
 0x836   :  { %v8970_v40 = vsel %vm104_vm0, %v8944_v42, %v8946_v5  ;;  %v8969_v19 = vsel %vm104_vm0, %v8942_v57, %v8944_v42  ;;  %10422 = vrot.lane.b32.xlu0 %v19936_v37, %s14404_s18 }
 0x837   :  { %10434 = vrot.lane.b32.xlu1 %v19966_v13, %s14404_s18  ;;  %9142 = vmatprep.subr.bf16.mxu1 %v8970_v40 }
 0x838   :  { %9143 = vmatpush1.bf16.msra.mxu1 %v8969_v19  ;;  %14114 = vmatmul.mubr.msk.bf16.vlgmr.msra.gmra.mxu0 %vm2964_vm10, %v20182_v3  ;;  %v9235_v50 = vpop.permute.xlu0 %9234 }
 0x839   :  { %v8932_v58 = vpop.permute.xlu1 %8931  ;;  %9109 = vmatprep.mubr.bf16.mxu0 %v23421_v45 }
 0x83a   :  { %v8964_v55 = vsel %vm104_vm0, %v8932_v58, %v8934_v10  ;;  %v8963_v14 = vsel %vm104_vm0, %v8930_v6, %v8932_v58  ;;  %10438 = vrot.lane.b32.xlu0 %v20055_v61, %s14404_s18  ;;  %v20343_v58 = vld [vmem:[%s23011_s8 + $0x10] sm:$0xff]  }
 0x83b   :  { %10432 = vrot.lane.b32.xlu1 %v19952_v43, %s14404_s18  ;;  %9144 = vmatprep.subr.bf16.mxu1 %v8964_v55 }
 0x83c   :  { %9145 = vmatpush1.bf16.msra.mxu1 %v8963_v14  ;;  %v9223_v31 = vpop.permute.xlu0 %9222 }
 0x83d   :  { %v9233_v63 = vpop.permute.xlu1 %9232 }
 0x83e   :  { %v9257_v60 = vsel %vm358_vm3, %v9233_v63, %v9235_v50  ;;  %v9256_v47 = vsel %vm358_vm3, %v23422_v32, %v9233_v63  ;;  %10420 = vrot.lane.b32.xlu0 %v19929_v16, %s14404_s18 }
 0x83f   :  { %10424 = vrot.lane.b32.xlu1 %v20005_v25, %s14404_s18  ;;  %14117 = vmatmul.mubr.msk.bf16.vlgmr.msra.gmra.mxu1 %vm2964_vm10, %v20182_v3 }
 0x840   :  { %9299 = vmatprep.subr.bf16.mxu0 %v9257_v60  ;;  %14115 = vmatmul.mubr.msk.bf16.gmra.mxu0 %vm2964_vm10, %v20198_v27  ;;  %v20261_v33 = vpop.permute.xlu0 %9238 }
 0x841   :  { %9300 = vmatpush1.bf16.msra.mxu0 %v9256_v47  ;;  %v9221_v53 = vpop.permute.xlu1 %9220  ;;  %9172 = vmatprep.mubr.bf16.mxu1 %v23421_v45 }
 0x842   :  { %v9251_v15 = vsel %vm358_vm3, %v9221_v53, %v9223_v31  ;;  %v9250_v39 = vsel %vm358_vm3, %v23422_v32, %v9221_v53  ;;  %10412 = vrot.lane.b32.xlu0 %v19955_v22, %s14404_s18  ;;  %9119 = vmatprep.mubr.bf16.mxu0 %v23421_v45 }
 0x843   :  { %10440 = vrot.lane.b32.xlu1 %v20062_v56, %s14404_s18  ;;  %9301 = vmatprep.subr.bf16.mxu0 %v9251_v15 }
 0x844   :  { %v9211_v51 = vpop.permute.xlu0 %9210 }
 0x845   :  { %9302 = vmatpush1.bf16.msra.mxu0 %v9250_v39  ;;  %v9237_v3 = vpop.permute.xlu1 %9236 }
 0x846   :  { %v9259_v57 = vsel %vm358_vm3, %v9237_v3, %v20261_v33  ;;  %v9258_v6 = vsel %vm358_vm3, %v9235_v50, %v9237_v3  ;;  %10428 = vrot.lane.b32.xlu0 %v20047_v0, %s14404_s18 }
 0x847   :  { %10410 = vrot.lane.b32.xlu1 %v19908_v44, %s14404_s18  ;;  %14118 = vmatmul.mubr.msk.bf16.gmra.mxu1 %vm2964_vm10, %v20198_v27 }
 0x848   :  { %9362 = vmatprep.subr.bf16.mxu1 %v9259_v57  ;;  %14116 = vmatmul.mubr.msk.bf16.gmra.mxu0 %vm2964_vm10, %v20217_v26  ;;  %v9227_v11 = vpop.permute.xlu0 %9226 }
 0x849   :  { %9363 = vmatpush1.bf16.msra.mxu1 %v9258_v6  ;;  %v9209_v12 = vpop.permute.xlu1 %9208  ;;  %9182 = vmatprep.mubr.bf16.mxu1 %v23421_v45 }
 0x84a   :  { %v9245_v1 = vsel %vm358_vm3, %v9209_v12, %v9211_v51  ;;  %v9244_v20 = vsel %vm358_vm3, %v23422_v32, %v9209_v12  ;;  %10414 = vrot.lane.b32.xlu0 %v19977_v7, %s14404_s18  ;;  %9321 = vmatprep.mubr.bf16.mxu0 %v23421_v45 }
 0x84b   :  { %10426 = vrot.lane.b32.xlu1 %v20018_v34, %s14404_s18  ;;  %9303 = vmatprep.subr.bf16.mxu0 %v9245_v1 }
 0x84c   :  { %9304 = vmatpush1.bf16.msra.mxu0 %v9244_v20  ;;  %v9215_v27 = vpop.permute.xlu0 %9214 }
 0x84d   :  { %v9225_v48 = vpop.permute.xlu1 %9224 }
 0x84e   :  { %v9253_v38 = vsel %vm358_vm3, %v9225_v48, %v9227_v11  ;;  %v9252_v46 = vsel %vm358_vm3, %v9223_v31, %v9225_v48  ;;  %10761 = vrot.lane.b32.xlu0 %v19966_v13, %s14405_s19  ;;  %v23423_v31 = vld [vmem:[#allocation7_spill] sm:$0xff] }
 0x84f   :  { %10408 = vrot.lane.b32.xlu1 %v19896_v49, %s14404_s18  ;;  %14119 = vmatmul.mubr.msk.bf16.gmra.mxu1 %vm2964_vm10, %v20217_v26 }
 0x850   :  { %9364 = vmatprep.subr.bf16.mxu1 %v9253_v38  ;;  %14123 = vmatmul.mubr.msk.bf16.vlgmr.msra.gmra.mxu0 %vm2964_vm10, %v20295_v62  ;;  %v9231_v35 = vpop.permute.xlu0 %9230 }
 0x851   :  { %9365 = vmatpush1.bf16.msra.mxu1 %v9252_v46  ;;  %v9213_v59 = vpop.permute.xlu1 %9212  ;;  %9384 = vmatprep.mubr.bf16.mxu1 %v23421_v45 }
 0x852   :  { %v9247_v5 = vsel %vm358_vm3, %v9213_v59, %v9215_v27  ;;  %v9246_v23 = vsel %vm358_vm3, %v9211_v51, %v9213_v59  ;;  %10759 = vrot.lane.b32.xlu0 %v19952_v43, %s14405_s19  ;;  %9331 = vmatprep.mubr.bf16.mxu0 %v23421_v45 }
 0x853   :  { %10416 = vrot.lane.b32.xlu1 %v20007_v28, %s14404_s18  ;;  %9366 = vmatprep.subr.bf16.mxu1 %v9247_v5 }
 0x854   :  { %v20315_v26 = vpop.permute.xlu0 %9525 }
 0x855   :  { %9367 = vmatpush1.bf16.msra.mxu1 %v9246_v23  ;;  %v9241_v54 = vpop.permute.xlu1 %9240 }
 0x856   :  { %10442 = vrot.lane.b32.xlu0 %v20064_v24, %s14404_s18  ;;  %v9260_v40 = vsel %vm358_vm3, %v20261_v33, %v9241_v54 }
 0x857   :  { %10430 = vrot.lane.b32.xlu1 %v20060_v30, %s14404_s18 }
 0x858   :  { %14126 = vmatmul.mubr.msk.bf16.vlgmr.msra.gmra.mxu1 %vm2964_vm10, %v20295_v62  ;;  %14124 = vmatmul.mubr.msk.bf16.gmra.mxu0 %vm2964_vm10, %v20320_v41  ;;  %v9243_v17 = vpop.permute.xlu0 %9242 }
 0x859   :  { %v9229_v10 = vpop.permute.xlu1 %9228  ;;  %v9261_v42 = vsel %vm358_vm3, %v9241_v54, %v9243_v17  ;;  %9394 = vmatprep.mubr.bf16.mxu1 %v23421_v45  ;;  %9341 = vmatprep.mubr.bf16.mxu0 %v23421_v45 }
 0x85a   :  { %10749 = vrot.lane.b32.xlu0 %v19936_v37, %s14405_s19  ;;  %9425 = vmatprep.subr.bf16.mxu0 %v9261_v42  ;;  %v9255_v19 = vsel %vm358_vm3, %v9229_v10, %v9231_v35  ;;  %v9254_v60 = vsel %vm358_vm3, %v9227_v11, %v9229_v10 }
 0x85b   :  { %10763 = vrot.lane.b32.xlu1 %v20045_v29, %s14405_s19  ;;  %9426 = vmatpush1.bf16.msra.mxu0 %v9260_v40 }
 0x85c   :  { %v9219_v50 = vpop.permute.xlu0 %9218  ;;  %9427 = vmatprep.subr.bf16.mxu0 %v9255_v19 }
 0x85d   :  { %v9524_v55 = vpop.permute.xlu1 %9523 }
 0x85e   :  { %v9548_v14 = vsel %vm616_vm4, %v9524_v55, %v20315_v26  ;;  %v9547_v63 = vsel %vm616_vm4, %v23423_v31, %v9524_v55  ;;  %10747 = vrot.lane.b32.xlu0 %v19929_v16, %s14405_s19 }
 0x85f   :  { %10418 = vrot.lane.b32.xlu1 %v20023_v9, %s14404_s18  ;;  %9590 = vmatprep.subr.bf16.mxu1 %v9548_v14 }
 0x860   :  { %14127 = vmatmul.mubr.msk.bf16.gmra.mxu1 %vm2964_vm10, %v20320_v41  ;;  %14125 = vmatmul.mubr.msk.bf16.gmra.mxu0 %vm2964_vm10, %v20343_v58  ;;  %v9514_v47 = vpop.permute.xlu0 %9513 }
 0x861   :  { %9591 = vmatpush1.bf16.msra.mxu1 %v9547_v63  ;;  %v9217_v33 = vpop.permute.xlu1 %9216  ;;  %9428 = vmatpush1.bf16.msra.mxu0 %v9254_v60 }
 0x862   :  { %v9249_v53 = vsel %vm358_vm3, %v9217_v33, %v9219_v50  ;;  %10739 = vrot.lane.b32.xlu0 %v19955_v22, %s14405_s19  ;;  %9404 = vmatprep.mubr.bf16.mxu1 %v23421_v45  ;;  %v9248_v15 = vsel %vm358_vm3, %v9215_v27, %v9217_v33  ;;  %v20389_v27 = vld [vmem:[%s23011_s8 + $0x30] sm:$0xff]  }
 0x863   :  { %10751 = vrot.lane.b32.xlu1 %v20005_v25, %s14405_s19  ;;  %9429 = vmatprep.subr.bf16.mxu0 %v9249_v53 }
 0x864   :  { %v9502_v39 = vpop.permute.xlu0 %9501  ;;  %9447 = vmatprep.mubr.bf16.mxu0 %v23421_v45 }
 0x865   :  { %v9512_v51 = vpop.permute.xlu1 %9511  ;;  %9430 = vmatpush1.bf16.msra.mxu0 %v9248_v15 }
 0x866   :  { %v9542_v3 = vsel %vm616_vm4, %v9512_v51, %v9514_v47  ;;  %v9541_v57 = vsel %vm616_vm4, %v23423_v31, %v9512_v51  ;;  %10765 = vrot.lane.b32.xlu0 %v20055_v61, %s14405_s19 }
 0x867   :  { %10737 = vrot.lane.b32.xlu1 %v19908_v44, %s14405_s19  ;;  %9592 = vmatprep.subr.bf16.mxu1 %v9542_v3  ;;  %v23424_v3 = vld [vmem:[#allocation8_spill] sm:$0xff] }
 0x868   :  { %14128 = vmatmul.mubr.msk.bf16.gmra.mxu1 %vm2964_vm10, %v20343_v58  ;;  %14129 = vmatmul.mubr.msk.bf16.vlgmr.msra.gmra.mxu0 %vm2964_vm10, %v20295_v62  ;;  %v9530_v6 = vpop.permute.xlu0 %9529 }
 0x869   :  { %9593 = vmatpush1.bf16.msra.mxu1 %v9541_v57  ;;  %v9500_v11 = vpop.permute.xlu1 %9499  ;;  %9612 = vmatprep.mubr.bf16.mxu1 %v23421_v45 }
 0x86a   :  { %v9536_v12 = vsel %vm616_vm4, %v9500_v11, %v9502_v39  ;;  %v9535_v1 = vsel %vm616_vm4, %v23423_v31, %v9500_v11  ;;  %10753 = vrot.lane.b32.xlu0 %v20018_v34, %s14405_s19  ;;  %9457 = vmatprep.mubr.bf16.mxu0 %v23421_v45 }
 0x86b   :  { %10735 = vrot.lane.b32.xlu1 %v19896_v49, %s14405_s19  ;;  %9594 = vmatprep.subr.bf16.mxu1 %v9536_v12 }
 0x86c   :  { %v9518_v20 = vpop.permute.xlu0 %9517 }
 0x86d   :  { %9595 = vmatpush1.bf16.msra.mxu1 %v9535_v1  ;;  %v9528_v62 = vpop.permute.xlu1 %9527 }
 0x86e   :  { %v9550_v48 = vsel %vm616_vm4, %v9528_v62, %v9530_v6  ;;  %v9549_v38 = vsel %vm616_vm4, %v20315_v26, %v9528_v62  ;;  %10743 = vrot.lane.b32.xlu0 %v20007_v28, %s14405_s19  ;;  %v20413_v26 = vld [vmem:[%s23011_s8 + $0x38] sm:$0xff]  }
 0x86f   :  { %10767 = vrot.lane.b32.xlu1 %v20062_v56, %s14405_s19  ;;  %9653 = vmatprep.subr.bf16.mxu0 %v9550_v48 }
 0x870   :  { %14135 = vmatmul.mubr.msk.bf16.vlgmr.msra.gmra.mxu1 %vm2964_vm10, %v20389_v27  ;;  %9654 = vmatpush1.bf16.msra.mxu0 %v9549_v38  ;;  %v9506_v46 = vpop.permute.xlu0 %9505 }
 0x871   :  { %14130 = vmatmul.mubr.msk.bf16.gmra.mxu0 %vm2964_vm10, %v20320_v41  ;;  %v9516_v35 = vpop.permute.xlu1 %9515  ;;  %9622 = vmatprep.mubr.bf16.mxu1 %v23421_v45 }
 0x872   :  { %v9544_v59 = vsel %vm616_vm4, %v9516_v35, %v9518_v20  ;;  %v9543_v5 = vsel %vm616_vm4, %v9514_v47, %v9516_v35  ;;  %10769 = vrot.lane.b32.xlu0 %v20064_v24, %s14405_s19  ;;  %9467 = vmatprep.mubr.bf16.mxu0 %v23421_v45 }
 0x873   :  { %10755 = vrot.lane.b32.xlu1 %v20047_v0, %s14405_s19  ;;  %9655 = vmatprep.subr.bf16.mxu0 %v9544_v59 }
 0x874   :  { %9656 = vmatpush1.bf16.msra.mxu0 %v9543_v5  ;;  %v9534_v23 = vpop.permute.xlu0 %9533 }
 0x875   :  { %v9532_v41 = vpop.permute.xlu1 %9531 }
 0x876   :  { %10745 = vrot.lane.b32.xlu0 %v20023_v9, %s14405_s19  ;;  %v9552_v54 = vsel %vm616_vm4, %v9532_v41, %v9534_v23  ;;  %v9551_v17 = vsel %vm616_vm4, %v9530_v6, %v9532_v41 }
 0x877   :  { %10741 = vrot.lane.b32.xlu1 %v19977_v7, %s14405_s19  ;;  %9716 = vmatprep.subr.bf16.mxu1 %v9552_v54 }
 0x878   :  { %14136 = vmatmul.mubr.msk.bf16.gmra.mxu1 %vm2964_vm10, %v20413_v26  ;;  %v9522_v10 = vpop.permute.xlu0 %9521 }
 0x879   :  { %14131 = vmatmul.mubr.msk.bf16.gmra.mxu0 %vm2964_vm10, %v20343_v58  ;;  %v9504_v42 = vpop.permute.xlu1 %9503  ;;  %9717 = vmatpush1.bf16.msra.mxu1 %v9551_v17  ;;  %v20435_v58 = vld [vmem:[%s23011_s8 + $0x40] sm:$0xff]  }
 0x87a   :  { %v9538_v40 = vsel %vm616_vm4, %v9504_v42, %v9506_v46  ;;  %v9537_v19 = vsel %vm616_vm4, %v9502_v39, %v9504_v42  ;;  %11090 = vrot.lane.b32.xlu0 %v20045_v29, %s14406_s20  ;;  %9632 = vmatprep.mubr.bf16.mxu1 %v23421_v45 }
 0x87b   :  { %10757 = vrot.lane.b32.xlu1 %v20060_v30, %s14405_s19  ;;  %9657 = vmatprep.subr.bf16.mxu0 %v9538_v40 }
 0x87c   :  { %9658 = vmatpush1.bf16.msra.mxu0 %v9537_v19  ;;  %v9510_v50 = vpop.permute.xlu0 %9509  ;;  %9675 = vmatprep.mubr.bf16.mxu0 %v23421_v45 }
 0x87d   :  { %v9520_v55 = vpop.permute.xlu1 %9519 }
 0x87e   :  { %v9546_v14 = vsel %vm616_vm4, %v9520_v55, %v9522_v10  ;;  %v9545_v63 = vsel %vm616_vm4, %v9518_v20, %v9520_v55  ;;  %11076 = vrot.lane.b32.xlu0 %v19936_v37, %s14406_s20 }
 0x87f   :  { %11088 = vrot.lane.b32.xlu1 %v19966_v13, %s14406_s20  ;;  %9718 = vmatprep.subr.bf16.mxu1 %v9546_v14 }
 0x880   :  { %14137 = vmatmul.mubr.msk.bf16.gmra.mxu1 %vm2964_vm10, %v20435_v58  ;;  %v9853_v60 = vpop.permute.xlu0 %9852 }
 0x881   :  { %9719 = vmatpush1.bf16.msra.mxu1 %v9545_v63  ;;  %14138 = vmatmul.mubr.msk.bf16.vlgmr.msra.gmra.mxu0 %vm2964_vm10, %v20389_v27  ;;  %v9508_v47 = vpop.permute.xlu1 %9507 }
 0x882   :  { %v9540_v33 = vsel %vm616_vm4, %v9508_v47, %v9510_v50  ;;  %v9539_v53 = vsel %vm616_vm4, %v9506_v46, %v9508_v47  ;;  %11092 = vrot.lane.b32.xlu0 %v20055_v61, %s14406_s20  ;;  %9738 = vmatprep.mubr.bf16.mxu1 %v23421_v45 }
 0x883   :  { %11086 = vrot.lane.b32.xlu1 %v19952_v43, %s14406_s20  ;;  %9720 = vmatprep.subr.bf16.mxu1 %v9540_v33 }
 0x884   :  { %v9841_v15 = vpop.permute.xlu0 %9840  ;;  %9685 = vmatprep.mubr.bf16.mxu0 %v23421_v45 }
 0x885   :  { %9721 = vmatpush1.bf16.msra.mxu1 %v9539_v53  ;;  %v9851_v39 = vpop.permute.xlu1 %9850  ;;  %v20550_v53 = vld [vmem:[%s23011_s8 + $0x58] sm:$0xff]  }
 0x886   :  { %v9875_v51 = vsel %vm910_vm5, %v9851_v39, %v9853_v60  ;;  %v9874_v57 = vsel %vm910_vm5, %v23424_v3, %v9851_v39  ;;  %11074 = vrot.lane.b32.xlu0 %v19929_v16, %s14406_s20 }
 0x887   :  { %11078 = vrot.lane.b32.xlu1 %v20005_v25, %s14406_s20  ;;  %9917 = vmatprep.subr.bf16.mxu0 %v9875_v51 }
 0x888   :  { %14141 = vmatmul.mubr.msk.bf16.vlgmr.msra.gmra.mxu1 %vm2964_vm10, %v20389_v27  ;;  %9918 = vmatpush1.bf16.msra.mxu0 %v9874_v57  ;;  %v9857_v6 = vpop.permute.xlu0 %9856 }
 0x889   :  { %14139 = vmatmul.mubr.msk.bf16.gmra.mxu0 %vm2964_vm10, %v20413_v26  ;;  %v9839_v11 = vpop.permute.xlu1 %9838  ;;  %9748 = vmatprep.mubr.bf16.mxu1 %v23421_v45 }
 0x88a   :  { %v9869_v12 = vsel %vm910_vm5, %v9839_v11, %v9841_v15  ;;  %v9868_v1 = vsel %vm910_vm5, %v23424_v3, %v9839_v11  ;;  %11066 = vrot.lane.b32.xlu0 %v19955_v22, %s14406_s20  ;;  %9695 = vmatprep.mubr.bf16.mxu0 %v23421_v45 }
 0x88b   :  { %11094 = vrot.lane.b32.xlu1 %v20062_v56, %s14406_s20  ;;  %9919 = vmatprep.subr.bf16.mxu0 %v9869_v12 }
 0x88c   :  { %9920 = vmatpush1.bf16.msra.mxu0 %v9868_v1  ;;  %v9829_v20 = vpop.permute.xlu0 %9828 }
 0x88d   :  { %v9855_v27 = vpop.permute.xlu1 %9854 }
 0x88e   :  { %v9877_v62 = vsel %vm910_vm5, %v9855_v27, %v9857_v6  ;;  %v9876_v48 = vsel %vm910_vm5, %v9853_v60, %v9855_v27  ;;  %11082 = vrot.lane.b32.xlu0 %v20047_v0, %s14406_s20 }
 0x88f   :  { %11064 = vrot.lane.b32.xlu1 %v19908_v44, %s14406_s20  ;;  %9980 = vmatprep.subr.bf16.mxu1 %v9877_v62  ;;  %v11698_v62 = vld [vmem:[%s23012_s9 + $0x18] sm:$0xff] }
 0x890   :  { %14142 = vmatmul.mubr.msk.bf16.gmra.mxu1 %vm2964_vm10, %v20413_v26  ;;  %v9845_v38 = vpop.permute.xlu0 %9844  ;;  %v20498_v26 = vld [vmem:[%s23011_s8 + $0x48] sm:$0xff]  }
 0x891   :  { %9981 = vmatpush1.bf16.msra.mxu1 %v9876_v48  ;;  %14140 = vmatmul.mubr.msk.bf16.gmra.mxu0 %vm2964_vm10, %v20435_v58  ;;  %v9827_v46 = vpop.permute.xlu1 %9826  ;;  %v11697_v48 = vld [vmem:[%s23012_s9 + $0x10] sm:$0xff] }
 0x892   :  { %v9863_v35 = vsel %vm910_vm5, %v9827_v46, %v9829_v20  ;;  %v9862_v59 = vsel %vm910_vm5, %v23424_v3, %v9827_v46  ;;  %11068 = vrot.lane.b32.xlu0 %v19977_v7, %s14406_s20  ;;  %9758 = vmatprep.mubr.bf16.mxu1 %v23421_v45 }
 0x893   :  { %11080 = vrot.lane.b32.xlu1 %v20018_v34, %s14406_s20  ;;  %9921 = vmatprep.subr.bf16.mxu0 %v9863_v35  ;;  %v11696_v35 = vld [vmem:[%s23012_s9 + $0x8] sm:$0xff] }
 0x894   :  { %9922 = vmatpush1.bf16.msra.mxu0 %v9862_v59  ;;  %v9833_v5 = vpop.permute.xlu0 %9832  ;;  %9939 = vmatprep.mubr.bf16.mxu0 %v23421_v45 }
 0x895   :  { %v9843_v23 = vpop.permute.xlu1 %9842 }
 0x896   :  { %v9871_v41 = vsel %vm910_vm5, %v9843_v23, %v9845_v38  ;;  %v9870_v54 = vsel %vm910_vm5, %v9841_v15, %v9843_v23  ;;  %11415 = vrot.lane.b32.xlu0 %v19966_v13, %s14407_s28  ;;  %v11695_v23 = vld [vmem:[%s23012_s9] sm:$0xff] }
 0x897   :  { %11062 = vrot.lane.b32.xlu1 %v19896_v49, %s14406_s20  ;;  %9982 = vmatprep.subr.bf16.mxu1 %v9871_v41 }
 0x898   :  { %14143 = vmatmul.mubr.msk.bf16.gmra.mxu1 %vm2964_vm10, %v20435_v58  ;;  %v9861_v17 = vpop.permute.xlu0 %9860  ;;  %v20521_v58 = vld [vmem:[%s23011_s8 + $0x50] sm:$0xff]  }
 0x899   :  { %9983 = vmatpush1.bf16.msra.mxu1 %v9870_v54  ;;  %14147 = vmatmul.mubr.msk.bf16.vlgmr.msra.gmra.mxu0 %vm2964_vm10, %v20498_v26  ;;  %v9831_v10 = vpop.permute.xlu1 %9830 }
 0x89a   :  { %v9865_v42 = vsel %vm910_vm5, %v9831_v10, %v9833_v5  ;;  %v9864_v40 = vsel %vm910_vm5, %v9829_v20, %v9831_v10  ;;  %11413 = vrot.lane.b32.xlu0 %v19952_v43, %s14407_s28  ;;  %10002 = vmatprep.mubr.bf16.mxu1 %v23421_v45  ;;  %v14358_v20 = vld [vmem:[%s23011_s8 + $0x70] sm:$0xff]  }
 0x89b   :  { %11070 = vrot.lane.b32.xlu1 %v20007_v28, %s14406_s20  ;;  %9984 = vmatprep.subr.bf16.mxu1 %v9865_v42 }
 0x89c   :  { %v9849_v19 = vpop.permute.xlu0 %9848  ;;  %9949 = vmatprep.mubr.bf16.mxu0 %v23421_v45 }
 0x89d   :  { %9985 = vmatpush1.bf16.msra.mxu1 %v9864_v40  ;;  %v9859_v50 = vpop.permute.xlu1 %9858 }
 0x89e   :  { %10172 = vmatprep.subr.bf16.mxu1 %v19966_v13  ;;  %v9879_v55 = vsel %vm910_vm5, %v9859_v50, %v9861_v17  ;;  %v9878_v14 = vsel %vm910_vm5, %v9857_v6, %v9859_v50  ;;  %11096 = vrot.lane.b32.xlu0 %v20064_v24, %s14406_s20  ;;  %v23425_v50 = vld [vmem:[#allocation9_spill] sm:$0xff] }
 0x89f   :  { %11084 = vrot.lane.b32.xlu1 %v20060_v30, %s14406_s20  ;;  %10043 = vmatprep.subr.bf16.mxu0 %v9879_v55 }
 0x8a0   :  { %14150 = vmatmul.mubr.msk.bf16.vlgmr.msra.gmra.mxu1 %vm2964_vm10, %v20498_v26  ;;  %10044 = vmatpush1.bf16.msra.mxu0 %v9878_v14  ;;  %v9837_v63 = vpop.permute.xlu0 %9836 }
 0x8a1   :  { %10173 = vmatpush1.bf16.msra.mxu1 %v19952_v43  ;;  %14148 = vmatmul.mubr.msk.bf16.gmra.mxu0 %vm2964_vm10, %v20521_v58  ;;  %v9847_v13 = vpop.permute.xlu1 %9846 }
 0x8a2   :  { %10174 = vmatprep.subr.bf16.mxu1 %v19936_v37  ;;  %v9873_v60 = vsel %vm910_vm5, %v9847_v13, %v9849_v19  ;;  %v9872_v47 = vsel %vm910_vm5, %v9845_v38, %v9847_v13  ;;  %11403 = vrot.lane.b32.xlu0 %v19936_v37, %s14407_s28 }
 0x8a3   :  { %11417 = vrot.lane.b32.xlu1 %v20045_v29, %s14407_s28  ;;  %10045 = vmatprep.subr.bf16.mxu0 %v9873_v60 }
 0x8a4   :  { %10046 = vmatpush1.bf16.msra.mxu0 %v9872_v47  ;;  %10012 = vmatprep.mubr.bf16.mxu1 %v23421_v45  ;;  %v20543_v43 = vpop.permute.xlu0 %10436 }
 0x8a5   :  { %10175 = vmatpush1.bf16.msra.mxu1 %v19929_v16  ;;  %v9835_v33 = vpop.permute.xlu1 %9834  ;;  %9959 = vmatprep.mubr.bf16.mxu0 %v23421_v45 }
 0x8a6   :  { %10176 = vmatprep.subr.bf16.mxu1 %v19908_v44  ;;  %v9867_v37 = vsel %vm910_vm5, %v9835_v33, %v9837_v63  ;;  %v9866_v15 = vsel %vm910_vm5, %v9833_v5, %v9835_v33  ;;  %11401 = vrot.lane.b32.xlu0 %v19929_v16, %s14407_s28 }
 0x8a7   :  { %11072 = vrot.lane.b32.xlu1 %v20023_v9, %s14406_s20  ;;  %10047 = vmatprep.subr.bf16.mxu0 %v9867_v37 }
 0x8a8   :  { %14151 = vmatmul.mubr.msk.bf16.gmra.mxu1 %vm2964_vm10, %v20521_v58  ;;  %10048 = vmatpush1.bf16.msra.mxu0 %v9866_v15  ;;  %v20561_v39 = vpop.permute.xlu0 %10422  ;;  %v20750_v15 = vld [vmem:[%s23011_s8 + $0x78] sm:$0xff]  }
 0x8a9   :  { %10177 = vmatpush1.bf16.msra.mxu1 %v19896_v49  ;;  %14149 = vmatmul.mubr.msk.bf16.gmra.mxu0 %vm2964_vm10, %v20550_v53  ;;  %v20566_v51 = vpop.permute.xlu1 %10434 }
 0x8aa   :  { %10235 = vmatprep.subr.bf16.mxu0 %v20055_v61  ;;  %10298 = vmatprep.subr.bf16.mxu1 %v20064_v24 }
 0x8ab   :  { %11405 = vrot.lane.b32.xlu1 %v20005_v25, %s14407_s28  ;;  %11393 = vrot.lane.b32.xlu0 %v19955_v22, %s14407_s28 }
 0x8ac   :  { %10022 = vmatprep.mubr.bf16.mxu1 %v23421_v45  ;;  %v20575_v16 = vpop.permute.xlu0 %10438  ;;  %10065 = vmatprep.mubr.bf16.mxu0 %v23421_v45 }
 0x8ad   :  { %v20578_v57 = vpop.permute.xlu1 %10432  ;;  %v10458_v17 = vsel %vm1477_vm6, %v20543_v43, %v20575_v16 }
 0x8ae   :  { %v10456_v38 = vsel %vm1477_vm6, %v20578_v57, %v20566_v51 }
 0x8af   :  { %11391 = vrot.lane.b32.xlu1 %v19908_v44, %s14407_s28  ;;  %11419 = vrot.lane.b32.xlu0 %v20055_v61, %s14407_s28  ;;  %v20605_v61 = vld [vmem:[%s23011_s8 + $0x60] sm:$0xff]  }
 0x8b0   :  { %14152 = vmatmul.mubr.msk.bf16.gmra.mxu1 %vm2964_vm10, %v20550_v53  ;;  %v20586_v6 = vpop.permute.xlu0 %10420 }
 0x8b1   :  { %14153 = vmatmul.mubr.msk.bf16.vlgmr.msra.gmra.mxu0 %vm2964_vm10, %v20498_v26  ;;  %v20590_v11 = vpop.permute.xlu1 %10424  ;;  %10194 = vmatprep.mubr.bf16.mxu1 %v23421_v45  ;;  %v10450_v26 = vsel %vm1477_vm6, %v20586_v6, %v20561_v39 }
 0x8b2   :  { %10236 = vmatpush1.bf16.msra.mxu0 %v20045_v29  ;;  %10075 = vmatprep.mubr.bf16.mxu0 %v23421_v45  ;;  %v10451_v59 = vsel %vm1477_vm6, %v20561_v39, %v20590_v11 }
 0x8b3   :  { %10237 = vmatprep.subr.bf16.mxu0 %v20018_v34  ;;  %11389 = vrot.lane.b32.xlu1 %v19896_v49, %s14407_s28 }
 0x8b4   :  { %11407 = vrot.lane.b32.xlu0 %v20018_v34, %s14407_s28  ;;  %v20600_v44 = vpop.permute.xlu0 %10412 }
 0x8b5   :  { %v20607_v12 = vpop.permute.xlu1 %10440 }
 0x8b6   :  { %10238 = vmatpush1.bf16.msra.mxu0 %v20005_v25  ;;  %v10457_v25 = vsel %vm1477_vm6, %v20566_v51, %v20543_v43 }
 0x8b7   :  { %10239 = vmatprep.subr.bf16.mxu0 %v19977_v7  ;;  %11421 = vrot.lane.b32.xlu1 %v20062_v56, %s14407_s28 }
 0x8b8   :  { %14159 = vmatmul.mubr.msk.bf16.vlgmr.msra.gmra.mxu1 %vm2964_vm10, %v20605_v61  ;;  %11423 = vrot.lane.b32.xlu0 %v20064_v24, %s14407_s28  ;;  %v20617_v49 = vpop.permute.xlu0 %10428 }
 0x8b9   :  { %10299 = vmatpush1.bf16.msra.mxu1 %v20062_v56  ;;  %14154 = vmatmul.mubr.msk.bf16.gmra.mxu0 %vm2964_vm10, %v20521_v58  ;;  %v10411_v34 = vpop.permute.xlu1 %10410  ;;  %v20637_v56 = vld [vmem:[%s23011_s8 + $0x68] sm:$0xff]  }
 0x8ba   :  { %10300 = vmatprep.subr.bf16.mxu1 %v20060_v30  ;;  %10240 = vmatpush1.bf16.msra.mxu0 %v19955_v22  ;;  %v10445_v54 = vsel %vm1477_vm6, %v10411_v34, %v20600_v44 }
 0x8bb   :  { %10499 = vmatprep.subr.bf16.mxu0 %v10457_v25  ;;  %11409 = vrot.lane.b32.xlu1 %v20047_v0, %s14407_s28  ;;  %v20782_v25 = vld [vmem:[%s23011_s8 + $0x80] sm:$0xff]  }
 0x8bc   :  { %11397 = vrot.lane.b32.xlu0 %v20007_v28, %s14407_s28  ;;  %10204 = vmatprep.mubr.bf16.mxu1 %v23421_v45  ;;  %v20632_v29 = vpop.permute.xlu0 %10414 }
 0x8bd   :  { %10301 = vmatpush1.bf16.msra.mxu1 %v20047_v0  ;;  %v10427_v22 = vpop.permute.xlu1 %10426  ;;  %10085 = vmatprep.mubr.bf16.mxu0 %v23421_v45  ;;  %v10459_v0 = vsel %vm1477_vm6, %v20575_v16, %v20607_v12  ;;  %v10446_v60 = vsel %vm1477_vm6, %v20600_v44, %v20632_v29 }
 0x8be   :  { %10302 = vmatprep.subr.bf16.mxu1 %v20023_v9  ;;  %v10453_v40 = vsel %vm1477_vm6, %v10427_v22, %v20617_v49  ;;  %v10452_v55 = vsel %vm1477_vm6, %v20590_v11, %v10427_v22 }
 0x8bf   :  { %11395 = vrot.lane.b32.xlu1 %v19977_v7, %s14407_s28  ;;  %v11700_v7 = vld [vmem:[%s23012_s9 + $0x28] sm:$0xff] }
 0x8c0   :  { %14160 = vmatmul.mubr.msk.bf16.gmra.mxu1 %vm2964_vm10, %v20637_v56  ;;  %11399 = vrot.lane.b32.xlu0 %v20023_v9, %s14407_s28  ;;  %v20648_v24 = vpop.permute.xlu0 %10761  ;;  %v11699_v9 = vld [vmem:[%s23012_s9 + $0x20] sm:$0xff] }
 0x8c1   :  { %10303 = vmatpush1.bf16.msra.mxu1 %v20007_v28  ;;  %14155 = vmatmul.mubr.msk.bf16.gmra.mxu0 %vm2964_vm10, %v20550_v53  ;;  %v10409_v1 = vpop.permute.xlu1 %10408 }
 0x8c2   :  { %10562 = vmatprep.subr.bf16.mxu1 %v10459_v0  ;;  %10214 = vmatprep.mubr.bf16.mxu1 %v23421_v45  ;;  %v10444_v42 = vsel %vm1477_vm6, %v10409_v1, %v10411_v34 }
 0x8c3   :  { %11411 = vrot.lane.b32.xlu1 %v20060_v30, %s14407_s28  ;;  %10257 = vmatprep.mubr.bf16.mxu0 %v23421_v45 }
 0x8c4   :  { %11728 = vperm.xlu0 %14261, %v11700_v7   ;;  %v20663_v28 = vpop.permute.xlu0 %10759 }
 0x8c5   :  { %v20671_v27 = vpop.permute.xlu1 %10416 }
 0x8c6   :  { %v10447_v63 = vsel %vm1477_vm6, %v20632_v29, %v20671_v27 }
 0x8c7   :  { %11723 = vperm.xlu1 %14262, %v11699_v9  }
 0x8c8   :  { %14161 = vmatmul.mubr.msk.bf16.gmra.mxu1 %vm2964_vm10, %v14358_v20  ;;  %11718 = vperm.xlu0 %14261, %v11698_v62   ;;  %v10443_v30 = vpop.permute.xlu0 %10442 }
 0x8c9   :  { %14162 = vmatmul.mubr.msk.bf16.vlgmr.msra.gmra.mxu0 %vm2964_vm10, %v20605_v61  ;;  %v20685_v46 = vpop.permute.xlu1 %10430  ;;  %10320 = vmatprep.mubr.bf16.mxu1 %v23421_v45  ;;  %v10461_v58 = vsel %vm1477_vm6, %v10443_v30, %v23425_v50  ;;  %v10460_v16 = vsel %vm1477_vm6, %v20607_v12, %v10443_v30 }
 0x8ca   :  { %10500 = vmatpush1.bf16.msra.mxu0 %v10456_v38  ;;  %10267 = vmatprep.mubr.bf16.mxu0 %v23421_v45  ;;  %v10455_v11 = vsel %vm1477_vm6, %v20685_v46, %v23425_v50  ;;  %v10454_v12 = vsel %vm1477_vm6, %v20617_v49, %v20685_v46  ;;  %v10783_v49 = vsel %vm1771_vm7, %v20663_v28, %v20648_v24  ;;  %v20825_v38 = vld [vmem:[%s23011_s8 + $0x88] sm:$0xff]  }
 0x8cb   :  { %10501 = vmatprep.subr.bf16.mxu0 %v10451_v59  ;;  %11713 = vperm.xlu1 %14262, %v11697_v48  }
 0x8cc   :  { %11708 = vperm.xlu0 %14261, %v11696_v35   ;;  %v20695_v5 = vpop.permute.xlu0 %10749 }
 0x8cd   :  { %v20703_v41 = vpop.permute.xlu1 %10763 }
 0x8ce   :  { %10502 = vmatpush1.bf16.msra.mxu0 %v10450_v26  ;;  %v10784_v43 = vsel %vm1771_vm7, %v20648_v24, %v20703_v41 }
 0x8cf   :  { %10503 = vmatprep.subr.bf16.mxu0 %v10445_v54  ;;  %11703 = vperm.xlu1 %14262, %v11695_v23   ;;  %v23426_v23 = vld [vmem:[#allocation10_spill] sm:$0xff] }
 0x8d0   :  { %14165 = vmatmul.mubr.msk.bf16.vlgmr.msra.gmra.mxu1 %vm2964_vm10, %v20605_v61  ;;  %v20712_v10 = vpop.permute.xlu0 %10747 }
 0x8d1   :  { %10563 = vmatpush1.bf16.msra.mxu1 %v10458_v17  ;;  %14163 = vmatmul.mubr.msk.bf16.gmra.mxu0 %vm2964_vm10, %v20637_v56  ;;  %v10419_v19 = vpop.permute.xlu1 %10418  ;;  %v10777_v62 = vsel %vm1771_vm7, %v20712_v10, %v20695_v5 }
 0x8d2   :  { %10564 = vmatprep.subr.bf16.mxu1 %v10453_v40  ;;  %10504 = vmatpush1.bf16.msra.mxu0 %v10444_v42  ;;  %v10448_v7 = vsel %vm1477_vm6, %v20671_v27, %v10419_v19 }
 0x8d3   :  { %10625 = vmatprep.subr.bf16.mxu0 %v10461_v58  ;;  %10330 = vmatprep.mubr.bf16.mxu1 %v23421_v45 }
 0x8d4   :  { %v20724_v14 = vpop.permute.xlu0 %10739  ;;  %10277 = vmatprep.mubr.bf16.mxu0 %v23421_v45 }
 0x8d5   :  { %10565 = vmatpush1.bf16.msra.mxu1 %v10452_v55  ;;  %v20730_v13 = vpop.permute.xlu1 %10751 }
 0x8d6   :  { %10566 = vmatprep.subr.bf16.mxu1 %v10447_v63  ;;  %v10778_v1 = vsel %vm1771_vm7, %v20695_v5, %v20730_v13 }
 0x8d8   :  { %14166 = vmatmul.mubr.msk.bf16.gmra.mxu1 %vm2964_vm10, %v20637_v56  ;;  %v20737_v47 = vpop.permute.xlu0 %10765  ;;  %v10449_v56 = vsel %vm1477_vm6, %v10419_v19, %v23425_v50 }
 0x8d9   :  { %10567 = vmatpush1.bf16.msra.mxu1 %v10446_v60  ;;  %14164 = vmatmul.mubr.msk.bf16.gmra.mxu0 %vm2964_vm10, %v14358_v20  ;;  %v10738_v33 = vpop.permute.xlu1 %10737  ;;  %v10785_v55 = vsel %vm1771_vm7, %v20703_v41, %v20737_v47  ;;  %v20882_v41 = vld [vmem:[%s23011_s8 + $0x90] sm:$0xff]  }
 0x8da   :  { %10826 = vmatprep.subr.bf16.mxu1 %v10784_v43  ;;  %10340 = vmatprep.mubr.bf16.mxu1 %v23421_v45  ;;  %v10772_v30 = vsel %vm1771_vm7, %v10738_v33, %v20724_v14 }
 0x8db   :  { %10521 = vmatprep.mubr.bf16.mxu0 %v23421_v45 }
 0x8dc   :  { %v20745_v53 = vpop.permute.xlu0 %10753 }
 0x8dd   :  { %v10736_v37 = vpop.permute.xlu1 %10735 }
 0x8de   :  { %v20752_v39 = vpop.f32.mrf.mxu1  ;;  %v10771_v35 = vsel %vm1771_vm7, %v10736_v37, %v10738_v33 }
 0x8e0   :  { %14167 = vmatmul.mubr.msk.bf16.gmra.mxu1 %vm2964_vm10, %v14358_v20  ;;  %v20755_v51 = vpop.permute.xlu0 %10743  ;;  %v20764_v6 = vpop.f32.mrf.mxu1 }
 0x8e1   :  { %14171 = vmatmul.mubr.msk.bf16.vlgmr.msra.gmra.mxu0 %vm2964_vm10, %v20750_v15  ;;  %v20761_v57 = vpop.permute.xlu1 %10767  ;;  %10584 = vmatprep.mubr.bf16.mxu1 %v23421_v45 }
 0x8e2   :  { %10626 = vmatpush1.bf16.msra.mxu0 %v10460_v16  ;;  %10531 = vmatprep.mubr.bf16.mxu0 %v23421_v45  ;;  %v20770_v44 = vpop.f32.mrf.mxu1  ;;  %v10786_v24 = vsel %vm1771_vm7, %v20737_v47, %v20761_v57  ;;  %v10779_v47 = vsel %vm1771_vm7, %v20730_v13, %v20745_v53 }
 0x8e3   :  { %10627 = vmatprep.subr.bf16.mxu0 %v10455_v11 }
 0x8e4   :  { %v20772_v61 = vpop.permute.xlu0 %10769  ;;  %v20784_v29 = vpop.f32.mrf.mxu1 }
 0x8e5   :  { %v20777_v34 = vpop.permute.xlu1 %10755  ;;  %v10788_v26 = vsel %vm1771_vm7, %v20772_v61, %v23426_v23 }
 0x8e6   :  { %10628 = vmatpush1.bf16.msra.mxu0 %v10454_v12  ;;  %v20788_v22 = vpop.f32.mrf.mxu1  ;;  %v10780_v60 = vsel %vm1771_vm7, %v20745_v53, %v20777_v34 }
 0x8e7   :  { %10629 = vmatprep.subr.bf16.mxu0 %v10449_v56 }
 0x8e8   :  { %14174 = vmatmul.mubr.msk.bf16.vlgmr.msra.gmra.mxu1 %vm2964_vm10, %v20750_v15  ;;  %v20795_v0 = vpop.permute.xlu0 %10745  ;;  %v20806_v20 = vpop.f32.mrf.mxu1 }
 0x8e9   :  { %10827 = vmatpush1.bf16.msra.mxu1 %v10783_v49  ;;  %14172 = vmatmul.mubr.msk.bf16.gmra.mxu0 %vm2964_vm10, %v20782_v25  ;;  %v20804_v9 = vpop.permute.xlu1 %10741  ;;  %v10787_v49 = vsel %vm1771_vm7, %v20761_v57, %v20772_v61 }
 0x8ea   :  { %10828 = vmatprep.subr.bf16.mxu1 %v10778_v1  ;;  %10630 = vmatpush1.bf16.msra.mxu0 %v10448_v7  ;;  %v20812_v28 = vpop.f32.mrf.mxu1  ;;  %v10774_v11 = vsel %vm1771_vm7, %v20804_v9, %v20755_v51 }
 0x8eb   :  { %10889 = vmatprep.subr.bf16.mxu0 %v10786_v24  ;;  %10594 = vmatprep.mubr.bf16.mxu1 %v23421_v45  ;;  %v10773_v24 = vsel %vm1771_vm7, %v20724_v14, %v20804_v9  ;;  %v20933_v9 = vld [vmem:[%s23011_s8 + $0x98] sm:$0xff]  }
 0x8ec   :  { %v20817_v27 = vpop.permute.xlu0 %11090  ;;  %10541 = vmatprep.mubr.bf16.mxu0 %v23421_v45  ;;  %v20827_v46 = vpop.f32.mrf.mxu1 }
 0x8ed   :  { %10829 = vmatpush1.bf16.msra.mxu1 %v10777_v62  ;;  %v10758_v48 = vpop.permute.xlu1 %10757 }
 0x8ee   :  { %10830 = vmatprep.subr.bf16.mxu1 %v10772_v30  ;;  %v20834_v5 = vpop.f32.mrf.mxu1  ;;  %v10782_v1 = vsel %vm1771_vm7, %v10758_v48, %v23426_v23 }
 0x8f0   :  { %14175 = vmatmul.mubr.msk.bf16.gmra.mxu1 %vm2964_vm10, %v20782_v25  ;;  %v20832_v59 = vpop.permute.xlu0 %11076  ;;  %v20845_v17 = vpop.f32.mrf.mxu1 }
 0x8f1   :  { %10831 = vmatpush1.bf16.msra.mxu1 %v10771_v35  ;;  %14173 = vmatmul.mubr.msk.bf16.gmra.mxu0 %vm2964_vm10, %v20825_v38  ;;  %v20841_v54 = vpop.permute.xlu1 %11088 }
 0x8f2   :  { %10952 = vmatprep.subr.bf16.mxu1 %v10788_v26  ;;  %10604 = vmatprep.mubr.bf16.mxu1 %v23421_v45  ;;  %v20851_v40 = vpop.f32.mrf.mxu1  ;;  %v11111_v57 = vsel %vm2065_vm8, %v20841_v54, %v20817_v27  ;;  %v10776_v26 = vsel %vm1771_vm7, %v20795_v0, %v23426_v23 }
 0x8f3   :  { %10647 = vmatprep.mubr.bf16.mxu0 %v23421_v45 }
 0x8f4   :  { %v20847_v10 = vpop.permute.xlu0 %11092  ;;  %v20873_v33 = vpop.f32.mrf.mxu1 }
 0x8f5   :  { %v20849_v42 = vpop.permute.xlu1 %11086 }
 0x8f6   :  { %v11110_v32 = vsel %vm2065_vm8, %v20849_v42, %v20841_v54 }
 0x8f8   :  { %14176 = vmatmul.mubr.msk.bf16.gmra.mxu1 %vm2964_vm10, %v20825_v38  ;;  %v20855_v19 = vpop.f32.mrf.mxu0  ;;  %v20857_v58 = vpop.permute.xlu0 %11074 }
 0x8f9   :  { %14177 = vmatmul.mubr.msk.bf16.vlgmr.msra.gmra.mxu0 %vm2964_vm10, %v20750_v15  ;;  %v20864_v63 = vpop.permute.xlu1 %11078  ;;  %10848 = vmatprep.mubr.bf16.mxu1 %v23421_v45  ;;  %v11104_v42 = vsel %vm2065_vm8, %v20857_v58, %v20832_v59 }
 0x8fa   :  { %10890 = vmatpush1.bf16.msra.mxu0 %v10785_v55  ;;  %v20870_v43 = vpop.f32.mrf.mxu0  ;;  %10657 = vmatprep.mubr.bf16.mxu0 %v23421_v45  ;;  %v11105_v36 = vsel %vm2065_vm8, %v20832_v59, %v20864_v63 }
 0x8fb   :  { %10891 = vmatprep.subr.bf16.mxu0 %v10780_v60 }
 0x8fc   :  { %v20875_v37 = vpop.f32.mrf.mxu0  ;;  %v20877_v15 = vpop.permute.xlu0 %11066 }
 0x8fd   :  { %v20887_v16 = vpop.permute.xlu1 %11094 }
 0x8fe   :  { %10892 = vmatpush1.bf16.msra.mxu0 %v10779_v47  ;;  %v20892_v12 = vpop.f32.mrf.mxu0  ;;  %v10775_v47 = vsel %vm1771_vm7, %v20755_v51, %v20795_v0 }
 0x8ff   :  { %10893 = vmatprep.subr.bf16.mxu0 %v10774_v11  ;;  %v20894_v56 = vpop.f32.mrf.mxu1 }
 0x900   :  { %14183 = vmatmul.mubr.msk.bf16.vlgmr.msra.gmra.mxu1 %vm2964_vm10, %v20882_v41  ;;  %v20901_v13 = vpop.f32.mrf.mxu0  ;;  %v20903_v53 = vpop.permute.xlu0 %11082 }
 0x901   :  { %10953 = vmatpush1.bf16.msra.mxu1 %v10787_v49  ;;  %v20907_v7 = vpop.f32.mrf.mxu1  ;;  %14178 = vmatmul.mubr.msk.bf16.gmra.mxu0 %vm2964_vm10, %v20782_v25  ;;  %v20914_v62 = vpop.permute.xlu1 %11064  ;;  %v10781_v25 = vsel %vm1771_vm7, %v20777_v34, %v10758_v48 }
 0x902   :  { %10954 = vmatprep.subr.bf16.mxu1 %v10782_v1  ;;  %10894 = vmatpush1.bf16.msra.mxu0 %v10773_v24  ;;  %v20919_v61 = vpop.f32.mrf.mxu0  ;;  %v11113_v1 = vsel %vm2065_vm8, %v20847_v10, %v20887_v16 }
 0x903   :  { %11153 = vmatprep.subr.bf16.mxu0 %v11111_v57  ;;  %v20921_v30 = vpop.f32.mrf.mxu1  ;;  %10858 = vmatprep.mubr.bf16.mxu1 %v23421_v45 }
 0x904   :  { %v20926_v35 = vpop.f32.mrf.mxu0  ;;  %v20928_v14 = vpop.permute.xlu0 %11068  ;;  %10667 = vmatprep.mubr.bf16.mxu0 %v23421_v45 }
 0x905   :  { %10955 = vmatpush1.bf16.msra.mxu1 %v10781_v25  ;;  %v20939_v55 = vpop.f32.mrf.mxu1  ;;  %v20941_v60 = vpop.permute.xlu1 %11080 }
 0x906   :  { %10956 = vmatprep.subr.bf16.mxu1 %v10776_v26  ;;  %v20943_v34 = vpop.f32.mrf.mxu0  ;;  %v11107_v58 = vsel %vm2065_vm8, %v20941_v60, %v20903_v53 }
 0x907   :  { %v20945_v48 = vpop.f32.mrf.mxu1 }
 0x908   :  { %14184 = vmatmul.mubr.msk.bf16.gmra.mxu1 %vm2964_vm10, %v20933_v9  ;;  %v20952_v11 = vpop.f32.mrf.mxu0  ;;  %v20954_v49 = vpop.permute.xlu0 %11415 }
 0x909   :  { %10957 = vmatpush1.bf16.msra.mxu1 %v10775_v47  ;;  %v20959_v24 = vpop.f32.mrf.mxu1  ;;  %14179 = vmatmul.mubr.msk.bf16.gmra.mxu0 %vm2964_vm10, %v20825_v38  ;;  %v11063_v57 = vpop.permute.xlu1 %11062  ;;  %v20976_v47 = vld [vmem:[%s23011_s8 + $0xa0] sm:$0xff]  }
 0x90a   :  { %11216 = vmatprep.subr.bf16.mxu1 %v11113_v1  ;;  %v20963_v25 = vpop.f32.mrf.mxu0  ;;  %10868 = vmatprep.mubr.bf16.mxu1 %v23421_v45 }
 0x90b   :  { %v20966_v51 = vpop.f32.mrf.mxu1  ;;  %10911 = vmatprep.mubr.bf16.mxu0 %v23421_v45 }
 0x90c   :  { %v20969_v0 = vpop.f32.mrf.mxu0  ;;  %v20971_v26 = vpop.permute.xlu0 %11413 }
 0x90d   :  { %v20978_v38 = vpop.f32.mrf.mxu1  ;;  %v20980_v1 = vpop.permute.xlu1 %11070 }
 0x90e   :  { %v20982_v23 = vpop.f32.mrf.mxu0 }
 0x90f   :  { %v20984_v50 = vpop.f32.mrf.mxu1 }
 0x910   :  { %14185 = vmatmul.mubr.msk.bf16.gmra.mxu1 %vm2964_vm10, %v20976_v47  ;;  %v9323_v3 = vpop.f32.mrf.mxu0  ;;  %v20988_v31 = vpop.permute.xlu0 %11096 }
 0x911   :  { %v20993_v4 = vpop.f32.mrf.mxu1  ;;  %v20996_v52 = vadd.f32 %v9323_v3, %v20752_v39  ;;  %14186 = vmatmul.mubr.msk.bf16.vlgmr.msra.gmra.mxu0 %vm2964_vm10, %v20882_v41  ;;  %v21000_v2 = vpop.permute.xlu1 %11084  ;;  %10974 = vmatprep.mubr.bf16.mxu1 %v23421_v45 }
 0x912   :  { %11154 = vmatpush1.bf16.msra.mxu0 %v11110_v32  ;;  %v9325_v21 = vpop.f32.mrf.mxu0  ;;  %10921 = vmatprep.mubr.bf16.mxu0 %v23421_v45 }
 0x913   :  { %11155 = vmatprep.subr.bf16.mxu0 %v11105_v36  ;;  %v21007_v54 = vpop.f32.mrf.mxu1  ;;  %v21010_v3 = vadd.f32 %v9325_v21, %v20764_v6  ;;  %v11099_v36 = vsel %vm2065_vm8, %v20914_v62, %v20877_v15 }
 0x914   :  { %23427 = vst [vmem:[#allocation33_spill] sm:$0xff] %v21007_v54  ;;  %v9327_v39 = vpop.f32.mrf.mxu0  ;;  %v21025_v21 = vpop.permute.xlu0 %11403 }
 0x915   :  { %v21015_v8 = vpop.f32.mrf.mxu1  ;;  %v21018_v32 = vadd.f32 %v9327_v39, %v20770_v44  ;;  %v21020_v18 = vpop.permute.xlu1 %11417  ;;  %v11112_v44 = vsel %vm2065_vm8, %v20817_v27, %v20847_v10  ;;  %v23428_v10 = vld [vmem:[#allocation11_spill] sm:$0xff] }
 0x916   :  { %11156 = vmatpush1.bf16.msra.mxu0 %v11104_v42  ;;  %v9329_v54 = vpop.f32.mrf.mxu0  ;;  %v11098_v42 = vsel %vm2065_vm8, %v11063_v57, %v20914_v62 }
 0x917   :  { %11157 = vmatprep.subr.bf16.mxu0 %v11099_v36  ;;  %v21028_v6 = vadd.f32 %v9329_v54, %v20784_v29  ;;  %v11115_v54 = vsel %vm2065_vm8, %v20988_v31, %v23428_v10 }
 0x918   :  { %v9386_v59 = vpop.f32.mrf.mxu1  ;;  %14189 = vmatmul.mubr.msk.bf16.vlgmr.msra.gmra.mxu1 %vm2964_vm10, %v20882_v41  ;;  %v9333_v39 = vpop.f32.mrf.mxu0 }
 0x919   :  { %v21041_v36 = vadd.f32 %v9386_v59, %v20855_v19  ;;  %11217 = vmatpush1.bf16.msra.mxu1 %v11112_v44  ;;  %v21044_v29 = vadd.f32 %v9333_v39, %v20788_v22  ;;  %14187 = vmatmul.mubr.msk.bf16.gmra.mxu0 %vm2964_vm10, %v20933_v9  ;;  %v21048_v41 = vpop.permute.xlu1 %11072  ;;  %v11106_v59 = vsel %vm2065_vm8, %v20864_v63, %v20941_v60 }
 0x91a   :  { %11218 = vmatprep.subr.bf16.mxu1 %v11107_v58  ;;  %v9388_v27 = vpop.f32.mrf.mxu1  ;;  %11158 = vmatpush1.bf16.msra.mxu0 %v11098_v42  ;;  %v9335_v62 = vpop.f32.mrf.mxu0 }
 0x91b   :  { %v21054_v19 = vadd.f32 %v9388_v27, %v20870_v43  ;;  %11279 = vmatprep.subr.bf16.mxu0 %v11115_v54  ;;  %v21057_v22 = vadd.f32 %v9335_v62, %v20806_v20  ;;  %10984 = vmatprep.mubr.bf16.mxu1 %v23421_v45  ;;  %v21064_v58 = vpop.permute.xlu0 %11401  ;;  %v11101_v20 = vsel %vm2065_vm8, %v20928_v14, %v20980_v1 }
 0x91c   :  { %v9390_v57 = vpop.f32.mrf.mxu1  ;;  %v9337_v44 = vpop.f32.mrf.mxu0  ;;  %10931 = vmatprep.mubr.bf16.mxu0 %v23421_v45 }
 0x91d   :  { %v21067_v39 = vadd.f32 %v9390_v57, %v20875_v37  ;;  %11219 = vmatpush1.bf16.msra.mxu1 %v11106_v59  ;;  %v21073_v43 = vadd.f32 %v9337_v44, %v20812_v28  ;;  %v21075_v42 = vpop.permute.xlu1 %11405  ;;  %v11100_v28 = vsel %vm2065_vm8, %v20877_v15, %v20928_v14 }
 0x91e   :  { %11220 = vmatprep.subr.bf16.mxu1 %v11101_v20  ;;  %v9392_v63 = vpop.f32.mrf.mxu1  ;;  %v9339_v60 = vpop.f32.mrf.mxu0 }
 0x91f   :  { %v21078_v27 = vadd.f32 %v9392_v63, %v20892_v12  ;;  %v21081_v54 = vadd.f32 %v9339_v60, %v20827_v46  ;;  %v11438_v12 = vsel %vm2359_vm9, %v20954_v49, %v21020_v18  ;;  %v21100_v15 = vpop.permute.xlu0 %11393 }
 0x920   :  { %v9396_v37 = vpop.f32.mrf.mxu1  ;;  %14190 = vmatmul.mubr.msk.bf16.gmra.mxu1 %vm2964_vm10, %v20933_v9  ;;  %v9343_v62 = vpop.f32.mrf.mxu0 }
 0x921   :  { %v21089_v57 = vadd.f32 %v9396_v37, %v20901_v13  ;;  %11221 = vmatpush1.bf16.msra.mxu1 %v11100_v28  ;;  %v21095_v46 = vadd.f32 %v9343_v62, %v20834_v5  ;;  %14188 = vmatmul.mubr.msk.bf16.gmra.mxu0 %vm2964_vm10, %v20976_v47  ;;  %v21105_v14 = vpop.permute.xlu1 %11391 }
 0x922   :  { %11480 = vmatprep.subr.bf16.mxu1 %v11438_v12  ;;  %v9398_v9 = vpop.f32.mrf.mxu1  ;;  %v9345_v59 = vpop.f32.mrf.mxu0  ;;  %10994 = vmatprep.mubr.bf16.mxu1 %v23421_v45 }
 0x923   :  { %v21103_v13 = vadd.f32 %v9398_v9, %v20919_v61  ;;  %v21108_v44 = vadd.f32 %v9345_v59, %v20845_v17  ;;  %11175 = vmatprep.mubr.bf16.mxu0 %v23421_v45  ;;  %v21120_v61 = vld [vmem:[%s23011_s8 + $0xa8] sm:$0xff]  }
 0x924   :  { %v9400_v5 = vpop.f32.mrf.mxu1  ;;  %v9347_v20 = vpop.f32.mrf.mxu0 }
 0x925   :  { %v21112_v63 = vadd.f32 %v9400_v5, %v20926_v35  ;;  %v21115_v60 = vadd.f32 %v9347_v20, %v20851_v40  ;;  %v21130_v35 = vpop.permute.xlu1 %11389 }
 0x926   :  { %v9402_v37 = vpop.f32.mrf.mxu1  ;;  %v9349_v17 = vpop.f32.mrf.mxu0 }
 0x927   :  { %v21123_v28 = vadd.f32 %v9402_v37, %v20943_v34  ;;  %v21126_v62 = vadd.f32 %v9349_v17, %v20873_v33  ;;  %v11114_v34 = vsel %vm2065_vm8, %v20887_v16, %v20988_v31  ;;  %v21141_v33 = vpop.permute.xlu0 %11419  ;;  %v11108_v17 = vsel %vm2065_vm8, %v20903_v53, %v21000_v2 }
 0x928   :  { %v9406_v12 = vpop.f32.mrf.mxu1  ;;  %14191 = vmatmul.mubr.msk.bf16.gmra.mxu1 %vm2964_vm10, %v20976_v47  ;;  %v9449_v9 = vpop.f32.mrf.mxu0  ;;  %v11437_v53 = vsel %vm2359_vm9, %v20971_v26, %v20954_v49 }
 0x929   :  { %v21133_v40 = vadd.f32 %v9406_v12, %v20952_v11  ;;  %14195 = vmatmul.mubr.msk.bf16.vlgmr.msra.gmra.mxu0 %vm2964_vm10, %v21120_v61  ;;  %11238 = vmatprep.mubr.bf16.mxu1 %v23421_v45  ;;  %v21144_v47 = vadd.f32 %v9449_v9, %v20894_v56  ;;  %v11109_v11 = vsel %vm2065_vm8, %v21000_v2, %v23428_v10  ;;  %v21165_v12 = vld [vmem:[%s23011_s8 + $0xb0] sm:$0xff]  }
 0x92a   :  { %v9408_v59 = vpop.f32.mrf.mxu1  ;;  %11280 = vmatpush1.bf16.msra.mxu0 %v11114_v34  ;;  %11185 = vmatprep.mubr.bf16.mxu0 %v23421_v45  ;;  %v9451_v31 = vpop.f32.mrf.mxu0 }
 0x92b   :  { %v21151_v5 = vadd.f32 %v9408_v59, %v20963_v25  ;;  %11281 = vmatprep.subr.bf16.mxu0 %v11109_v11  ;;  %v21154_v20 = vadd.f32 %v9451_v31, %v20907_v7  ;;  %v11103_v7 = vsel %vm2065_vm8, %v21048_v41, %v23428_v10  ;;  %v21181_v59 = vpop.permute.xlu0 %11407 }
 0x92c   :  { %v9410_v16 = vpop.f32.mrf.mxu1  ;;  %v9453_v56 = vpop.f32.mrf.mxu0 }
 0x92d   :  { %v21157_v37 = vadd.f32 %v9410_v16, %v20969_v0  ;;  %v21168_v9 = vadd.f32 %v9453_v56, %v20921_v30  ;;  %v21173_v0 = vpop.permute.xlu1 %11421 }
 0x92e   :  { %v9412_v25 = vpop.f32.mrf.mxu1  ;;  %11282 = vmatpush1.bf16.msra.mxu0 %v11108_v17  ;;  %v9455_v2 = vpop.f32.mrf.mxu0 }
 0x92f   :  { %v21176_v34 = vadd.f32 %v9412_v25, %v20982_v23  ;;  %11283 = vmatprep.subr.bf16.mxu0 %v11103_v7  ;;  %v21184_v30 = vadd.f32 %v9455_v2, %v20939_v55  ;;  %v11432_v23 = vsel %vm2359_vm9, %v21025_v21, %v21075_v42  ;;  %v11102_v55 = vsel %vm2065_vm8, %v20980_v1, %v21048_v41  ;;  %v21225_v2 = vld [vmem:[%s23011_s8 + $0xb8] sm:$0xff]  }
 0x930   :  { %v9614_v11 = vpop.f32.mrf.mxu1  ;;  %14198 = vmatmul.mubr.msk.bf16.vlgmr.msra.gmra.mxu1 %vm2964_vm10, %v21120_v61  ;;  %v11431_v1 = vsel %vm2359_vm9, %v21064_v58, %v21025_v21  ;;  %v21227_v21 = vpop.permute.xlu0 %11423 }
 0x931   :  { %23429 = vst [vmem:[#allocation21_spill] sm:$0xff] %v21176_v34  ;;  %v21189_v31 = vadd.f32 %v9614_v11, %v20996_v52  ;;  %11481 = vmatpush1.bf16.msra.mxu1 %v11437_v53  ;;  %v9459_v16 = vpop.f32.mrf.mxu0  ;;  %14196 = vmatmul.mubr.msk.bf16.gmra.mxu0 %vm2964_vm10, %v21165_v12  ;;  %v11440_v52 = vsel %vm2359_vm9, %v21141_v33, %v21173_v0 }
 0x932   :  { %11482 = vmatprep.subr.bf16.mxu1 %v11432_v23  ;;  %v21200_v49 = vadd.f32 %v9459_v16, %v20945_v48  ;;  %v9616_v26 = vpop.f32.mrf.mxu1  ;;  %11284 = vmatpush1.bf16.msra.mxu0 %v11102_v55  ;;  %v11425_v11 = vsel %vm2359_vm9, %v21130_v35, %v21105_v14 }
 0x933   :  { %v21206_v56 = vadd.f32 %v9616_v26, %v21010_v3  ;;  %11543 = vmatprep.subr.bf16.mxu0 %v11440_v52  ;;  %v9461_v17 = vpop.f32.mrf.mxu0  ;;  %11248 = vmatprep.mubr.bf16.mxu1 %v23421_v45  ;;  %v11426_v3 = vsel %vm2359_vm9, %v21105_v14, %v21100_v15  ;;  %v21251_v14 = vpop.permute.xlu1 %11409 }
 0x934   :  { %v21213_v48 = vadd.f32 %v9461_v17, %v20959_v24  ;;  %v9618_v41 = vpop.f32.mrf.mxu1  ;;  %11195 = vmatprep.mubr.bf16.mxu0 %v23421_v45 }
 0x935   :  { %v21217_v25 = vadd.f32 %v9618_v41, %v21018_v32  ;;  %11483 = vmatpush1.bf16.msra.mxu1 %v11431_v1  ;;  %v9463_v7 = vpop.f32.mrf.mxu0 }
 0x936   :  { %11484 = vmatprep.subr.bf16.mxu1 %v11426_v3  ;;  %v21230_v24 = vadd.f32 %v9463_v7, %v20966_v51  ;;  %v9620_v58 = vpop.f32.mrf.mxu1  ;;  %v23430_v51 = vld [vmem:[#allocation12_spill] sm:$0xff]  ;;  %v23431_v7 = vld [vmem:[#allocation33_spill] sm:$0xff] }
 0x937   :  { %v21233_v32 = vadd.f32 %v9620_v58, %v21028_v6  ;;  %v9465_v53 = vpop.f32.mrf.mxu0  ;;  %v11442_v6 = vsel %vm2359_vm9, %v21227_v21, %v23430_v51 }
 0x938   :  { %v21239_v23 = vadd.f32 %v9465_v53, %v20978_v38  ;;  %v9624_v16 = vpop.f32.mrf.mxu1  ;;  %14199 = vmatmul.mubr.msk.bf16.gmra.mxu1 %vm2964_vm10, %v21165_v12 }
 0x939   :  { %v21244_v55 = vadd.f32 %v9624_v16, %v21044_v29  ;;  %11485 = vmatpush1.bf16.msra.mxu1 %v11425_v11  ;;  %v9469_v26 = vpop.f32.mrf.mxu0  ;;  %14197 = vmatmul.mubr.msk.bf16.gmra.mxu0 %vm2964_vm10, %v21225_v2  ;;  %v11396_v11 = vpop.permute.xlu1 %11395 }
 0x93a   :  { %11606 = vmatprep.subr.bf16.mxu1 %v11442_v6  ;;  %v21254_v38 = vadd.f32 %v9469_v26, %v20984_v50  ;;  %v9626_v35 = vpop.f32.mrf.mxu1  ;;  %11258 = vmatprep.mubr.bf16.mxu1 %v23421_v45 }
 0x93b   :  { %v21258_v29 = vadd.f32 %v9626_v35, %v21057_v22  ;;  %v9471_v52 = vpop.f32.mrf.mxu0  ;;  %11301 = vmatprep.mubr.bf16.mxu0 %v23421_v45 }
 0x93c   :  { %v21262_v17 = vadd.f32 %v9471_v52, %v20993_v4  ;;  %v9628_v1 = vpop.f32.mrf.mxu1  ;;  %v11398_v52 = vpop.permute.xlu0 %11397 }
 0x93d   :  { %v21265_v41 = vadd.f32 %v9628_v1, %v21073_v43  ;;  %v9473_v3 = vpop.f32.mrf.mxu0 }
 0x93e   :  { %v21268_v50 = vadd.f32 %v9473_v3, %v23431_v7  ;;  %v9630_v58 = vpop.f32.mrf.mxu1  ;;  %v11412_v7 = vpop.permute.xlu1 %11411 }
 0x93f   :  { %v21271_v53 = vadd.f32 %v9630_v58, %v21081_v54  ;;  %v9475_v22 = vpop.f32.mrf.mxu0  ;;  %v11439_v54 = vsel %vm2359_vm9, %v21020_v18, %v21141_v33 }
 0x940   :  { %v21274_v16 = vadd.f32 %v9475_v22, %v21015_v8  ;;  %v9634_v6 = vpop.f32.mrf.mxu1  ;;  %14200 = vmatmul.mubr.msk.bf16.gmra.mxu1 %vm2964_vm10, %v21225_v2 }
 0x941   :  { %v21279_v4 = vadd.f32 %v9634_v6, %v21095_v46  ;;  %v9677_v43 = vpop.f32.mrf.mxu0  ;;  %14201 = vmatmul.mubr.msk.bf16.vlgmr.msra.gmra.mxu0 %vm2964_vm10, %v21120_v61  ;;  %11502 = vmatprep.mubr.bf16.mxu1 %v23421_v45  ;;  %v11434_v46 = vsel %vm2359_vm9, %v21181_v59, %v21251_v14 }
 0x942   :  { %v9636_v26 = vpop.f32.mrf.mxu1  ;;  %v21288_v8 = vadd.f32 %v9677_v43, %v21041_v36  ;;  %11544 = vmatpush1.bf16.msra.mxu0 %v11439_v54  ;;  %11311 = vmatprep.mubr.bf16.mxu0 %v23421_v45  ;;  %v21303_v36 = vld [vmem:[%s23011_s8 + $0xc0] sm:$0xff]  }
 0x943   :  { %v21295_v35 = vadd.f32 %v9636_v26, %v21108_v44  ;;  %11545 = vmatprep.subr.bf16.mxu0 %v11434_v46  ;;  %v9679_v61 = vpop.f32.mrf.mxu0  ;;  %v11433_v44 = vsel %vm2359_vm9, %v21075_v42, %v21181_v59  ;;  %v11400_v26 = vpop.permute.xlu0 %11399 }
 0x944   :  { %v9638_v18 = vpop.f32.mrf.mxu1  ;;  %v21298_v33 = vadd.f32 %v9679_v61, %v21054_v19  ;;  %v11428_v19 = vsel %vm2359_vm9, %v11396_v11, %v11398_v52 }
 0x945   :  { %v21306_v1 = vadd.f32 %v9638_v18, %v21115_v60  ;;  %v9681_v3 = vpop.f32.mrf.mxu0 }
 0x946   :  { %v9640_v58 = vpop.f32.mrf.mxu1  ;;  %v21312_v22 = vadd.f32 %v9681_v3, %v21067_v39  ;;  %11546 = vmatpush1.bf16.msra.mxu0 %v11433_v44  ;;  %v11441_v39 = vsel %vm2359_vm9, %v21173_v0, %v21227_v21 }
 0x947   :  { %v21316_v6 = vadd.f32 %v9640_v58, %v21126_v62  ;;  %11547 = vmatprep.subr.bf16.mxu0 %v11428_v19  ;;  %v9683_v43 = vpop.f32.mrf.mxu0  ;;  %v11436_v62 = vsel %vm2359_vm9, %v11412_v7, %v23430_v51 }
 0x948   :  { %v21319_v60 = vadd.f32 %v9683_v43, %v21078_v27  ;;  %v9740_v54 = vpop.f32.mrf.mxu1  ;;  %14207 = vmatmul.mubr.msk.bf16.vlgmr.msra.gmra.mxu1 %vm2964_vm10, %v21303_v36  ;;  %v11427_v27 = vsel %vm2359_vm9, %v21100_v15, %v11396_v11  ;;  %v11435_v15 = vsel %vm2359_vm9, %v21251_v14, %v11412_v7  ;;  %v11430_v11 = vsel %vm2359_vm9, %v11400_v26, %v23430_v51 }
 0x949   :  { %v21327_v42 = vadd.f32 %v9740_v54, %v21144_v47  ;;  %11607 = vmatpush1.bf16.msra.mxu1 %v11441_v39  ;;  %v9687_v59 = vpop.f32.mrf.mxu0  ;;  %14202 = vmatmul.mubr.msk.bf16.gmra.mxu0 %vm2964_vm10, %v21165_v12 }
 0x94a   :  { %11608 = vmatprep.subr.bf16.mxu1 %v11436_v62  ;;  %v21336_v46 = vadd.f32 %v9687_v59, %v21089_v57  ;;  %v9742_v0 = vpop.f32.mrf.mxu1  ;;  %11548 = vmatpush1.bf16.msra.mxu0 %v11427_v27  ;;  %v21351_v57 = vld [vmem:[%s23011_s8 + $0xc8] sm:$0xff]  }
 0x94b   :  { %v21339_v47 = vadd.f32 %v9742_v0, %v21154_v20  ;;  %v9689_v21 = vpop.f32.mrf.mxu0  ;;  %11512 = vmatprep.mubr.bf16.mxu1 %v23421_v45  ;;  %11321 = vmatprep.mubr.bf16.mxu0 %v23421_v45 }
 0x94c   :  { %v21344_v12 = vadd.f32 %v9689_v21, %v21103_v13  ;;  %v9744_v61 = vpop.f32.mrf.mxu1 }
 0x94d   :  { %v21354_v20 = vadd.f32 %v9744_v61, %v21168_v9  ;;  %11609 = vmatpush1.bf16.msra.mxu1 %v11435_v15  ;;  %v9691_v18 = vpop.f32.mrf.mxu0  ;;  %v11429_v9 = vsel %vm2359_vm9, %v11398_v52, %v11400_v26 }
 0x94e   :  { %11610 = vmatprep.subr.bf16.mxu1 %v11430_v11  ;;  %v21359_v13 = vadd.f32 %v9691_v18, %v21112_v63  ;;  %v9746_v3 = vpop.f32.mrf.mxu1 }
 0x94f   :  { %v21362_v14 = vadd.f32 %v9746_v3, %v21184_v30  ;;  %v9693_v44 = vpop.f32.mrf.mxu0 }
 0x950   :  { %v21365_v7 = vadd.f32 %v9693_v44, %v21123_v28  ;;  %v9750_v58 = vpop.f32.mrf.mxu1  ;;  %14208 = vmatmul.mubr.msk.bf16.gmra.mxu1 %vm2964_vm10, %v21351_v57 }
 0x951   :  { %v21371_v19 = vadd.f32 %v9750_v58, %v21200_v49  ;;  %11611 = vmatpush1.bf16.msra.mxu1 %v11429_v9  ;;  %v9697_v63 = vpop.f32.mrf.mxu0  ;;  %14203 = vmatmul.mubr.msk.bf16.gmra.mxu0 %vm2964_vm10, %v21225_v2  ;;  %v14370_v2 = vld [vmem:[%s23011_s8 + $0xd0] sm:$0xff]  }
 0x952   :  { %v21376_v30 = vadd.f32 %v9697_v63, %v21133_v40  ;;  %v9752_v43 = vpop.f32.mrf.mxu1  ;;  %11522 = vmatprep.mubr.bf16.mxu1 %v23421_v45  ;;  %11565 = vmatprep.mubr.bf16.mxu0 %v23421_v45 }
 0x953   :  { %v21381_v28 = vadd.f32 %v9752_v43, %v21213_v48  ;;  %v9699_v52 = vpop.f32.mrf.mxu0 }
 0x954   :  { %v21384_v49 = vadd.f32 %v9699_v52, %v21151_v5  ;;  %v9754_v54 = vpop.f32.mrf.mxu1 }
 0x955   :  { %v21390_v40 = vadd.f32 %v9754_v54, %v21230_v24  ;;  %v9701_v39 = vpop.f32.mrf.mxu0 }
 0x956   :  { %v21393_v62 = vadd.f32 %v9701_v39, %v21157_v37  ;;  %v9756_v59 = vpop.f32.mrf.mxu1 }
 0x957   :  { %v21396_v48 = vadd.f32 %v9756_v59, %v21239_v23  ;;  %v21398_v27 = vpop.f32.mrf.mxu0 }
 0x958   :  { %23432 = vst [vmem:[#allocation22_spill] sm:$0xff] %v21398_v27  ;;  %v9760_v5 = vpop.f32.mrf.mxu1  ;;  %14209 = vmatmul.mubr.msk.bf16.gmra.mxu1 %vm2964_vm10, %v14370_v2 }
 0x959   :  { %v21402_v26 = vadd.f32 %v9760_v5, %v21254_v38  ;;  %v9941_v0 = vpop.f32.mrf.mxu0  ;;  %14210 = vmatmul.mubr.msk.bf16.vlgmr.msra.gmra.mxu0 %vm2964_vm10, %v21303_v36  ;;  %11628 = vmatprep.mubr.bf16.mxu1 %v23421_v45 }
 0x95a   :  { %v9762_v37 = vpop.f32.mrf.mxu1  ;;  %v21408_v24 = vadd.f32 %v9941_v0, %v21189_v31  ;;  %11575 = vmatprep.mubr.bf16.mxu0 %v23421_v45 }
 0x95b   :  { %v21412_v23 = vadd.f32 %v9762_v37, %v21262_v17  ;;  %v9943_v21 = vpop.f32.mrf.mxu0 }
 0x95c   :  { %v9764_v61 = vpop.f32.mrf.mxu1  ;;  %v21415_v38 = vadd.f32 %v9943_v21, %v21206_v56 }
 0x95d   :  { %v21418_v15 = vadd.f32 %v9764_v61, %v21268_v50  ;;  %v9945_v11 = vpop.f32.mrf.mxu0 }
 0x95e   :  { %v21420_v18 = vpop.f32.mrf.mxu1  ;;  %v21423_v3 = vadd.f32 %v9945_v11, %v21217_v25 }
 0x95f   :  { %v21425_v31 = vpop.f32.mrf.mxu0 }
 0x960   :  { %v10004_v44 = vpop.f32.mrf.mxu1  ;;  %14213 = vmatmul.mubr.msk.bf16.vlgmr.msra.gmra.mxu1 %vm2964_vm10, %v21303_v36 }
 0x961   :  { %v21430_v17 = vadd.f32 %v10004_v44, %v21288_v8  ;;  %v9951_v56 = vpop.f32.mrf.mxu0  ;;  %14211 = vmatmul.mubr.msk.bf16.gmra.mxu0 %vm2964_vm10, %v21351_v57  ;;  %11638 = vmatprep.mubr.bf16.mxu1 %v23421_v45 }
 0x962   :  { %v10108_v50 = vadd.f32 %v9951_v56, %v21244_v55  ;;  %v10006_v58 = vpop.f32.mrf.mxu1  ;;  %11585 = vmatprep.mubr.bf16.mxu0 %v23421_v45 }
 0x963   :  { %v21438_v25 = vadd.f32 %v10006_v58, %v21298_v33  ;;  %v9953_v9 = vpop.f32.mrf.mxu0 }
 0x964   :  { %v10109_v36 = vadd.f32 %v9953_v9, %v21258_v29  ;;  %v10008_v63 = vpop.f32.mrf.mxu1 }
 0x965   :  { %v21442_v8 = vadd.f32 %v10008_v63, %v21312_v22  ;;  %v9955_v43 = vpop.f32.mrf.mxu0 }
 0x966   :  { %v10114_v52 = vadd.f32 %v9955_v43, %v21265_v41  ;;  %v21445_v54 = vpop.f32.mrf.mxu1 }
 0x967   :  { %v21447_v39 = vpop.f32.mrf.mxu0 }
 0x968   :  { %v10014_v55 = vpop.f32.mrf.mxu1  ;;  %14214 = vmatmul.mubr.msk.bf16.gmra.mxu1 %vm2964_vm10, %v21351_v57 }
 0x969   :  { %v21452_v33 = vadd.f32 %v10014_v55, %v21336_v46  ;;  %v9961_v59 = vpop.f32.mrf.mxu0  ;;  %14212 = vmatmul.mubr.msk.bf16.gmra.mxu0 %vm2964_vm10, %v14370_v2  ;;  %11648 = vmatprep.mubr.bf16.mxu1 %v23421_v45 }
 0x96a   :  { %v10120_v29 = vadd.f32 %v9961_v59, %v21279_v4  ;;  %v10016_v22 = vpop.f32.mrf.mxu1  ;;  %12024 = vmatprep.mubr.bf16.mxu0 %v23421_v45 }
 0x96b   :  { %v21459_v41 = vadd.f32 %v10016_v22, %v21344_v12  ;;  %v9963_v5 = vpop.f32.mrf.mxu0 }
 0x96c   :  { %v10121_v0 = vadd.f32 %v9963_v5, %v21295_v35  ;;  %v10018_v57 = vpop.f32.mrf.mxu1 }
 0x96d   :  { %v21463_v46 = vadd.f32 %v10018_v57, %v21359_v13  ;;  %v9965_v37 = vpop.f32.mrf.mxu0 }
 0x96e   :  { %v10126_v21 = vadd.f32 %v9965_v37, %v21306_v1  ;;  %v21466_v61 = vpop.f32.mrf.mxu1 }
 0x96f   :  { %23433 = vst [vmem:[#allocation24_spill] sm:$0xff] %v21466_v61  ;;  %v21468_v11 = vpop.f32.mrf.mxu0 }
 0x970   :  { %v10024_v4 = vpop.f32.mrf.mxu1  ;;  %14215 = vmatmul.mubr.msk.bf16.gmra.mxu1 %vm2964_vm10, %v14370_v2 }
 0x971   :  { %v21472_v12 = vadd.f32 %v10024_v4, %v21376_v30  ;;  %v10067_v44 = vpop.f32.mrf.mxu0  ;;  %12065 = vmatprep.mubr.bf16.mxu1 %v23421_v45 }
 0x972   :  { %v10026_v35 = vpop.f32.mrf.mxu1  ;;  %v10100_v13 = vadd.f32 %v10067_v44, %v21327_v42 }
 0x973   :  { %v21477_v56 = vadd.f32 %v10026_v35, %v21384_v49  ;;  %v10069_v1 = vpop.f32.mrf.mxu0 }
 0x974   :  { %v10028_v58 = vpop.f32.mrf.mxu1  ;;  %v10101_v9 = vadd.f32 %v10069_v1, %v21339_v47 }
 0x975   :  { %v21481_v63 = vadd.f32 %v10028_v58, %v21393_v62  ;;  %v10071_v2 = vpop.f32.mrf.mxu0 }
 0x976   :  { %v21483_v43 = vpop.f32.mrf.mxu1  ;;  %v10106_v30 = vadd.f32 %v10071_v2, %v21354_v20 }
 0x977   :  { %23434 = vst [vmem:[#allocation23_spill] sm:$0xff] %v21483_v43  ;;  %v21486_v55 = vpop.f32.mrf.mxu0 }
 0x978   :  { %v10196_v59 = vpop.f32.mrf.mxu1 }
 0x979   :  { %v21489_v42 = vadd.f32 %v10196_v59, %v21408_v24  ;;  %v10077_v49 = vpop.f32.mrf.mxu0 }
 0x97a   :  { %v10112_v22 = vadd.f32 %v10077_v49, %v21371_v19  ;;  %v10198_v5 = vpop.f32.mrf.mxu1 }
 0x97b   :  { %v21493_v47 = vadd.f32 %v10198_v5, %v21415_v38  ;;  %v10079_v62 = vpop.f32.mrf.mxu0 }
 0x97c   :  { %v10113_v57 = vadd.f32 %v10079_v62, %v21381_v28  ;;  %v10200_v37 = vpop.f32.mrf.mxu1 }
 0x97d   :  { %v21497_v4 = vadd.f32 %v10200_v37, %v21423_v3  ;;  %v10081_v20 = vpop.f32.mrf.mxu0 }
 0x97e   :  { %v10118_v44 = vadd.f32 %v10081_v20, %v21390_v40  ;;  %v21500_v35 = vpop.f32.mrf.mxu1 }
 0x97f   :  { %v21502_v24 = vpop.f32.mrf.mxu0 }
 0x980   :  { %v10206_v1 = vpop.f32.mrf.mxu1 }
 0x981   :  { %v21504_v19 = vadd.f32 %v10206_v1, %v10108_v50  ;;  %v10087_v58 = vpop.f32.mrf.mxu0 }
 0x982   :  { %v10124_v38 = vadd.f32 %v10087_v58, %v21402_v26  ;;  %v10208_v2 = vpop.f32.mrf.mxu1 }
 0x983   :  { %v21507_v59 = vadd.f32 %v10208_v2, %v10109_v36  ;;  %v10089_v28 = vpop.f32.mrf.mxu0 }
 0x984   :  { %v10125_v3 = vadd.f32 %v10089_v28, %v21412_v23  ;;  %v10210_v49 = vpop.f32.mrf.mxu1 }
 0x985   :  { %v21510_v5 = vadd.f32 %v10210_v49, %v10114_v52  ;;  %v10091_v40 = vpop.f32.mrf.mxu0 }
 0x986   :  { %v10130_v62 = vadd.f32 %v10091_v40, %v21418_v15  ;;  %v21513_v37 = vpop.f32.mrf.mxu1 }
 0x987   :  { %v21515_v20 = vpop.f32.mrf.mxu0 }
 0x988   :  { %v10216_v50 = vpop.f32.mrf.mxu1 }
 0x989   :  { %v21517_v1 = vadd.f32 %v10216_v50, %v10120_v29  ;;  %v10259_v26 = vpop.f32.mrf.mxu0 }
 0x98a   :  { %v10218_v58 = vpop.f32.mrf.mxu1  ;;  %v10353_v36 = vadd.f32 %v10259_v26, %v21430_v17 }
 0x98b   :  { %v21520_v2 = vadd.f32 %v10218_v58, %v10121_v0  ;;  %v10261_v23 = vpop.f32.mrf.mxu0 }
 0x98c   :  { %v10220_v28 = vpop.f32.mrf.mxu1  ;;  %v10354_v52 = vadd.f32 %v10261_v23, %v21438_v25 }
 0x98d   :  { %v21523_v49 = vadd.f32 %v10220_v28, %v10126_v21  ;;  %v10263_v15 = vpop.f32.mrf.mxu0 }
 0x98e   :  { %v21525_v40 = vpop.f32.mrf.mxu1  ;;  %v10359_v51 = vadd.f32 %v10263_v15, %v21442_v8 }
 0x98f   :  { %v21528_v10 = vpop.f32.mrf.mxu0 }
 0x990   :  { %v10322_v29 = vpop.f32.mrf.mxu1 }
 0x991   :  { %v21530_v50 = vadd.f32 %v10322_v29, %v10100_v13  ;;  %v10269_v45 = vpop.f32.mrf.mxu0 }
 0x992   :  { %v10365_v17 = vadd.f32 %v10269_v45, %v21452_v33  ;;  %v10324_v0 = vpop.f32.mrf.mxu1 }
 0x993   :  { %v21533_v26 = vadd.f32 %v10324_v0, %v10101_v9  ;;  %v10271_v58 = vpop.f32.mrf.mxu0 }
 0x994   :  { %v10366_v25 = vadd.f32 %v10271_v58, %v21459_v41  ;;  %v10326_v21 = vpop.f32.mrf.mxu1 }
 0x995   :  { %v21536_v23 = vadd.f32 %v10326_v21, %v10106_v30  ;;  %v10273_v28 = vpop.f32.mrf.mxu0 }
 0x996   :  { %v10371_v8 = vadd.f32 %v10273_v28, %v21463_v46  ;;  %v21539_v15 = vpop.f32.mrf.mxu1 }
 0x997   :  { %23435 = vst [vmem:[#allocation26_spill] sm:$0xff] %v21539_v15  ;;  %v21541_v43 = vpop.f32.mrf.mxu0 }
 0x998   :  { %23436 = vst [vmem:[#allocation25_spill] sm:$0xff] %v21541_v43  ;;  %v10332_v13 = vpop.f32.mrf.mxu1 }
 0x999   :  { %v21543_v29 = vadd.f32 %v10332_v13, %v10112_v22  ;;  %v10279_v45 = vpop.f32.mrf.mxu0 }
 0x99a   :  { %v10377_v33 = vadd.f32 %v10279_v45, %v21472_v12  ;;  %v10334_v9 = vpop.f32.mrf.mxu1 }
 0x99b   :  { %v21546_v0 = vadd.f32 %v10334_v9, %v10113_v57  ;;  %v10281_v41 = vpop.f32.mrf.mxu0 }
 0x99c   :  { %v10378_v30 = vadd.f32 %v10281_v41, %v21477_v56  ;;  %v10336_v58 = vpop.f32.mrf.mxu1 }
 0x99d   :  { %v21549_v21 = vadd.f32 %v10336_v58, %v10118_v44  ;;  %v10283_v46 = vpop.f32.mrf.mxu0 }
 0x99e   :  { %v10383_v28 = vadd.f32 %v10283_v46, %v21481_v63  ;;  %v21552_v27 = vpop.f32.mrf.mxu1 }
 0x99f   :  { %v21554_v34 = vpop.f32.mrf.mxu0 }
 0x9a0   :  { %23437 = vst [vmem:[#allocation44_spill] sm:$0xff] %v21554_v34  ;;  %v10342_v22 = vpop.f32.mrf.mxu1 }
 0x9a1   :  { %v21556_v13 = vadd.f32 %v10342_v22, %v10124_v38  ;;  %v10523_v12 = vpop.f32.mrf.mxu0 }
 0x9a2   :  { %v10344_v45 = vpop.f32.mrf.mxu1  ;;  %v10678_v57 = vadd.f32 %v10523_v12, %v21489_v42 }
 0x9a3   :  { %v21559_v9 = vadd.f32 %v10344_v45, %v10125_v3  ;;  %v10525_v56 = vpop.f32.mrf.mxu0 }
 0x9a4   :  { %v10346_v41 = vpop.f32.mrf.mxu1  ;;  %v10679_v44 = vadd.f32 %v10525_v56, %v21493_v47 }
 0x9a5   :  { %v21562_v58 = vadd.f32 %v10346_v41, %v10130_v62  ;;  %v10527_v63 = vpop.f32.mrf.mxu0 }
 0x9a6   :  { %v21564_v46 = vpop.f32.mrf.mxu1  ;;  %v10684_v34 = vadd.f32 %v10527_v63, %v21497_v4 }
 0x9a7   :  { %v10529_v43 = vpop.f32.mrf.mxu0 }
 0x9a8   :  { %v10586_v38 = vpop.f32.mrf.mxu1 }
 0x9a9   :  { %v21567_v22 = vadd.f32 %v10586_v38, %v10353_v36  ;;  %v10533_v15 = vpop.f32.mrf.mxu0 }
 0x9aa   :  { %v10690_v42 = vadd.f32 %v10533_v15, %v21504_v19  ;;  %v10588_v3 = vpop.f32.mrf.mxu1 }
 0x9ab   :  { %v21570_v12 = vadd.f32 %v10588_v3, %v10354_v52  ;;  %v10535_v45 = vpop.f32.mrf.mxu0 }
 0x9ac   :  { %v21573_v47 = vadd.f32 %v10535_v45, %v21507_v59  ;;  %v10590_v62 = vpop.f32.mrf.mxu1 }
 0x9ad   :  { %v21575_v56 = vadd.f32 %v10590_v62, %v10359_v51  ;;  %v10537_v41 = vpop.f32.mrf.mxu0 }
 0x9ae   :  { %v21578_v4 = vadd.f32 %v10537_v41, %v21510_v5  ;;  %v21580_v63 = vpop.f32.mrf.mxu1 }
 0x9af   :  { %v21582_v36 = vpop.f32.mrf.mxu0 }
 0x9b0   :  { %v10596_v38 = vpop.f32.mrf.mxu1 }
 0x9b1   :  { %v21584_v19 = vadd.f32 %v10596_v38, %v10365_v17  ;;  %v10543_v52 = vpop.f32.mrf.mxu0 }
 0x9b2   :  { %v21587_v15 = vadd.f32 %v10543_v52, %v21517_v1  ;;  %v10598_v59 = vpop.f32.mrf.mxu1 }
 0x9b3   :  { %v21589_v3 = vadd.f32 %v10598_v59, %v10366_v25  ;;  %v10545_v51 = vpop.f32.mrf.mxu0 }
 0x9b4   :  { %v21592_v45 = vadd.f32 %v10545_v51, %v21520_v2  ;;  %v10600_v5 = vpop.f32.mrf.mxu1 }
 0x9b5   :  { %23438 = vst [vmem:[#allocation45_spill] sm:$0xff] %v21589_v3  ;;  %v21594_v62 = vadd.f32 %v10600_v5, %v10371_v8  ;;  %v10547_v41 = vpop.f32.mrf.mxu0 }
 0x9b6   :  { %v21597_v61 = vadd.f32 %v10547_v41, %v21523_v49  ;;  %v21599_v17 = vpop.f32.mrf.mxu1 }
 0x9b7   :  { %23439 = vst [vmem:[#allocation46_spill] sm:$0xff] %v21594_v62  ;;  %v21601_v38 = vpop.f32.mrf.mxu0 }
 0x9b8   :  { %v10606_v1 = vpop.f32.mrf.mxu1 }
 0x9b9   :  { %v21603_v52 = vadd.f32 %v10606_v1, %v10377_v33  ;;  %v10649_v25 = vpop.f32.mrf.mxu0 }
 0x9ba   :  { %v10608_v59 = vpop.f32.mrf.mxu1  ;;  %v21606_v3 = vadd.f32 %v10649_v25, %v21530_v50  ;;  %v10103_v50 = vadd.f32 %v21425_v31, %v21233_v32 }
 0x9bb   :  { %23440 = vst [vmem:[#allocation27_spill] sm:$0xff] %v21603_v52  ;;  %v21608_v2 = vadd.f32 %v10608_v59, %v10378_v30  ;;  %v10651_v8 = vpop.f32.mrf.mxu0 }
 0x9bc   :  { %v10610_v51 = vpop.f32.mrf.mxu1  ;;  %v21611_v5 = vadd.f32 %v10651_v8, %v21533_v26  ;;  %v10358_v59 = vadd.f32 %v21500_v35, %v10103_v50 }
 0x9bd   :  { %v21613_v49 = vadd.f32 %v10610_v51, %v10383_v28  ;;  %v10653_v41 = vpop.f32.mrf.mxu0 }
 0x9be   :  { %v21615_v62 = vpop.f32.mrf.mxu1  ;;  %v21618_v33 = vadd.f32 %v10653_v41, %v21536_v23  ;;  %v10119_v23 = vadd.f32 %v21502_v24, %v21396_v48  ;;  %v10685_v32 = vadd.f32 %v10529_v43, %v10358_v59  ;;  %v10115_v24 = vadd.f32 %v21447_v39, %v21271_v53 }
 0x9bf   :  { %23441 = vst [vmem:[#allocation47_spill] sm:$0xff] %v21613_v49  ;;  %v21620_v1 = vpop.f32.mrf.mxu0  ;;  %v9804_v43 = vadd.f32 %v21420_v18, %v21274_v16 }
 0x9c0   :  { %v10850_v52 = vpop.f32.mrf.mxu1 }
 0x9c1   :  { %v21624_v30 = vadd.f32 %v10850_v52, %v10678_v57  ;;  %v10659_v25 = vpop.f32.mrf.mxu0 }
 0x9c2   :  { %v21627_v26 = vadd.f32 %v10659_v25, %v21543_v29  ;;  %v10852_v28 = vpop.f32.mrf.mxu1  ;;  %v10374_v29 = vadd.f32 %v21552_v27, %v10119_v23 }
 0x9c3   :  { %v21630_v8 = vadd.f32 %v10852_v28, %v10679_v44  ;;  %v10661_v51 = vpop.f32.mrf.mxu0 }
 0x9c4   :  { %v21635_v41 = vadd.f32 %v10661_v51, %v21546_v0  ;;  %v10854_v49 = vpop.f32.mrf.mxu1  ;;  %v10131_v51 = vadd.f32 %v21515_v20, %v9804_v43 }
 0x9c5   :  { %v21637_v31 = vadd.f32 %v10854_v49, %v10684_v34  ;;  %v10663_v57 = vpop.f32.mrf.mxu0  ;;  %v10370_v49 = vadd.f32 %v21513_v37, %v10115_v24 }
 0x9c6   :  { %v21641_v52 = vadd.f32 %v10663_v57, %v21549_v21  ;;  %v10856_v35 = vpop.f32.mrf.mxu1  ;;  %v10127_v57 = vadd.f32 %v21468_v11, %v21316_v6 }
 0x9c7   :  { %v21643_v44 = vadd.f32 %v10856_v35, %v10685_v32  ;;  %v10665_v50 = vpop.f32.mrf.mxu0 }
 0x9c8   :  { %v21645_v25 = vadd.f32 %v10665_v50, %v10374_v29  ;;  %v10860_v48 = vpop.f32.mrf.mxu1  ;;  %v10382_v35 = vadd.f32 %v21525_v40, %v10127_v57  ;;  %v23446_v57 = vld [vmem:[#allocation46_spill] sm:$0xff] }
 0x9c9   :  { %v21649_v0 = vadd.f32 %v10860_v48, %v10690_v42  ;;  %v10669_v34 = vpop.f32.mrf.mxu0  ;;  %v10697_v42 = vadd.f32 %v21582_v36, %v10370_v49  ;;  %v23442_v49 = vld [vmem:[#allocation24_spill] sm:$0xff] }
 0x9ca   :  { %v21654_v27 = vadd.f32 %v10669_v34, %v21556_v13  ;;  %v10862_v21 = vpop.f32.mrf.mxu1  ;;  %v10386_v13 = vadd.f32 %v21564_v46, %v10131_v51  ;;  %v10105_v46 = vadd.f32 %v21445_v54, %v21319_v60  ;;  %v23443_v51 = vld [vmem:[#allocation26_spill] sm:$0xff] }
 0x9cb   :  { %v21658_v28 = vadd.f32 %v10862_v21, %v21573_v47  ;;  %v10671_v59 = vpop.f32.mrf.mxu0 }
 0x9cc   :  { %v21662_v53 = vadd.f32 %v10671_v59, %v21559_v9  ;;  %v10864_v39 = vpop.f32.mrf.mxu1  ;;  %v10360_v24 = vadd.f32 %v21528_v10, %v10105_v46 }
 0x9cd   :  { %v21666_v16 = vadd.f32 %v10864_v39, %v21578_v4  ;;  %v10673_v18 = vpop.f32.mrf.mxu0 }
 0x9ce   :  { %v21670_v37 = vadd.f32 %v10673_v18, %v21562_v58  ;;  %v10866_v47 = vpop.f32.mrf.mxu1 }
 0x9cf   :  { %v21672_v23 = vadd.f32 %v10866_v47, %v10697_v42  ;;  %v10675_v32 = vpop.f32.mrf.mxu0 }
 0x9d0   :  { %v21674_v20 = vadd.f32 %v10675_v32, %v10386_v13  ;;  %v10870_v9 = vpop.f32.mrf.mxu1  ;;  %v23444_v13 = vld [vmem:[#allocation25_spill] sm:$0xff] }
 0x9d1   :  { %v21679_v36 = vadd.f32 %v10870_v9, %v21587_v15  ;;  %v10913_v4 = vpop.f32.mrf.mxu0  ;;  %v10709_v15 = vadd.f32 %v21601_v38, %v10382_v35  ;;  %v23445_v32 = vld [vmem:[#allocation45_spill] sm:$0xff] }
 0x9d2   :  { %v10872_v29 = vpop.f32.mrf.mxu1  ;;  %v21684_v58 = vadd.f32 %v10913_v4, %v21567_v22  ;;  %v10687_v22 = vadd.f32 %v21580_v63, %v10360_v24  ;;  %v10117_v63 = vadd.f32 %v23442_v49, %v21365_v7  ;;  %v23447_v35 = vld [vmem:[#allocation21_spill] sm:$0xff] }
 0x9d3   :  { %v21688_v50 = vadd.f32 %v10872_v29, %v21592_v45  ;;  %v10915_v48 = vpop.f32.mrf.mxu0 }
 0x9d4   :  { %v10874_v6 = vpop.f32.mrf.mxu1  ;;  %v21692_v11 = vadd.f32 %v10915_v48, %v21570_v12  ;;  %v10107_v12 = vadd.f32 %v21486_v55, %v21362_v14  ;;  %v10372_v47 = vadd.f32 %v23444_v13, %v10117_v63  ;;  %v23448_v48 = vld [vmem:[#allocation22_spill] sm:$0xff] }
 0x9d5   :  { %v21696_v60 = vadd.f32 %v10874_v6, %v21597_v61  ;;  %v10917_v54 = vpop.f32.mrf.mxu0  ;;  %v9802_v24 = vadd.f32 %v23448_v48, %v23447_v35 }
 0x9d6   :  { %v10876_v34 = vpop.f32.mrf.mxu1  ;;  %v21700_v40 = vadd.f32 %v10917_v54, %v21575_v56  ;;  %v10362_v39 = vadd.f32 %v23443_v51, %v10107_v12 }
 0x9d7   :  { %v21702_v45 = vadd.f32 %v10876_v34, %v10709_v15  ;;  %v10919_v43 = vpop.f32.mrf.mxu0  ;;  %v23450_v34 = vld [vmem:[#allocation27_spill] sm:$0xff] }
 0x9d8   :  { %v21704_v10 = vadd.f32 %v10919_v43, %v10687_v22  ;;  %v10976_v21 = vpop.f32.mrf.mxu1 }
 0x9d9   :  { %v21709_v38 = vadd.f32 %v10976_v21, %v21606_v3  ;;  %v10923_v61 = vpop.f32.mrf.mxu0  ;;  %v10689_v3 = vadd.f32 %v21620_v1, %v10362_v39 }
 0x9da   :  { %v11019_v59 = vadd.f32 %v10923_v61, %v21584_v19  ;;  %v10978_v56 = vpop.f32.mrf.mxu1  ;;  %v10699_v19 = vadd.f32 %v21599_v17, %v10372_v47  ;;  %v23451_v61 = vld [vmem:[#allocation44_spill] sm:$0xff] }
 0x9db   :  { %v21716_v42 = vadd.f32 %v10978_v56, %v21611_v5  ;;  %v10925_v18 = vpop.f32.mrf.mxu0 }
 0x9dc   :  { %v11020_v14 = vadd.f32 %v10925_v18, %v23445_v32  ;;  %v10980_v55 = vpop.f32.mrf.mxu1  ;;  %v23452_v18 = vld [vmem:[#allocation47_spill] sm:$0xff] }
 0x9dd   :  { %v21722_v9 = vadd.f32 %v10980_v55, %v21618_v33  ;;  %v10927_v7 = vpop.f32.mrf.mxu0  ;;  %v23449_v33 = vld [vmem:[#allocation23_spill] sm:$0xff] }
 0x9de   :  { %v11025_v4 = vadd.f32 %v10927_v7, %v23446_v57  ;;  %v10982_v46 = vpop.f32.mrf.mxu1  ;;  %v10129_v22 = vadd.f32 %v23449_v33, %v9802_v24 }
 0x9df   :  { %v21726_v29 = vadd.f32 %v10982_v46, %v10689_v3  ;;  %v10929_v5 = vpop.f32.mrf.mxu0 }
 0x9e0   :  { %v11026_v6 = vadd.f32 %v10929_v5, %v10699_v19  ;;  %v10986_v15 = vpop.f32.mrf.mxu1  ;;  %v10384_v49 = vadd.f32 %v23451_v61, %v10129_v22 }
 0x9e1   :  { %v21731_v54 = vadd.f32 %v10986_v15, %v21627_v26  ;;  %v10933_v1 = vpop.f32.mrf.mxu0 }
 0x9e2   :  { %v11031_v43 = vadd.f32 %v10933_v1, %v23450_v34  ;;  %v10988_v17 = vpop.f32.mrf.mxu1  ;;  %v10711_v39 = vadd.f32 %v21615_v62, %v10384_v49 }
 0x9e3   :  { %v21736_v21 = vadd.f32 %v10988_v17, %v21635_v41  ;;  %v10935_v12 = vpop.f32.mrf.mxu0 }
 0x9e4   :  { %v11032_v63 = vadd.f32 %v10935_v12, %v21608_v2  ;;  %v10990_v56 = vpop.f32.mrf.mxu1 }
 0x9e5   :  { %v21741_v51 = vadd.f32 %v10990_v56, %v21641_v52  ;;  %v10937_v26 = vpop.f32.mrf.mxu0 }
 0x9e6   :  { %v11037_v13 = vadd.f32 %v10937_v26, %v23452_v18  ;;  %v10992_v47 = vpop.f32.mrf.mxu1 }
 0x9e7   :  { %v21746_v32 = vadd.f32 %v10992_v47, %v21645_v25  ;;  %v10939_v41 = vpop.f32.mrf.mxu0 }
 0x9e8   :  { %v11038_v55 = vadd.f32 %v10939_v41, %v10711_v39  ;;  %v10996_v3 = vpop.f32.mrf.mxu1 }
 0x9e9   :  { %v21749_v7 = vadd.f32 %v10996_v3, %v21654_v27  ;;  %v11177_v2 = vpop.f32.mrf.mxu0 }
 0x9ea   :  { %v10998_v19 = vpop.f32.mrf.mxu1 }
 0x9eb   :  { %v21752_v52 = vadd.f32 %v10998_v19, %v21662_v53  ;;  %v11179_v57 = vpop.f32.mrf.mxu0 }
 0x9ec   :  { %v11000_v46 = vpop.f32.mrf.mxu1 }
 0x9ed   :  { %v21755_v62 = vadd.f32 %v11000_v46, %v21670_v37  ;;  %v11181_v5 = vpop.f32.mrf.mxu0 }
 0x9ee   :  { %v11002_v35 = vpop.f32.mrf.mxu1 }
 0x9ef   :  { %v21758_v25 = vadd.f32 %v11002_v35, %v21674_v20  ;;  %v21760_v48 = vpop.f32.mrf.mxu0 }
 0x9f0   :  { %v21762_v24 = vpop.f32.mrf.mxu1 }
 0x9f1   :  { %v11187_v27 = vpop.f32.mrf.mxu0 }
 0x9f2   :  { %v21765_v15 = vadd.f32 %v11187_v27, %v21649_v0  ;;  %v21767_v53 = vpop.f32.mrf.mxu1  ;;  %v21806_v27 = vpop.permute.xlu0 %11728 }
 0x9f3   :  { %v11189_v1 = vpop.f32.mrf.mxu0 }
 0x9f4   :  { %v21770_v33 = vadd.f32 %v11189_v1, %v21658_v28  ;;  %v21772_v37 = vpop.f32.mrf.mxu1 }
 0x9f5   :  { %v11191_v22 = vpop.f32.mrf.mxu0 }
 0x9f6   :  { %v21775_v20 = vadd.f32 %v11191_v22, %v21666_v16  ;;  %v21777_v34 = vpop.f32.mrf.mxu1 }
 0x9f7   :  { %v11193_v17 = vpop.f32.mrf.mxu0 }
 0x9f8   :  { %v21780_v12 = vadd.f32 %v11193_v17, %v21672_v23  ;;  %v11250_v0 = vpop.f32.mrf.mxu1  ;;  %v21794_v23 = vpop.permute.xlu1 %11723 }
 0x9f9   :  { %v21782_v61 = vadd.f32 %v11250_v0, %v11019_v59  ;;  %v11197_v49 = vpop.f32.mrf.mxu0 }
 0x9fa   :  { %v21785_v56 = vadd.f32 %v11197_v49, %v21679_v36  ;;  %v11252_v28 = vpop.f32.mrf.mxu1 }
 0x9fb   :  { %v21787_v26 = vadd.f32 %v11252_v28, %v11020_v14  ;;  %v11199_v39 = vpop.f32.mrf.mxu0 }
 0x9fc   :  { %v21790_v16 = vadd.f32 %v11199_v39, %v21688_v50  ;;  %v11254_v18 = vpop.f32.mrf.mxu1  ;;  %v21813_v17 = vpop.permute.xlu1 %11713  ;;  %v11332_v39 = vadd.f32 %v11177_v2, %v21624_v30  ;;  %v11338_v30 = vadd.f32 %v11181_v5, %v21637_v31 }
 0x9fd   :  { %v21792_v47 = vadd.f32 %v11254_v18, %v11025_v4  ;;  %v11201_v41 = vpop.f32.mrf.mxu0  ;;  %v21826_v18 = vpop.permute.xlu0 %11718 }
 0x9fe   :  { %v21797_v59 = vadd.f32 %v11201_v41, %v21696_v60  ;;  %v11256_v3 = vpop.f32.mrf.mxu1 }
 0x9ff   :  { %v21799_v19 = vadd.f32 %v11256_v3, %v11026_v6  ;;  %v11203_v36 = vpop.f32.mrf.mxu0 }
 0xa00   :  { %v21802_v14 = vadd.f32 %v11203_v36, %v21702_v45  ;;  %v11260_v46 = vpop.f32.mrf.mxu1 }
 0xa01   :  { %v21804_v35 = vadd.f32 %v11260_v46, %v11031_v43  ;;  %v11303_v50 = vpop.f32.mrf.mxu0  ;;  %v21832_v46 = vpop.permute.xlu1 %11703 }
 0xa02   :  { %v11262_v4 = vpop.f32.mrf.mxu1  ;;  %v21809_v1 = vadd.f32 %v11303_v50, %v21709_v38 }
 0xa03   :  { %v21811_v22 = vadd.f32 %v11262_v4, %v11032_v63  ;;  %v11305_v60 = vpop.f32.mrf.mxu0 }
 0xa04   :  { %v11264_v6 = vpop.f32.mrf.mxu1  ;;  %v21816_v0 = vadd.f32 %v11305_v60, %v21716_v42  ;;  %v11333_v42 = vadd.f32 %v11179_v57, %v21630_v8  ;;  %v11339_v8 = vadd.f32 %v21760_v48, %v21643_v44 }
 0xa05   :  { %v21818_v45 = vadd.f32 %v11264_v6, %v11037_v13  ;;  %v11307_v43 = vpop.f32.mrf.mxu0 }
 0xa06   :  { %v11266_v49 = vpop.f32.mrf.mxu1  ;;  %v21821_v28 = vadd.f32 %v11307_v43, %v21722_v9 }
 0xa07   :  { %v21824_v38 = vadd.f32 %v11266_v49, %v11038_v55  ;;  %v11309_v63 = vpop.f32.mrf.mxu0  ;;  %v21845_v49 = vpop.permute.xlu0 %11708 }
 0xa08   :  { %v21829_v41 = vadd.f32 %v11309_v63, %v21726_v29  ;;  %v11504_v3 = vpop.f32.mrf.mxu1 }
 0xa09   :  { %v11659_v13 = vadd.f32 %v11504_v3, %v11332_v39  ;;  %v11313_v36 = vpop.f32.mrf.mxu0 }
 0xa0a   :  { %v21835_v9 = vadd.f32 %v11313_v36, %v21731_v54  ;;  %v11506_v50 = vpop.f32.mrf.mxu1 }
 0xa0b   :  { %v11731_v55 = vadd.f32 %v21832_v46, %v11659_v13  ;;  %v11660_v2 = vadd.f32 %v11506_v50, %v11333_v42  ;;  %v11315_v4 = vpop.f32.mrf.mxu0 }
 0xa0c   :  { %v21840_v29 = vadd.f32 %v11315_v4, %v21736_v21  ;;  %v11508_v60 = vpop.f32.mrf.mxu1 }
 0xa0d   :  { %v11767_v57 = vmul.f32 0.01, %v11731_v55  ;;  %v11732_v6 = vadd.f32 %v21832_v46, %v11660_v2  ;;  %v11665_v43 = vadd.f32 %v11508_v60, %v11338_v30  ;;  %v11317_v54 = vpop.f32.mrf.mxu0 }
 0xa0e   :  { %v21848_v31 = vadd.f32 %v11317_v54, %v21741_v51  ;;  %v11510_v5 = vpop.f32.mrf.mxu1 }
 0xa0f   :  { %v11768_v39 = vmul.f32 0.01, %v11732_v6  ;;  %v11737_v63 = vadd.f32 %v21845_v49, %v11665_v43  ;;  %v11666_v21 = vadd.f32 %v11510_v5, %v11339_v8  ;;  %v11319_v3 = vpop.f32.mrf.mxu0  ;;  %v11803_v42 = vmax.f32 %v11731_v55, %v11767_v57  ;;  %v23453_v57 = vld [vmem:[#allocation14_spill] sm:$0xff] }
 0xa10   :  { %v21852_v13 = vadd.f32 %v11319_v3, %v21746_v32  ;;  %v11514_v44 = vpop.f32.mrf.mxu1  ;;  %v23454_v3 = vld [vmem:[#allocation58_spill] sm:$0xff] }
 0xa11   :  { %v11773_v48 = vmul.f32 0.01, %v11737_v63  ;;  %v11738_v36 = vadd.f32 %v21845_v49, %v11666_v21  ;;  %v11323_v50 = vpop.f32.mrf.mxu0  ;;  %v11804_v30 = vmax.f32 %v11732_v6, %v11768_v39  ;;  %v11671_v2 = vadd.f32 %v11514_v44, %v21765_v15 }
 0xa12   :  { %v21857_v51 = vadd.f32 %v11323_v50, %v21749_v7  ;;  %v11516_v4 = vpop.f32.mrf.mxu1  ;;  %v11839_v32 = vmul.f32 %v11803_v42, %v23453_v57 }
 0xa13   :  { %v11809_v60 = vmax.f32 %v11737_v63, %v11773_v48  ;;  %v11774_v43 = vmul.f32 0.01, %v11738_v36  ;;  %v11672_v8 = vadd.f32 %v11516_v4, %v21770_v33  ;;  %v11325_v55 = vpop.f32.mrf.mxu0  ;;  %v11743_v54 = vadd.f32 %v21813_v17, %v11671_v2 }
 0xa14   :  { %v21863_v5 = vadd.f32 %v11325_v55, %v21752_v52  ;;  %v11518_v21 = vpop.f32.mrf.mxu1  ;;  %v11334_v33 = vadd.f32 %v21762_v24, %v21684_v58  ;;  %v11840_v44 = vmul.f32 %v11804_v30, %v23454_v3 }
 0xa15   :  { %v11845_v6 = vmul.f32 %v11809_v60, %v23453_v57  ;;  %v11810_v15 = vmax.f32 %v11738_v36, %v11774_v43  ;;  %v11744_v7 = vadd.f32 %v21813_v17, %v11672_v8  ;;  %v11677_v39 = vadd.f32 %v11518_v21, %v21775_v20  ;;  %v11327_v63 = vpop.f32.mrf.mxu0 }
 0xa16   :  { %v11779_v42 = vmul.f32 0.01, %v11743_v54  ;;  %v21872_v48 = vadd.f32 %v11327_v63, %v21755_v62  ;;  %v11520_v52 = vpop.f32.mrf.mxu1  ;;  %v11335_v20 = vadd.f32 %v21767_v53, %v21692_v11  ;;  %v11340_v11 = vadd.f32 %v21772_v37, %v21700_v40 }
 0xa17   :  { %v21874_v50 = vpack.c.bf16 %v11845_v6, %v11839_v32  ;;  %v11846_v2 = vmul.f32 %v11810_v15, %v23454_v3  ;;  %v11780_v36 = vmul.f32 0.01, %v11744_v7  ;;  %v11749_v4 = vadd.f32 %v21826_v18, %v11677_v39  ;;  %v11329_v60 = vpop.f32.mrf.mxu0 }
 0xa18   :  { %v11815_v43 = vmax.f32 %v11743_v54, %v11779_v42  ;;  %v11678_v58 = vadd.f32 %v11520_v52, %v21780_v12  ;;  %v21882_v24 = vadd.f32 %v11329_v60, %v21758_v25  ;;  %v11524_v62 = vpop.f32.mrf.mxu1  ;;  %v11341_v53 = vadd.f32 %v21777_v34, %v21704_v10 }
 0xa19   :  { %v21884_v30 = vpack.c.bf16 %v11846_v2, %v11840_v44  ;;  %v11816_v8 = vmax.f32 %v11744_v7, %v11780_v36  ;;  %v11785_v55 = vmul.f32 0.01, %v11749_v4  ;;  %v11683_v32 = vadd.f32 %v11524_v62, %v21785_v56  ;;  %11917 = vrot.lane.b32.xlu1 %v21874_v50, %s14400_s27  ;;  %v11567_v21 = vpop.f32.mrf.mxu0 }
 0xa1a   :  { %v11750_v25 = vadd.f32 %v21826_v18, %v11678_v58  ;;  %v11526_v12 = vpop.f32.mrf.mxu1  ;;  %v11661_v54 = vadd.f32 %v11567_v21, %v11334_v33  ;;  %v11851_v6 = vmul.f32 %v11815_v43, %v23453_v57 }
 0xa1b   :  { %v11821_v15 = vmax.f32 %v11749_v4, %v11785_v55  ;;  %v11755_v7 = vadd.f32 %v21794_v23, %v11683_v32  ;;  %v11684_v56 = vadd.f32 %v11526_v12, %v21790_v16  ;;  %11919 = vrot.lane.b32.xlu0 %v21884_v30, %s14400_s27  ;;  %v11569_v39 = vpop.f32.mrf.mxu0  ;;  %v11852_v40 = vmul.f32 %v11816_v8, %v23454_v3 }
 0xa1c   :  { %v11786_v37 = vmul.f32 0.01, %v11750_v25  ;;  %v11733_v10 = vadd.f32 %v21832_v46, %v11661_v54  ;;  %v11528_v34 = vpop.f32.mrf.mxu1  ;;  %v11662_v63 = vadd.f32 %v11569_v39, %v11335_v20 }
 0xa1d   :  { %v11857_v33 = vmul.f32 %v11821_v15, %v23453_v57  ;;  %v11791_v44 = vmul.f32 0.01, %v11755_v7  ;;  %v11756_v42 = vadd.f32 %v21794_v23, %v11684_v56  ;;  %v11689_v52 = vadd.f32 %v11528_v34, %v21797_v59  ;;  %v11571_v2 = vpop.f32.mrf.mxu0 }
 0xa1e   :  { %v11822_v16 = vmax.f32 %v11750_v25, %v11786_v37  ;;  %v11769_v36 = vmul.f32 0.01, %v11733_v10  ;;  %v11734_v4 = vadd.f32 %v21832_v46, %v11662_v63  ;;  %v11530_v60 = vpop.f32.mrf.mxu1  ;;  %v11667_v43 = vadd.f32 %v11571_v2, %v11340_v11 }
 0xa1f   :  { %v21905_v58 = vpack.c.bf16 %v11857_v33, %v11851_v6  ;;  %v11827_v62 = vmax.f32 %v11755_v7, %v11791_v44  ;;  %v11792_v8 = vmul.f32 0.01, %v11756_v42  ;;  %v11761_v20 = vadd.f32 %v21806_v27, %v11689_v52  ;;  %v11573_v55 = vpop.f32.mrf.mxu0  ;;  %v23455_v7 = vld [vmem:[#allocation59_spill] sm:$0xff] }
 0xa20   :  { %v11858_v32 = vmul.f32 %v11822_v16, %v23454_v3  ;;  %v11805_v21 = vmax.f32 %v11733_v10, %v11769_v36  ;;  %v11770_v12 = vmul.f32 0.01, %v11734_v4  ;;  %v11690_v59 = vadd.f32 %v11530_v60, %v21802_v14  ;;  %v11630_v54 = vpop.f32.mrf.mxu1  ;;  %v23456_v16 = vld [vmem:[#allocation60_spill] sm:$0xff] }
 0xa21   :  { %v11863_v25 = vmul.f32 %v11827_v62, %v23453_v57  ;;  %v11828_v15 = vmax.f32 %v11756_v42, %v11792_v8  ;;  %v11797_v56 = vmul.f32 0.01, %v11761_v20  ;;  %v11739_v11 = vadd.f32 %v21845_v49, %v11667_v43  ;;  %v11577_v6 = vpop.f32.mrf.mxu0 }
 0xa22   :  { %v21912_v39 = vpack.c.bf16 %v11858_v32, %v11852_v40  ;;  %v11841_v37 = vmul.f32 %v11805_v21, %v23455_v7  ;;  %v11806_v34 = vmax.f32 %v11734_v4, %v11770_v12  ;;  %v11762_v63 = vadd.f32 %v21806_v27, %v11690_v59  ;;  %v11632_v33 = vpop.f32.mrf.mxu1 }
 0xa23   :  { %v11864_v10 = vmul.f32 %v11828_v15, %v23454_v3  ;;  %v11833_v44 = vmax.f32 %v11761_v20, %v11797_v56  ;;  %v11775_v14 = vmul.f32 0.01, %v11739_v11  ;;  %v11668_v52 = vadd.f32 %v11573_v55, %v11341_v53  ;;  %v11579_v2 = vpop.f32.mrf.mxu0 }
 0xa24   :  { %v11842_v42 = vmul.f32 %v11806_v34, %v23456_v16  ;;  %v11798_v36 = vmul.f32 0.01, %v11762_v63  ;;  %v11663_v60 = vadd.f32 %v11630_v54, %v21809_v1  ;;  %v11673_v40 = vadd.f32 %v11577_v6, %v21782_v61  ;;  %v11634_v43 = vpop.f32.mrf.mxu1 }
 0xa25   :  { %v11869_v62 = vmul.f32 %v11833_v44, %v23453_v57  ;;  %v11811_v4 = vmax.f32 %v11739_v11, %v11775_v14  ;;  %v11740_v8 = vadd.f32 %v21845_v49, %v11668_v52  ;;  %v11664_v32 = vadd.f32 %v11632_v33, %v21816_v0  ;;  %v11581_v21 = vpop.f32.mrf.mxu0 }
 0xa26   :  { %v11834_v20 = vmax.f32 %v11762_v63, %v11798_v36  ;;  %v11735_v53 = vadd.f32 %v21832_v46, %v11663_v60  ;;  %v11745_v55 = vadd.f32 %v21813_v17, %v11673_v40  ;;  %v11674_v12 = vadd.f32 %v11579_v2, %v21787_v26  ;;  %v11636_v59 = vpop.f32.mrf.mxu1 }
 0xa27   :  { %v21926_v1 = vpack.c.bf16 %v11869_v62, %v11863_v25  ;;  %v11847_v61 = vmul.f32 %v11811_v4, %v23455_v7  ;;  %v11776_v54 = vmul.f32 0.01, %v11740_v8  ;;  %v11736_v57 = vadd.f32 %v21832_v46, %v11664_v32  ;;  %v11583_v15 = vpop.f32.mrf.mxu0 }
 0xa28   :  { %v11870_v56 = vmul.f32 %v11834_v20, %v23454_v3  ;;  %v11771_v0 = vmul.f32 0.01, %v11735_v53  ;;  %v11781_v11 = vmul.f32 0.01, %v11745_v55  ;;  %v11746_v6 = vadd.f32 %v21813_v17, %v11674_v12  ;;  %v11640_v34 = vpop.f32.mrf.mxu1  ;;  %v23460_v20 = vld [vmem:[#allocation18_spill] sm:$0xff] }
 0xa29   :  { %23457 = vst [vmem:[#allocation28_spill] sm:$0xff] %v21926_v1  ;;  %v21932_v63 = vpack.c.bf16 %v11847_v61, %v11841_v37  ;;  %v11812_v33 = vmax.f32 %v11740_v8, %v11776_v54  ;;  %v11772_v26 = vmul.f32 0.01, %v11736_v57  ;;  %v11669_v25 = vadd.f32 %v11634_v43, %v21821_v28  ;;  %v11587_v44 = vpop.f32.mrf.mxu0  ;;  %v23459_v37 = vld [vmem:[#allocation17_spill] sm:$0xff] }
 0xa2a   :  { %v21935_v14 = vpack.c.bf16 %v11870_v56, %v11864_v10  ;;  %v11807_v52 = vmax.f32 %v11735_v53, %v11771_v0  ;;  %v11817_v2 = vmax.f32 %v11745_v55, %v11781_v11  ;;  %v11782_v46 = vmul.f32 0.01, %v11746_v6  ;;  %v11642_v36 = vpop.f32.mrf.mxu1 }
 0xa2b   :  { %v11848_v3 = vmul.f32 %v11812_v33, %v23456_v16  ;;  %v11808_v60 = vmax.f32 %v11736_v57, %v11772_v26  ;;  %v11741_v40 = vadd.f32 %v21845_v49, %v11669_v25  ;;  %v11679_v62 = vadd.f32 %v11581_v21, %v21792_v47  ;;  %11921 = vrot.lane.b32.xlu1 %v21932_v63, %s14400_s27  ;;  %v11589_v61 = vpop.f32.mrf.mxu0 }
 0xa2c   :  { %23458 = vst [vmem:[#allocation35_spill] sm:$0xff] %v21935_v14  ;;  %v11843_v4 = vmul.f32 %v11807_v52, %v23459_v37  ;;  %v11853_v28 = vmul.f32 %v11817_v2, %v23455_v7  ;;  %v11818_v10 = vmax.f32 %v11746_v6, %v11782_v46  ;;  %v11670_v43 = vadd.f32 %v11636_v59, %v21829_v41  ;;  %v11644_v8 = vpop.f32.mrf.mxu1 }
 0xa2d   :  { %v21945_v32 = vpack.c.bf16 %v11848_v3, %v11842_v42  ;;  %v11844_v53 = vmul.f32 %v11808_v60, %v23460_v20  ;;  %v11777_v55 = vmul.f32 0.01, %v11741_v40  ;;  %v11751_v12 = vadd.f32 %v21826_v18, %v11679_v62  ;;  %v11591_v33 = vpop.f32.mrf.mxu0 }
 0xa2e   :  { %v11854_v47 = vmul.f32 %v11818_v10, %v23456_v16  ;;  %v11742_v21 = vadd.f32 %v21845_v49, %v11670_v43  ;;  %v11680_v54 = vadd.f32 %v11583_v15, %v21799_v19  ;;  %v11675_v57 = vadd.f32 %v11640_v34, %v21835_v9  ;;  %v11646_v56 = vpop.f32.mrf.mxu1 }
 0xa2f   :  { %v11813_v0 = vmax.f32 %v11741_v40, %v11777_v55  ;;  %v11787_v41 = vmul.f32 0.01, %v11751_v12  ;;  %v11685_v42 = vadd.f32 %v11587_v44, %v21804_v35  ;;  %v11676_v59 = vadd.f32 %v11642_v36, %v21840_v29  ;;  %11923 = vrot.lane.b32.xlu0 %v21945_v32, %s14400_s27  ;;  %12115 = vrot.lane.b32.xlu1 %v21874_v50, %s14401_s0 }
 0xa30   :  { %v11778_v11 = vmul.f32 0.01, %v11742_v21  ;;  %v11752_v49 = vadd.f32 %v21826_v18, %v11680_v54  ;;  %v11747_v19 = vadd.f32 %v21813_v17, %v11675_v57  ;;  %v11686_v9 = vadd.f32 %v11589_v61, %v21811_v22  ;;  %v11650_v15 = vpop.f32.mrf.mxu1  ;;  %v11593_v61 = vpop.f32.mrf.mxu0 }
 0xa31   :  { %v11849_v6 = vmul.f32 %v11813_v0, %v23459_v37  ;;  %v11823_v34 = vmax.f32 %v11751_v12, %v11787_v41  ;;  %v11757_v35 = vadd.f32 %v21794_v23, %v11685_v42  ;;  %v11748_v29 = vadd.f32 %v21813_v17, %v11676_v59 }
 0xa32   :  { %v11814_v26 = vmax.f32 %v11742_v21, %v11778_v11  ;;  %v11788_v25 = vmul.f32 0.01, %v11752_v49  ;;  %v11783_v44 = vmul.f32 0.01, %v11747_v19  ;;  %v11758_v52 = vadd.f32 %v21794_v23, %v11686_v9  ;;  %v11652_v2 = vpop.f32.mrf.mxu1 }
 0xa33   :  { %v21966_v46 = vpack.c.bf16 %v11849_v6, %v11843_v4  ;;  %v11859_v36 = vmul.f32 %v11823_v34, %v23455_v7  ;;  %v11793_v22 = vmul.f32 0.01, %v11757_v35  ;;  %v11784_v3 = vmul.f32 0.01, %v11748_v29  ;;  %12117 = vrot.lane.b32.xlu0 %v21884_v30, %s14401_s0  ;;  %12119 = vrot.lane.b32.xlu1 %v21932_v63, %s14401_s0 }
 0xa34   :  { %v11850_v17 = vmul.f32 %v11814_v26, %v23460_v20  ;;  %v11824_v60 = vmax.f32 %v11752_v49, %v11788_v25  ;;  %v11819_v40 = vmax.f32 %v11747_v19, %v11783_v44  ;;  %v11794_v62 = vmul.f32 0.01, %v11758_v52  ;;  %v11654_v10 = vpop.f32.mrf.mxu1 }
 0xa35   :  { %v21974_v43 = vpack.c.bf16 %v11859_v36, %v11853_v28  ;;  %v11829_v4 = vmax.f32 %v11757_v35, %v11793_v22  ;;  %v11820_v55 = vmax.f32 %v11748_v29, %v11784_v3  ;;  %v11681_v12 = vadd.f32 %v11644_v8, %v21848_v31 }
 0xa36   :  { %v21977_v21 = vpack.c.bf16 %v11850_v17, %v11844_v53  ;;  %v11860_v54 = vmul.f32 %v11824_v60, %v23456_v16  ;;  %v11855_v57 = vmul.f32 %v11819_v40, %v23459_v37  ;;  %v11830_v0 = vmax.f32 %v11758_v52, %v11794_v62  ;;  %v11656_v31 = vpop.f32.mrf.mxu1 }
 0xa37   :  { %v11865_v41 = vmul.f32 %v11829_v4, %v23455_v7  ;;  %v11856_v42 = vmul.f32 %v11820_v55, %v23460_v20  ;;  %v11753_v59 = vadd.f32 %v21826_v18, %v11681_v12  ;;  %v11691_v28 = vadd.f32 %v11591_v33, %v21818_v45  ;;  %12121 = vrot.lane.b32.xlu0 %v21945_v32, %s14401_s0 }
 0xa38   :  { %v21987_v8 = vpack.c.bf16 %v11860_v54, %v11854_v47  ;;  %v11866_v53 = vmul.f32 %v11830_v0, %v23456_v16  ;;  %v11682_v11 = vadd.f32 %v11646_v56, %v21852_v13  ;;  %v11692_v49 = vadd.f32 %v11593_v61, %v21824_v38  ;;  %12318 = vrot.lane.b32.xlu1 %v21874_v50, %s14402_s16 }
 0xa39   :  { %v11789_v19 = vmul.f32 0.01, %v11753_v59  ;;  %v11763_v9 = vadd.f32 %v21806_v27, %v11691_v28  ;;  %v11687_v45 = vadd.f32 %v11650_v15, %v21857_v51  ;;  %v11688_v6 = vadd.f32 %v11652_v2, %v21863_v5 }
 0xa3a   :  { %v11754_v34 = vadd.f32 %v21826_v18, %v11682_v11  ;;  %v11764_v47 = vadd.f32 %v21806_v27, %v11692_v49  ;;  %v11693_v35 = vadd.f32 %v11654_v10, %v21872_v48  ;;  %v11694_v13 = vadd.f32 %v11656_v31, %v21882_v24 }
 0xa3b   :  { %v11825_v56 = vmax.f32 %v11753_v59, %v11789_v19  ;;  %v11799_v38 = vmul.f32 0.01, %v11763_v9  ;;  %v11759_v29 = vadd.f32 %v21794_v23, %v11687_v45  ;;  %v11760_v33 = vadd.f32 %v21794_v23, %v11688_v6  ;;  %12320 = vrot.lane.b32.xlu0 %v21884_v30, %s14402_s16 }
 0xa3c   :  { %v11790_v51 = vmul.f32 0.01, %v11754_v34  ;;  %v11800_v15 = vmul.f32 0.01, %v11764_v47  ;;  %v11765_v5 = vadd.f32 %v21806_v27, %v11693_v35  ;;  %v11766_v18 = vadd.f32 %v21806_v27, %v11694_v13  ;;  %12322 = vrot.lane.b32.xlu1 %v21932_v63, %s14402_s16 }
 0xa3d   :  { %v11861_v48 = vmul.f32 %v11825_v56, %v23459_v37  ;;  %v11835_v24 = vmax.f32 %v11763_v9, %v11799_v38  ;;  %v11795_v26 = vmul.f32 0.01, %v11759_v29  ;;  %v11796_v25 = vmul.f32 0.01, %v11760_v33 }
 0xa3e   :  { %v11826_v44 = vmax.f32 %v11754_v34, %v11790_v51  ;;  %v11836_v52 = vmax.f32 %v11764_v47, %v11800_v15  ;;  %v11801_v23 = vmul.f32 0.01, %v11765_v5  ;;  %v11802_v2 = vmul.f32 0.01, %v11766_v18 }
 0xa3f   :  { %v22010_v36 = vpack.c.bf16 %v11861_v48, %v11855_v57  ;;  %v11871_v22 = vmul.f32 %v11835_v24, %v23455_v7  ;;  %v11831_v3 = vmax.f32 %v11759_v29, %v11795_v26  ;;  %v11832_v17 = vmax.f32 %v11760_v33, %v11796_v25  ;;  %12324 = vrot.lane.b32.xlu0 %v21945_v32, %s14402_s16 }
 0xa40   :  { %v11862_v27 = vmul.f32 %v11826_v44, %v23460_v20  ;;  %v11872_v60 = vmul.f32 %v11836_v52, %v23456_v16  ;;  %v11837_v40 = vmax.f32 %v11765_v5, %v11801_v23  ;;  %v11838_v62 = vmax.f32 %v11766_v18, %v11802_v2  ;;  %12527 = vrot.lane.b32.xlu1 %v21874_v50, %s14403_s17 }
 0xa41   :  { %v22019_v10 = vpack.c.bf16 %v11871_v22, %v11865_v41  ;;  %v11867_v4 = vmul.f32 %v11831_v3, %v23459_v37  ;;  %v11868_v7 = vmul.f32 %v11832_v17, %v23460_v20 }
 0xa42   :  { %v22023_v55 = vpack.c.bf16 %v11862_v27, %v11856_v42  ;;  %v22025_v12 = vpack.c.bf16 %v11872_v60, %v11866_v53  ;;  %v11873_v61 = vmul.f32 %v11837_v40, %v23459_v37  ;;  %v11874_v54 = vmul.f32 %v11838_v62, %v23460_v20  ;;  %v23470_v27 = vld [vmem:[#allocation5_spill] sm:$0xff] }
 0xa43   :  { %12529 = vrot.lane.b32.xlu0 %v21884_v30, %s14403_s17 }
 0xa44   :  { %v22031_v16 = vpack.c.bf16 %v11873_v61, %v11867_v4  ;;  %v22033_v57 = vpack.c.bf16 %v11874_v54, %v11868_v7  ;;  %12531 = vrot.lane.b32.xlu1 %v21932_v63, %s14403_s17 }
 0xa47   :  { %12533 = vrot.lane.b32.xlu0 %v21945_v32, %s14403_s17 }
 0xa48   :  { %11929 = vrot.lane.b32.xlu1 %v21905_v58, %s14400_s27 }
 0xa4b   :  { %11931 = vrot.lane.b32.xlu0 %v21912_v39, %s14400_s27 }
 0xa4c   :  { %11933 = vrot.lane.b32.xlu1 %v21974_v43, %s14400_s27 }
 0xa4f   :  { %11935 = vrot.lane.b32.xlu0 %v21987_v8, %s14400_s27 }
 0xa50   :  { %12127 = vrot.lane.b32.xlu1 %v21905_v58, %s14401_s0 }
 0xa53   :  { %12129 = vrot.lane.b32.xlu0 %v21912_v39, %s14401_s0 }
 0xa54   :  { %12131 = vrot.lane.b32.xlu1 %v21974_v43, %s14401_s0 }
 0xa57   :  { %12133 = vrot.lane.b32.xlu0 %v21987_v8, %s14401_s0 }
 0xa58   :  { %12330 = vrot.lane.b32.xlu1 %v21905_v58, %s14402_s16 }
 0xa5b   :  { %12332 = vrot.lane.b32.xlu0 %v21912_v39, %s14402_s16 }
 0xa5c   :  { %12334 = vrot.lane.b32.xlu1 %v21974_v43, %s14402_s16 }
 0xa5f   :  { %12336 = vrot.lane.b32.xlu0 %v21987_v8, %s14402_s16 }
 0xa60   :  { %12539 = vrot.lane.b32.xlu1 %v21905_v58, %s14403_s17 }
 0xa63   :  { %12541 = vrot.lane.b32.xlu0 %v21912_v39, %s14403_s17 }
 0xa64   :  { %12543 = vrot.lane.b32.xlu1 %v21974_v43, %s14403_s17 }
 0xa67   :  { %12545 = vrot.lane.b32.xlu0 %v21987_v8, %s14403_s17 }
 0xa68   :  { %11941 = vrot.lane.b32.xlu1 %v21926_v1, %s14400_s27 }
 0xa6b   :  { %12897 = vrot.lane.b32.xlu0 %v22019_v10, %s14404_s18 }
 0xa6c   :  { %11945 = vrot.lane.b32.xlu1 %v22019_v10, %s14400_s27 }
 0xa6f   :  { %11943 = vrot.lane.b32.xlu0 %v21935_v14, %s14400_s27 }
 0xa70   :  { %12139 = vrot.lane.b32.xlu1 %v21926_v1, %s14401_s0 }
 0xa73   :  { %11947 = vrot.lane.b32.xlu0 %v22025_v12, %s14400_s27 }
 0xa74   :  { %12143 = vrot.lane.b32.xlu1 %v22019_v10, %s14401_s0 }
 0xa77   :  { %12141 = vrot.lane.b32.xlu0 %v21935_v14, %s14401_s0 }
 0xa78   :  { %12342 = vrot.lane.b32.xlu1 %v21926_v1, %s14402_s16 }
 0xa7b   :  { %12145 = vrot.lane.b32.xlu0 %v22025_v12, %s14401_s0 }
 0xa7c   :  { %12346 = vrot.lane.b32.xlu1 %v22019_v10, %s14402_s16 }
 0xa7f   :  { %12344 = vrot.lane.b32.xlu0 %v21935_v14, %s14402_s16 }
 0xa80   :  { %12551 = vrot.lane.b32.xlu1 %v21926_v1, %s14403_s17 }
 0xa83   :  { %12348 = vrot.lane.b32.xlu0 %v22025_v12, %s14402_s16 }
 0xa84   :  { %12555 = vrot.lane.b32.xlu1 %v22019_v10, %s14403_s17 }
 0xa87   :  { %12553 = vrot.lane.b32.xlu0 %v21935_v14, %s14403_s17 }
 0xa88   :  { %12893 = vrot.lane.b32.xlu1 %v21926_v1, %s14404_s18 }
 0xa8b   :  { %12557 = vrot.lane.b32.xlu0 %v22025_v12, %s14403_s17  ;;  %v22121_v37 = vpop.permute.xlu1 %11917 }
 0xa8c   :  { %12895 = vrot.lane.b32.xlu1 %v21935_v14, %s14404_s18 }
 0xa8d   :  { %v22127_v20 = vpop.permute.xlu0 %11919 }
 0xa8f   :  { %11927 = vrot.lane.b32.xlu0 %v21977_v21, %s14400_s27 }
 0xa90   :  { %11925 = vrot.lane.b32.xlu1 %v21966_v46, %s14400_s27 }
 0xa93   :  { %12125 = vrot.lane.b32.xlu0 %v21977_v21, %s14401_s0 }
 0xa94   :  { %12123 = vrot.lane.b32.xlu1 %v21966_v46, %s14401_s0 }
 0xa97   :  { %12328 = vrot.lane.b32.xlu0 %v21977_v21, %s14402_s16 }
 0xa98   :  { %12326 = vrot.lane.b32.xlu1 %v21966_v46, %s14402_s16 }
 0xa9b   :  { %12537 = vrot.lane.b32.xlu0 %v21977_v21, %s14403_s17 }
 0xa9c   :  { %12535 = vrot.lane.b32.xlu1 %v21966_v46, %s14403_s17 }
 0xa9d   :  { %v22129_v0 = vpop.permute.xlu1 %11921 }
 0xa9f   :  { %11939 = vrot.lane.b32.xlu0 %v22023_v55, %s14400_s27 }
 0xaa0   :  { %11937 = vrot.lane.b32.xlu1 %v22010_v36, %s14400_s27 }
 0xaa1   :  { %v22135_v41 = vpop.permute.xlu0 %11923  ;;  %v22137_v42 = vpop.permute.xlu1 %12115 }
 0xaa3   :  { %12137 = vrot.lane.b32.xlu0 %v22023_v55, %s14401_s0 }
 0xaa4   :  { %12135 = vrot.lane.b32.xlu1 %v22010_v36, %s14401_s0 }
 0xaa5   :  { %v22143_v59 = vpop.permute.xlu0 %12117  ;;  %v22145_v28 = vpop.permute.xlu1 %12119 }
 0xaa7   :  { %12340 = vrot.lane.b32.xlu0 %v22023_v55, %s14402_s16 }
 0xaa8   :  { %12338 = vrot.lane.b32.xlu1 %v22010_v36, %s14402_s16 }
 0xaa9   :  { %v22151_v31 = vpop.permute.xlu0 %12121 }
 0xaaa   :  { %v22153_v53 = vpop.permute.xlu1 %12318 }
 0xaab   :  { %12549 = vrot.lane.b32.xlu0 %v22023_v55, %s14403_s17 }
 0xaac   :  { %12547 = vrot.lane.b32.xlu1 %v22010_v36, %s14403_s17 }
 0xaad   :  { %v22159_v11 = vpop.permute.xlu0 %12320 }
 0xaae   :  { %v22161_v49 = vpop.permute.xlu1 %12322 }
 0xaaf   :  { %11951 = vrot.lane.b32.xlu0 %v22033_v57, %s14400_s27 }
 0xab0   :  { %11949 = vrot.lane.b32.xlu1 %v22031_v16, %s14400_s27 }
 0xab1   :  { %v22167_v19 = vpop.permute.xlu0 %12324 }
 0xab2   :  { %v22169_v9 = vpop.permute.xlu1 %12527 }
 0xab3   :  { %23461 = vst [vmem:[#allocation48_spill] sm:$0xff] %v22169_v9  ;;  %12883 = vrot.lane.b32.xlu0 %v21912_v39, %s14404_s18 }
 0xab4   :  { %12147 = vrot.lane.b32.xlu1 %v22031_v16, %s14401_s0 }
 0xab5   :  { %v22175_v45 = vpop.permute.xlu0 %12529 }
 0xab6   :  { %23462 = vst [vmem:[#allocation50_spill] sm:$0xff] %v22175_v45  ;;  %v22177_v6 = vpop.permute.xlu1 %12531 }
 0xab7   :  { %23463 = vst [vmem:[#allocation36_spill] sm:$0xff] %v22177_v6  ;;  %12899 = vrot.lane.b32.xlu0 %v22025_v12, %s14404_s18 }
 0xab8   :  { %12350 = vrot.lane.b32.xlu1 %v22031_v16, %s14402_s16 }
 0xab9   :  { %v22183_v34 = vpop.permute.xlu0 %12533 }
 0xaba   :  { %23464 = vst [vmem:[#allocation51_spill] sm:$0xff] %v22183_v34  ;;  %v11930_v47 = vpop.permute.xlu1 %11929 }
 0xabb   :  { %12881 = vrot.lane.b32.xlu0 %v21905_v58, %s14404_s18  ;;  %v11959_v61 = vsel %vm104_vm0, %v23470_v27, %v11930_v47 }
 0xabc   :  { %12559 = vrot.lane.b32.xlu1 %v22031_v16, %s14403_s17 }
 0xabd   :  { %v22189_v35 = vpop.permute.xlu0 %11931 }
 0xabe   :  { %v22191_v13 = vpop.permute.xlu1 %11933  ;;  %v11960_v40 = vsel %vm104_vm0, %v11930_v47, %v22189_v35  ;;  %v14371_v47 = vld [vmem:[%s23013_s10] ss:$0 sps:$4 sm:$0x22]  }
 0xabf   :  { %12873 = vrot.lane.b32.xlu0 %v21932_v63, %s14404_s18 }
 0xac0   :  { %12885 = vrot.lane.b32.xlu1 %v21974_v43, %s14404_s18 }
 0xac1   :  { %v22197_v56 = vpop.permute.xlu0 %11935 }
 0xac2   :  { %v22199_v38 = vpop.permute.xlu1 %12127 }
 0xac3   :  { %12149 = vrot.lane.b32.xlu0 %v22033_v57, %s14401_s0 }
 0xac4   :  { %12901 = vrot.lane.b32.xlu1 %v22031_v16, %s14404_s18 }
 0xac5   :  { %v22205_v29 = vpop.permute.xlu0 %12129 }
 0xac6   :  { %v22207_v33 = vpop.permute.xlu1 %12131 }
 0xac7   :  { %12889 = vrot.lane.b32.xlu0 %v22010_v36, %s14404_s18 }
 0xac8   :  { %12871 = vrot.lane.b32.xlu1 %v21884_v30, %s14404_s18 }
 0xac9   :  { %v22213_v51 = vpop.permute.xlu0 %12133 }
 0xaca   :  { %v22215_v15 = vpop.permute.xlu1 %12330 }
 0xacb   :  { %12875 = vrot.lane.b32.xlu0 %v21945_v32, %s14404_s18 }
 0xacc   :  { %12887 = vrot.lane.b32.xlu1 %v21987_v8, %s14404_s18 }
 0xacd   :  { %v22221_v5 = vpop.permute.xlu0 %12332 }
 0xace   :  { %v22223_v18 = vpop.permute.xlu1 %12334 }
 0xacf   :  { %13104 = vrot.lane.b32.xlu0 %v21935_v14, %s14405_s19 }
 0xad0   :  { %12869 = vrot.lane.b32.xlu1 %v21874_v50, %s14404_s18 }
 0xad1   :  { %v22229_v48 = vpop.permute.xlu0 %12336 }
 0xad2   :  { %v22231_v24 = vpop.permute.xlu1 %12539 }
 0xad3   :  { %23465 = vst [vmem:[#allocation13_spill] sm:$0xff] %v22231_v24  ;;  %12352 = vrot.lane.b32.xlu0 %v22033_v57, %s14402_s16 }
 0xad4   :  { %12877 = vrot.lane.b32.xlu1 %v21966_v46, %s14404_s18 }
 0xad5   :  { %v22237_v26 = vpop.permute.xlu0 %12541 }
 0xad6   :  { %23466 = vst [vmem:[#allocation37_spill] sm:$0xff] %v22237_v26  ;;  %v22239_v25 = vpop.permute.xlu1 %12543 }
 0xad7   :  { %23467 = vst [vmem:[#allocation41_spill] sm:$0xff] %v22239_v25  ;;  %13102 = vrot.lane.b32.xlu0 %v21926_v1, %s14405_s19 }
 0xad8   :  { %12891 = vrot.lane.b32.xlu1 %v22023_v55, %s14404_s18 }
 0xad9   :  { %v22245_v44 = vpop.permute.xlu0 %12545 }
 0xada   :  { %23468 = vst [vmem:[#allocation29_spill] sm:$0xff] %v22245_v44  ;;  %v11942_v52 = vpop.permute.xlu1 %11941 }
 0xadb   :  { %13092 = vrot.lane.b32.xlu0 %v21912_v39, %s14405_s19  ;;  %v11965_v60 = vsel %vm104_vm0, %v23470_v27, %v11942_v52 }
 0xadc   :  { %13106 = vrot.lane.b32.xlu1 %v22019_v10, %s14405_s19 }
 0xadd   :  { %v22251_v23 = vpop.permute.xlu0 %12897 }
 0xade   :  { %23469 = vst [vmem:[#allocation32_spill] sm:$0xff] %v22251_v23  ;;  %v11946_v2 = vpop.permute.xlu1 %11945 }
 0xadf   :  { %13090 = vrot.lane.b32.xlu0 %v21905_v58, %s14405_s19 }
 0xae0   :  { %12879 = vrot.lane.b32.xlu1 %v21977_v21, %s14404_s18 }
 0xae1   :  { %v11944_v22 = vpop.permute.xlu0 %11943 }
 0xae2   :  { %v11966_v3 = vsel %vm104_vm0, %v11942_v52, %v11944_v22  ;;  %v12140_v17 = vpop.permute.xlu1 %12139  ;;  %v11967_v54 = vsel %vm104_vm0, %v11944_v22, %v11946_v2  ;;  %v11954_v52 = vsel %vm104_vm0, %v22121_v37, %v22127_v20  ;;  %v11953_v22 = vsel %vm104_vm0, %v23470_v27, %v22121_v37 }
 0xae3   :  { %13082 = vrot.lane.b32.xlu0 %v21932_v63, %s14405_s19  ;;  %12002 = vmatprep.subr.bf16.mxu0 %v11966_v3  ;;  %v11955_v37 = vsel %vm104_vm0, %v22127_v20, %v22129_v0  ;;  %v23472_v20 = vld [vmem:[#allocation6_spill] sm:$0xff] }
 0xae4   :  { %12003 = vmatpush1.bf16.msra.mxu0 %v11965_v60  ;;  %13094 = vrot.lane.b32.xlu1 %v21974_v43, %s14405_s19  ;;  %v11962_v60 = vsel %vm104_vm0, %v22191_v13, %v22197_v56 }
 0xae5   :  { %v22266_v62 = vpop.permute.xlu0 %11947  ;;  %12004 = vmatprep.subr.bf16.mxu0 %v11960_v40  ;;  %v11961_v40 = vsel %vm104_vm0, %v22189_v35, %v22191_v13  ;;  %v23471_v13 = vmov 0  }
 0xae6   :  { %v11968_v4 = vsel %vm104_vm0, %v11946_v2, %v22266_v62  ;;  %v22270_v7 = vpop.permute.xlu1 %12143 }
 0xae7   :  { %12561 = vrot.lane.b32.xlu0 %v22033_v57, %s14403_s17  ;;  %12043 = vmatprep.subr.bf16.mxu1 %v11968_v4  ;;  %v11956_v4 = vsel %vm104_vm0, %v22129_v0, %v22135_v41  ;;  %v12163_v0 = vsel %vm358_vm3, %v23472_v20, %v12140_v17 }
 0xae8   :  { %12005 = vmatpush1.bf16.msra.mxu0 %v11959_v61  ;;  %12044 = vmatpush1.bf16.msra.mxu1 %v11967_v54  ;;  %v22307_v54 = vrot.slane %v14371_v47, 1  ;;  %v12158_v47 = vsel %vm358_vm3, %v22199_v38, %v22205_v29 }
 0xae9   :  { %v22280_v3 = vpop.permute.xlu0 %12141  ;;  %13080 = vrot.lane.b32.xlu1 %v21884_v30, %s14405_s19  ;;  %12006 = vmatprep.subr.bf16.mxu0 %v11954_v52 }
 0xaea   :  { %12045 = vmatprep.subr.bf16.mxu1 %v11962_v60  ;;  %v22290_v2 = vpop.permute.xlu1 %12342  ;;  %v12164_v35 = vsel %vm358_vm3, %v12140_v17, %v22280_v3  ;;  %v12157_v17 = vsel %vm358_vm3, %v23472_v20, %v22199_v38  ;;  %v22363_v38 = vld [vmem:[%s23013_s10] sm:$0x1] }
 0xaeb   :  { %13110 = vrot.lane.b32.xlu0 %v22031_v16, %s14405_s19 }
 0xaec   :  { %12007 = vmatpush1.bf16.msra.mxu0 %v11953_v22  ;;  %12046 = vmatpush1.bf16.msra.mxu1 %v11961_v40 }
 0xaed   :  { %v22303_v61 = vpop.permute.xlu0 %12145  ;;  %13108 = vrot.lane.b32.xlu1 %v22025_v12, %s14405_s19  ;;  %12047 = vmatprep.subr.bf16.mxu1 %v11956_v4  ;;  %v12152_v4 = vsel %vm358_vm3, %v22137_v42, %v22143_v59 }
 0xaee   :  { %v22309_v52 = vpop.permute.xlu1 %12346 }
 0xaef   :  { %13096 = vrot.lane.b32.xlu0 %v21987_v8, %s14405_s19  ;;  %14217 = vmatmul.mubr.msk.bf16.vlgmr.msra.gmra.mxu0 %vm2964_vm10, %v22307_v54 }
 0xaf0   :  { %12048 = vmatpush1.bf16.msra.mxu1 %v11955_v37  ;;  %12106 = vmatprep.mubr.bf16.mxu0 %v23471_v13 }
 0xaf1   :  { %v22321_v27 = vpop.permute.xlu0 %12344  ;;  %13078 = vrot.lane.b32.xlu1 %v21874_v50, %s14405_s19  ;;  %12200 = vmatprep.subr.bf16.mxu1 %v12164_v35 }
 0xaf2   :  { %v22325_v60 = vpop.permute.xlu1 %12551 }
 0xaf3   :  { %13086 = vrot.lane.b32.xlu0 %v21966_v46, %s14405_s19  ;;  %14218 = vmatmul.mubr.msk.bf16.vlgmr.msra.gmra.mxu1 %vm2964_vm10, %v22307_v54 }
 0xaf4   :  { %12201 = vmatpush1.bf16.msra.mxu1 %v12163_v0  ;;  %12222 = vmatprep.mubr.bf16.mxu1 %v23471_v13  ;;  %v12151_v0 = vsel %vm358_vm3, %v23472_v20, %v22137_v42 }
 0xaf5   :  { %v22337_v22 = vpop.permute.xlu0 %12348  ;;  %13098 = vrot.lane.b32.xlu1 %v22010_v36, %s14405_s19  ;;  %12202 = vmatprep.subr.bf16.mxu1 %v12158_v47 }
 0xaf6   :  { %v22341_v40 = vpop.permute.xlu1 %12555 }
 0xaf7   :  { %23473 = vst [vmem:[#allocation31_spill] sm:$0xff] %v22341_v40  ;;  %13088 = vrot.lane.b32.xlu0 %v21977_v21, %s14405_s19 }
 0xaf8   :  { %12203 = vmatpush1.bf16.msra.mxu1 %v12157_v17 }
 0xaf9   :  { %v22351_v37 = vpop.permute.xlu0 %12553  ;;  %13084 = vrot.lane.b32.xlu1 %v21945_v32, %s14405_s19  ;;  %12204 = vmatprep.subr.bf16.mxu1 %v12152_v4 }
 0xafa   :  { %v12894_v35 = vpop.permute.xlu1 %12893 }
 0xafb   :  { %13315 = vrot.lane.b32.xlu0 %v22019_v10, %s14406_s20 }
 0xafc   :  { %12205 = vmatpush1.bf16.msra.mxu1 %v12151_v0 }
 0xafd   :  { %v22365_v47 = vpop.permute.xlu0 %12557  ;;  %13100 = vrot.lane.b32.xlu1 %v22023_v55, %s14405_s19 }
 0xafe   :  { %23474 = vst [vmem:[#allocation38_spill] sm:$0xff] %v22365_v47  ;;  %v22369_v17 = vpop.permute.xlu1 %12895 }
 0xaff   :  { %23475 = vst [vmem:[#allocation52_spill] sm:$0xff] %v22369_v17  ;;  %13301 = vrot.lane.b32.xlu0 %v21912_v39, %s14406_s20  ;;  %v22375_v4 = vsel %vm1477_vm6, %v12894_v35, %v22369_v17  ;;  %14220 = vmatmul.mubr.msk.bf16.vlgmr.msra.gmra.mxu1 %vm2964_vm10, %v22363_v38 }
 0xb00   :  { %23476 = vst [vmem:[#allocation40_spill] sm:$0xff] %v22375_v4  ;;  %12304 = vmatprep.mubr.bf16.mxu1 %v23471_v13 }
 0xb01   :  { %v11928_v42 = vpop.permute.xlu0 %11927  ;;  %13313 = vrot.lane.b32.xlu1 %v21935_v14, %s14406_s20 }
 0xb02   :  { %v11926_v20 = vpop.permute.xlu1 %11925 }
 0xb03   :  { %13317 = vrot.lane.b32.xlu0 %v22025_v12, %s14406_s20 }
 0xb05   :  { %v22384_v0 = vpop.permute.xlu0 %12125  ;;  %13311 = vrot.lane.b32.xlu1 %v21926_v1, %s14406_s20 }
 0xb06   :  { %v22388_v35 = vpop.permute.xlu1 %12123 }
 0xb07   :  { %13299 = vrot.lane.b32.xlu0 %v21905_v58, %s14406_s20 }
 0xb09   :  { %v12329_v4 = vpop.permute.xlu0 %12328  ;;  %13303 = vrot.lane.b32.xlu1 %v21974_v43, %s14406_s20 }
 0xb0a   :  { %v22394_v17 = vpop.permute.xlu1 %12326 }
 0xb0b   :  { %23477 = vst [vmem:[#allocation20_spill] sm:$0xff] %v22394_v17  ;;  %12903 = vrot.lane.b32.xlu0 %v22033_v57, %s14404_s18  ;;  %v22400_v23 = vsel %vm616_vm4, %v22394_v17, %v12329_v4 }
 0xb0c   :  { %23478 = vst [vmem:[#allocation34_spill] sm:$0xff] %v22400_v23 }
 0xb0d   :  { %v12538_v6 = vpop.permute.xlu0 %12537  ;;  %13319 = vrot.lane.b32.xlu1 %v22031_v16, %s14406_s20 }
 0xb0e   :  { %v22404_v34 = vpop.permute.xlu1 %12535 }
 0xb0f   :  { %23479 = vst [vmem:[#allocation42_spill] sm:$0xff] %v22404_v34  ;;  %13291 = vrot.lane.b32.xlu0 %v21932_v63, %s14406_s20  ;;  %v22410_v25 = vsel %vm910_vm5, %v22404_v34, %v12538_v6 }
 0xb10   :  { %23480 = vst [vmem:[#allocation16_spill] sm:$0xff] %v22410_v25 }
 0xb11   :  { %v11940_v44 = vpop.permute.xlu0 %11939  ;;  %13289 = vrot.lane.b32.xlu1 %v21884_v30, %s14406_s20 }
 0xb12   :  { %v11938_v9 = vpop.permute.xlu1 %11937 }
 0xb13   :  { %13307 = vrot.lane.b32.xlu0 %v22010_v36, %s14406_s20 }
 0xb15   :  { %v22416_v4 = vpop.permute.xlu0 %12137  ;;  %13305 = vrot.lane.b32.xlu1 %v21987_v8, %s14406_s20 }
 0xb16   :  { %v22420_v45 = vpop.permute.xlu1 %12135 }
 0xb17   :  { %13293 = vrot.lane.b32.xlu0 %v21945_v32, %s14406_s20 }
 0xb19   :  { %v22424_v6 = vpop.permute.xlu0 %12340  ;;  %13287 = vrot.lane.b32.xlu1 %v21874_v50, %s14406_s20 }
 0xb1a   :  { %v22428_v34 = vpop.permute.xlu1 %12338 }
 0xb1b   :  { %13112 = vrot.lane.b32.xlu0 %v22033_v57, %s14405_s19 }
 0xb1d   :  { %v22432_v25 = vpop.permute.xlu0 %12549  ;;  %13295 = vrot.lane.b32.xlu1 %v21966_v46, %s14406_s20 }
 0xb1e   :  { %23481 = vst [vmem:[#allocation43_spill] sm:$0xff] %v22432_v25  ;;  %v22436_v40 = vpop.permute.xlu1 %12547 }
 0xb1f   :  { %23482 = vst [vmem:[#allocation57_spill] sm:$0xff] %v22436_v40  ;;  %13518 = vrot.lane.b32.xlu0 %v21935_v14, %s14407_s28  ;;  %v11964_v14 = vsel %vm104_vm0, %v11938_v9, %v11940_v44 }
 0xb21   :  { %v11952_v47 = vpop.permute.xlu0 %11951  ;;  %13309 = vrot.lane.b32.xlu1 %v22023_v55, %s14406_s20 }
 0xb22   :  { %v11950_v17 = vpop.permute.xlu1 %11949 }
 0xb23   :  { %13516 = vrot.lane.b32.xlu0 %v21926_v1, %s14407_s28  ;;  %v11969_v24 = vsel %vm104_vm0, %v22266_v62, %v11950_v17  ;;  %v11970_v25 = vsel %vm104_vm0, %v11950_v17, %v11952_v47  ;;  %v11963_v1 = vsel %vm104_vm0, %v22197_v56, %v11938_v9  ;;  %v12160_v47 = vsel %vm358_vm3, %v22207_v33, %v22213_v51 }
 0xb24   :  { %12084 = vmatprep.subr.bf16.mxu0 %v11970_v25  ;;  %v11958_v25 = vsel %vm104_vm0, %v11926_v20, %v11928_v42  ;;  %v12154_v42 = vsel %vm358_vm3, %v22145_v28, %v22151_v31 }
 0xb25   :  { %v12884_v26 = vpop.permute.xlu0 %12883  ;;  %13520 = vrot.lane.b32.xlu1 %v22019_v10, %s14407_s28  ;;  %12085 = vmatpush1.bf16.msra.mxu0 %v11969_v24 }
 0xb26   :  { %12086 = vmatprep.subr.bf16.mxu0 %v11964_v14  ;;  %v12148_v40 = vpop.permute.xlu1 %12147  ;;  %v11957_v14 = vsel %vm104_vm0, %v22135_v41, %v11926_v20  ;;  %v12165_v41 = vsel %vm358_vm3, %v22280_v3, %v22270_v7  ;;  %v12159_v3 = vsel %vm358_vm3, %v22205_v29, %v22207_v33  ;;  %v12162_v29 = vsel %vm358_vm3, %v22420_v45, %v22416_v4 }
 0xb27   :  { %13506 = vrot.lane.b32.xlu0 %v21912_v39, %s14407_s28  ;;  %v12161_v4 = vsel %vm358_vm3, %v22213_v51, %v22420_v45 }
 0xb29   :  { %v22454_v23 = vpop.permute.xlu0 %12899  ;;  %13297 = vrot.lane.b32.xlu1 %v21977_v21, %s14406_s20  ;;  %12087 = vmatpush1.bf16.msra.mxu0 %v11963_v1  ;;  %v12166_v1 = vsel %vm358_vm3, %v22270_v7, %v22303_v61 }
 0xb2a   :  { %12088 = vmatprep.subr.bf16.mxu0 %v11958_v25  ;;  %v22459_v24 = vpop.permute.xlu1 %12350 }
 0xb2b   :  { %13504 = vrot.lane.b32.xlu0 %v21905_v58, %s14407_s28 }
 0xb2d   :  { %v12882_v44 = vpop.permute.xlu0 %12881  ;;  %13508 = vrot.lane.b32.xlu1 %v21974_v43, %s14407_s28  ;;  %12089 = vmatpush1.bf16.msra.mxu0 %v11957_v14  ;;  %v12153_v14 = vsel %vm358_vm3, %v22143_v59, %v22145_v28  ;;  %v12156_v59 = vsel %vm358_vm3, %v22388_v35, %v22384_v0  ;;  %v23483_v28 = vld [vmem:[#allocation7_spill] sm:$0xff]  ;;  %v12155_v0 = vsel %vm358_vm3, %v22151_v31, %v22388_v35 }
 0xb2e   :  { %v22471_v9 = vsel %vm1477_vm6, %v12882_v44, %v12884_v26  ;;  %12241 = vmatprep.subr.bf16.mxu0 %v12166_v1  ;;  %v22473_v56 = vpop.permute.xlu1 %12559  ;;  %v12366_v45 = vsel %vm616_vm4, %v23483_v28, %v22290_v2  ;;  %v12361_v1 = vsel %vm616_vm4, %v22215_v15, %v22221_v5  ;;  %v12360_v31 = vsel %vm616_vm4, %v23483_v28, %v22215_v15  ;;  %v14372_v35 = vld [vmem:[%s23013_s10] ss:$0 sps:$4 sm:$0x44]  }
 0xb2f   :  { %13321 = vrot.lane.b32.xlu0 %v22033_v57, %s14406_s20  ;;  %v12368_v15 = vsel %vm616_vm4, %v22321_v27, %v22309_v52 }
 0xb30   :  { %14219 = vmatmul.mubr.msk.bf16.vlgmr.msra.gmra.mxu0 %vm2964_vm10, %v22307_v54 }
 0xb31   :  { %v22482_v62 = vpop.permute.xlu0 %12873  ;;  %13494 = vrot.lane.b32.xlu1 %v21884_v30, %s14407_s28  ;;  %12242 = vmatpush1.bf16.msra.mxu0 %v12165_v41 }
 0xb32   :  { %12243 = vmatprep.subr.bf16.mxu0 %v12160_v47  ;;  %v22489_v17 = vpop.permute.xlu1 %12885  ;;  %12263 = vmatprep.mubr.bf16.mxu0 %v23471_v13 }
 0xb33   :  { %13496 = vrot.lane.b32.xlu0 %v21932_v63, %s14407_s28  ;;  %v22496_v7 = vsel %vm1477_vm6, %v12884_v26, %v22489_v17  ;;  %v12167_v26 = vsel %vm358_vm3, %v22303_v61, %v12148_v40  ;;  %v12367_v61 = vsel %vm616_vm4, %v22290_v2, %v22321_v27  ;;  %v12369_v2 = vsel %vm616_vm4, %v22309_v52, %v22337_v22 }
 0xb35   :  { %v12150_v54 = vpop.permute.xlu0 %12149  ;;  %13522 = vrot.lane.b32.xlu1 %v22025_v12, %s14407_s28  ;;  %12244 = vmatpush1.bf16.msra.mxu0 %v12159_v3 }
 0xb36   :  { %12245 = vmatprep.subr.bf16.mxu0 %v12154_v42  ;;  %v12168_v20 = vsel %vm358_vm3, %v12148_v40, %v12150_v54  ;;  %v22507_v25 = vpop.permute.xlu1 %12901  ;;  %v12355_v54 = vsel %vm616_vm4, %v22153_v53, %v22159_v11  ;;  %v12363_v42 = vsel %vm616_vm4, %v22223_v18, %v22229_v48 }
 0xb37   :  { %13524 = vrot.lane.b32.xlu0 %v22031_v16, %s14407_s28  ;;  %12282 = vmatprep.subr.bf16.mxu1 %v12168_v20 }
 0xb38   :  { %12283 = vmatpush1.bf16.msra.mxu1 %v12167_v26  ;;  %v12317_v26 = vrot.slane %v14372_v35, 2  ;;  %v23489_v35 = vld [vmem:[#allocation38_spill] sm:$0xff] }
 0xb39   :  { %v22516_v33 = vpop.permute.xlu0 %12889  ;;  %13492 = vrot.lane.b32.xlu1 %v21874_v50, %s14407_s28  ;;  %12284 = vmatprep.subr.bf16.mxu1 %v12162_v29  ;;  %v13696_v29 = vld [vmem:[%s23014_s11] sm:$0x3] }
 0xb3a   :  { %12246 = vmatpush1.bf16.msra.mxu0 %v12153_v14  ;;  %v22526_v40 = vpop.permute.xlu1 %12871  ;;  %v12370_v14 = vsel %vm616_vm4, %v22337_v22, %v22459_v24  ;;  %v12356_v22 = vsel %vm616_vm4, %v22159_v11, %v22161_v49  ;;  %v23484_v11 = vld [vmem:[#allocation34_spill] sm:$0xff] }
 0xb3b   :  { %13510 = vrot.lane.b32.xlu0 %v21987_v8, %s14407_s28  ;;  %12403 = vmatprep.subr.bf16.mxu0 %v12367_v61 }
 0xb3c   :  { %12285 = vmatpush1.bf16.msra.mxu1 %v12161_v4  ;;  %v12357_v4 = vsel %vm616_vm4, %v22161_v49, %v22167_v19  ;;  %v23485_v49 = vld [vmem:[#allocation8_spill] sm:$0xff] }
 0xb3d   :  { %v22533_v44 = vpop.permute.xlu0 %12875  ;;  %13512 = vrot.lane.b32.xlu1 %v22010_v36, %s14407_s28  ;;  %14221 = vmatmul.mubr.msk.bf16.vlgmr.msra.gmra.mxu0 %vm2964_vm10, %v22363_v38 }
 0xb3e   :  { %v22548_v51 = vsel %vm1477_vm6, %v22482_v62, %v22533_v44  ;;  %12286 = vmatprep.subr.bf16.mxu1 %v12156_v59  ;;  %12404 = vmatpush1.bf16.msra.mxu0 %v12366_v45  ;;  %v22553_v41 = vpop.permute.xlu1 %12887  ;;  %v12364_v59 = vsel %vm616_vm4, %v22229_v48, %v22428_v34  ;;  %v12575_v45 = vsel %vm910_vm5, %v23485_v49, %v22325_v60 }
 0xb3f   :  { %13526 = vrot.lane.b32.xlu0 %v22033_v57, %s14407_s28  ;;  %12405 = vmatprep.subr.bf16.mxu0 %v12361_v1  ;;  %v23486_v1 = vld [vmem:[#allocation37_spill] sm:$0xff] }
 0xb40   :  { %12287 = vmatpush1.bf16.msra.mxu1 %v12155_v0  ;;  %12425 = vmatprep.mubr.bf16.mxu0 %v23471_v13  ;;  %v23487_v0 = vld [vmem:[#allocation13_spill] sm:$0xff] }
 0xb41   :  { %v22564_v47 = vpop.permute.xlu0 %13104  ;;  %13498 = vrot.lane.b32.xlu1 %v21945_v32, %s14407_s28  ;;  %12444 = vmatprep.subr.bf16.mxu1 %v12369_v2  ;;  %v12570_v2 = vsel %vm910_vm5, %v23487_v0, %v23486_v1 }
 0xb42   :  { %12406 = vmatpush1.bf16.msra.mxu0 %v12360_v31  ;;  %v22574_v3 = vpop.permute.xlu1 %12869 }
 0xb43   :  { %13500 = vrot.lane.b32.xlu0 %v21966_v46, %s14407_s28  ;;  %14222 = vmatmul.mubr.msk.bf16.vlgmr.msra.gmra.mxu1 %vm2964_vm10, %v22363_v38  ;;  %v12354_v38 = vsel %vm616_vm4, %v23483_v28, %v22153_v53  ;;  %v12362_v53 = vsel %vm616_vm4, %v22221_v5, %v22223_v18  ;;  %v12365_v5 = vsel %vm616_vm4, %v22428_v34, %v22424_v6  ;;  %v23488_v34 = vld [vmem:[#allocation20_spill] sm:$0xff] }
 0xb44   :  { %12407 = vmatprep.subr.bf16.mxu0 %v12355_v54  ;;  %12445 = vmatpush1.bf16.msra.mxu1 %v12368_v15  ;;  %v12358_v48 = vsel %vm616_vm4, %v22167_v19, %v23488_v34  ;;  %v23490_v54 = vld [vmem:[#allocation31_spill] sm:$0xff]  ;;  %v23491_v19 = vld [vmem:[#allocation50_spill] sm:$0xff] }
 0xb45   :  { %v12353_v20 = vpop.permute.xlu0 %12352  ;;  %13514 = vrot.lane.b32.xlu1 %v22023_v55, %s14407_s28  ;;  %12446 = vmatprep.subr.bf16.mxu1 %v12363_v42  ;;  %v12578_v15 = vsel %vm910_vm5, %v23490_v54, %v23489_v35  ;;  %v12569_v42 = vsel %vm910_vm5, %v23485_v49, %v23487_v0 }
 0xb46   :  { %12408 = vmatpush1.bf16.msra.mxu0 %v12354_v38  ;;  %v12371_v52 = vsel %vm616_vm4, %v22459_v24, %v12353_v20  ;;  %v22596_v27 = vpop.permute.xlu1 %12877  ;;  %12466 = vmatprep.mubr.bf16.mxu1 %v23471_v13  ;;  %v12576_v24 = vsel %vm910_vm5, %v22325_v60, %v22351_v37  ;;  %v14373_v20 = vld [vmem:[%s23013_s10] ss:$0 sps:$4 sm:$0x88]   ;;  %v23492_v38 = vld [vmem:[#allocation48_spill] sm:$0xff] }
 0xb47   :  { %13502 = vrot.lane.b32.xlu0 %v21977_v21, %s14407_s28  ;;  %12485 = vmatprep.subr.bf16.mxu0 %v12371_v52  ;;  %v12564_v52 = vsel %vm910_vm5, %v23492_v38, %v23491_v19 }
 0xb48   :  { %12447 = vmatpush1.bf16.msra.mxu1 %v12362_v53 }
 0xb49   :  { %v22610_v61 = vpop.permute.xlu0 %13102  ;;  %13699 = vperm.xlu1 %14262, %v13696_v29   ;;  %14224 = vmatmul.mubr.msk.bf16.vlgmr.msra.gmra.mxu0 %vm2964_vm10, %v12317_v26  ;;  %v12577_v29 = vsel %vm910_vm5, %v22351_v37, %v23490_v54  ;;  %v12526_v37 = vrot.slane %v14373_v20, 3  ;;  %v23498_v54 = vld [vmem:[#allocation57_spill] sm:$0xff]  ;;  %v23499_v20 = vld [vmem:[#allocation35_spill] sm:$0xff] }
 0xb4a   :  { %12448 = vmatprep.subr.bf16.mxu1 %v12357_v4  ;;  %12486 = vmatpush1.bf16.msra.mxu0 %v12370_v14  ;;  %v22619_v18 = vpop.permute.xlu1 %12891  ;;  %v23493_v14 = vld [vmem:[#allocation29_spill] sm:$0xff] }
 0xb4b   :  { %12487 = vmatprep.subr.bf16.mxu0 %v12365_v5  ;;  %12507 = vmatprep.mubr.bf16.mxu0 %v23471_v13  ;;  %v23494_v4 = vld [vmem:[#allocation41_spill] sm:$0xff] }
 0xb4c   :  { %12449 = vmatpush1.bf16.msra.mxu1 %v12356_v22  ;;  %v12572_v5 = vsel %vm910_vm5, %v23494_v4, %v23493_v14 }
 0xb4d   :  { %v22631_v28 = vpop.permute.xlu0 %13092  ;;  %12612 = vmatprep.subr.bf16.mxu1 %v12576_v24  ;;  %v12563_v24 = vsel %vm910_vm5, %v23485_v49, %v23492_v38  ;;  %v12579_v49 = vsel %vm910_vm5, %v23489_v35, %v22473_v56 }
 0xb4e   :  { %12488 = vmatpush1.bf16.msra.mxu0 %v12364_v59  ;;  %v22633_v6 = vpop.permute.xlu1 %13106 }
 0xb4f   :  { %14225 = vmatmul.mubr.msk.bf16.vlgmr.msra.gmra.mxu1 %vm2964_vm10, %v12317_v26  ;;  %12489 = vmatprep.subr.bf16.mxu0 %v23484_v11  ;;  %v23495_v11 = vld [vmem:[#allocation51_spill] sm:$0xff] }
 0xb50   :  { %12613 = vmatpush1.bf16.msra.mxu1 %v12575_v45  ;;  %12634 = vmatprep.mubr.bf16.mxu1 %v23471_v13  ;;  %v23496_v45 = vld [vmem:[#allocation36_spill] sm:$0xff] }
 0xb51   :  { %v22647_v31 = vpop.permute.xlu0 %13090  ;;  %12614 = vmatprep.subr.bf16.mxu1 %v12570_v2  ;;  %v12566_v0 = vsel %vm910_vm5, %v23496_v45, %v23495_v11 }
 0xb52   :  { %12490 = vmatpush1.bf16.msra.mxu0 %v12358_v48  ;;  %v22652_v60 = vpop.permute.xlu1 %12879  ;;  %v23497_v48 = vld [vmem:[#allocation43_spill] sm:$0xff] }
 0xb53   :  { %12653 = vmatprep.subr.bf16.mxu0 %v12578_v15  ;;  %v12574_v15 = vsel %vm910_vm5, %v23498_v54, %v23497_v48  ;;  %v13126_v48 = vsel %vm1771_vm7, %v22610_v61, %v22564_v47  ;;  %v13120_v61 = vsel %vm1771_vm7, %v22647_v31, %v22631_v28 }
 0xb54   :  { %12615 = vmatpush1.bf16.msra.mxu1 %v12569_v42  ;;  %v12565_v42 = vsel %vm910_vm5, %v23491_v19, %v23496_v45 }
 0xb55   :  { %v22666_v53 = vpop.permute.xlu0 %13082  ;;  %14226 = vmatmul.mubr.msk.bf16.vlgmr.msra.gmra.mxu0 %vm2964_vm10, %v12317_v26  ;;  %12616 = vmatprep.subr.bf16.mxu1 %v12564_v52  ;;  %v12571_v26 = vsel %vm910_vm5, %v23486_v1, %v23494_v4  ;;  %v23500_v52 = vld [vmem:[#allocation16_spill] sm:$0xff]  ;;  %v23502_v4 = vld [vmem:[#allocation42_spill] sm:$0xff] }
 0xb56   :  { %12654 = vmatpush1.bf16.msra.mxu0 %v12577_v29  ;;  %v22672_v22 = vpop.permute.xlu1 %13094  ;;  %12675 = vmatprep.mubr.bf16.mxu0 %v23471_v13  ;;  %v23501_v29 = vld [vmem:[#allocation28_spill] sm:$0xff] }
 0xb57   :  { %12655 = vmatprep.subr.bf16.mxu0 %v12572_v5  ;;  %v12567_v5 = vsel %vm910_vm5, %v23495_v11, %v23502_v4  ;;  %v23507_v4 = vld [vmem:[#allocation10_spill] sm:$0xff] }
 0xb58   :  { %12617 = vmatpush1.bf16.msra.mxu1 %v12563_v24 }
 0xb59   :  { %v12562_v59 = vpop.permute.xlu0 %12561 }
 0xb5a   :  { %12656 = vmatpush1.bf16.msra.mxu0 %v12571_v26  ;;  %v12580_v2 = vsel %vm910_vm5, %v22473_v56, %v12562_v59  ;;  %v12573_v56 = vsel %vm910_vm5, %v23493_v14, %v23498_v54  ;;  %v12914_v59 = vsel %vm1477_vm6, %v22553_v41, %v22516_v33 }
 0xb5b   :  { %14228 = vmatmul.mubr.msk.bf16.vlgmr.msra.gmra.mxu1 %vm2964_vm10, %v12526_v37  ;;  %12657 = vmatprep.subr.bf16.mxu0 %v12566_v0  ;;  %v22687_v34 = vpop.permute.xlu1 %13080  ;;  %v12908_v0 = vsel %vm1477_vm6, %v22533_v44, %v22596_v27  ;;  %v13127_v44 = vsel %vm1771_vm7, %v22564_v47, %v22633_v6  ;;  %v12909_v47 = vsel %vm1477_vm6, %v22596_v27, %v22652_v60 }
 0xb5c   :  { %12694 = vmatprep.subr.bf16.mxu1 %v12580_v2  ;;  %12716 = vmatprep.mubr.bf16.mxu1 %v23471_v13  ;;  %v23506_v2 = vld [vmem:[#allocation9_spill] sm:$0xff]  ;;  %v13115_v27 = vsel %vm1771_vm7, %v22687_v34, %v22666_v53 }
 0xb5d   :  { %12695 = vmatpush1.bf16.msra.mxu1 %v12579_v49  ;;  %v22693_v1 = vpop.permute.xlu0 %13110 }
 0xb5e   :  { %12696 = vmatprep.subr.bf16.mxu1 %v12574_v15  ;;  %12658 = vmatpush1.bf16.msra.mxu0 %v12565_v42  ;;  %v13121_v15 = vsel %vm1771_vm7, %v22631_v28, %v22672_v22 }
 0xb5f   :  { %12745 = vmatprep.subr.bf16.mxu0 %v23499_v20  ;;  %v22702_v38 = vpop.permute.xlu1 %13108  ;;  %v14375_v20 = vld [vmem:[%s23013_s10 + $0x4] ss:$0 sps:$4 sm:$0x44]  }
 0xb60   :  { %v13129_v42 = vsel %vm1771_vm7, %v22702_v38, %v22693_v1  ;;  %v13128_v28 = vsel %vm1771_vm7, %v22633_v6, %v22702_v38 }
 0xb61   :  { %12697 = vmatpush1.bf16.msra.mxu1 %v12573_v56  ;;  %v22707_v35 = vpop.permute.xlu0 %13096  ;;  %14229 = vmatmul.mubr.msk.bf16.vlgmr.msra.gmra.mxu0 %vm2964_vm10, %v12526_v37 }
 0xb62   :  { %12698 = vmatprep.subr.bf16.mxu1 %v23500_v52  ;;  %12746 = vmatpush1.bf16.msra.mxu0 %v23501_v29  ;;  %v13077_v29 = vrot.slane %v14375_v20, 2 }
 0xb63   :  { %12747 = vmatprep.subr.bf16.mxu0 %v21912_v39  ;;  %v22713_v19 = vpop.permute.xlu1 %13078  ;;  %12767 = vmatprep.mubr.bf16.mxu0 %v23471_v13 }
 0xb64   :  { %v13114_v31 = vsel %vm1771_vm7, %v22713_v19, %v22687_v34  ;;  %v13122_v34 = vsel %vm1771_vm7, %v22672_v22, %v22707_v35 }
 0xb65   :  { %12699 = vmatpush1.bf16.msra.mxu1 %v12567_v5  ;;  %v22719_v14 = vpop.permute.xlu0 %13086 }
 0xb66   :  { %12786 = vmatprep.subr.bf16.mxu1 %v22025_v12  ;;  %12748 = vmatpush1.bf16.msra.mxu0 %v21905_v58  ;;  %v12731_v58 = vld [vmem:[%s23013_s10 + $0x4] sm:$0x1] }
 0xb67   :  { %12749 = vmatprep.subr.bf16.mxu0 %v21884_v30  ;;  %v22724_v24 = vpop.permute.xlu1 %13098 }
 0xb68   :  { %14230 = vmatmul.mubr.msk.bf16.vlgmr.msra.gmra.mxu1 %vm2964_vm10, %v12526_v37  ;;  %v13123_v52 = vsel %vm1771_vm7, %v22707_v35, %v22724_v24 }
 0xb69   :  { %12787 = vmatpush1.bf16.msra.mxu1 %v22019_v10  ;;  %v22728_v39 = vpop.permute.xlu0 %13088  ;;  %12808 = vmatprep.mubr.bf16.mxu1 %v23471_v13  ;;  %v23503_v10 = vld [vmem:[#allocation32_spill] sm:$0xff] }
 0xb6a   :  { %12788 = vmatprep.subr.bf16.mxu1 %v21987_v8  ;;  %12750 = vmatpush1.bf16.msra.mxu0 %v21874_v50  ;;  %v12919_v37 = vsel %vm1477_vm6, %v23503_v10, %v22454_v23 }
 0xb6b   :  { %12827 = vmatprep.subr.bf16.mxu0 %v22033_v57  ;;  %v22737_v30 = vpop.permute.xlu1 %13084 }
 0xb6d   :  { %12789 = vmatpush1.bf16.msra.mxu1 %v21974_v43  ;;  %v22740_v12 = vpop.permute.xlu0 %13315  ;;  %14231 = vmatmul.mubr.msk.bf16.vlgmr.msra.gmra.mxu0 %vm2964_vm10, %v12731_v58  ;;  %v23504_v43 = vld [vmem:[#allocation52_spill] sm:$0xff] }
 0xb6e   :  { %12790 = vmatprep.subr.bf16.mxu1 %v21945_v32  ;;  %12828 = vmatpush1.bf16.msra.mxu0 %v22031_v16  ;;  %v12918_v57 = vsel %vm1477_vm6, %v23504_v43, %v23503_v10 }
 0xb6f   :  { %12829 = vmatprep.subr.bf16.mxu0 %v22023_v55  ;;  %v22746_v50 = vpop.permute.xlu1 %13100  ;;  %12849 = vmatprep.mubr.bf16.mxu0 %v23471_v13  ;;  %v23505_v55 = vld [vmem:[#allocation40_spill] sm:$0xff] }
 0xb70   :  { %v13125_v10 = vsel %vm1771_vm7, %v22746_v50, %v23507_v4  ;;  %v13124_v35 = vsel %vm1771_vm7, %v22724_v24, %v22746_v50  ;;  %v13118_v24 = vsel %vm1771_vm7, %v22719_v14, %v22728_v39 }
 0xb71   :  { %12791 = vmatpush1.bf16.msra.mxu1 %v21932_v63  ;;  %v22750_v8 = vpop.permute.xlu0 %13301  ;;  %v12920_v63 = vsel %vm1477_vm6, %v22454_v23, %v22507_v25  ;;  %v12905_v23 = vsel %vm1477_vm6, %v22574_v3, %v22526_v40  ;;  %v12915_v3 = vsel %vm1477_vm6, %v22516_v33, %v22619_v18 }
 0xb72   :  { %12954 = vmatprep.subr.bf16.mxu1 %v12918_v57  ;;  %12830 = vmatpush1.bf16.msra.mxu0 %v22010_v36  ;;  %v14374_v36 = vld [vmem:[%s23013_s10 + $0x4] ss:$0 sps:$4 sm:$0x22]  }
 0xb73   :  { %12831 = vmatprep.subr.bf16.mxu0 %v21977_v21  ;;  %v22757_v32 = vpop.permute.xlu1 %13313 }
 0xb74   :  { %14232 = vmatmul.mubr.msk.bf16.vlgmr.msra.gmra.mxu1 %vm2964_vm10, %v12731_v58  ;;  %v13336_v57 = vsel %vm2065_vm8, %v22757_v32, %v22740_v12 }
 0xb75   :  { %12955 = vmatpush1.bf16.msra.mxu1 %v23505_v55  ;;  %v22761_v16 = vpop.permute.xlu0 %13317  ;;  %12976 = vmatprep.mubr.bf16.mxu1 %v23471_v13  ;;  %v13119_v55 = vsel %vm1771_vm7, %v22728_v39, %v23507_v4  ;;  %v14376_v39 = vld [vmem:[%s23013_s10 + $0x4] ss:$0 sps:$4 sm:$0x88]  }
 0xb76   :  { %12956 = vmatprep.subr.bf16.mxu1 %v22496_v7  ;;  %12832 = vmatpush1.bf16.msra.mxu0 %v21966_v46  ;;  %v12906_v46 = vsel %vm1477_vm6, %v22526_v40, %v22482_v62  ;;  %v12913_v62 = vsel %vm1477_vm6, %v22489_v17, %v22553_v41 }
 0xb77   :  { %12995 = vmatprep.subr.bf16.mxu0 %v12920_v63  ;;  %v22769_v21 = vpop.permute.xlu1 %13311 }
 0xb79   :  { %12957 = vmatpush1.bf16.msra.mxu1 %v22471_v9  ;;  %v22778_v7 = vpop.permute.xlu0 %13299  ;;  %14233 = vmatmul.mubr.msk.bf16.vlgmr.msra.gmra.mxu0 %vm2964_vm10, %v12731_v58  ;;  %v12868_v9 = vrot.slane %v14374_v36, 1  ;;  %v13117_v58 = vsel %vm1771_vm7, %v22737_v30, %v22719_v14  ;;  %v13337_v36 = vsel %vm2065_vm8, %v22740_v12, %v22761_v16 }
 0xb7a   :  { %12958 = vmatprep.subr.bf16.mxu1 %v12906_v46  ;;  %12996 = vmatpush1.bf16.msra.mxu0 %v12919_v37  ;;  %v13329_v14 = vsel %vm2065_vm8, %v22778_v7, %v22750_v8 }
 0xb7b   :  { %12997 = vmatprep.subr.bf16.mxu0 %v12914_v59  ;;  %v22787_v26 = vpop.permute.xlu1 %13303  ;;  %13017 = vmatprep.mubr.bf16.mxu0 %v23471_v13 }
 0xb7c   :  { %v13330_v50 = vsel %vm2065_vm8, %v22750_v8, %v22787_v26 }
 0xb7d   :  { %12959 = vmatpush1.bf16.msra.mxu1 %v12905_v23  ;;  %v12904_v11 = vpop.permute.xlu0 %12903 }
 0xb7e   :  { %v12921_v45 = vsel %vm1477_vm6, %v22507_v25, %v12904_v11  ;;  %12998 = vmatpush1.bf16.msra.mxu0 %v12913_v62  ;;  %v12922_v49 = vsel %vm1477_vm6, %v12904_v11, %v23506_v2  ;;  %v12916_v25 = vsel %vm1477_vm6, %v22619_v18, %v23506_v2  ;;  %v23508_v11 = vld [vmem:[#allocation11_spill] sm:$0xff] }
 0xb7f   :  { %12999 = vmatprep.subr.bf16.mxu0 %v12908_v0  ;;  %13036 = vmatprep.subr.bf16.mxu1 %v12922_v49  ;;  %v22803_v40 = vpop.permute.xlu1 %13319 }
 0xb80   :  { %14235 = vmatmul.mubr.msk.bf16.vlgmr.msra.gmra.mxu1 %vm2964_vm10, %v12868_v9 }
 0xb81   :  { %13037 = vmatpush1.bf16.msra.mxu1 %v12921_v45  ;;  %v22806_v17 = vpop.permute.xlu0 %13291  ;;  %13058 = vmatprep.mubr.bf16.mxu1 %v23471_v13 }
 0xb82   :  { %13038 = vmatprep.subr.bf16.mxu1 %v12916_v25  ;;  %13000 = vmatpush1.bf16.msra.mxu0 %v22548_v51  ;;  %v12910_v51 = vsel %vm1477_vm6, %v22652_v60, %v23506_v2 }
 0xb83   :  { %13163 = vmatprep.subr.bf16.mxu0 %v13127_v44  ;;  %v22816_v41 = vpop.permute.xlu1 %13289 }
 0xb84   :  { %v13324_v46 = vsel %vm2065_vm8, %v22816_v41, %v22806_v17 }
 0xb85   :  { %13039 = vmatpush1.bf16.msra.mxu1 %v12915_v3  ;;  %v22824_v54 = vpop.permute.xlu0 %13307  ;;  %14236 = vmatmul.mubr.msk.bf16.vlgmr.msra.gmra.mxu0 %vm2964_vm10, %v12868_v9 }
 0xb86   :  { %13040 = vmatprep.subr.bf16.mxu1 %v12910_v51  ;;  %13164 = vmatpush1.bf16.msra.mxu0 %v13126_v48 }
 0xb87   :  { %13165 = vmatprep.subr.bf16.mxu0 %v13121_v15  ;;  %v22833_v33 = vpop.permute.xlu1 %13305  ;;  %13185 = vmatprep.mubr.bf16.mxu0 %v23471_v13 }
 0xb88   :  { %v13332_v8 = vsel %vm2065_vm8, %v22833_v33, %v22824_v54  ;;  %v13331_v59 = vsel %vm2065_vm8, %v22787_v26, %v22833_v33 }
 0xb89   :  { %13041 = vmatpush1.bf16.msra.mxu1 %v12909_v47  ;;  %v22842_v18 = vpop.permute.xlu0 %13293 }
 0xb8a   :  { %13204 = vmatprep.subr.bf16.mxu1 %v13129_v42  ;;  %13166 = vmatpush1.bf16.msra.mxu0 %v13120_v61  ;;  %v13325_v26 = vsel %vm2065_vm8, %v22806_v17, %v22842_v18 }
 0xb8b   :  { %13167 = vmatprep.subr.bf16.mxu0 %v13115_v27  ;;  %v13288_v60 = vpop.permute.xlu1 %13287 }
 0xb8c   :  { %14237 = vmatmul.mubr.msk.bf16.vlgmr.msra.gmra.mxu1 %vm2964_vm10, %v12868_v9  ;;  %v13323_v12 = vsel %vm2065_vm8, %v13288_v60, %v22816_v41 }
 0xb8d   :  { %13205 = vmatpush1.bf16.msra.mxu1 %v13128_v28  ;;  %v13113_v56 = vpop.permute.xlu0 %13112  ;;  %13226 = vmatprep.mubr.bf16.mxu1 %v23471_v13 }
 0xb8e   :  { %13206 = vmatprep.subr.bf16.mxu1 %v13123_v52  ;;  %13168 = vmatpush1.bf16.msra.mxu0 %v13114_v31  ;;  %v13131_v6 = vsel %vm1771_vm7, %v13113_v56, %v23507_v4  ;;  %v13130_v19 = vsel %vm1771_vm7, %v22693_v1, %v13113_v56  ;;  %v13116_v1 = vsel %vm1771_vm7, %v22666_v53, %v22737_v30  ;;  %v23509_v56 = vld [vmem:[#allocation12_spill] sm:$0xff] }
 0xb8f   :  { %13245 = vmatprep.subr.bf16.mxu0 %v13131_v6  ;;  %v22866_v38 = vpop.permute.xlu1 %13295  ;;  %v13335_v53 = vsel %vm2065_vm8, %v22769_v21, %v22757_v32  ;;  %v13338_v32 = vsel %vm2065_vm8, %v22761_v16, %v22803_v40  ;;  %v13286_v16 = vrot.slane %v14376_v39, 3 }
 0xb90   :  { %v13326_v62 = vsel %vm2065_vm8, %v22842_v18, %v22866_v38 }
 0xb91   :  { %13207 = vmatpush1.bf16.msra.mxu1 %v13122_v34  ;;  %v22873_v5 = vpop.permute.xlu0 %13518  ;;  %14239 = vmatmul.mubr.msk.bf16.vlgmr.msra.gmra.mxu0 %vm2964_vm10, %v13077_v29 }
 0xb92   :  { %13208 = vmatprep.subr.bf16.mxu1 %v13117_v58  ;;  %13246 = vmatpush1.bf16.msra.mxu0 %v13130_v19 }
 0xb93   :  { %13247 = vmatprep.subr.bf16.mxu0 %v13125_v10  ;;  %v13310_v22 = vpop.permute.xlu1 %13309  ;;  %13267 = vmatprep.mubr.bf16.mxu0 %v23471_v13 }
 0xb94   :  { %v13334_v49 = vsel %vm2065_vm8, %v13310_v22, %v23508_v11  ;;  %v13333_v44 = vsel %vm2065_vm8, %v22824_v54, %v13310_v22 }
 0xb95   :  { %13209 = vmatpush1.bf16.msra.mxu1 %v13116_v1  ;;  %v13517_v43 = vpop.permute.xlu0 %13516 }
 0xb96   :  { %13372 = vmatprep.subr.bf16.mxu1 %v13336_v57  ;;  %13248 = vmatpush1.bf16.msra.mxu0 %v13124_v35  ;;  %v13540_v17 = vsel %vm2359_vm9, %v13517_v43, %v22873_v5 }
 0xb97   :  { %13249 = vmatprep.subr.bf16.mxu0 %v13119_v55  ;;  %v22895_v63 = vpop.permute.xlu1 %13520 }
 0xb98   :  { %14240 = vmatmul.mubr.msk.bf16.vlgmr.msra.gmra.mxu1 %vm2964_vm10, %v13077_v29 }
 0xb99   :  { %13373 = vmatpush1.bf16.msra.mxu1 %v13335_v53  ;;  %v13507_v30 = vpop.permute.xlu0 %13506  ;;  %13394 = vmatprep.mubr.bf16.mxu1 %v23471_v13 }
 0xb9a   :  { %13374 = vmatprep.subr.bf16.mxu1 %v13330_v50  ;;  %13250 = vmatpush1.bf16.msra.mxu0 %v13118_v24 }
 0xb9b   :  { %13413 = vmatprep.subr.bf16.mxu0 %v13338_v32  ;;  %v13298_v21 = vpop.permute.xlu1 %13297 }
 0xb9c   :  { %v13328_v3 = vsel %vm2065_vm8, %v13298_v21, %v23508_v11  ;;  %v13327_v54 = vsel %vm2065_vm8, %v22866_v38, %v13298_v21 }
 0xb9d   :  { %13375 = vmatpush1.bf16.msra.mxu1 %v13329_v14  ;;  %v13505_v37 = vpop.permute.xlu0 %13504  ;;  %14241 = vmatmul.mubr.msk.bf16.vlgmr.msra.gmra.mxu0 %vm2964_vm10, %v13077_v29  ;;  %v13491_v29 = vld [vmem:[%s23013_s10 + $0x8] sm:$0x1]  ;;  %s14409_s10 = smov [#allocation2]  }
 0xb9e   :  { %13376 = vmatprep.subr.bf16.mxu1 %v13324_v46  ;;  %13414 = vmatpush1.bf16.msra.mxu0 %v13337_v36  ;;  %v13534_v15 = vsel %vm2359_vm9, %v13505_v37, %v13507_v30  ;;  %s13749_s29 = sshll.u32 %s14409_s10, 4  ;;  %s13750_s29 = int_to_ptr.vmem [resolvable:$true] %s13749_s29 }
 0xb9f   :  { %13415 = vmatprep.subr.bf16.mxu0 %v13332_v8  ;;  %v22927_v7 = vpop.permute.xlu1 %13508  ;;  %13435 = vmatprep.mubr.bf16.mxu0 %v23471_v13  ;;  %s14377_s30 = scalar_lea.vmem %s13750_s29, 192  ;;  %p14382_p1 = scmp.lt.s32.totalorder %s13750_s29, %s13750_s29 }
 0xba0   :  { %v13535_v48 = vsel %vm2359_vm9, %v13507_v30, %v22927_v7  ;;  %p14378_p0 = scmp.ne.s32.totalorder %s13750_s29, %s14377_s30  ;;  %p14383_p2 = scmp.lt.s32.totalorder %s14377_s30, %s14377_s30 }
 0xba1   :  { %13377 = vmatpush1.bf16.msra.mxu1 %v13323_v12  ;;  %v13322_v23 = vpop.permute.xlu0 %13321 }
 0xba2   :  { %v13339_v9 = vsel %vm2065_vm8, %v22803_v40, %v13322_v23  ;;  %13416 = vmatpush1.bf16.msra.mxu0 %v13331_v59  ;;  %v13340_v45 = vsel %vm2065_vm8, %v13322_v23, %v23508_v11  ;;  %v13541_v40 = vsel %vm2359_vm9, %v22873_v5, %v22895_v63  ;;  %p14384_p3 = por %p14383_p2, %p14382_p1 }
 0xba3   :  { %13417 = vmatprep.subr.bf16.mxu0 %v13326_v62  ;;  %13454 = vmatprep.subr.bf16.mxu1 %v13340_v45  ;;  %v13495_v0 = vpop.permute.xlu1 %13494 }
 0xba4   :  { %14243 = vmatmul.mubr.msk.bf16.vlgmr.msra.gmra.mxu1 %vm2964_vm10, %v13286_v16  ;;  %p14385_p4 = pnand %p14384_p3, %p14378_p0 }
 0xba5   :  { %13455 = vmatpush1.bf16.msra.mxu1 %v13339_v9  ;;  %v13497_v2 = vpop.permute.xlu0 %13496  ;;  %13476 = vmatprep.mubr.bf16.mxu1 %v23471_v13 }
 0xba6   :  { %13456 = vmatprep.subr.bf16.mxu1 %v13334_v49  ;;  %13418 = vmatpush1.bf16.msra.mxu0 %v13325_v26  ;;  %v13529_v61 = vsel %vm2359_vm9, %v13495_v0, %v13497_v2 }
 0xba7   :  { %13577 = vmatprep.subr.bf16.mxu0 %v13541_v40  ;;  %v13523_v25 = vpop.permute.xlu1 %13522 }
 0xba8   :  { %v13542_v20 = vsel %vm2359_vm9, %v22895_v63, %v13523_v25 }
 0xba9   :  { %13457 = vmatpush1.bf16.msra.mxu1 %v13333_v44  ;;  %v13525_v41 = vpop.permute.xlu0 %13524  ;;  %14244 = vmatmul.mubr.msk.bf16.vlgmr.msra.gmra.mxu0 %vm2964_vm10, %v13286_v16 }
 0xbaa   :  { %13458 = vmatprep.subr.bf16.mxu1 %v13328_v3  ;;  %13578 = vmatpush1.bf16.msra.mxu0 %v13540_v17  ;;  %v13543_v47 = vsel %vm2359_vm9, %v13523_v25, %v13525_v41 }
 0xbab   :  { %13579 = vmatprep.subr.bf16.mxu0 %v13535_v48  ;;  %v13493_v51 = vpop.permute.xlu1 %13492  ;;  %13599 = vmatprep.mubr.bf16.mxu0 %v23471_v13 }
 0xbac   :  { %v13528_v60 = vsel %vm2359_vm9, %v13493_v51, %v13495_v0 }
 0xbad   :  { %13459 = vmatpush1.bf16.msra.mxu1 %v13327_v54  ;;  %v13511_v33 = vpop.permute.xlu0 %13510 }
 0xbae   :  { %13618 = vmatprep.subr.bf16.mxu1 %v13543_v47  ;;  %13580 = vmatpush1.bf16.msra.mxu0 %v13534_v15  ;;  %v13536_v38 = vsel %vm2359_vm9, %v22927_v7, %v13511_v33 }
 0xbaf   :  { %13581 = vmatprep.subr.bf16.mxu0 %v13529_v61  ;;  %v13513_v18 = vpop.permute.xlu1 %13512  ;;  %v12026_v42 = vpop.f32.mrf.mxu0 }
 0xbb0   :  { %14245 = vmatmul.mubr.msk.bf16.vlgmr.msra.gmra.mxu1 %vm2964_vm10, %v13286_v16  ;;  %v13537_v27 = vsel %vm2359_vm9, %v13511_v33, %v13513_v18 }
 0xbb1   :  { %13619 = vmatpush1.bf16.msra.mxu1 %v13542_v20  ;;  %v13527_v28 = vpop.permute.xlu0 %13526  ;;  %13640 = vmatprep.mubr.bf16.mxu1 %v23471_v13  ;;  %v12028_v31 = vpop.f32.mrf.mxu0 }
 0xbb2   :  { %13620 = vmatprep.subr.bf16.mxu1 %v13537_v27  ;;  %13582 = vmatpush1.bf16.msra.mxu0 %v13528_v60  ;;  %v13545_v52 = vsel %vm2359_vm9, %v13527_v28, %v23509_v56  ;;  %v13544_v19 = vsel %vm2359_vm9, %v13525_v41, %v13527_v28 }
 0xbb3   :  { %13659 = vmatprep.subr.bf16.mxu0 %v13545_v52  ;;  %v13499_v4 = vpop.permute.xlu1 %13498  ;;  %v12067_v6 = vpop.f32.mrf.mxu1 }
 0xbb4   :  { %v12030_v34 = vpop.f32.mrf.mxu0  ;;  %v13530_v43 = vsel %vm2359_vm9, %v13497_v2, %v13499_v4 }
 0xbb5   :  { %13621 = vmatpush1.bf16.msra.mxu1 %v13536_v38  ;;  %v13501_v5 = vpop.permute.xlu0 %13500  ;;  %14246 = vmatmul.mubr.msk.bf16.vlgmr.msra.gmra.mxu0 %vm2964_vm10, %v13491_v29  ;;  %v12069_v58 = vpop.f32.mrf.mxu1 }
 0xbb6   :  { %13660 = vmatpush1.bf16.msra.mxu0 %v13544_v19  ;;  %v13531_v10 = vsel %vm2359_vm9, %v13499_v4, %v13501_v5  ;;  %13681 = vmatprep.mubr.bf16.mxu0 %v23471_v13  ;;  %v12031_v22 = vpop.f32.mrf.mxu0 }
 0xbb7   :  { %13622 = vmatprep.subr.bf16.mxu1 %v13531_v10  ;;  %v13515_v1 = vpop.permute.xlu1 %13514  ;;  %v12071_v35 = vpop.f32.mrf.mxu1 }
 0xbb8   :  { %v13538_v57 = vsel %vm2359_vm9, %v13513_v18, %v13515_v1  ;;  %v13539_v55 = vsel %vm2359_vm9, %v13515_v1, %v23509_v56 }
 0xbb9   :  { %13623 = vmatpush1.bf16.msra.mxu1 %v13530_v43  ;;  %v13503_v63 = vpop.permute.xlu0 %13502  ;;  %13661 = vmatprep.subr.bf16.mxu0 %v13539_v55  ;;  %v12072_v53 = vpop.f32.mrf.mxu1 }
 0xbba   :  { %13662 = vmatpush1.bf16.msra.mxu0 %v13538_v57  ;;  %v13533_v24 = vsel %vm2359_vm9, %v13503_v63, %v23509_v56  ;;  %v13532_v13 = vsel %vm2359_vm9, %v13501_v5, %v13503_v63 }
 0xbbb   :  { %13663 = vmatprep.subr.bf16.mxu0 %v13533_v24 }
 0xbbc   :  { %14247 = vmatmul.mubr.msk.bf16.vlgmr.msra.gmra.mxu1 %vm2964_vm10, %v13491_v29 }
 0xbbe   :  { %13664 = vmatpush1.bf16.msra.mxu0 %v13532_v13 }
 0xbbf   :  { %v12224_v30 = vpop.f32.mrf.mxu1 }
 0xbc0   :  { %v12225_v50 = vadd.f32 %v12224_v30, %v12026_v42 }
 0xbc1   :  { %14248 = vmatmul.mubr.msk.bf16.vlgmr.msra.gmra.mxu0 %vm2964_vm10, %v13491_v29  ;;  %v12226_v32 = vpop.f32.mrf.mxu1 }
 0xbc2   :  { %v12227_v21 = vadd.f32 %v12226_v32, %v12028_v31 }
 0xbc3   :  { %v12228_v14 = vpop.f32.mrf.mxu1 }
 0xbc5   :  { %v12229_v39 = vpop.f32.mrf.mxu1 }
 0xbf0   :  { %v12108_v36 = vpop.f32.mrf.mxu0 }
 0xbf2   :  { %v12110_v37 = vpop.f32.mrf.mxu0 }
 0xbf4   :  { %v12112_v46 = vpop.f32.mrf.mxu0 }
 0xbf6   :  { %v12113_v8 = vpop.f32.mrf.mxu0 }
 0xbfd   :  { %v12265_v7 = vpop.f32.mrf.mxu0 }
 0xbfe   :  { %v12266_v44 = vadd.f32 %v12265_v7, %v12067_v6 }
 0xbff   :  { %v12267_v12 = vpop.f32.mrf.mxu0 }
 0xc00   :  { %v12268_v3 = vadd.f32 %v12267_v12, %v12069_v58 }
 0xc01   :  { %v12269_v16 = vpop.f32.mrf.mxu0 }
 0xc03   :  { %v12306_v59 = vpop.f32.mrf.mxu1  ;;  %v12270_v23 = vpop.f32.mrf.mxu0 }
 0xc04   :  { %v12307_v9 = vadd.f32 %v12306_v59, %v12108_v36 }
 0xc05   :  { %v12308_v62 = vpop.f32.mrf.mxu1 }
 0xc06   :  { %v12309_v11 = vadd.f32 %v12308_v62, %v12110_v37 }
 0xc07   :  { %v12310_v45 = vpop.f32.mrf.mxu1 }
 0xc09   :  { %v12427_v0 = vpop.f32.mrf.mxu0  ;;  %v12311_v26 = vpop.f32.mrf.mxu1 }
 0xc0a   :  { %v12516_v2 = vadd.f32 %v12427_v0, %v12225_v50 }
 0xc0b   :  { %v12429_v49 = vpop.f32.mrf.mxu0 }
 0xc0c   :  { %v12517_v40 = vadd.f32 %v12429_v49, %v12227_v21 }
 0xc0d   :  { %v12431_v25 = vpop.f32.mrf.mxu0 }
 0xc0f   :  { %v12468_v17 = vpop.f32.mrf.mxu1  ;;  %v12432_v41 = vpop.f32.mrf.mxu0 }
 0xc10   :  { %v12518_v48 = vadd.f32 %v12468_v17, %v12266_v44 }
 0xc11   :  { %v12470_v51 = vpop.f32.mrf.mxu1 }
 0xc12   :  { %v12519_v54 = vadd.f32 %v12470_v51, %v12268_v3 }
 0xc13   :  { %v12472_v15 = vpop.f32.mrf.mxu1 }
 0xc15   :  { %v12509_v33 = vpop.f32.mrf.mxu0  ;;  %v12473_v47 = vpop.f32.mrf.mxu1 }
 0xc16   :  { %v12520_v61 = vadd.f32 %v12509_v33, %v12307_v9 }
 0xc17   :  { %v12511_v18 = vpop.f32.mrf.mxu0 }
 0xc18   :  { %v12521_v42 = vadd.f32 %v12511_v18, %v12309_v11 }
 0xc19   :  { %v12513_v20 = vpop.f32.mrf.mxu0 }
 0xc1b   :  { %v12636_v27 = vpop.f32.mrf.mxu1  ;;  %v12514_v60 = vpop.f32.mrf.mxu0 }
 0xc1c   :  { %v12725_v28 = vadd.f32 %v12636_v27, %v12516_v2 }
 0xc1d   :  { %v12638_v31 = vpop.f32.mrf.mxu1 }
 0xc1e   :  { %v12726_v56 = vadd.f32 %v12638_v31, %v12517_v40 }
 0xc1f   :  { %v12640_v52 = vpop.f32.mrf.mxu1 }
 0xc21   :  { %v12677_v29 = vpop.f32.mrf.mxu0  ;;  %v12641_v4 = vpop.f32.mrf.mxu1 }
 0xc22   :  { %v12727_v6 = vadd.f32 %v12677_v29, %v12518_v48 }
 0xc23   :  { %v12679_v38 = vpop.f32.mrf.mxu0 }
 0xc24   :  { %v12728_v34 = vadd.f32 %v12679_v38, %v12519_v54 }
 0xc25   :  { %v12681_v19 = vpop.f32.mrf.mxu0 }
 0xc27   :  { %v12682_v5 = vpop.f32.mrf.mxu0 }
 0xc28   :  { %v12718_v58 = vpop.f32.mrf.mxu1 }
 0xc29   :  { %v12729_v10 = vadd.f32 %v12718_v58, %v12520_v61 }
 0xc2a   :  { %v12720_v22 = vpop.f32.mrf.mxu1 }
 0xc2b   :  { %v12730_v1 = vadd.f32 %v12720_v22, %v12521_v42 }
 0xc2c   :  { %v12722_v35 = vpop.f32.mrf.mxu1 }
 0xc2d   :  { %v12769_v43 = vpop.f32.mrf.mxu0 }
 0xc2e   :  { %v12858_v57 = vadd.f32 %v12769_v43, %v12725_v28  ;;  %v12723_v55 = vpop.f32.mrf.mxu1 }
 0xc2f   :  { %v12771_v63 = vpop.f32.mrf.mxu0 }
 0xc30   :  { %v12859_v53 = vadd.f32 %v12771_v63, %v12726_v56  ;;  %v13700_v63 = vpop.permute.xlu1 %13699 }
 0xc31   :  { %v12773_v24 = vpop.f32.mrf.mxu0 }
 0xc33   :  { %v12774_v13 = vpop.f32.mrf.mxu0 }
 0xc34   :  { %v12810_v30 = vpop.f32.mrf.mxu1 }
 0xc35   :  { %v12860_v50 = vadd.f32 %v12810_v30, %v12727_v6 }
 0xc36   :  { %v12812_v32 = vpop.f32.mrf.mxu1 }
 0xc37   :  { %v12861_v21 = vadd.f32 %v12812_v32, %v12728_v34  ;;  %v14408_v32 = vmov 1983009808  }
 0xc38   :  { %v12814_v14 = vpop.f32.mrf.mxu1 }
 0xc39   :  { %v12851_v39 = vpop.f32.mrf.mxu0 }
 0xc3a   :  { %v22993_v36 = vadd.f32 %v12851_v39, %v12729_v10  ;;  %v12815_v37 = vpop.f32.mrf.mxu1 }
 0xc3b   :  { %v12853_v46 = vpop.f32.mrf.mxu0 }
 0xc3c   :  { %v22995_v8 = vadd.f32 %v12853_v46, %v12730_v1 }
 0xc3d   :  { %v12855_v7 = vpop.f32.mrf.mxu0 }
 0xc3f   :  { %v12856_v12 = vpop.f32.mrf.mxu0 }
 0xc40   :  { %v12978_v16 = vpop.f32.mrf.mxu1 }
 0xc41   :  { %v13067_v52 = vadd.f32 %v12978_v16, %v12858_v57  ;;  %v13717_v57 = vunpack.c.l.s4 %v14408_v32 }
 0xc42   :  { %v12980_v59 = vpop.f32.mrf.mxu1 }
 0xc43   :  { %v13068_v4 = vadd.f32 %v12980_v59, %v12859_v53 }
 0xc44   :  { %v12982_v23 = vpop.f32.mrf.mxu1 }
 0xc45   :  { %v13019_v9 = vpop.f32.mrf.mxu0 }
 0xc46   :  { %v12983_v62 = vpop.f32.mrf.mxu1  ;;  %v13069_v35 = vadd.f32 %v13019_v9, %v12860_v50  ;;  %v13718_v50 = vunpack.c.0.s8 %v13717_v57 }
 0xc47   :  { %v13021_v11 = vpop.f32.mrf.mxu0 }
 0xc48   :  { %v13070_v24 = vadd.f32 %v13021_v11, %v12861_v21 }
 0xc49   :  { %v13023_v45 = vpop.f32.mrf.mxu0 }
 0xc4b   :  { %v13024_v0 = vpop.f32.mrf.mxu0 }
 0xc4c   :  { %v13060_v26 = vpop.f32.mrf.mxu1 }
 0xc4d   :  { %v13071_v7 = vadd.f32 %v13060_v26, %v22993_v36 }
 0xc4e   :  { %v13062_v2 = vpop.f32.mrf.mxu1 }
 0xc4f   :  { %v13072_v9 = vadd.f32 %v13062_v2, %v22995_v8 }
 0xc50   :  { %v13064_v49 = vpop.f32.mrf.mxu1 }
 0xc51   :  { %v13187_v40 = vpop.f32.mrf.mxu0 }
 0xc52   :  { %v13065_v25 = vpop.f32.mrf.mxu1  ;;  %v13276_v6 = vadd.f32 %v13187_v40, %v13067_v52 }
 0xc53   :  { %v13189_v44 = vpop.f32.mrf.mxu0 }
 0xc54   :  { %v13277_v34 = vadd.f32 %v13189_v44, %v13068_v4 }
 0xc55   :  { %v13191_v17 = vpop.f32.mrf.mxu0 }
 0xc56   :  { %v23510_v17 = vld [vmem:[#allocation49_spill] sm:$0xff] }
 0xc57   :  { %v13192_v41 = vpop.f32.mrf.mxu0 }
 0xc58   :  { %v13228_v3 = vpop.f32.mrf.mxu1  ;;  %v13721_v41 = vsub.s32 %v13718_v50, %v23510_v17 }
 0xc59   :  { %v13278_v13 = vadd.f32 %v13228_v3, %v13069_v35 }
 0xc5a   :  { %v13230_v48 = vpop.f32.mrf.mxu1 }
 0xc5b   :  { %v13279_v39 = vadd.f32 %v13230_v48, %v13070_v24 }
 0xc5c   :  { %v13232_v51 = vpop.f32.mrf.mxu1 }
 0xc5d   :  { %v13269_v54 = vpop.f32.mrf.mxu0 }
 0xc5e   :  { %v13233_v15 = vpop.f32.mrf.mxu1  ;;  %v13280_v62 = vadd.f32 %v13269_v54, %v13071_v7 }
 0xc5f   :  { %v13271_v33 = vpop.f32.mrf.mxu0 }
 0xc60   :  { %v13281_v45 = vadd.f32 %v13271_v33, %v13072_v9 }
 0xc61   :  { %v13273_v47 = vpop.f32.mrf.mxu0 }
 0xc63   :  { %v13274_v61 = vpop.f32.mrf.mxu0 }
 0xc64   :  { %v13396_v18 = vpop.f32.mrf.mxu1 }
 0xc65   :  { %v13485_v19 = vadd.f32 %v13396_v18, %v13276_v6 }
 0xc66   :  { %v13398_v42 = vpop.f32.mrf.mxu1 }
 0xc67   :  { %v13486_v10 = vadd.f32 %v13398_v42, %v13277_v34 }
 0xc68   :  { %v13400_v20 = vpop.f32.mrf.mxu1 }
 0xc69   :  { %v13437_v27 = vpop.f32.mrf.mxu0 }
 0xc6a   :  { %v13401_v60 = vpop.f32.mrf.mxu1  ;;  %v13487_v37 = vadd.f32 %v13437_v27, %v13278_v13 }
 0xc6b   :  { %v13439_v28 = vpop.f32.mrf.mxu0 }
 0xc6c   :  { %v13488_v59 = vadd.f32 %v13439_v28, %v13279_v39 }
 0xc6d   :  { %v13441_v31 = vpop.f32.mrf.mxu0 }
 0xc6f   :  { %v13442_v56 = vpop.f32.mrf.mxu0 }
 0xc70   :  { %v13478_v29 = vpop.f32.mrf.mxu1 }
 0xc71   :  { %v13489_v0 = vadd.f32 %v13478_v29, %v13280_v62 }
 0xc72   :  { %v13480_v38 = vpop.f32.mrf.mxu1 }
 0xc73   :  { %v13490_v3 = vadd.f32 %v13480_v38, %v13281_v45 }
 0xc74   :  { %v13482_v5 = vpop.f32.mrf.mxu1 }
 0xc75   :  { %v13601_v58 = vpop.f32.mrf.mxu0 }
 0xc76   :  { %v13690_v22 = vadd.f32 %v13601_v58, %v13485_v19  ;;  %v13483_v1 = vpop.f32.mrf.mxu1 }
 0xc77   :  { %v13603_v43 = vpop.f32.mrf.mxu0 }
 0xc78   :  { %v13691_v55 = vadd.f32 %v13603_v43, %v13486_v10  ;;  %v13702_v14 = vadd.f32 %v13700_v63, %v13690_v22 }
 0xc79   :  { %v13605_v30 = vpop.f32.mrf.mxu0 }
 0xc7a   :  { %v13703_v53 = vadd.f32 %v13700_v63, %v13691_v55 }
 0xc7b   :  { %v13606_v46 = vpop.f32.mrf.mxu0 }
 0xc7c   :  { %v13714_v12 = vcombine.low %v13702_v14, %v13703_v53  ;;  %v13642_v16 = vpop.f32.mrf.mxu1 }
 0xc7d   :  { %v13692_v23 = vadd.f32 %v13642_v16, %v13487_v37 }
 0xc7e   :  { %v13644_v21 = vpop.f32.mrf.mxu1  ;;  %v13722_v61 = vrot.slane %v13714_v12, %v13721_v41 }
 0xc7f   :  { %v13693_v11 = vadd.f32 %v13644_v21, %v13488_v59  ;;  %v13704_v40 = vadd.f32 %v13700_v63, %v13692_v23 }
 0xc80   :  { %v13646_v49 = vpop.f32.mrf.mxu1 }
 0xc81   :  { %v13705_v25 = vadd.f32 %v13700_v63, %v13693_v11  ;;  %v13683_v44 = vpop.f32.mrf.mxu0 }
 0xc82   :  { %v13694_v36 = vadd.f32 %v13683_v44, %v13489_v0  ;;  %v13647_v26 = vpop.f32.mrf.mxu1 }
 0xc83   :  { %v13715_v48 = vcombine.low %v13704_v40, %v13705_v25  ;;  %v13685_v51 = vpop.f32.mrf.mxu0 }
 0xc84   :  { %v13695_v15 = vadd.f32 %v13685_v51, %v13490_v3  ;;  %v13706_v2 = vadd.f32 %v13700_v63, %v13694_v36 }
 0xc85   :  { %v13687_v47 = vpop.f32.mrf.mxu0  ;;  %v13729_v8 = vrot.slane %v13715_v48, %v13721_v41 }
 0xc86   :  { %v13707_v54 = vadd.f32 %v13700_v63, %v13695_v15 }
 0xc87   :  { %v13688_v33 = vpop.f32.mrf.mxu0  ;;  %v13730_v18 = vcombine.low %v13722_v61, %v13729_v8 }
 0xc88   :  { %v13731_v42 = vcombine.low %v13706_v2, %v13707_v54 }
 0xc89   :  { %13741 = vst [vmem:[#allocation2] sm:$0xff] %v13730_v18 }
 0xc8a   :  { %14249 = vst.sshfl [vmem:[#allocation2 + $0x8] sm:$0x33 pattern:$0x76325410] %v13731_v42 }
 0xc8b   :  { %14388 = shalt.err (!%p14385_p4)
}
 0xc8c   :  { %13752 = dma.vmem_to_hbm [thread:$0]  %s13750_s29, 192, %s23015_s12, [#allocation3]  }
 0xc8d   :  { %14397 = dma.done.wait [#allocation3], 192  }
 0xc8e   :  { %14398 = vsyncadd [#allocation3], 4294967104 }
 0xc8f   :  { %13756 = vsyncpa [#allocation3], 1 }

</bundles_post_ra>
